<compile_context>
chip_gen: v6e
topology: v6e:2x2x1
jax: 0.10.0
libtpu: 0.0.40
codegen_flags: <defaults>
</compile_context>

<pallas_src>
import functools

import jax
import jax.numpy as jnp
from jax.experimental import pallas as pl
from jax.experimental.pallas import tpu as pltpu


# --------------------------------------------------------------------------------------
# Kernels
# --------------------------------------------------------------------------------------

def _pos_proj_kernel(pos_ref, w_ref, b_ref, qr_ref, kr_ref):
    # pos: [W*W, C]; w: [C, 2C] pre-transposed (q-half pre-scaled); b: [1, 2C]
    proj = (jnp.dot(pos_ref[...], w_ref[...], preferred_element_type=jnp.float32)
            + b_ref[...])
    C = w_ref.shape[0]
    qr_ref[...] = proj[:, :C]
    kr_ref[...] = proj[:, C:]


def _cross_attn_layer_kernel(
        fl_ref, fr_ref, qr_ref, kr_ref, qrf_ref, krf_ref, mask_ref,
        n1w_ref, n1b_ref, n2w_ref, n2b_ref,
        wq_ref, bq_ref, wkv_ref, bkv_ref, wo_ref, bo_ref,
        out_l_ref, out_r_ref, raw_ref, *, nhead):
    # grid = (B,): one batch element (h*bz index) per invocation; heads fused inside.
    fl = fl_ref[0]                      # [W, C]
    fr = fr_ref[0]                      # [W, C]
    Wl, C = fl.shape
    hd = C // nhead

    wq = wq_ref[...]; bq = bq_ref[...]          # [C, C], [1, C]   (scaling folded in)
    wkv = wkv_ref[...]; bkv = bkv_ref[...]      # [C, 2C], [1, 2C]
    wo = wo_ref[...]; bo = bo_ref[...]          # [C, C], [1, C]

    def layer_norm(x, w, b):
        mu = jnp.mean(x, axis=-1, keepdims=True)
        xc = x - mu
        var = jnp.mean(xc * xc, axis=-1, keepdims=True)
        return xc * jax.lax.rsqrt(var + 1e-5) * w + b

    def attention(q, k, v, q_r, k_r, mask):
        # q, k, v: [W, C] (q, q_r already scaled); q_r, k_r: [W, W, C].
        # Returns output-projected value [W, C] (bias included) and the raw
        # (post-mask, head-summed) attention logits [W, W].
        out = None
        raw = None
        for e in range(nhead):                       # static unroll (heads fused)
            sl = slice(e * hd, (e + 1) * hd)
            qe, ke, ve = q[:, sl], k[:, sl], v[:, sl]
            qre, kre = q_r[:, :, sl], k_r[:, :, sl]
            # feat-feat term on the MXU; rhs contracted on its last dim (no `.T`)
            a = jax.lax.dot_general(qe, ke, (((1,), (1,)), ((), ())),
                                    preferred_element_type=jnp.float32)
            # relative-position terms (broadcast-multiply + reduce; hd is tiny here)
            a = a + jnp.sum(qe[:, None, :] * kre, axis=-1)
            a = a + jnp.sum(ke[None, :, :] * qre, axis=-1)
            if mask is not None:
                a = a + mask
            raw = a if raw is None else raw + a
            # softmax (EUP reciprocal)
            m = jnp.max(a, axis=-1, keepdims=True)
            p = jnp.exp(a - m)
            denom = jnp.sum(p, axis=-1, keepdims=True)
            sm = p * pl.reciprocal(denom, approx=True)
            oe = jnp.dot(sm, ve, preferred_element_type=jnp.float32)        # [W, hd]
            # fold the output projection into the head loop (no concat needed)
            contrib = jnp.dot(oe, wo[sl, :], preferred_element_type=jnp.float32)
            out = contrib if out is None else out + contrib
        return out + bo, raw

    n1w = n1w_ref[...]; n1b = n1b_ref[...]
    l2 = layer_norm(fl, n1w, n1b)                 # norm1(feat_left)
    r2 = layer_norm(fr, n1w, n1b)                 # norm1(feat_right)

    # ---- cross attention 1: query=right, key/value=left, flipped pos, no mask ----
    q1 = jnp.dot(r2, wq, preferred_element_type=jnp.float32) + bq
    kv1 = jnp.dot(l2, wkv, preferred_element_type=jnp.float32) + bkv
    o1, _ = attention(q1, kv1[:, :C], kv1[:, C:], qrf_ref[...], krf_ref[...], None)
    fr_new = fr + o1

    # ---- cross attention 2: query=norm1(left), key/value=norm2(right), pos, mask ----
    r2b = layer_norm(fr_new, n2w_ref[...], n2b_ref[...])
    q2 = jnp.dot(l2, wq, preferred_element_type=jnp.float32) + bq
    kv2 = jnp.dot(r2b, wkv, preferred_element_type=jnp.float32) + bkv
    o2, raw = attention(q2, kv2[:, :C], kv2[:, C:], qr_ref[...], kr_ref[...],
                        mask_ref[...])
    fl_new = fl + o2

    out_l_ref[0] = fl_new
    out_r_ref[0] = fr_new
    raw_ref[0] = raw


# --------------------------------------------------------------------------------------
# Wrapper (layout plumbing + parameter pre-processing done once per call)
# --------------------------------------------------------------------------------------

def make_square_subsequent_mask(w):
    tri = jnp.triu(jnp.ones((w, w), jnp.float32), k=1)
    return jnp.where(tri == 1.0, -jnp.inf, 0.0)


def cross_attn_layer_forward(feat_left, feat_right, pos, params, *, nhead,
                             last_layer=False):
    """feat_left/right: [w, h*bz, C]; pos: [w, w, C] or None.
    Returns (feat_left, feat_right, raw_attn); raw_attn: [h*bz, w, w]."""
    Wseq, B, C = feat_left.shape
    hd = C // nhead
    scaling = float(hd) ** -0.5

    in_w, in_b = params["in_w"], params["in_b"]          # [3C, C], [3C]
    out_w, out_b = params["out_w"], params["out_b"]      # [C, C],  [C]

    # pre-transposed projection weights; 1/sqrt(hd) folded into the q projection
    wq_t = (in_w[:C] * scaling).T                        # [C, C]
    bq = (in_b[:C] * scaling).reshape(1, C)
    wkv_t = in_w[C:].T                                   # [C, 2C]  (k | v)
    bkv = in_b[C:].reshape(1, 2 * C)
    wo_t = out_w.T                                       # [C, C]
    bo = out_b.reshape(1, C)

    # relative-pos projection, computed once (shared by both attention calls)
    if pos is not None:
        wpos_t = jnp.concatenate([(in_w[:C] * scaling).T, in_w[C:2 * C].T], axis=1)
        bpos = jnp.concatenate([in_b[:C] * scaling, in_b[C:2 * C]]).reshape(1, 2 * C)
        q_r_flat, k_r_flat = pl.pallas_call(
            _pos_proj_kernel,
            out_shape=[jax.ShapeDtypeStruct((Wseq * Wseq, C), jnp.float32)] * 2,
        )(pos.reshape(Wseq * Wseq, C), wpos_t, bpos)
        q_r = q_r_flat.reshape(Wseq, Wseq, C)
        k_r = k_r_flat.reshape(Wseq, Wseq, C)
    else:
        q_r = jnp.zeros((Wseq, Wseq, C), jnp.float32)
        k_r = jnp.zeros((Wseq, Wseq, C), jnp.float32)
    # pos.transpose(0, 1) commutes with the per-channel linear projection
    q_r_f = jnp.transpose(q_r, (1, 0, 2))
    k_r_f = jnp.transpose(k_r, (1, 0, 2))

    mask = (make_square_subsequent_mask(Wseq) if last_layer
            else jnp.zeros((Wseq, Wseq), jnp.float32))

    n1w = params["norm1_w"].reshape(1, C); n1b = params["norm1_b"].reshape(1, C)
    n2w = params["norm2_w"].reshape(1, C); n2b = params["norm2_b"].reshape(1, C)

    # sequence-major [W, B, C] -> batch-major [B, W, C] so each grid step gets a
    # (1, W, C) block whose last two dims equal the full array dims.
    fl = jnp.transpose(feat_left, (1, 0, 2))
    fr = jnp.transpose(feat_right, (1, 0, 2))

    feat_blk = pl.BlockSpec((1, Wseq, C), lambda b: (b, 0, 0))
    pos_blk = pl.BlockSpec((Wseq, Wseq, C), lambda b: (0, 0, 0))

    def full2(shape):   # whole-array 2D input, fetched once (constant block index)
        return pl.BlockSpec(shape, lambda b: (0, 0))

    out_l, out_r, raw = pl.pallas_call(
        functools.partial(_cross_attn_layer_kernel, nhead=nhead),
        grid=(B,),
        in_specs=[
            feat_blk, feat_blk,                        # feat_left, feat_right
            pos_blk, pos_blk, pos_blk, pos_blk,        # q_r, k_r, q_r_f, k_r_f
            full2((Wseq, Wseq)),                       # mask
            full2((1, C)), full2((1, C)),              # norm1 w/b
            full2((1, C)), full2((1, C)),              # norm2 w/b
            full2((C, C)), full2((1, C)),              # wq_t, bq
            full2((C, 2 * C)), full2((1, 2 * C)),      # wkv_t, bkv
            full2((C, C)), full2((1, C)),              # wo_t, bo
        ],
        out_specs=[
            pl.BlockSpec((1, Wseq, C), lambda b: (b, 0, 0)),
            pl.BlockSpec((1, Wseq, C), lambda b: (b, 0, 0)),
            pl.BlockSpec((1, Wseq, Wseq), lambda b: (b, 0, 0)),
        ],
        out_shape=[
            jax.ShapeDtypeStruct((B, Wseq, C), jnp.float32),
            jax.ShapeDtypeStruct((B, Wseq, C), jnp.float32),
            jax.ShapeDtypeStruct((B, Wseq, Wseq), jnp.float32),
        ],
        compiler_params=pltpu.CompilerParams(
            dimension_semantics=("parallel",),         # megacore-shardable on v7x
            vmem_limit_bytes=32 * 1024 * 1024),
    )(fl, fr, q_r, k_r, q_r_f, k_r_f, mask,
      n1w, n1b, n2w, n2b, wq_t, bq, wkv_t, bkv, wo_t, bo)

    feat_left_out = jnp.transpose(out_l, (1, 0, 2))    # back to [W, B, C]
    feat_right_out = jnp.transpose(out_r, (1, 0, 2))
    return feat_left_out, feat_right_out, raw


# --------------------------------------------------------------------------------------
# Deterministic parameter init (shapes per module __init__)
# --------------------------------------------------------------------------------------

def init_params(key, C):
    k1, k2, k3, k4 = jax.random.split(key, 4)
    return dict(
        in_w=jax.random.normal(k1, (3 * C, C), jnp.float32) * 0.05,
        in_b=jax.random.normal(k2, (3 * C,), jnp.float32) * 0.05,
        out_w=jax.random.normal(k3, (C, C), jnp.float32) * 0.05,
        out_b=jax.random.normal(k4, (C,), jnp.float32) * 0.05,
        norm1_w=jnp.ones((C,), jnp.float32), norm1_b=jnp.zeros((C,), jnp.float32),
        norm2_w=jnp.ones((C,), jnp.float32), norm2_b=jnp.zeros((C,), jnp.float32),
    )


if __name__ == "__main__":
    key = jax.random.PRNGKey(0)
    C, nhead = 32, 4
    H, N, Wd = 8, 2, 16
    B = H * N                                      # h*bz

    k1, k2, k3, k4 = jax.random.split(key, 4)
    feat_left = jax.random.normal(k1, (Wd, B, C), jnp.float32)     # [w, h*bz, C]
    feat_right = jax.random.normal(k2, (Wd, B, C), jnp.float32)
    pos = jax.random.normal(k3, (Wd, Wd, C), jnp.float32)          # [w, w, C]
    params = init_params(k4, C)

    fwd = jax.jit(functools.partial(cross_attn_layer_forward,
                                    nhead=nhead, last_layer=True))
    fl_out, fr_out, raw_attn = fwd(feat_left, feat_right, pos, params)
    jax.block_until_ready((fl_out, fr_out, raw_attn))

    assert fl_out.shape == (Wd, B, C), fl_out.shape
    assert fr_out.shape == (Wd, B, C), fr_out.shape
    assert raw_attn.shape == (B, Wd, Wd), raw_attn.shape
    assert bool(jnp.all(jnp.isfinite(fl_out)))
    assert bool(jnp.all(jnp.isfinite(fr_out)))
    # last-layer mask puts -inf in the upper triangle of the raw logits (matches the
    # reference, which sums post-mask logits over heads); lower triangle is finite.
    assert bool(jnp.all(jnp.isfinite(jnp.tril(raw_attn[0]))))
    print("KERNEL_OK")
</pallas_src>

<mosaic_0001>
module attributes {stable_mosaic.version = 11 : i64} {
  func.func @_pos_proj_kernel(%arg0: memref<256x32xf32, #tpu.memory_space<vmem>>, %arg1: memref<32x64xf32, #tpu.memory_space<vmem>>, %arg2: memref<1x64xf32, #tpu.memory_space<vmem>>, %arg3: memref<256x32xf32, #tpu.memory_space<vmem>>, %arg4: memref<256x32xf32, #tpu.memory_space<vmem>>) attributes {dimension_semantics = [], scalar_prefetch = 0 : i64, scratch_operands = 0 : i64, tpu.core_type = #tpu.core_type<tc>} {
    %c0 = arith.constant 0 : index
    %c0_0 = arith.constant 0 : index
    %0 = vector.load %arg0[%c0, %c0_0] : memref<256x32xf32, #tpu.memory_space<vmem>>, vector<256x32xf32>
    %c0_1 = arith.constant 0 : index
    %c0_2 = arith.constant 0 : index
    %1 = vector.load %arg1[%c0_1, %c0_2] : memref<32x64xf32, #tpu.memory_space<vmem>>, vector<32x64xf32>
    %cst = arith.constant dense<0.000000e+00> : vector<256x64xf32>
    %2 = tpu.matmul %0, %1, %cst {dimension_numbers = #tpu.dot_dimension_numbers<[1], [0], [0], [1], [0, 0, 1, 1], [], []>} : vector<256x32xf32>, vector<32x64xf32>, vector<256x64xf32> -> vector<256x64xf32>
    %c0_3 = arith.constant 0 : index
    %c0_4 = arith.constant 0 : index
    %3 = vector.load %arg2[%c0_3, %c0_4] : memref<1x64xf32, #tpu.memory_space<vmem>>, vector<1x64xf32>
    %4 = vector.broadcast %3 : vector<1x64xf32> to vector<256x64xf32>
    %5 = arith.addf %2, %4 : vector<256x64xf32>
    %6 = vector.extract_strided_slice %5 {offsets = [0, 0], sizes = [256, 32], strides = [1, 1]} : vector<256x64xf32> to vector<256x32xf32>
    %c0_5 = arith.constant 0 : index
    %c0_6 = arith.constant 0 : index
    %7 = vector.load %arg3[%c0_5, %c0_6] : memref<256x32xf32, #tpu.memory_space<vmem>>, vector<256x32xf32>
    tpu.vector_store %arg3[%c0_5, %c0_6], %6 {strides = array<i32>} : memref<256x32xf32, #tpu.memory_space<vmem>>, vector<256x32xf32>,
    %8 = vector.extract_strided_slice %5 {offsets = [0, 32], sizes = [256, 32], strides = [1, 1]} : vector<256x64xf32> to vector<256x32xf32>
    %c0_7 = arith.constant 0 : index
    %c0_8 = arith.constant 0 : index
    %9 = vector.load %arg4[%c0_7, %c0_8] : memref<256x32xf32, #tpu.memory_space<vmem>>, vector<256x32xf32>
    tpu.vector_store %arg4[%c0_7, %c0_8], %8 {strides = array<i32>} : memref<256x32xf32, #tpu.memory_space<vmem>>, vector<256x32xf32>,
    return
  }
}

module attributes {stable_mosaic.version = 11 : i64} {
  func.func @_cross_attn_layer_kernel(%arg0: i32, %arg1: memref<1x16x32xf32, #tpu.memory_space<vmem>>, %arg2: memref<1x16x32xf32, #tpu.memory_space<vmem>>, %arg3: memref<16x16x32xf32, #tpu.memory_space<vmem>>, %arg4: memref<16x16x32xf32, #tpu.memory_space<vmem>>, %arg5: memref<16x16x32xf32, #tpu.memory_space<vmem>>, %arg6: memref<16x16x32xf32, #tpu.memory_space<vmem>>, %arg7: memref<16x16xf32, #tpu.memory_space<vmem>>, %arg8: memref<1x32xf32, #tpu.memory_space<vmem>>, %arg9: memref<1x32xf32, #tpu.memory_space<vmem>>, %arg10: memref<1x32xf32, #tpu.memory_space<vmem>>, %arg11: memref<1x32xf32, #tpu.memory_space<vmem>>, %arg12: memref<32x32xf32, #tpu.memory_space<vmem>>, %arg13: memref<1x32xf32, #tpu.memory_space<vmem>>, %arg14: memref<32x64xf32, #tpu.memory_space<vmem>>, %arg15: memref<1x64xf32, #tpu.memory_space<vmem>>, %arg16: memref<32x32xf32, #tpu.memory_space<vmem>>, %arg17: memref<1x32xf32, #tpu.memory_space<vmem>>, %arg18: memref<1x16x32xf32, #tpu.memory_space<vmem>>, %arg19: memref<1x16x32xf32, #tpu.memory_space<vmem>>, %arg20: memref<1x16x16xf32, #tpu.memory_space<vmem>>) attributes {dimension_semantics = [#tpu.dimension_semantics<parallel>], iteration_bounds = array<i64: 16>, scalar_prefetch = 0 : i64, scratch_operands = 0 : i64, tpu.core_type = #tpu.core_type<tc>, window_params = [{transform_indices = @transform_0, window_bounds = array<i64: 1, 16, 32>}, {transform_indices = @transform_1, window_bounds = array<i64: 1, 16, 32>}, {pipeline_mode = #tpu.pipeline_mode<synchronous>, transform_indices = @transform_2, window_bounds = array<i64: 16, 16, 32>}, {pipeline_mode = #tpu.pipeline_mode<synchronous>, transform_indices = @transform_3, window_bounds = array<i64: 16, 16, 32>}, {pipeline_mode = #tpu.pipeline_mode<synchronous>, transform_indices = @transform_4, window_bounds = array<i64: 16, 16, 32>}, {pipeline_mode = #tpu.pipeline_mode<synchronous>, transform_indices = @transform_5, window_bounds = array<i64: 16, 16, 32>}, {pipeline_mode = #tpu.pipeline_mode<synchronous>, transform_indices = @transform_6, window_bounds = array<i64: 16, 16>}, {pipeline_mode = #tpu.pipeline_mode<synchronous>, transform_indices = @transform_7, window_bounds = array<i64: 1, 32>}, {pipeline_mode = #tpu.pipeline_mode<synchronous>, transform_indices = @transform_8, window_bounds = array<i64: 1, 32>}, {pipeline_mode = #tpu.pipeline_mode<synchronous>, transform_indices = @transform_9, window_bounds = array<i64: 1, 32>}, {pipeline_mode = #tpu.pipeline_mode<synchronous>, transform_indices = @transform_10, window_bounds = array<i64: 1, 32>}, {pipeline_mode = #tpu.pipeline_mode<synchronous>, transform_indices = @transform_11, window_bounds = array<i64: 32, 32>}, {pipeline_mode = #tpu.pipeline_mode<synchronous>, transform_indices = @transform_12, window_bounds = array<i64: 1, 32>}, {pipeline_mode = #tpu.pipeline_mode<synchronous>, transform_indices = @transform_13, window_bounds = array<i64: 32, 64>}, {pipeline_mode = #tpu.pipeline_mode<synchronous>, transform_indices = @transform_14, window_bounds = array<i64: 1, 64>}, {pipeline_mode = #tpu.pipeline_mode<synchronous>, transform_indices = @transform_15, window_bounds = array<i64: 32, 32>}, {pipeline_mode = #tpu.pipeline_mode<synchronous>, transform_indices = @transform_16, window_bounds = array<i64: 1, 32>}, {transform_indices = @transform_17, window_bounds = array<i64: 1, 16, 32>}, {transform_indices = @transform_18, window_bounds = array<i64: 1, 16, 32>}, {transform_indices = @transform_19, window_bounds = array<i64: 1, 16, 16>}]} {
    %c0 = arith.constant 0 : index
    %c0_0 = arith.constant 0 : index
    %c0_1 = arith.constant 0 : index
    %0 = vector.load %arg1[%c0, %c0_0, %c0_1] : memref<1x16x32xf32, #tpu.memory_space<vmem>>, vector<1x16x32xf32>
    %1 = vector.shape_cast %0 : vector<1x16x32xf32> to vector<16x32xf32>
    %c0_2 = arith.constant 0 : index
    %c0_3 = arith.constant 0 : index
    %c0_4 = arith.constant 0 : index
    %2 = vector.load %arg2[%c0_2, %c0_3, %c0_4] : memref<1x16x32xf32, #tpu.memory_space<vmem>>, vector<1x16x32xf32>
    %3 = vector.shape_cast %2 : vector<1x16x32xf32> to vector<16x32xf32>
    %c0_5 = arith.constant 0 : index
    %c0_6 = arith.constant 0 : index
    %4 = vector.load %arg12[%c0_5, %c0_6] : memref<32x32xf32, #tpu.memory_space<vmem>>, vector<32x32xf32>
    %c0_7 = arith.constant 0 : index
    %c0_8 = arith.constant 0 : index
    %5 = vector.load %arg13[%c0_7, %c0_8] : memref<1x32xf32, #tpu.memory_space<vmem>>, vector<1x32xf32>
    %c0_9 = arith.constant 0 : index
    %c0_10 = arith.constant 0 : index
    %6 = vector.load %arg14[%c0_9, %c0_10] : memref<32x64xf32, #tpu.memory_space<vmem>>, vector<32x64xf32>
    %c0_11 = arith.constant 0 : index
    %c0_12 = arith.constant 0 : index
    %7 = vector.load %arg15[%c0_11, %c0_12] : memref<1x64xf32, #tpu.memory_space<vmem>>, vector<1x64xf32>
    %c0_13 = arith.constant 0 : index
    %c0_14 = arith.constant 0 : index
    %8 = vector.load %arg16[%c0_13, %c0_14] : memref<32x32xf32, #tpu.memory_space<vmem>>, vector<32x32xf32>
    %c0_15 = arith.constant 0 : index
    %c0_16 = arith.constant 0 : index
    %9 = vector.load %arg17[%c0_15, %c0_16] : memref<1x32xf32, #tpu.memory_space<vmem>>, vector<1x32xf32>
    %c0_17 = arith.constant 0 : index
    %c0_18 = arith.constant 0 : index
    %10 = vector.load %arg8[%c0_17, %c0_18] : memref<1x32xf32, #tpu.memory_space<vmem>>, vector<1x32xf32>
    %c0_19 = arith.constant 0 : index
    %c0_20 = arith.constant 0 : index
    %11 = vector.load %arg9[%c0_19, %c0_20] : memref<1x32xf32, #tpu.memory_space<vmem>>, vector<1x32xf32>
    %cst = arith.constant dense<0.000000e+00> : vector<16xf32>
    %12 = vector.multi_reduction <add>, %1, %cst [1] : vector<16x32xf32> to vector<16xf32>
    %13 = vector.shape_cast %12 : vector<16xf32> to vector<16x1xf32>
    %cst_21 = arith.constant 3.200000e+01 : f32
    %14 = vector.broadcast %cst_21 : f32 to vector<16x1xf32>
    %15 = arith.divf %13, %14 : vector<16x1xf32>
    %16 = vector.broadcast %15 : vector<16x1xf32> to vector<16x32xf32>
    %17 = arith.subf %1, %16 : vector<16x32xf32>
    %18 = arith.mulf %17, %17 : vector<16x32xf32>
    %cst_22 = arith.constant dense<0.000000e+00> : vector<16xf32>
    %19 = vector.multi_reduction <add>, %18, %cst_22 [1] : vector<16x32xf32> to vector<16xf32>
    %20 = vector.shape_cast %19 : vector<16xf32> to vector<16x1xf32>
    %cst_23 = arith.constant 3.200000e+01 : f32
    %21 = vector.broadcast %cst_23 : f32 to vector<16x1xf32>
    %22 = arith.divf %20, %21 : vector<16x1xf32>
    %cst_24 = arith.constant 9.99999974E-6 : f32
    %23 = vector.broadcast %cst_24 : f32 to vector<16x1xf32>
    %24 = arith.addf %22, %23 : vector<16x1xf32>
    %25 = math.rsqrt %24 : vector<16x1xf32>
    %26 = vector.broadcast %25 : vector<16x1xf32> to vector<16x32xf32>
    %27 = arith.mulf %17, %26 : vector<16x32xf32>
    %28 = vector.broadcast %10 : vector<1x32xf32> to vector<16x32xf32>
    %29 = arith.mulf %27, %28 : vector<16x32xf32>
    %30 = vector.broadcast %11 : vector<1x32xf32> to vector<16x32xf32>
    %31 = arith.addf %29, %30 : vector<16x32xf32>
    %cst_25 = arith.constant dense<0.000000e+00> : vector<16xf32>
    %32 = vector.multi_reduction <add>, %3, %cst_25 [1] : vector<16x32xf32> to vector<16xf32>
    %33 = vector.shape_cast %32 : vector<16xf32> to vector<16x1xf32>
    %cst_26 = arith.constant 3.200000e+01 : f32
    %34 = vector.broadcast %cst_26 : f32 to vector<16x1xf32>
    %35 = arith.divf %33, %34 : vector<16x1xf32>
    %36 = vector.broadcast %35 : vector<16x1xf32> to vector<16x32xf32>
    %37 = arith.subf %3, %36 : vector<16x32xf32>
    %38 = arith.mulf %37, %37 : vector<16x32xf32>
    %cst_27 = arith.constant dense<0.000000e+00> : vector<16xf32>
    %39 = vector.multi_reduction <add>, %38, %cst_27 [1] : vector<16x32xf32> to vector<16xf32>
    %40 = vector.shape_cast %39 : vector<16xf32> to vector<16x1xf32>
    %cst_28 = arith.constant 3.200000e+01 : f32
    %41 = vector.broadcast %cst_28 : f32 to vector<16x1xf32>
    %42 = arith.divf %40, %41 : vector<16x1xf32>
    %cst_29 = arith.constant 9.99999974E-6 : f32
    %43 = vector.broadcast %cst_29 : f32 to vector<16x1xf32>
    %44 = arith.addf %42, %43 : vector<16x1xf32>
    %45 = math.rsqrt %44 : vector<16x1xf32>
    %46 = vector.broadcast %45 : vector<16x1xf32> to vector<16x32xf32>
    %47 = arith.mulf %37, %46 : vector<16x32xf32>
    %48 = vector.broadcast %10 : vector<1x32xf32> to vector<16x32xf32>
    %49 = arith.mulf %47, %48 : vector<16x32xf32>
    %50 = vector.broadcast %11 : vector<1x32xf32> to vector<16x32xf32>
    %51 = arith.addf %49, %50 : vector<16x32xf32>
    %cst_30 = arith.constant dense<0.000000e+00> : vector<16x32xf32>
    %52 = tpu.matmul %51, %4, %cst_30 {dimension_numbers = #tpu.dot_dimension_numbers<[1], [0], [0], [1], [0, 0, 1, 1], [], []>} : vector<16x32xf32>, vector<32x32xf32>, vector<16x32xf32> -> vector<16x32xf32>
    %53 = vector.broadcast %5 : vector<1x32xf32> to vector<16x32xf32>
    %54 = arith.addf %52, %53 : vector<16x32xf32>
    %cst_31 = arith.constant dense<0.000000e+00> : vector<16x64xf32>
    %55 = tpu.matmul %31, %6, %cst_31 {dimension_numbers = #tpu.dot_dimension_numbers<[1], [0], [0], [1], [0, 0, 1, 1], [], []>} : vector<16x32xf32>, vector<32x64xf32>, vector<16x64xf32> -> vector<16x64xf32>
    %56 = vector.broadcast %7 : vector<1x64xf32> to vector<16x64xf32>
    %57 = arith.addf %55, %56 : vector<16x64xf32>
    %58 = vector.extract_strided_slice %57 {offsets = [0, 0], sizes = [16, 32], strides = [1, 1]} : vector<16x64xf32> to vector<16x32xf32>
    %59 = vector.extract_strided_slice %57 {offsets = [0, 32], sizes = [16, 32], strides = [1, 1]} : vector<16x64xf32> to vector<16x32xf32>
    %c0_32 = arith.constant 0 : index
    %c0_33 = arith.constant 0 : index
    %c0_34 = arith.constant 0 : index
    %60 = vector.load %arg5[%c0_32, %c0_33, %c0_34] : memref<16x16x32xf32, #tpu.memory_space<vmem>>, vector<16x16x32xf32>
    %c0_35 = arith.constant 0 : index
    %c0_36 = arith.constant 0 : index
    %c0_37 = arith.constant 0 : index
    %61 = vector.load %arg6[%c0_35, %c0_36, %c0_37] : memref<16x16x32xf32, #tpu.memory_space<vmem>>, vector<16x16x32xf32>
    %62 = vector.extract_strided_slice %54 {offsets = [0, 0], sizes = [16, 8], strides = [1, 1]} : vector<16x32xf32> to vector<16x8xf32>
    %63 = vector.extract_strided_slice %58 {offsets = [0, 0], sizes = [16, 8], strides = [1, 1]} : vector<16x32xf32> to vector<16x8xf32>
    %64 = vector.extract_strided_slice %59 {offsets = [0, 0], sizes = [16, 8], strides = [1, 1]} : vector<16x32xf32> to vector<16x8xf32>
    %65 = vector.extract_strided_slice %60 {offsets = [0, 0, 0], sizes = [16, 16, 8], strides = [1, 1, 1]} : vector<16x16x32xf32> to vector<16x16x8xf32>
    %66 = vector.extract_strided_slice %61 {offsets = [0, 0, 0], sizes = [16, 16, 8], strides = [1, 1, 1]} : vector<16x16x32xf32> to vector<16x16x8xf32>
    %cst_38 = arith.constant dense<0.000000e+00> : vector<16x16xf32>
    %67 = tpu.matmul %62, %63, %cst_38 {dimension_numbers = #tpu.dot_dimension_numbers<[1], [1], [0], [0], [0, 0, 1, 0], [], []>} : vector<16x8xf32>, vector<16x8xf32>, vector<16x16xf32> -> vector<16x16xf32>
    %68 = vector.shape_cast %62 : vector<16x8xf32> to vector<16x1x8xf32>
    %69 = vector.broadcast %68 : vector<16x1x8xf32> to vector<16x16x8xf32>
    %70 = arith.mulf %69, %66 : vector<16x16x8xf32>
    %cst_39 = arith.constant dense<0.000000e+00> : vector<16x16xf32>
    %71 = vector.multi_reduction <add>, %70, %cst_39 [2] : vector<16x16x8xf32> to vector<16x16xf32>
    %72 = arith.addf %67, %71 : vector<16x16xf32>
    %73 = vector.shape_cast %63 : vector<16x8xf32> to vector<1x16x8xf32>
    %74 = vector.broadcast %73 : vector<1x16x8xf32> to vector<16x16x8xf32>
    %75 = arith.mulf %74, %65 : vector<16x16x8xf32>
    %cst_40 = arith.constant dense<0.000000e+00> : vector<16x16xf32>
    %76 = vector.multi_reduction <add>, %75, %cst_40 [2] : vector<16x16x8xf32> to vector<16x16xf32>
    %77 = arith.addf %72, %76 : vector<16x16xf32>
    %cst_41 = arith.constant dense<0xFF800000> : vector<16xf32>
    %78 = vector.multi_reduction <maximumf>, %77, %cst_41 [1] : vector<16x16xf32> to vector<16xf32>
    %79 = vector.shape_cast %78 : vector<16xf32> to vector<16x1xf32>
    %80 = vector.broadcast %79 : vector<16x1xf32> to vector<16x16xf32>
    %81 = arith.subf %77, %80 : vector<16x16xf32>
    %82 = math.exp %81 : vector<16x16xf32>
    %cst_42 = arith.constant dense<0.000000e+00> : vector<16xf32>
    %83 = vector.multi_reduction <add>, %82, %cst_42 [1] : vector<16x16xf32> to vector<16xf32>
    %84 = vector.shape_cast %83 : vector<16xf32> to vector<16x1xf32>
    %85 = tpu.reciprocal %84 {approx = true} : vector<16x1xf32> -> vector<16x1xf32>
    %86 = vector.broadcast %85 : vector<16x1xf32> to vector<16x16xf32>
    %87 = arith.mulf %82, %86 : vector<16x16xf32>
    %cst_43 = arith.constant dense<0.000000e+00> : vector<16x8xf32>
    %88 = tpu.matmul %87, %64, %cst_43 {dimension_numbers = #tpu.dot_dimension_numbers<[1], [0], [0], [1], [0, 0, 1, 1], [], []>} : vector<16x16xf32>, vector<16x8xf32>, vector<16x8xf32> -> vector<16x8xf32>
    %89 = vector.extract_strided_slice %8 {offsets = [0, 0], sizes = [8, 32], strides = [1, 1]} : vector<32x32xf32> to vector<8x32xf32>
    %cst_44 = arith.constant dense<0.000000e+00> : vector<16x32xf32>
    %90 = tpu.matmul %88, %89, %cst_44 {dimension_numbers = #tpu.dot_dimension_numbers<[1], [0], [0], [1], [0, 0, 1, 1], [], []>} : vector<16x8xf32>, vector<8x32xf32>, vector<16x32xf32> -> vector<16x32xf32>
    %91 = vector.extract_strided_slice %54 {offsets = [0, 8], sizes = [16, 8], strides = [1, 1]} : vector<16x32xf32> to vector<16x8xf32>
    %92 = vector.extract_strided_slice %58 {offsets = [0, 8], sizes = [16, 8], strides = [1, 1]} : vector<16x32xf32> to vector<16x8xf32>
    %93 = vector.extract_strided_slice %59 {offsets = [0, 8], sizes = [16, 8], strides = [1, 1]} : vector<16x32xf32> to vector<16x8xf32>
    %94 = vector.extract_strided_slice %60 {offsets = [0, 0, 8], sizes = [16, 16, 8], strides = [1, 1, 1]} : vector<16x16x32xf32> to vector<16x16x8xf32>
    %95 = vector.extract_strided_slice %61 {offsets = [0, 0, 8], sizes = [16, 16, 8], strides = [1, 1, 1]} : vector<16x16x32xf32> to vector<16x16x8xf32>
    %cst_45 = arith.constant dense<0.000000e+00> : vector<16x16xf32>
    %96 = tpu.matmul %91, %92, %cst_45 {dimension_numbers = #tpu.dot_dimension_numbers<[1], [1], [0], [0], [0, 0, 1, 0], [], []>} : vector<16x8xf32>, vector<16x8xf32>, vector<16x16xf32> -> vector<16x16xf32>
    %97 = vector.shape_cast %91 : vector<16x8xf32> to vector<16x1x8xf32>
    %98 = vector.broadcast %97 : vector<16x1x8xf32> to vector<16x16x8xf32>
    %99 = arith.mulf %98, %95 : vector<16x16x8xf32>
    %cst_46 = arith.constant dense<0.000000e+00> : vector<16x16xf32>
    %100 = vector.multi_reduction <add>, %99, %cst_46 [2] : vector<16x16x8xf32> to vector<16x16xf32>
    %101 = arith.addf %96, %100 : vector<16x16xf32>
    %102 = vector.shape_cast %92 : vector<16x8xf32> to vector<1x16x8xf32>
    %103 = vector.broadcast %102 : vector<1x16x8xf32> to vector<16x16x8xf32>
    %104 = arith.mulf %103, %94 : vector<16x16x8xf32>
    %cst_47 = arith.constant dense<0.000000e+00> : vector<16x16xf32>
    %105 = vector.multi_reduction <add>, %104, %cst_47 [2] : vector<16x16x8xf32> to vector<16x16xf32>
    %106 = arith.addf %101, %105 : vector<16x16xf32>
    %cst_48 = arith.constant dense<0xFF800000> : vector<16xf32>
    %107 = vector.multi_reduction <maximumf>, %106, %cst_48 [1] : vector<16x16xf32> to vector<16xf32>
    %108 = vector.shape_cast %107 : vector<16xf32> to vector<16x1xf32>
    %109 = vector.broadcast %108 : vector<16x1xf32> to vector<16x16xf32>
    %110 = arith.subf %106, %109 : vector<16x16xf32>
    %111 = math.exp %110 : vector<16x16xf32>
    %cst_49 = arith.constant dense<0.000000e+00> : vector<16xf32>
    %112 = vector.multi_reduction <add>, %111, %cst_49 [1] : vector<16x16xf32> to vector<16xf32>
    %113 = vector.shape_cast %112 : vector<16xf32> to vector<16x1xf32>
    %114 = tpu.reciprocal %113 {approx = true} : vector<16x1xf32> -> vector<16x1xf32>
    %115 = vector.broadcast %114 : vector<16x1xf32> to vector<16x16xf32>
    %116 = arith.mulf %111, %115 : vector<16x16xf32>
    %cst_50 = arith.constant dense<0.000000e+00> : vector<16x8xf32>
    %117 = tpu.matmul %116, %93, %cst_50 {dimension_numbers = #tpu.dot_dimension_numbers<[1], [0], [0], [1], [0, 0, 1, 1], [], []>} : vector<16x16xf32>, vector<16x8xf32>, vector<16x8xf32> -> vector<16x8xf32>
    %118 = vector.extract_strided_slice %8 {offsets = [8, 0], sizes = [8, 32], strides = [1, 1]} : vector<32x32xf32> to vector<8x32xf32>
    %cst_51 = arith.constant dense<0.000000e+00> : vector<16x32xf32>
    %119 = tpu.matmul %117, %118, %cst_51 {dimension_numbers = #tpu.dot_dimension_numbers<[1], [0], [0], [1], [0, 0, 1, 1], [], []>} : vector<16x8xf32>, vector<8x32xf32>, vector<16x32xf32> -> vector<16x32xf32>
    %120 = arith.addf %90, %119 : vector<16x32xf32>
    %121 = vector.extract_strided_slice %54 {offsets = [0, 16], sizes = [16, 8], strides = [1, 1]} : vector<16x32xf32> to vector<16x8xf32>
    %122 = vector.extract_strided_slice %58 {offsets = [0, 16], sizes = [16, 8], strides = [1, 1]} : vector<16x32xf32> to vector<16x8xf32>
    %123 = vector.extract_strided_slice %59 {offsets = [0, 16], sizes = [16, 8], strides = [1, 1]} : vector<16x32xf32> to vector<16x8xf32>
    %124 = vector.extract_strided_slice %60 {offsets = [0, 0, 16], sizes = [16, 16, 8], strides = [1, 1, 1]} : vector<16x16x32xf32> to vector<16x16x8xf32>
    %125 = vector.extract_strided_slice %61 {offsets = [0, 0, 16], sizes = [16, 16, 8], strides = [1, 1, 1]} : vector<16x16x32xf32> to vector<16x16x8xf32>
    %cst_52 = arith.constant dense<0.000000e+00> : vector<16x16xf32>
    %126 = tpu.matmul %121, %122, %cst_52 {dimension_numbers = #tpu.dot_dimension_numbers<[1], [1], [0], [0], [0, 0, 1, 0], [], []>} : vector<16x8xf32>, vector<16x8xf32>, vector<16x16xf32> -> vector<16x16xf32>
    %127 = vector.shape_cast %121 : vector<16x8xf32> to vector<16x1x8xf32>
    %128 = vector.broadcast %127 : vector<16x1x8xf32> to vector<16x16x8xf32>
    %129 = arith.mulf %128, %125 : vector<16x16x8xf32>
    %cst_53 = arith.constant dense<0.000000e+00> : vector<16x16xf32>
    %130 = vector.multi_reduction <add>, %129, %cst_53 [2] : vector<16x16x8xf32> to vector<16x16xf32>
    %131 = arith.addf %126, %130 : vector<16x16xf32>
    %132 = vector.shape_cast %122 : vector<16x8xf32> to vector<1x16x8xf32>
    %133 = vector.broadcast %132 : vector<1x16x8xf32> to vector<16x16x8xf32>
    %134 = arith.mulf %133, %124 : vector<16x16x8xf32>
    %cst_54 = arith.constant dense<0.000000e+00> : vector<16x16xf32>
    %135 = vector.multi_reduction <add>, %134, %cst_54 [2] : vector<16x16x8xf32> to vector<16x16xf32>
    %136 = arith.addf %131, %135 : vector<16x16xf32>
    %cst_55 = arith.constant dense<0xFF800000> : vector<16xf32>
    %137 = vector.multi_reduction <maximumf>, %136, %cst_55 [1] : vector<16x16xf32> to vector<16xf32>
    %138 = vector.shape_cast %137 : vector<16xf32> to vector<16x1xf32>
    %139 = vector.broadcast %138 : vector<16x1xf32> to vector<16x16xf32>
    %140 = arith.subf %136, %139 : vector<16x16xf32>
    %141 = math.exp %140 : vector<16x16xf32>
    %cst_56 = arith.constant dense<0.000000e+00> : vector<16xf32>
    %142 = vector.multi_reduction <add>, %141, %cst_56 [1] : vector<16x16xf32> to vector<16xf32>
    %143 = vector.shape_cast %142 : vector<16xf32> to vector<16x1xf32>
    %144 = tpu.reciprocal %143 {approx = true} : vector<16x1xf32> -> vector<16x1xf32>
    %145 = vector.broadcast %144 : vector<16x1xf32> to vector<16x16xf32>
    %146 = arith.mulf %141, %145 : vector<16x16xf32>
    %cst_57 = arith.constant dense<0.000000e+00> : vector<16x8xf32>
    %147 = tpu.matmul %146, %123, %cst_57 {dimension_numbers = #tpu.dot_dimension_numbers<[1], [0], [0], [1], [0, 0, 1, 1], [], []>} : vector<16x16xf32>, vector<16x8xf32>, vector<16x8xf32> -> vector<16x8xf32>
    %148 = vector.extract_strided_slice %8 {offsets = [16, 0], sizes = [8, 32], strides = [1, 1]} : vector<32x32xf32> to vector<8x32xf32>
    %cst_58 = arith.constant dense<0.000000e+00> : vector<16x32xf32>
    %149 = tpu.matmul %147, %148, %cst_58 {dimension_numbers = #tpu.dot_dimension_numbers<[1], [0], [0], [1], [0, 0, 1, 1], [], []>} : vector<16x8xf32>, vector<8x32xf32>, vector<16x32xf32> -> vector<16x32xf32>
    %150 = arith.addf %120, %149 : vector<16x32xf32>
    %151 = vector.extract_strided_slice %54 {offsets = [0, 24], sizes = [16, 8], strides = [1, 1]} : vector<16x32xf32> to vector<16x8xf32>
    %152 = vector.extract_strided_slice %58 {offsets = [0, 24], sizes = [16, 8], strides = [1, 1]} : vector<16x32xf32> to vector<16x8xf32>
    %153 = vector.extract_strided_slice %59 {offsets = [0, 24], sizes = [16, 8], strides = [1, 1]} : vector<16x32xf32> to vector<16x8xf32>
    %154 = vector.extract_strided_slice %60 {offsets = [0, 0, 24], sizes = [16, 16, 8], strides = [1, 1, 1]} : vector<16x16x32xf32> to vector<16x16x8xf32>
    %155 = vector.extract_strided_slice %61 {offsets = [0, 0, 24], sizes = [16, 16, 8], strides = [1, 1, 1]} : vector<16x16x32xf32> to vector<16x16x8xf32>
    %cst_59 = arith.constant dense<0.000000e+00> : vector<16x16xf32>
    %156 = tpu.matmul %151, %152, %cst_59 {dimension_numbers = #tpu.dot_dimension_numbers<[1], [1], [0], [0], [0, 0, 1, 0], [], []>} : vector<16x8xf32>, vector<16x8xf32>, vector<16x16xf32> -> vector<16x16xf32>
    %157 = vector.shape_cast %151 : vector<16x8xf32> to vector<16x1x8xf32>
    %158 = vector.broadcast %157 : vector<16x1x8xf32> to vector<16x16x8xf32>
    %159 = arith.mulf %158, %155 : vector<16x16x8xf32>
    %cst_60 = arith.constant dense<0.000000e+00> : vector<16x16xf32>
    %160 = vector.multi_reduction <add>, %159, %cst_60 [2] : vector<16x16x8xf32> to vector<16x16xf32>
    %161 = arith.addf %156, %160 : vector<16x16xf32>
    %162 = vector.shape_cast %152 : vector<16x8xf32> to vector<1x16x8xf32>
    %163 = vector.broadcast %162 : vector<1x16x8xf32> to vector<16x16x8xf32>
    %164 = arith.mulf %163, %154 : vector<16x16x8xf32>
    %cst_61 = arith.constant dense<0.000000e+00> : vector<16x16xf32>
    %165 = vector.multi_reduction <add>, %164, %cst_61 [2] : vector<16x16x8xf32> to vector<16x16xf32>
    %166 = arith.addf %161, %165 : vector<16x16xf32>
    %cst_62 = arith.constant dense<0xFF800000> : vector<16xf32>
    %167 = vector.multi_reduction <maximumf>, %166, %cst_62 [1] : vector<16x16xf32> to vector<16xf32>
    %168 = vector.shape_cast %167 : vector<16xf32> to vector<16x1xf32>
    %169 = vector.broadcast %168 : vector<16x1xf32> to vector<16x16xf32>
    %170 = arith.subf %166, %169 : vector<16x16xf32>
    %171 = math.exp %170 : vector<16x16xf32>
    %cst_63 = arith.constant dense<0.000000e+00> : vector<16xf32>
    %172 = vector.multi_reduction <add>, %171, %cst_63 [1] : vector<16x16xf32> to vector<16xf32>
    %173 = vector.shape_cast %172 : vector<16xf32> to vector<16x1xf32>
    %174 = tpu.reciprocal %173 {approx = true} : vector<16x1xf32> -> vector<16x1xf32>
    %175 = vector.broadcast %174 : vector<16x1xf32> to vector<16x16xf32>
    %176 = arith.mulf %171, %175 : vector<16x16xf32>
    %cst_64 = arith.constant dense<0.000000e+00> : vector<16x8xf32>
    %177 = tpu.matmul %176, %153, %cst_64 {dimension_numbers = #tpu.dot_dimension_numbers<[1], [0], [0], [1], [0, 0, 1, 1], [], []>} : vector<16x16xf32>, vector<16x8xf32>, vector<16x8xf32> -> vector<16x8xf32>
    %178 = vector.extract_strided_slice %8 {offsets = [24, 0], sizes = [8, 32], strides = [1, 1]} : vector<32x32xf32> to vector<8x32xf32>
    %cst_65 = arith.constant dense<0.000000e+00> : vector<16x32xf32>
    %179 = tpu.matmul %177, %178, %cst_65 {dimension_numbers = #tpu.dot_dimension_numbers<[1], [0], [0], [1], [0, 0, 1, 1], [], []>} : vector<16x8xf32>, vector<8x32xf32>, vector<16x32xf32> -> vector<16x32xf32>
    %180 = arith.addf %150, %179 : vector<16x32xf32>
    %181 = vector.broadcast %9 : vector<1x32xf32> to vector<16x32xf32>
    %182 = arith.addf %180, %181 : vector<16x32xf32>
    %183 = arith.addf %3, %182 : vector<16x32xf32>
    %c0_66 = arith.constant 0 : index
    %c0_67 = arith.constant 0 : index
    %184 = vector.load %arg10[%c0_66, %c0_67] : memref<1x32xf32, #tpu.memory_space<vmem>>, vector<1x32xf32>
    %c0_68 = arith.constant 0 : index
    %c0_69 = arith.constant 0 : index
    %185 = vector.load %arg11[%c0_68, %c0_69] : memref<1x32xf32, #tpu.memory_space<vmem>>, vector<1x32xf32>
    %cst_70 = arith.constant dense<0.000000e+00> : vector<16xf32>
    %186 = vector.multi_reduction <add>, %183, %cst_70 [1] : vector<16x32xf32> to vector<16xf32>
    %187 = vector.shape_cast %186 : vector<16xf32> to vector<16x1xf32>
    %cst_71 = arith.constant 3.200000e+01 : f32
    %188 = vector.broadcast %cst_71 : f32 to vector<16x1xf32>
    %189 = arith.divf %187, %188 : vector<16x1xf32>
    %190 = vector.broadcast %189 : vector<16x1xf32> to vector<16x32xf32>
    %191 = arith.subf %183, %190 : vector<16x32xf32>
    %192 = arith.mulf %191, %191 : vector<16x32xf32>
    %cst_72 = arith.constant dense<0.000000e+00> : vector<16xf32>
    %193 = vector.multi_reduction <add>, %192, %cst_72 [1] : vector<16x32xf32> to vector<16xf32>
    %194 = vector.shape_cast %193 : vector<16xf32> to vector<16x1xf32>
    %cst_73 = arith.constant 3.200000e+01 : f32
    %195 = vector.broadcast %cst_73 : f32 to vector<16x1xf32>
    %196 = arith.divf %194, %195 : vector<16x1xf32>
    %cst_74 = arith.constant 9.99999974E-6 : f32
    %197 = vector.broadcast %cst_74 : f32 to vector<16x1xf32>
    %198 = arith.addf %196, %197 : vector<16x1xf32>
    %199 = math.rsqrt %198 : vector<16x1xf32>
    %200 = vector.broadcast %199 : vector<16x1xf32> to vector<16x32xf32>
    %201 = arith.mulf %191, %200 : vector<16x32xf32>
    %202 = vector.broadcast %184 : vector<1x32xf32> to vector<16x32xf32>
    %203 = arith.mulf %201, %202 : vector<16x32xf32>
    %204 = vector.broadcast %185 : vector<1x32xf32> to vector<16x32xf32>
    %205 = arith.addf %203, %204 : vector<16x32xf32>
    %cst_75 = arith.constant dense<0.000000e+00> : vector<16x32xf32>
    %206 = tpu.matmul %31, %4, %cst_75 {dimension_numbers = #tpu.dot_dimension_numbers<[1], [0], [0], [1], [0, 0, 1, 1], [], []>} : vector<16x32xf32>, vector<32x32xf32>, vector<16x32xf32> -> vector<16x32xf32>
    %207 = vector.broadcast %5 : vector<1x32xf32> to vector<16x32xf32>
    %208 = arith.addf %206, %207 : vector<16x32xf32>
    %cst_76 = arith.constant dense<0.000000e+00> : vector<16x64xf32>
    %209 = tpu.matmul %205, %6, %cst_76 {dimension_numbers = #tpu.dot_dimension_numbers<[1], [0], [0], [1], [0, 0, 1, 1], [], []>} : vector<16x32xf32>, vector<32x64xf32>, vector<16x64xf32> -> vector<16x64xf32>
    %210 = vector.broadcast %7 : vector<1x64xf32> to vector<16x64xf32>
    %211 = arith.addf %209, %210 : vector<16x64xf32>
    %212 = vector.extract_strided_slice %211 {offsets = [0, 0], sizes = [16, 32], strides = [1, 1]} : vector<16x64xf32> to vector<16x32xf32>
    %213 = vector.extract_strided_slice %211 {offsets = [0, 32], sizes = [16, 32], strides = [1, 1]} : vector<16x64xf32> to vector<16x32xf32>
    %c0_77 = arith.constant 0 : index
    %c0_78 = arith.constant 0 : index
    %c0_79 = arith.constant 0 : index
    %214 = vector.load %arg3[%c0_77, %c0_78, %c0_79] : memref<16x16x32xf32, #tpu.memory_space<vmem>>, vector<16x16x32xf32>
    %c0_80 = arith.constant 0 : index
    %c0_81 = arith.constant 0 : index
    %c0_82 = arith.constant 0 : index
    %215 = vector.load %arg4[%c0_80, %c0_81, %c0_82] : memref<16x16x32xf32, #tpu.memory_space<vmem>>, vector<16x16x32xf32>
    %c0_83 = arith.constant 0 : index
    %c0_84 = arith.constant 0 : index
    %216 = vector.load %arg7[%c0_83, %c0_84] : memref<16x16xf32, #tpu.memory_space<vmem>>, vector<16x16xf32>
    %217 = vector.shape_cast %216 : vector<16x16xf32> to vector<16x16xf32>
    %218 = vector.extract_strided_slice %208 {offsets = [0, 0], sizes = [16, 8], strides = [1, 1]} : vector<16x32xf32> to vector<16x8xf32>
    %219 = vector.extract_strided_slice %212 {offsets = [0, 0], sizes = [16, 8], strides = [1, 1]} : vector<16x32xf32> to vector<16x8xf32>
    %220 = vector.extract_strided_slice %213 {offsets = [0, 0], sizes = [16, 8], strides = [1, 1]} : vector<16x32xf32> to vector<16x8xf32>
    %221 = vector.extract_strided_slice %214 {offsets = [0, 0, 0], sizes = [16, 16, 8], strides = [1, 1, 1]} : vector<16x16x32xf32> to vector<16x16x8xf32>
    %222 = vector.extract_strided_slice %215 {offsets = [0, 0, 0], sizes = [16, 16, 8], strides = [1, 1, 1]} : vector<16x16x32xf32> to vector<16x16x8xf32>
    %cst_85 = arith.constant dense<0.000000e+00> : vector<16x16xf32>
    %223 = tpu.matmul %218, %219, %cst_85 {dimension_numbers = #tpu.dot_dimension_numbers<[1], [1], [0], [0], [0, 0, 1, 0], [], []>} : vector<16x8xf32>, vector<16x8xf32>, vector<16x16xf32> -> vector<16x16xf32>
    %224 = vector.shape_cast %218 : vector<16x8xf32> to vector<16x1x8xf32>
    %225 = vector.broadcast %224 : vector<16x1x8xf32> to vector<16x16x8xf32>
    %226 = arith.mulf %225, %222 : vector<16x16x8xf32>
    %cst_86 = arith.constant dense<0.000000e+00> : vector<16x16xf32>
    %227 = vector.multi_reduction <add>, %226, %cst_86 [2] : vector<16x16x8xf32> to vector<16x16xf32>
    %228 = arith.addf %223, %227 : vector<16x16xf32>
    %229 = vector.shape_cast %219 : vector<16x8xf32> to vector<1x16x8xf32>
    %230 = vector.broadcast %229 : vector<1x16x8xf32> to vector<16x16x8xf32>
    %231 = arith.mulf %230, %221 : vector<16x16x8xf32>
    %cst_87 = arith.constant dense<0.000000e+00> : vector<16x16xf32>
    %232 = vector.multi_reduction <add>, %231, %cst_87 [2] : vector<16x16x8xf32> to vector<16x16xf32>
    %233 = arith.addf %228, %232 : vector<16x16xf32>
    %234 = arith.addf %233, %217 : vector<16x16xf32>
    %cst_88 = arith.constant dense<0xFF800000> : vector<16xf32>
    %235 = vector.multi_reduction <maximumf>, %234, %cst_88 [1] : vector<16x16xf32> to vector<16xf32>
    %236 = vector.shape_cast %235 : vector<16xf32> to vector<16x1xf32>
    %237 = vector.broadcast %236 : vector<16x1xf32> to vector<16x16xf32>
    %238 = arith.subf %234, %237 : vector<16x16xf32>
    %239 = math.exp %238 : vector<16x16xf32>
    %cst_89 = arith.constant dense<0.000000e+00> : vector<16xf32>
    %240 = vector.multi_reduction <add>, %239, %cst_89 [1] : vector<16x16xf32> to vector<16xf32>
    %241 = vector.shape_cast %240 : vector<16xf32> to vector<16x1xf32>
    %242 = tpu.reciprocal %241 {approx = true} : vector<16x1xf32> -> vector<16x1xf32>
    %243 = vector.broadcast %242 : vector<16x1xf32> to vector<16x16xf32>
    %244 = arith.mulf %239, %243 : vector<16x16xf32>
    %cst_90 = arith.constant dense<0.000000e+00> : vector<16x8xf32>
    %245 = tpu.matmul %244, %220, %cst_90 {dimension_numbers = #tpu.dot_dimension_numbers<[1], [0], [0], [1], [0, 0, 1, 1], [], []>} : vector<16x16xf32>, vector<16x8xf32>, vector<16x8xf32> -> vector<16x8xf32>
    %246 = vector.extract_strided_slice %8 {offsets = [0, 0], sizes = [8, 32], strides = [1, 1]} : vector<32x32xf32> to vector<8x32xf32>
    %cst_91 = arith.constant dense<0.000000e+00> : vector<16x32xf32>
    %247 = tpu.matmul %245, %246, %cst_91 {dimension_numbers = #tpu.dot_dimension_numbers<[1], [0], [0], [1], [0, 0, 1, 1], [], []>} : vector<16x8xf32>, vector<8x32xf32>, vector<16x32xf32> -> vector<16x32xf32>
    %248 = vector.extract_strided_slice %208 {offsets = [0, 8], sizes = [16, 8], strides = [1, 1]} : vector<16x32xf32> to vector<16x8xf32>
    %249 = vector.extract_strided_slice %212 {offsets = [0, 8], sizes = [16, 8], strides = [1, 1]} : vector<16x32xf32> to vector<16x8xf32>
    %250 = vector.extract_strided_slice %213 {offsets = [0, 8], sizes = [16, 8], strides = [1, 1]} : vector<16x32xf32> to vector<16x8xf32>
    %251 = vector.extract_strided_slice %214 {offsets = [0, 0, 8], sizes = [16, 16, 8], strides = [1, 1, 1]} : vector<16x16x32xf32> to vector<16x16x8xf32>
    %252 = vector.extract_strided_slice %215 {offsets = [0, 0, 8], sizes = [16, 16, 8], strides = [1, 1, 1]} : vector<16x16x32xf32> to vector<16x16x8xf32>
    %cst_92 = arith.constant dense<0.000000e+00> : vector<16x16xf32>
    %253 = tpu.matmul %248, %249, %cst_92 {dimension_numbers = #tpu.dot_dimension_numbers<[1], [1], [0], [0], [0, 0, 1, 0], [], []>} : vector<16x8xf32>, vector<16x8xf32>, vector<16x16xf32> -> vector<16x16xf32>
    %254 = vector.shape_cast %248 : vector<16x8xf32> to vector<16x1x8xf32>
    %255 = vector.broadcast %254 : vector<16x1x8xf32> to vector<16x16x8xf32>
    %256 = arith.mulf %255, %252 : vector<16x16x8xf32>
    %cst_93 = arith.constant dense<0.000000e+00> : vector<16x16xf32>
    %257 = vector.multi_reduction <add>, %256, %cst_93 [2] : vector<16x16x8xf32> to vector<16x16xf32>
    %258 = arith.addf %253, %257 : vector<16x16xf32>
    %259 = vector.shape_cast %249 : vector<16x8xf32> to vector<1x16x8xf32>
    %260 = vector.broadcast %259 : vector<1x16x8xf32> to vector<16x16x8xf32>
    %261 = arith.mulf %260, %251 : vector<16x16x8xf32>
    %cst_94 = arith.constant dense<0.000000e+00> : vector<16x16xf32>
    %262 = vector.multi_reduction <add>, %261, %cst_94 [2] : vector<16x16x8xf32> to vector<16x16xf32>
    %263 = arith.addf %258, %262 : vector<16x16xf32>
    %264 = arith.addf %263, %217 : vector<16x16xf32>
    %265 = arith.addf %234, %264 : vector<16x16xf32>
    %cst_95 = arith.constant dense<0xFF800000> : vector<16xf32>
    %266 = vector.multi_reduction <maximumf>, %264, %cst_95 [1] : vector<16x16xf32> to vector<16xf32>
    %267 = vector.shape_cast %266 : vector<16xf32> to vector<16x1xf32>
    %268 = vector.broadcast %267 : vector<16x1xf32> to vector<16x16xf32>
    %269 = arith.subf %264, %268 : vector<16x16xf32>
    %270 = math.exp %269 : vector<16x16xf32>
    %cst_96 = arith.constant dense<0.000000e+00> : vector<16xf32>
    %271 = vector.multi_reduction <add>, %270, %cst_96 [1] : vector<16x16xf32> to vector<16xf32>
    %272 = vector.shape_cast %271 : vector<16xf32> to vector<16x1xf32>
    %273 = tpu.reciprocal %272 {approx = true} : vector<16x1xf32> -> vector<16x1xf32>
    %274 = vector.broadcast %273 : vector<16x1xf32> to vector<16x16xf32>
    %275 = arith.mulf %270, %274 : vector<16x16xf32>
    %cst_97 = arith.constant dense<0.000000e+00> : vector<16x8xf32>
    %276 = tpu.matmul %275, %250, %cst_97 {dimension_numbers = #tpu.dot_dimension_numbers<[1], [0], [0], [1], [0, 0, 1, 1], [], []>} : vector<16x16xf32>, vector<16x8xf32>, vector<16x8xf32> -> vector<16x8xf32>
    %277 = vector.extract_strided_slice %8 {offsets = [8, 0], sizes = [8, 32], strides = [1, 1]} : vector<32x32xf32> to vector<8x32xf32>
    %cst_98 = arith.constant dense<0.000000e+00> : vector<16x32xf32>
    %278 = tpu.matmul %276, %277, %cst_98 {dimension_numbers = #tpu.dot_dimension_numbers<[1], [0], [0], [1], [0, 0, 1, 1], [], []>} : vector<16x8xf32>, vector<8x32xf32>, vector<16x32xf32> -> vector<16x32xf32>
    %279 = arith.addf %247, %278 : vector<16x32xf32>
    %280 = vector.extract_strided_slice %208 {offsets = [0, 16], sizes = [16, 8], strides = [1, 1]} : vector<16x32xf32> to vector<16x8xf32>
    %281 = vector.extract_strided_slice %212 {offsets = [0, 16], sizes = [16, 8], strides = [1, 1]} : vector<16x32xf32> to vector<16x8xf32>
    %282 = vector.extract_strided_slice %213 {offsets = [0, 16], sizes = [16, 8], strides = [1, 1]} : vector<16x32xf32> to vector<16x8xf32>
    %283 = vector.extract_strided_slice %214 {offsets = [0, 0, 16], sizes = [16, 16, 8], strides = [1, 1, 1]} : vector<16x16x32xf32> to vector<16x16x8xf32>
    %284 = vector.extract_strided_slice %215 {offsets = [0, 0, 16], sizes = [16, 16, 8], strides = [1, 1, 1]} : vector<16x16x32xf32> to vector<16x16x8xf32>
    %cst_99 = arith.constant dense<0.000000e+00> : vector<16x16xf32>
    %285 = tpu.matmul %280, %281, %cst_99 {dimension_numbers = #tpu.dot_dimension_numbers<[1], [1], [0], [0], [0, 0, 1, 0], [], []>} : vector<16x8xf32>, vector<16x8xf32>, vector<16x16xf32> -> vector<16x16xf32>
    %286 = vector.shape_cast %280 : vector<16x8xf32> to vector<16x1x8xf32>
    %287 = vector.broadcast %286 : vector<16x1x8xf32> to vector<16x16x8xf32>
    %288 = arith.mulf %287, %284 : vector<16x16x8xf32>
    %cst_100 = arith.constant dense<0.000000e+00> : vector<16x16xf32>
    %289 = vector.multi_reduction <add>, %288, %cst_100 [2] : vector<16x16x8xf32> to vector<16x16xf32>
    %290 = arith.addf %285, %289 : vector<16x16xf32>
    %291 = vector.shape_cast %281 : vector<16x8xf32> to vector<1x16x8xf32>
    %292 = vector.broadcast %291 : vector<1x16x8xf32> to vector<16x16x8xf32>
    %293 = arith.mulf %292, %283 : vector<16x16x8xf32>
    %cst_101 = arith.constant dense<0.000000e+00> : vector<16x16xf32>
    %294 = vector.multi_reduction <add>, %293, %cst_101 [2] : vector<16x16x8xf32> to vector<16x16xf32>
    %295 = arith.addf %290, %294 : vector<16x16xf32>
    %296 = arith.addf %295, %217 : vector<16x16xf32>
    %297 = arith.addf %265, %296 : vector<16x16xf32>
    %cst_102 = arith.constant dense<0xFF800000> : vector<16xf32>
    %298 = vector.multi_reduction <maximumf>, %296, %cst_102 [1] : vector<16x16xf32> to vector<16xf32>
    %299 = vector.shape_cast %298 : vector<16xf32> to vector<16x1xf32>
    %300 = vector.broadcast %299 : vector<16x1xf32> to vector<16x16xf32>
    %301 = arith.subf %296, %300 : vector<16x16xf32>
    %302 = math.exp %301 : vector<16x16xf32>
    %cst_103 = arith.constant dense<0.000000e+00> : vector<16xf32>
    %303 = vector.multi_reduction <add>, %302, %cst_103 [1] : vector<16x16xf32> to vector<16xf32>
    %304 = vector.shape_cast %303 : vector<16xf32> to vector<16x1xf32>
    %305 = tpu.reciprocal %304 {approx = true} : vector<16x1xf32> -> vector<16x1xf32>
    %306 = vector.broadcast %305 : vector<16x1xf32> to vector<16x16xf32>
    %307 = arith.mulf %302, %306 : vector<16x16xf32>
    %cst_104 = arith.constant dense<0.000000e+00> : vector<16x8xf32>
    %308 = tpu.matmul %307, %282, %cst_104 {dimension_numbers = #tpu.dot_dimension_numbers<[1], [0], [0], [1], [0, 0, 1, 1], [], []>} : vector<16x16xf32>, vector<16x8xf32>, vector<16x8xf32> -> vector<16x8xf32>
    %309 = vector.extract_strided_slice %8 {offsets = [16, 0], sizes = [8, 32], strides = [1, 1]} : vector<32x32xf32> to vector<8x32xf32>
    %cst_105 = arith.constant dense<0.000000e+00> : vector<16x32xf32>
    %310 = tpu.matmul %308, %309, %cst_105 {dimension_numbers = #tpu.dot_dimension_numbers<[1], [0], [0], [1], [0, 0, 1, 1], [], []>} : vector<16x8xf32>, vector<8x32xf32>, vector<16x32xf32> -> vector<16x32xf32>
    %311 = arith.addf %279, %310 : vector<16x32xf32>
    %312 = vector.extract_strided_slice %208 {offsets = [0, 24], sizes = [16, 8], strides = [1, 1]} : vector<16x32xf32> to vector<16x8xf32>
    %313 = vector.extract_strided_slice %212 {offsets = [0, 24], sizes = [16, 8], strides = [1, 1]} : vector<16x32xf32> to vector<16x8xf32>
    %314 = vector.extract_strided_slice %213 {offsets = [0, 24], sizes = [16, 8], strides = [1, 1]} : vector<16x32xf32> to vector<16x8xf32>
    %315 = vector.extract_strided_slice %214 {offsets = [0, 0, 24], sizes = [16, 16, 8], strides = [1, 1, 1]} : vector<16x16x32xf32> to vector<16x16x8xf32>
    %316 = vector.extract_strided_slice %215 {offsets = [0, 0, 24], sizes = [16, 16, 8], strides = [1, 1, 1]} : vector<16x16x32xf32> to vector<16x16x8xf32>
    %cst_106 = arith.constant dense<0.000000e+00> : vector<16x16xf32>
    %317 = tpu.matmul %312, %313, %cst_106 {dimension_numbers = #tpu.dot_dimension_numbers<[1], [1], [0], [0], [0, 0, 1, 0], [], []>} : vector<16x8xf32>, vector<16x8xf32>, vector<16x16xf32> -> vector<16x16xf32>
    %318 = vector.shape_cast %312 : vector<16x8xf32> to vector<16x1x8xf32>
    %319 = vector.broadcast %318 : vector<16x1x8xf32> to vector<16x16x8xf32>
    %320 = arith.mulf %319, %316 : vector<16x16x8xf32>
    %cst_107 = arith.constant dense<0.000000e+00> : vector<16x16xf32>
    %321 = vector.multi_reduction <add>, %320, %cst_107 [2] : vector<16x16x8xf32> to vector<16x16xf32>
    %322 = arith.addf %317, %321 : vector<16x16xf32>
    %323 = vector.shape_cast %313 : vector<16x8xf32> to vector<1x16x8xf32>
    %324 = vector.broadcast %323 : vector<1x16x8xf32> to vector<16x16x8xf32>
    %325 = arith.mulf %324, %315 : vector<16x16x8xf32>
    %cst_108 = arith.constant dense<0.000000e+00> : vector<16x16xf32>
    %326 = vector.multi_reduction <add>, %325, %cst_108 [2] : vector<16x16x8xf32> to vector<16x16xf32>
    %327 = arith.addf %322, %326 : vector<16x16xf32>
    %328 = arith.addf %327, %217 : vector<16x16xf32>
    %329 = arith.addf %297, %328 : vector<16x16xf32>
    %cst_109 = arith.constant dense<0xFF800000> : vector<16xf32>
    %330 = vector.multi_reduction <maximumf>, %328, %cst_109 [1] : vector<16x16xf32> to vector<16xf32>
    %331 = vector.shape_cast %330 : vector<16xf32> to vector<16x1xf32>
    %332 = vector.broadcast %331 : vector<16x1xf32> to vector<16x16xf32>
    %333 = arith.subf %328, %332 : vector<16x16xf32>
    %334 = math.exp %333 : vector<16x16xf32>
    %cst_110 = arith.constant dense<0.000000e+00> : vector<16xf32>
    %335 = vector.multi_reduction <add>, %334, %cst_110 [1] : vector<16x16xf32> to vector<16xf32>
    %336 = vector.shape_cast %335 : vector<16xf32> to vector<16x1xf32>
    %337 = tpu.reciprocal %336 {approx = true} : vector<16x1xf32> -> vector<16x1xf32>
    %338 = vector.broadcast %337 : vector<16x1xf32> to vector<16x16xf32>
    %339 = arith.mulf %334, %338 : vector<16x16xf32>
    %cst_111 = arith.constant dense<0.000000e+00> : vector<16x8xf32>
    %340 = tpu.matmul %339, %314, %cst_111 {dimension_numbers = #tpu.dot_dimension_numbers<[1], [0], [0], [1], [0, 0, 1, 1], [], []>} : vector<16x16xf32>, vector<16x8xf32>, vector<16x8xf32> -> vector<16x8xf32>
    %341 = vector.extract_strided_slice %8 {offsets = [24, 0], sizes = [8, 32], strides = [1, 1]} : vector<32x32xf32> to vector<8x32xf32>
    %cst_112 = arith.constant dense<0.000000e+00> : vector<16x32xf32>
    %342 = tpu.matmul %340, %341, %cst_112 {dimension_numbers = #tpu.dot_dimension_numbers<[1], [0], [0], [1], [0, 0, 1, 1], [], []>} : vector<16x8xf32>, vector<8x32xf32>, vector<16x32xf32> -> vector<16x32xf32>
    %343 = arith.addf %311, %342 : vector<16x32xf32>
    %344 = vector.broadcast %9 : vector<1x32xf32> to vector<16x32xf32>
    %345 = arith.addf %343, %344 : vector<16x32xf32>
    %346 = arith.addf %1, %345 : vector<16x32xf32>
    %c0_113 = arith.constant 0 : index
    %c0_114 = arith.constant 0 : index
    %c0_115 = arith.constant 0 : index
    %347 = vector.load %arg18[%c0_113, %c0_114, %c0_115] : memref<1x16x32xf32, #tpu.memory_space<vmem>>, vector<1x16x32xf32>
    %348 = vector.shape_cast %347 : vector<1x16x32xf32> to vector<16x32xf32>
    %349 = vector.shape_cast %346 : vector<16x32xf32> to vector<1x16x32xf32>
    tpu.vector_store %arg18[%c0_113, %c0_114, %c0_115], %349 {strides = array<i32>} : memref<1x16x32xf32, #tpu.memory_space<vmem>>, vector<1x16x32xf32>,
    %c0_116 = arith.constant 0 : index
    %c0_117 = arith.constant 0 : index
    %c0_118 = arith.constant 0 : index
    %350 = vector.load %arg19[%c0_116, %c0_117, %c0_118] : memref<1x16x32xf32, #tpu.memory_space<vmem>>, vector<1x16x32xf32>
    %351 = vector.shape_cast %350 : vector<1x16x32xf32> to vector<16x32xf32>
    %352 = vector.shape_cast %183 : vector<16x32xf32> to vector<1x16x32xf32>
    tpu.vector_store %arg19[%c0_116, %c0_117, %c0_118], %352 {strides = array<i32>} : memref<1x16x32xf32, #tpu.memory_space<vmem>>, vector<1x16x32xf32>,
    %c0_119 = arith.constant 0 : index
    %c0_120 = arith.constant 0 : index
    %c0_121 = arith.constant 0 : index
    %353 = vector.load %arg20[%c0_119, %c0_120, %c0_121] : memref<1x16x16xf32, #tpu.memory_space<vmem>>, vector<1x16x16xf32>
    %354 = vector.shape_cast %353 : vector<1x16x16xf32> to vector<16x16xf32>
    %355 = vector.shape_cast %329 : vector<16x16xf32> to vector<1x16x16xf32>
    tpu.vector_store %arg20[%c0_119, %c0_120, %c0_121], %355 {strides = array<i32>} : memref<1x16x16xf32, #tpu.memory_space<vmem>>, vector<1x16x16xf32>,
    return
  }
  func.func @transform_0(%arg0: i32) -> (i32, i32, i32) {
    %c0_i32 = arith.constant 0 : i32
    %c0_i32_0 = arith.constant 0 : i32
    %c0_i32_1 = arith.constant 0 : i32
    return %arg0, %c0_i32, %c0_i32_0 : i32, i32, i32
  }
  func.func @transform_1(%arg0: i32) -> (i32, i32, i32) {
    %c0_i32 = arith.constant 0 : i32
    %c0_i32_0 = arith.constant 0 : i32
    %c0_i32_1 = arith.constant 0 : i32
    return %arg0, %c0_i32, %c0_i32_0 : i32, i32, i32
  }
  func.func @transform_2(%arg0: i32) -> (i32, i32, i32) {
    %c0_i32 = arith.constant 0 : i32
    %c0_i32_0 = arith.constant 0 : i32
    %c0_i32_1 = arith.constant 0 : i32
    %c0_i32_2 = arith.constant 0 : i32
    return %c0_i32, %c0_i32_0, %c0_i32_1 : i32, i32, i32
  }
  func.func @transform_3(%arg0: i32) -> (i32, i32, i32) {
    %c0_i32 = arith.constant 0 : i32
    %c0_i32_0 = arith.constant 0 : i32
    %c0_i32_1 = arith.constant 0 : i32
    %c0_i32_2 = arith.constant 0 : i32
    return %c0_i32, %c0_i32_0, %c0_i32_1 : i32, i32, i32
  }
  func.func @transform_4(%arg0: i32) -> (i32, i32, i32) {
    %c0_i32 = arith.constant 0 : i32
    %c0_i32_0 = arith.constant 0 : i32
    %c0_i32_1 = arith.constant 0 : i32
    %c0_i32_2 = arith.constant 0 : i32
    return %c0_i32, %c0_i32_0, %c0_i32_1 : i32, i32, i32
  }
  func.func @transform_5(%arg0: i32) -> (i32, i32, i32) {
    %c0_i32 = arith.constant 0 : i32
    %c0_i32_0 = arith.constant 0 : i32
    %c0_i32_1 = arith.constant 0 : i32
    %c0_i32_2 = arith.constant 0 : i32
    return %c0_i32, %c0_i32_0, %c0_i32_1 : i32, i32, i32
  }
  func.func @transform_6(%arg0: i32) -> (i32, i32) {
    %c0_i32 = arith.constant 0 : i32
    %c0_i32_0 = arith.constant 0 : i32
    %c0_i32_1 = arith.constant 0 : i32
    return %c0_i32, %c0_i32_0 : i32, i32
  }
  func.func @transform_7(%arg0: i32) -> (i32, i32) {
    %c0_i32 = arith.constant 0 : i32
    %c0_i32_0 = arith.constant 0 : i32
    %c0_i32_1 = arith.constant 0 : i32
    return %c0_i32, %c0_i32_0 : i32, i32
  }
  func.func @transform_8(%arg0: i32) -> (i32, i32) {
    %c0_i32 = arith.constant 0 : i32
    %c0_i32_0 = arith.constant 0 : i32
    %c0_i32_1 = arith.constant 0 : i32
    return %c0_i32, %c0_i32_0 : i32, i32
  }
  func.func @transform_9(%arg0: i32) -> (i32, i32) {
    %c0_i32 = arith.constant 0 : i32
    %c0_i32_0 = arith.constant 0 : i32
    %c0_i32_1 = arith.constant 0 : i32
    return %c0_i32, %c0_i32_0 : i32, i32
  }
  func.func @transform_10(%arg0: i32) -> (i32, i32) {
    %c0_i32 = arith.constant 0 : i32
    %c0_i32_0 = arith.constant 0 : i32
    %c0_i32_1 = arith.constant 0 : i32
    return %c0_i32, %c0_i32_0 : i32, i32
  }
  func.func @transform_11(%arg0: i32) -> (i32, i32) {
    %c0_i32 = arith.constant 0 : i32
    %c0_i32_0 = arith.constant 0 : i32
    %c0_i32_1 = arith.constant 0 : i32
    return %c0_i32, %c0_i32_0 : i32, i32
  }
  func.func @transform_12(%arg0: i32) -> (i32, i32) {
    %c0_i32 = arith.constant 0 : i32
    %c0_i32_0 = arith.constant 0 : i32
    %c0_i32_1 = arith.constant 0 : i32
    return %c0_i32, %c0_i32_0 : i32, i32
  }
  func.func @transform_13(%arg0: i32) -> (i32, i32) {
    %c0_i32 = arith.constant 0 : i32
    %c0_i32_0 = arith.constant 0 : i32
    %c0_i32_1 = arith.constant 0 : i32
    return %c0_i32, %c0_i32_0 : i32, i32
  }
  func.func @transform_14(%arg0: i32) -> (i32, i32) {
    %c0_i32 = arith.constant 0 : i32
    %c0_i32_0 = arith.constant 0 : i32
    %c0_i32_1 = arith.constant 0 : i32
    return %c0_i32, %c0_i32_0 : i32, i32
  }
  func.func @transform_15(%arg0: i32) -> (i32, i32) {
    %c0_i32 = arith.constant 0 : i32
    %c0_i32_0 = arith.constant 0 : i32
    %c0_i32_1 = arith.constant 0 : i32
    return %c0_i32, %c0_i32_0 : i32, i32
  }
  func.func @transform_16(%arg0: i32) -> (i32, i32) {
    %c0_i32 = arith.constant 0 : i32
    %c0_i32_0 = arith.constant 0 : i32
    %c0_i32_1 = arith.constant 0 : i32
    return %c0_i32, %c0_i32_0 : i32, i32
  }
  func.func @transform_17(%arg0: i32) -> (i32, i32, i32) {
    %c0_i32 = arith.constant 0 : i32
    %c0_i32_0 = arith.constant 0 : i32
    %c0_i32_1 = arith.constant 0 : i32
    return %arg0, %c0_i32, %c0_i32_0 : i32, i32, i32
  }
  func.func @transform_18(%arg0: i32) -> (i32, i32, i32) {
    %c0_i32 = arith.constant 0 : i32
    %c0_i32_0 = arith.constant 0 : i32
    %c0_i32_1 = arith.constant 0 : i32
    return %arg0, %c0_i32, %c0_i32_0 : i32, i32, i32
  }
  func.func @transform_19(%arg0: i32) -> (i32, i32, i32) {
    %c0_i32 = arith.constant 0 : i32
    %c0_i32_0 = arith.constant 0 : i32
    %c0_i32_1 = arith.constant 0 : i32
    return %arg0, %c0_i32, %c0_i32_0 : i32, i32, i32
  }
}

</mosaic_0001>

<bundles_post_ra>
// kernel: cross_attn_layer_forward.2
= control target key start
LH: loop header
LB: loop body
LE: loop exit
PB: predicated region body
PF: predicated region fallthrough
CT: control target
= control target key end

     0   :  { %vm59_vm0 = vcmask 261120   ;;  %s1206_s1 = inlined_call_operand.vmem [shape: f32[32,64], index: 1, kind: input, shape index: {}]   ;;  %s1207_s0 = inlined_call_operand.vmem [shape: f32[256,32], index: 0, kind: input, shape index: {}]   ;;  %s1208_s2 = inlined_call_operand.vmem [shape: f32[1,64], index: 2, kind: input, shape index: {}]   ;;  %s1209_s3 = inlined_call_operand.vmem [shape: f32[256,32], index: 3, kind: output, shape index: {0}]   ;;  %s1210_s4 = inlined_call_operand.vmem [shape: f32[256,32], index: 4, kind: output, shape index: {1}]  }
   0x1   :  { %v51_v0 = vld [vmem:[%s1206_s1 + $0x18] sm:$0xff]  ;;  %v50_v1 = vld [vmem:[%s1206_s1 + $0x10] sm:$0xff]  ;;  %v49_v2 = vld [vmem:[%s1206_s1 + $0x8] sm:$0xff] }
   0x2   :  { %650 = vmatprep.subr.mxu0 %v51_v0  ;;  %706 = vmatprep.subr.mxu1 %v51_v0  ;;  %v48_v3 = vld [vmem:[%s1206_s1] sm:$0xff]  ;;  %v17_v6 = vld [vmem:[%s1207_s0 + $0x8] sm:$0xff]  ;;  %v18_v8 = vld [vmem:[%s1207_s0 + $0x10] sm:$0xff] }
   0x3   :  { %651 = vmatpush3.msra.mxu0 %v51_v0  ;;  %710 = vmatpush3.msra.mxu1 %v51_v0  ;;  %v16_v4 = vld [vmem:[%s1207_s0] sm:$0xff]  ;;  %v33_v7 = vld [vmem:[%s1207_s0 + $0x88] sm:$0xff]  ;;  %v34_v9 = vld [vmem:[%s1207_s0 + $0x90] sm:$0xff] }
   0x4   :  { %652 = vmatprep.subr.mxu0 %v50_v1  ;;  %707 = vmatprep.subr.mxu1 %v50_v1  ;;  %v32_v5 = vld [vmem:[%s1207_s0 + $0x80] sm:$0xff]  ;;  %v19_v10 = vld [vmem:[%s1207_s0 + $0x18] sm:$0xff]  ;;  %v21_v14 = vld [vmem:[%s1207_s0 + $0x28] sm:$0xff] }
   0x5   :  { %653 = vmatpush3.msra.mxu0 %v50_v1  ;;  %711 = vmatpush3.msra.mxu1 %v50_v1  ;;  %v35_v11 = vld [vmem:[%s1207_s0 + $0x98] sm:$0xff]  ;;  %v20_v12 = vld [vmem:[%s1207_s0 + $0x20] sm:$0xff]  ;;  %v37_v15 = vld [vmem:[%s1207_s0 + $0xa8] sm:$0xff] }
   0x6   :  { %654 = vmatprep.subr.mxu0 %v49_v2  ;;  %708 = vmatprep.subr.mxu1 %v49_v2  ;;  %v36_v13 = vld [vmem:[%s1207_s0 + $0xa0] sm:$0xff]  ;;  %v22_v16 = vld [vmem:[%s1207_s0 + $0x30] sm:$0xff]  ;;  %v23_v18 = vld [vmem:[%s1207_s0 + $0x38] sm:$0xff] }
   0x7   :  { %655 = vmatpush3.msra.mxu0 %v49_v2  ;;  %712 = vmatpush3.msra.mxu1 %v49_v2  ;;  %v38_v17 = vld [vmem:[%s1207_s0 + $0xb0] sm:$0xff]  ;;  %v39_v19 = vld [vmem:[%s1207_s0 + $0xb8] sm:$0xff]  ;;  %v24_v20 = vld [vmem:[%s1207_s0 + $0x40] sm:$0xff] }
   0x8   :  { %656 = vmatprep.subr.mxu0 %v48_v3  ;;  %709 = vmatprep.subr.mxu1 %v48_v3  ;;  %v40_v21 = vld [vmem:[%s1207_s0 + $0xc0] sm:$0xff]  ;;  %v25_v22 = vld [vmem:[%s1207_s0 + $0x48] sm:$0xff]  ;;  %v26_v24 = vld [vmem:[%s1207_s0 + $0x50] sm:$0xff] }
   0x9   :  { %657 = vmatpush3.msra.mxu0 %v48_v3  ;;  %713 = vmatpush3.msra.mxu1 %v48_v3  ;;  %v41_v23 = vld [vmem:[%s1207_s0 + $0xc8] sm:$0xff]  ;;  %v42_v25 = vld [vmem:[%s1207_s0 + $0xd0] sm:$0xff]  ;;  %v27_v26 = vld [vmem:[%s1207_s0 + $0x58] sm:$0xff] }
   0xa   :  { %658 = vmatprep.mubr.msk.f32.mxu0 %vm59_vm0, %v16_v4  ;;  %682 = vmatprep.mubr.msk.f32.mxu1 %vm59_vm0, %v32_v5  ;;  %v43_v27 = vld [vmem:[%s1207_s0 + $0xd8] sm:$0xff]  ;;  %v28_v28 = vld [vmem:[%s1207_s0 + $0x60] sm:$0xff]  ;;  %v29_v30 = vld [vmem:[%s1207_s0 + $0x68] sm:$0xff] }
   0xb   :  { %659 = vmatmul.mubr.msk.f32.vlgmr.msra.gmra.mxu0 %vm59_vm0, %v17_v6  ;;  %683 = vmatmul.mubr.msk.f32.vlgmr.msra.gmra.mxu1 %vm59_vm0, %v33_v7  ;;  %v44_v29 = vld [vmem:[%s1207_s0 + $0xe0] sm:$0xff]  ;;  %v45_v31 = vld [vmem:[%s1207_s0 + $0xe8] sm:$0xff]  ;;  %v30_v32 = vld [vmem:[%s1207_s0 + $0x70] sm:$0xff] }
   0xc   :  { %661 = vmatprep.mubr.msk.f32.mxu0 %vm59_vm0, %v18_v8  ;;  %685 = vmatprep.mubr.msk.f32.mxu1 %vm59_vm0, %v34_v9  ;;  %v46_v33 = vld [vmem:[%s1207_s0 + $0xf0] sm:$0xff]  ;;  %v31_v34 = vld [vmem:[%s1207_s0 + $0x78] sm:$0xff]  ;;  %v884_v36 = vld [vmem:[%s1208_s2] ss:$0 sm:$0xff]  ;;  %s715_s2 = smov 96  }
   0xd   :  { %v47_v35 = vld [vmem:[%s1207_s0 + $0xf8] sm:$0xff] }
   0xf   :  { %662 = vmatmul.mubr.msk.f32.gmra.mxu0 %vm59_vm0, %v19_v10  ;;  %686 = vmatmul.mubr.msk.f32.gmra.mxu1 %vm59_vm0, %v35_v11 }
  0x10   :  { %664 = vmatprep.mubr.msk.f32.mxu0 %vm59_vm0, %v20_v12  ;;  %688 = vmatprep.mubr.msk.f32.mxu1 %vm59_vm0, %v36_v13 }
  0x13   :  { %665 = vmatmul.mubr.msk.f32.gmra.mxu0 %vm59_vm0, %v21_v14  ;;  %689 = vmatmul.mubr.msk.f32.gmra.mxu1 %vm59_vm0, %v37_v15 }
  0x14   :  { %667 = vmatprep.mubr.msk.f32.mxu0 %vm59_vm0, %v22_v16  ;;  %691 = vmatprep.mubr.msk.f32.mxu1 %vm59_vm0, %v38_v17 }
  0x17   :  { %668 = vmatmul.mubr.msk.f32.gmra.mxu0 %vm59_vm0, %v23_v18  ;;  %692 = vmatmul.mubr.msk.f32.gmra.mxu1 %vm59_vm0, %v39_v19 }
  0x18   :  { %670 = vmatprep.mubr.msk.f32.mxu0 %vm59_vm0, %v24_v20  ;;  %694 = vmatprep.mubr.msk.f32.mxu1 %vm59_vm0, %v40_v21 }
  0x1b   :  { %671 = vmatmul.mubr.msk.f32.gmra.mxu0 %vm59_vm0, %v25_v22  ;;  %695 = vmatmul.mubr.msk.f32.gmra.mxu1 %vm59_vm0, %v41_v23 }
  0x1c   :  { %673 = vmatprep.mubr.msk.f32.mxu0 %vm59_vm0, %v26_v24  ;;  %697 = vmatprep.mubr.msk.f32.mxu1 %vm59_vm0, %v42_v25 }
  0x1f   :  { %674 = vmatmul.mubr.msk.f32.gmra.mxu0 %vm59_vm0, %v27_v26  ;;  %698 = vmatmul.mubr.msk.f32.gmra.mxu1 %vm59_vm0, %v43_v27 }
  0x20   :  { %676 = vmatprep.mubr.msk.f32.mxu0 %vm59_vm0, %v28_v28  ;;  %700 = vmatprep.mubr.msk.f32.mxu1 %vm59_vm0, %v44_v29 }
  0x23   :  { %677 = vmatmul.mubr.msk.f32.gmra.mxu0 %vm59_vm0, %v29_v30  ;;  %701 = vmatmul.mubr.msk.f32.gmra.mxu1 %vm59_vm0, %v45_v31 }
  0x24   :  { %679 = vmatprep.mubr.msk.f32.mxu0 %vm59_vm0, %v30_v32  ;;  %703 = vmatprep.mubr.msk.f32.mxu1 %vm59_vm0, %v46_v33 }
  0x27   :  { %680 = vmatmul.mubr.msk.f32.gmra.mxu0 %vm59_vm0, %v31_v34  ;;  %704 = vmatmul.mubr.msk.f32.gmra.mxu1 %vm59_vm0, %v47_v35 }
  0xcb   :  { %v660_v37 = vpop.f32.mrf.mxu0  ;;  %v684_v38 = vpop.f32.mrf.mxu1 }
  0xcc   :  { %v228_v39 = vadd.f32 %v660_v37, %v884_v36  ;;  %v308_v40 = vadd.f32 %v684_v38, %v884_v36 }
  0xcd   :  { %v222_v41 = vpop.f32.mrf.mxu0  ;;  %v302_v42 = vpop.f32.mrf.mxu1 }
  0xce   :  { %382 = vst.msk [vmem:[%s1209_s3 + $0x8] sm:$0xff] %vm59_vm0, %v228_v39  ;;  %398 = vst.msk [vmem:[%s1209_s3 + $0x88] sm:$0xff] %vm59_vm0, %v308_v40  ;;  %v223_v43 = vadd.f32 %v884_v36, %v222_v41  ;;  %v303_v44 = vadd.f32 %v884_v36, %v302_v42  ;;  %479 = vrot.lane.b32.xlu1 %v308_v40, %s715_s2  ;;  %447 = vrot.lane.b32.xlu0 %v228_v39, %s715_s2 }
  0xcf   :  { %v663_v45 = vpop.f32.mrf.mxu0  ;;  %v687_v46 = vpop.f32.mrf.mxu1 }
  0xd0   :  { %381 = vst.msk [vmem:[%s1209_s3] sm:$0xff] %vm59_vm0, %v223_v43  ;;  %397 = vst.msk [vmem:[%s1209_s3 + $0x80] sm:$0xff] %vm59_vm0, %v303_v44  ;;  %v238_v47 = vadd.f32 %v663_v45, %v884_v36  ;;  %v318_v48 = vadd.f32 %v687_v46, %v884_v36 }
  0xd1   :  { %v232_v49 = vpop.f32.mrf.mxu0  ;;  %v312_v50 = vpop.f32.mrf.mxu1 }
  0xd2   :  { %384 = vst.msk [vmem:[%s1209_s3 + $0x18] sm:$0xff] %vm59_vm0, %v238_v47  ;;  %v233_v51 = vadd.f32 %v884_v36, %v232_v49  ;;  %400 = vst.msk [vmem:[%s1209_s3 + $0x98] sm:$0xff] %vm59_vm0, %v318_v48  ;;  %451 = vrot.lane.b32.xlu1 %v238_v47, %s715_s2  ;;  %445 = vrot.lane.b32.xlu0 %v223_v43, %s715_s2  ;;  %v313_v52 = vadd.f32 %v884_v36, %v312_v50 }
  0xd3   :  { %v666_v53 = vpop.f32.mrf.mxu0  ;;  %v690_v54 = vpop.f32.mrf.mxu1 }
  0xd4   :  { %383 = vst.msk [vmem:[%s1209_s3 + $0x10] sm:$0xff] %vm59_vm0, %v233_v51  ;;  %399 = vst.msk [vmem:[%s1209_s3 + $0x90] sm:$0xff] %vm59_vm0, %v313_v52  ;;  %v248_v55 = vadd.f32 %v666_v53, %v884_v36  ;;  %v328_v56 = vadd.f32 %v690_v54, %v884_v36 }
  0xd5   :  { %v242_v57 = vpop.f32.mrf.mxu0  ;;  %v322_v58 = vpop.f32.mrf.mxu1 }
  0xd6   :  { %483 = vrot.lane.b32.xlu1 %v318_v48, %s715_s2  ;;  %477 = vrot.lane.b32.xlu0 %v303_v44, %s715_s2  ;;  %386 = vst.msk [vmem:[%s1209_s3 + $0x28] sm:$0xff] %vm59_vm0, %v248_v55  ;;  %v243_v59 = vadd.f32 %v884_v36, %v242_v57  ;;  %402 = vst.msk [vmem:[%s1209_s3 + $0xa8] sm:$0xff] %vm59_vm0, %v328_v56  ;;  %v323_v60 = vadd.f32 %v884_v36, %v322_v58 }
  0xd7   :  { %v669_v61 = vpop.f32.mrf.mxu0  ;;  %v693_v62 = vpop.f32.mrf.mxu1 }
  0xd8   :  { %385 = vst.msk [vmem:[%s1209_s3 + $0x20] sm:$0xff] %vm59_vm0, %v243_v59  ;;  %401 = vst.msk [vmem:[%s1209_s3 + $0xa0] sm:$0xff] %vm59_vm0, %v323_v60  ;;  %v258_v63 = vadd.f32 %v669_v61, %v884_v36  ;;  %v338_v0 = vadd.f32 %v693_v62, %v884_v36 }
  0xd9   :  { %v252_v1 = vpop.f32.mrf.mxu0  ;;  %v332_v2 = vpop.f32.mrf.mxu1 }
  0xda   :  { %449 = vrot.lane.b32.xlu1 %v233_v51, %s715_s2  ;;  %481 = vrot.lane.b32.xlu0 %v313_v52, %s715_s2  ;;  %388 = vst.msk [vmem:[%s1209_s3 + $0x38] sm:$0xff] %vm59_vm0, %v258_v63  ;;  %v253_v3 = vadd.f32 %v884_v36, %v252_v1  ;;  %404 = vst.msk [vmem:[%s1209_s3 + $0xb8] sm:$0xff] %vm59_vm0, %v338_v0  ;;  %v333_v4 = vadd.f32 %v884_v36, %v332_v2 }
  0xdb   :  { %v672_v5 = vpop.f32.mrf.mxu0  ;;  %v696_v6 = vpop.f32.mrf.mxu1 }
  0xdc   :  { %387 = vst.msk [vmem:[%s1209_s3 + $0x30] sm:$0xff] %vm59_vm0, %v253_v3  ;;  %403 = vst.msk [vmem:[%s1209_s3 + $0xb0] sm:$0xff] %vm59_vm0, %v333_v4  ;;  %v268_v7 = vadd.f32 %v672_v5, %v884_v36  ;;  %v348_v8 = vadd.f32 %v696_v6, %v884_v36 }
  0xdd   :  { %v262_v9 = vpop.f32.mrf.mxu0  ;;  %v342_v10 = vpop.f32.mrf.mxu1 }
  0xde   :  { %455 = vrot.lane.b32.xlu1 %v248_v55, %s715_s2  ;;  %453 = vrot.lane.b32.xlu0 %v243_v59, %s715_s2  ;;  %390 = vst.msk [vmem:[%s1209_s3 + $0x48] sm:$0xff] %vm59_vm0, %v268_v7  ;;  %v263_v11 = vadd.f32 %v884_v36, %v262_v9  ;;  %406 = vst.msk [vmem:[%s1209_s3 + $0xc8] sm:$0xff] %vm59_vm0, %v348_v8  ;;  %v343_v12 = vadd.f32 %v884_v36, %v342_v10 }
  0xdf   :  { %v675_v13 = vpop.f32.mrf.mxu0  ;;  %v699_v14 = vpop.f32.mrf.mxu1 }
  0xe0   :  { %389 = vst.msk [vmem:[%s1209_s3 + $0x40] sm:$0xff] %vm59_vm0, %v263_v11  ;;  %405 = vst.msk [vmem:[%s1209_s3 + $0xc0] sm:$0xff] %vm59_vm0, %v343_v12  ;;  %v278_v15 = vadd.f32 %v675_v13, %v884_v36  ;;  %v358_v16 = vadd.f32 %v699_v14, %v884_v36 }
  0xe1   :  { %v272_v17 = vpop.f32.mrf.mxu0  ;;  %v352_v18 = vpop.f32.mrf.mxu1 }
  0xe2   :  { %487 = vrot.lane.b32.xlu1 %v328_v56, %s715_s2  ;;  %485 = vrot.lane.b32.xlu0 %v323_v60, %s715_s2  ;;  %392 = vst.msk [vmem:[%s1209_s3 + $0x58] sm:$0xff] %vm59_vm0, %v278_v15  ;;  %v273_v19 = vadd.f32 %v884_v36, %v272_v17  ;;  %408 = vst.msk [vmem:[%s1209_s3 + $0xd8] sm:$0xff] %vm59_vm0, %v358_v16  ;;  %v353_v20 = vadd.f32 %v884_v36, %v352_v18 }
  0xe3   :  { %v678_v21 = vpop.f32.mrf.mxu0  ;;  %v702_v22 = vpop.f32.mrf.mxu1 }
  0xe4   :  { %391 = vst.msk [vmem:[%s1209_s3 + $0x50] sm:$0xff] %vm59_vm0, %v273_v19  ;;  %407 = vst.msk [vmem:[%s1209_s3 + $0xd0] sm:$0xff] %vm59_vm0, %v353_v20  ;;  %v288_v23 = vadd.f32 %v678_v21, %v884_v36  ;;  %v368_v24 = vadd.f32 %v702_v22, %v884_v36 }
  0xe5   :  { %v282_v25 = vpop.f32.mrf.mxu0  ;;  %v362_v26 = vpop.f32.mrf.mxu1 }
  0xe6   :  { %459 = vrot.lane.b32.xlu1 %v258_v63, %s715_s2  ;;  %457 = vrot.lane.b32.xlu0 %v253_v3, %s715_s2  ;;  %394 = vst.msk [vmem:[%s1209_s3 + $0x68] sm:$0xff] %vm59_vm0, %v288_v23  ;;  %v283_v27 = vadd.f32 %v884_v36, %v282_v25  ;;  %410 = vst.msk [vmem:[%s1209_s3 + $0xe8] sm:$0xff] %vm59_vm0, %v368_v24  ;;  %v363_v28 = vadd.f32 %v884_v36, %v362_v26 }
  0xe7   :  { %v681_v29 = vpop.f32.mrf.mxu0  ;;  %v705_v30 = vpop.f32.mrf.mxu1 }
  0xe8   :  { %393 = vst.msk [vmem:[%s1209_s3 + $0x60] sm:$0xff] %vm59_vm0, %v283_v27  ;;  %409 = vst.msk [vmem:[%s1209_s3 + $0xe0] sm:$0xff] %vm59_vm0, %v363_v28  ;;  %v298_v31 = vadd.f32 %v681_v29, %v884_v36  ;;  %v378_v32 = vadd.f32 %v705_v30, %v884_v36 }
  0xe9   :  { %v292_v33 = vpop.f32.mrf.mxu0  ;;  %v372_v34 = vpop.f32.mrf.mxu1 }
  0xea   :  { %491 = vrot.lane.b32.xlu1 %v338_v0, %s715_s2  ;;  %489 = vrot.lane.b32.xlu0 %v333_v4, %s715_s2  ;;  %396 = vst.msk [vmem:[%s1209_s3 + $0x78] sm:$0xff] %vm59_vm0, %v298_v31  ;;  %v293_v35 = vadd.f32 %v884_v36, %v292_v33  ;;  %412 = vst.msk [vmem:[%s1209_s3 + $0xf8] sm:$0xff] %vm59_vm0, %v378_v32  ;;  %v373_v37 = vadd.f32 %v884_v36, %v372_v34 }
  0xec   :  { %395 = vst.msk [vmem:[%s1209_s3 + $0x70] sm:$0xff] %vm59_vm0, %v293_v35  ;;  %411 = vst.msk [vmem:[%s1209_s3 + $0xf0] sm:$0xff] %vm59_vm0, %v373_v37 }
  0xee   :  { %463 = vrot.lane.b32.xlu1 %v268_v7, %s715_s2  ;;  %461 = vrot.lane.b32.xlu0 %v263_v11, %s715_s2 }
  0xf2   :  { %495 = vrot.lane.b32.xlu1 %v348_v8, %s715_s2  ;;  %493 = vrot.lane.b32.xlu0 %v343_v12, %s715_s2 }
  0xf6   :  { %467 = vrot.lane.b32.xlu1 %v278_v15, %s715_s2  ;;  %465 = vrot.lane.b32.xlu0 %v273_v19, %s715_s2 }
  0xfa   :  { %499 = vrot.lane.b32.xlu1 %v358_v16, %s715_s2  ;;  %497 = vrot.lane.b32.xlu0 %v353_v20, %s715_s2 }
  0xfe   :  { %471 = vrot.lane.b32.xlu1 %v288_v23, %s715_s2  ;;  %469 = vrot.lane.b32.xlu0 %v283_v27, %s715_s2 }
 0x102   :  { %503 = vrot.lane.b32.xlu1 %v368_v24, %s715_s2  ;;  %501 = vrot.lane.b32.xlu0 %v363_v28, %s715_s2 }
 0x106   :  { %475 = vrot.lane.b32.xlu1 %v298_v31, %s715_s2  ;;  %473 = vrot.lane.b32.xlu0 %v293_v35, %s715_s2 }
 0x10a   :  { %507 = vrot.lane.b32.xlu1 %v378_v32, %s715_s2  ;;  %505 = vrot.lane.b32.xlu0 %v373_v37, %s715_s2 }
 0x140   :  { %v480_v36 = vpop.permute.xlu1 %479  ;;  %v448_v38 = vpop.permute.xlu0 %447 }
 0x141   :  { %558 = vst.msk [vmem:[%s1210_s4 + $0x88] sm:$0xff] %vm59_vm0, %v480_v36  ;;  %542 = vst.msk [vmem:[%s1210_s4 + $0x8] sm:$0xff] %vm59_vm0, %v448_v38 }
 0x144   :  { %v452_v39 = vpop.permute.xlu1 %451  ;;  %v446_v40 = vpop.permute.xlu0 %445 }
 0x145   :  { %544 = vst.msk [vmem:[%s1210_s4 + $0x18] sm:$0xff] %vm59_vm0, %v452_v39  ;;  %541 = vst.msk [vmem:[%s1210_s4] sm:$0xff] %vm59_vm0, %v446_v40 }
 0x148   :  { %v484_v41 = vpop.permute.xlu1 %483  ;;  %v478_v42 = vpop.permute.xlu0 %477 }
 0x149   :  { %560 = vst.msk [vmem:[%s1210_s4 + $0x98] sm:$0xff] %vm59_vm0, %v484_v41  ;;  %557 = vst.msk [vmem:[%s1210_s4 + $0x80] sm:$0xff] %vm59_vm0, %v478_v42 }
 0x14c   :  { %v450_v43 = vpop.permute.xlu1 %449  ;;  %v482_v44 = vpop.permute.xlu0 %481 }
 0x14d   :  { %543 = vst.msk [vmem:[%s1210_s4 + $0x10] sm:$0xff] %vm59_vm0, %v450_v43  ;;  %559 = vst.msk [vmem:[%s1210_s4 + $0x90] sm:$0xff] %vm59_vm0, %v482_v44 }
 0x150   :  { %v456_v45 = vpop.permute.xlu1 %455  ;;  %v454_v46 = vpop.permute.xlu0 %453 }
 0x151   :  { %546 = vst.msk [vmem:[%s1210_s4 + $0x28] sm:$0xff] %vm59_vm0, %v456_v45  ;;  %545 = vst.msk [vmem:[%s1210_s4 + $0x20] sm:$0xff] %vm59_vm0, %v454_v46 }
 0x154   :  { %v488_v47 = vpop.permute.xlu1 %487  ;;  %v486_v48 = vpop.permute.xlu0 %485 }
 0x155   :  { %562 = vst.msk [vmem:[%s1210_s4 + $0xa8] sm:$0xff] %vm59_vm0, %v488_v47  ;;  %561 = vst.msk [vmem:[%s1210_s4 + $0xa0] sm:$0xff] %vm59_vm0, %v486_v48 }
 0x158   :  { %v460_v49 = vpop.permute.xlu1 %459  ;;  %v458_v50 = vpop.permute.xlu0 %457 }
 0x159   :  { %548 = vst.msk [vmem:[%s1210_s4 + $0x38] sm:$0xff] %vm59_vm0, %v460_v49  ;;  %547 = vst.msk [vmem:[%s1210_s4 + $0x30] sm:$0xff] %vm59_vm0, %v458_v50 }
 0x15c   :  { %v492_v51 = vpop.permute.xlu1 %491  ;;  %v490_v52 = vpop.permute.xlu0 %489 }
 0x15d   :  { %564 = vst.msk [vmem:[%s1210_s4 + $0xb8] sm:$0xff] %vm59_vm0, %v492_v51  ;;  %563 = vst.msk [vmem:[%s1210_s4 + $0xb0] sm:$0xff] %vm59_vm0, %v490_v52 }
 0x160   :  { %v464_v53 = vpop.permute.xlu1 %463  ;;  %v462_v54 = vpop.permute.xlu0 %461 }
 0x161   :  { %550 = vst.msk [vmem:[%s1210_s4 + $0x48] sm:$0xff] %vm59_vm0, %v464_v53  ;;  %549 = vst.msk [vmem:[%s1210_s4 + $0x40] sm:$0xff] %vm59_vm0, %v462_v54 }
 0x164   :  { %v496_v55 = vpop.permute.xlu1 %495  ;;  %v494_v56 = vpop.permute.xlu0 %493 }
 0x165   :  { %566 = vst.msk [vmem:[%s1210_s4 + $0xc8] sm:$0xff] %vm59_vm0, %v496_v55  ;;  %565 = vst.msk [vmem:[%s1210_s4 + $0xc0] sm:$0xff] %vm59_vm0, %v494_v56 }
 0x168   :  { %v468_v57 = vpop.permute.xlu1 %467  ;;  %v466_v58 = vpop.permute.xlu0 %465 }
 0x169   :  { %552 = vst.msk [vmem:[%s1210_s4 + $0x58] sm:$0xff] %vm59_vm0, %v468_v57  ;;  %551 = vst.msk [vmem:[%s1210_s4 + $0x50] sm:$0xff] %vm59_vm0, %v466_v58 }
 0x16c   :  { %v500_v59 = vpop.permute.xlu1 %499  ;;  %v498_v60 = vpop.permute.xlu0 %497 }
 0x16d   :  { %568 = vst.msk [vmem:[%s1210_s4 + $0xd8] sm:$0xff] %vm59_vm0, %v500_v59  ;;  %567 = vst.msk [vmem:[%s1210_s4 + $0xd0] sm:$0xff] %vm59_vm0, %v498_v60 }
 0x170   :  { %v472_v61 = vpop.permute.xlu1 %471  ;;  %v470_v62 = vpop.permute.xlu0 %469 }
 0x171   :  { %554 = vst.msk [vmem:[%s1210_s4 + $0x68] sm:$0xff] %vm59_vm0, %v472_v61  ;;  %553 = vst.msk [vmem:[%s1210_s4 + $0x60] sm:$0xff] %vm59_vm0, %v470_v62 }
 0x174   :  { %v504_v63 = vpop.permute.xlu1 %503  ;;  %v502_v0 = vpop.permute.xlu0 %501 }
 0x175   :  { %570 = vst.msk [vmem:[%s1210_s4 + $0xe8] sm:$0xff] %vm59_vm0, %v504_v63  ;;  %569 = vst.msk [vmem:[%s1210_s4 + $0xe0] sm:$0xff] %vm59_vm0, %v502_v0 }
 0x178   :  { %v476_v1 = vpop.permute.xlu1 %475  ;;  %v474_v2 = vpop.permute.xlu0 %473 }
 0x179   :  { %556 = vst.msk [vmem:[%s1210_s4 + $0x78] sm:$0xff] %vm59_vm0, %v476_v1  ;;  %555 = vst.msk [vmem:[%s1210_s4 + $0x70] sm:$0xff] %vm59_vm0, %v474_v2 }
 0x17c   :  { %v508_v3 = vpop.permute.xlu1 %507  ;;  %v506_v4 = vpop.permute.xlu0 %505 }
 0x17d   :  { %572 = vst.msk [vmem:[%s1210_s4 + $0xf8] sm:$0xff] %vm59_vm0, %v508_v3  ;;  %571 = vst.msk [vmem:[%s1210_s4 + $0xf0] sm:$0xff] %vm59_vm0, %v506_v4 }

// kernel: cross_attn_layer_forward.3
= control target key start
LH: loop header
LB: loop body
LE: loop exit
PB: predicated region body
PF: predicated region fallthrough
CT: control target
= control target key end

     0   :  { %s16587_s0 = inlined_call_operand.vmem [shape: f32[16,16,32], index: 0, kind: input, shape index: {}]   ;;  %s16588_s1 = inlined_call_operand.vmem [shape: f32[16,16,32], index: 1, kind: input, shape index: {}]   ;;  %s16589_s2 = inlined_call_operand.vmem [shape: f32[16,16,32], index: 2, kind: input, shape index: {}]   ;;  %s16590_s3 = inlined_call_operand.vmem [shape: f32[16,16,32], index: 3, kind: input, shape index: {}]   ;;  %s16591_s4 = inlined_call_operand.vmem [shape: f32[16,16,32], index: 4, kind: input, shape index: {}]   ;;  %s16592_s5 = inlined_call_operand.vmem [shape: f32[16,16,32], index: 5, kind: input, shape index: {}]   ;;  %s16593_s6 = inlined_call_operand.vmem [shape: f32[16,16], index: 6, kind: input, shape index: {}]   ;;  %s16594_s7 = inlined_call_operand.vmem [shape: f32[1,32], index: 7, kind: input, shape index: {}]   ;;  %s16595_s8 = inlined_call_operand.vmem [shape: f32[1,32], index: 8, kind: input, shape index: {}]   ;;  %s16596_s9 = inlined_call_operand.vmem [shape: f32[1,32], index: 9, kind: input, shape index: {}]   ;;  %s16597_s10 = inlined_call_operand.vmem [shape: f32[1,32], index: 10, kind: input, shape index: {}]   ;;  %s16598_s11 = inlined_call_operand.vmem [shape: f32[32,32], index: 11, kind: input, shape index: {}]   ;;  %s16599_s12 = inlined_call_operand.vmem [shape: f32[1,32], index: 12, kind: input, shape index: {}]   ;;  %s16600_s13 = inlined_call_operand.vmem [shape: f32[32,64], index: 13, kind: input, shape index: {}]   ;;  %s16601_s14 = inlined_call_operand.vmem [shape: f32[1,64], index: 14, kind: input, shape index: {}]   ;;  %s16602_s15 = inlined_call_operand.vmem [shape: f32[32,32], index: 15, kind: input, shape index: {}]   ;;  %s16603_s16 = inlined_call_operand.vmem [shape: f32[1,32], index: 16, kind: input, shape index: {}]   ;;  %s16604_s17 = inlined_call_operand.vmem [shape: f32[16,16,32], index: 17, kind: output, shape index: {0}]   ;;  %s16605_s18 = inlined_call_operand.vmem [shape: f32[16,16,32], index: 18, kind: output, shape index: {1}]   ;;  %s16606_s19 = inlined_call_operand.hbm [shape: f32[16,16,16], index: 19, kind: output, shape index: {2}]  }
   0x1   :  { %16923 = sst [smem:[#allocation91_spill]] %s16587_s0 }
   0x2   :  { %16924 = sst [smem:[#allocation92_spill]] %s16588_s1 }
   0x3   :  { %16925 = sst [smem:[#allocation93_spill]] %s16589_s2 }
   0x4   :  { %16926 = sst [smem:[#allocation94_spill]] %s16590_s3 }
   0x5   :  { %16927 = sst [smem:[#allocation95_spill]] %s16591_s4 }
   0x6   :  { %16928 = sst [smem:[#allocation96_spill]] %s16592_s5 }
   0x7   :  { %16929 = sst [smem:[#allocation97_spill]] %s16593_s6 }
   0x8   :  { %25 = vsyncpa [#allocation3], 0 }
   0x9   :  { %27 = vsyncpa [#allocation3 + $0x1], 0  ;;  %s10811_s0 = smov 0   ;;  %s10813_s30 = smov 0  }
   0xa   :  { %s10815_s20 = smov 0   ;;  %s10817_s21 = smov 0  }
   0xb LB: > { %16930 = sst [smem:[#allocation5_spill]] %s10686_s0  ;;  %s10832_s1 = sadd.s32 4294967295, %s10698_s21   ;;  %s10698_s21 = sphi %s10817_s21, %s17626_s21   ;;  %s10694_s20 = sphi %s10815_s20, %s17628_s20   ;;  %s10690_s30 = sphi %s10813_s30, %s17630_s30   ;;  %s10686_s0 = sphi %s10811_s0, %s17629_s0  }
   0xc   : > { %16931 = sst [smem:[#allocation6_spill]] %s10694_s20  ;;  %s10082_s22 = sadd.s32 4294967294, %s10698_s21  }
   0xd   : > { %s10836_s2 = sadd.s32 1, %s10698_s21   ;;  %s459_s23 = sadd.s32 1, %s10694_s20 }
   0xe   : > { %16932 = sst [smem:[#allocation7_spill]] %s10836_s2  ;;  %s456_s24 = ssub.s32 %s10698_s21, %s10836_s2 }
   0xf   : > { %p469_p0 = scmp.ne.s32.totalorder %s10694_s20, %s10690_s30  ;;  %p457_p1 = scmp.eq.s32.totalorder %s456_s24, 0 }
  0x10   : > { %p470_p2 = scmp.eq.s32.totalorder %s10832_s1, 15  ;;  %p475_p3 = scmp.ne.s32.totalorder %s10690_s30, %s10686_s0 }
  0x11   : > { %p476_p4 = scmp.eq.s32.totalorder %s10082_s22, 15  ;;  %p10085_p7 = scmp.ge.s32.totalorder %s10698_s21, 1 }
  0x12   : > { %s10847_s25 = scalar_select %p457_p1, %s10694_s20, %s459_s23  }
  0x13   : > { %p10849_p5 = por %p470_p2, %p469_p0  ;;  %p10853_p6 = por %p476_p4, %p475_p3 }
  0x14   : > { %16933 = sst [smem:[#allocation8_spill]] %s10847_s25  ;;  %p555_p8 = scmp.lt.s32.totalorder %s10698_s21, 17 }
  0x15   : > { %s16935_s26 = scalar_select %p10853_p6, 1, 0 }
  0x16   : > { %p556_p9 = pnand %p10085_p7, %p555_p8 }
  0x17   : > { %16936 = sst [smem:[#allocation9_spill]] %s16935_s26 }
  0x18   : > { %559 = sbr.rel (%p556_p9) target bundleno = 6285 (0x188d), region = 88 }
  0x1d   : > { %p626_p10 = scmp.lt.s32.totalorder %s10832_s1, 15  ;;  %vm667_vm0 = vcmask 261120   ;;  %s16937_s23 = sld [smem:[#allocation91_spill]]  ;;  %v658_v28 = vld [vmem:[%s16600_s13 + $0x18] sm:$0xff]  ;;  %v657_v29 = vld [vmem:[%s16600_s13 + $0x10] sm:$0xff]  ;;  %v656_v31 = vld [vmem:[%s16600_s13 + $0x8] sm:$0xff] }
  0x1e   : > { %s16938_s2 = sld [smem:[#allocation92_spill]]  ;;  %v653_v30 = vld [vmem:[%s16598_s11 + $0x18] sm:$0xff]  ;;  %10307 = vmatprep.subr.mxu1 %v658_v28  ;;  %v652_v32 = vld [vmem:[%s16598_s11 + $0x10] sm:$0xff]  ;;  %v655_v33 = vld [vmem:[%s16600_s13] sm:$0xff]  ;;  %vm1191_vm1 = vcmask 64512   ;;  %s10700_s20 = smov 120  }
  0x1f   : > { %s627_s27 = scalar_select %p626_p10, %s10832_s1, 15  ;;  %10296 = vmatprep.subr.mxu0 %v653_v30  ;;  %10308 = vmatpush3.msra.mxu1 %v658_v28  ;;  %v651_v34 = vld [vmem:[%s16598_s11 + $0x8] sm:$0xff]  ;;  %v650_v35 = vld [vmem:[%s16598_s11] sm:$0xff]  ;;  %vm1331_vm2 = vcmask 130112   ;;  %vm1468_vm3 = vcmask 1041409   ;;  %vm1470_vm4 = vcmask 1042434  }
  0x20   : > { %10297 = vmatpush3.msra.mxu0 %v653_v30  ;;  %10309 = vmatprep.subr.mxu1 %v657_v29  ;;  %v10095_v49 = vld [vmem:[%s16594_s7] ss:$0 sm:$0xff]  ;;  %s16945_s4 = sld [smem:[#allocation95_spill]]  ;;  %vm1472_vm5 = vcmask 1043459   ;;  %vm1474_vm6 = vcmask 1044484   ;;  %vm1476_vm7 = vcmask 1045509  }
  0x21   : > { %s10861_s28 = sshll.u32 %s627_s27, 4  ;;  %10310 = vmatpush3.msra.mxu1 %v657_v29  ;;  %10298 = vmatprep.subr.mxu0 %v652_v32  ;;  %v10096_v51 = vld [vmem:[%s16595_s8] ss:$0 sm:$0xff]  ;;  %s16976_s5 = sld [smem:[#allocation96_spill]]  ;;  %vm1478_vm8 = vcmask 1046534   ;;  %vm1480_vm9 = vcmask 1047559  }
  0x22   : > { %10311 = vmatprep.subr.mxu1 %v656_v31  ;;  %10299 = vmatpush3.msra.mxu0 %v652_v32  ;;  %vm1898_vm10 = vcmask 130048   ;;  %s16763_s0 = smov 88   ;;  %s16775_s29 = smov 104  }
  0x23   : > { %s10867_s24 = scalar_lea.vmem %s16937_s23, %s10861_s28  ;;  %10312 = vmatpush3.msra.mxu1 %v656_v31  ;;  %10300 = vmatprep.subr.mxu0 %v651_v34  ;;  %s16761_s23 = smov 112  }
  0x24   : > { %v646_v0 = vld [vmem:[%s10867_s24] sm:$0xff]  ;;  %s10874_s26 = scalar_lea.vmem %s16938_s2, %s10861_s28  ;;  %v647_v1 = vld [vmem:[%s10867_s24 + $0x8] sm:$0xff]  ;;  %10313 = vmatprep.subr.mxu1 %v655_v33  ;;  %10301 = vmatpush3.msra.mxu0 %v651_v34  ;;  %s16765_s2 = smov 96  }
  0x25   : > { %v668_v2 = vsel %vm667_vm0, %v646_v0, 0.0  ;;  %v648_v3 = vld [vmem:[%s10874_s26] sm:$0xff]  ;;  %v649_v4 = vld [vmem:[%s10874_s26 + $0x8] sm:$0xff]  ;;  %v671_v6 = vsel %vm667_vm0, %v647_v1, 0.0  ;;  %10314 = vmatpush3.msra.mxu1 %v655_v33  ;;  %10302 = vmatprep.subr.mxu0 %v650_v35  ;;  %s16773_s22 = smov 80   ;;  %s17318_s25 = smov 96  }
  0x26   : > { %669 = vadd.xlane.f32.xlu0 %v668_v2  ;;  %v711_v5 = vsel %vm667_vm0, %v648_v3, 0.0  ;;  %v714_v7 = vsel %vm667_vm0, %v649_v4, 0.0  ;;  %10303 = vmatpush3.msra.mxu0 %v650_v35  ;;  %v10100_v2 = vld [vmem:[%s16601_s14] ss:$0 sm:$0xff]  ;;  %v920_v31 = vld [vmem:[%s16945_s4 + $0x28] sm:$0xff]  ;;  %v921_v32 = vld [vmem:[%s16945_s4 + $0x30] sm:$0xff] }
  0x27   : > { %712 = vadd.xlane.f32.xlu1 %v711_v5  ;;  %s17362_s6 = sld [smem:[#allocation97_spill]]  ;;  %s17414_s27 = smov 88  }
  0x2a   : > { %672 = vadd.xlane.f32.xlu0 %v671_v6  ;;  %v10097_v6 = vld [vmem:[%s16599_s12] ss:$0 sm:$0xff] }
  0x2b   : > { %715 = vadd.xlane.f32.xlu1 %v714_v7 }
  0xaf   : > { %v670_v8 = vpop.xlane.xlu0 %669 }
  0xb0   : > { %v675_v9 = vmul.f32 0.03125, %v670_v8  ;;  %v713_v10 = vpop.xlane.xlu1 %712 }
  0xb1   : > { %v717_v11 = vmul.f32 0.03125, %v713_v10 }
  0xb2   : > { %v677_v12 = vsub.f32 %v646_v0, %v675_v9 }
  0xb3   : > { %v10883_v13 = vsub.f32 %v648_v3, %v717_v11  ;;  %v673_v14 = vpop.xlane.xlu0 %672 }
  0xb4   : > { %v676_v15 = vmul.f32 0.03125, %v673_v14  ;;  %v716_v16 = vpop.xlane.xlu1 %715  ;;  %v679_v17 = vmul.f32 %v677_v12, %v677_v12  ;;  %v917_v14 = vld [vmem:[%s16945_s4 + $0x10] sm:$0xff] }
  0xb5   : > { %v718_v18 = vmul.f32 0.03125, %v716_v16  ;;  %v721_v19 = vmul.f32 %v10883_v13, %v10883_v13 }
  0xb6   : > { %v678_v20 = vsub.f32 %v647_v1, %v676_v15  ;;  %v681_v21 = vsel %vm667_vm0, %v679_v17, 0.0  ;;  %v919_v17 = vld [vmem:[%s16945_s4 + $0x20] sm:$0xff] }
  0xb7   : > { %v10888_v22 = vsub.f32 %v649_v4, %v718_v18  ;;  %682 = vadd.xlane.f32.xlu0 %v681_v21  ;;  %v723_v23 = vsel %vm667_vm0, %v721_v19, 0.0  ;;  %v931_v21 = vld [vmem:[%s16945_s4 + $0x80] sm:$0xff] }
  0xb8   : > { %v680_v24 = vmul.f32 %v678_v20, %v678_v20 }
  0xb9   : > { %v722_v25 = vmul.f32 %v10888_v22, %v10888_v22 }
  0xba   : > { %v684_v26 = vsel %vm667_vm0, %v680_v24, 0.0 }
  0xbb   : > { %724 = vadd.xlane.f32.xlu0 %v723_v23  ;;  %685 = vadd.xlane.f32.xlu1 %v684_v26  ;;  %v726_v27 = vsel %vm667_vm0, %v722_v25, 0.0  ;;  %v918_v25 = vld [vmem:[%s16945_s4 + $0x18] sm:$0xff]  ;;  %v933_v26 = vld [vmem:[%s16945_s4 + $0x90] sm:$0xff] }
  0xbf   : > { %727 = vadd.xlane.f32.xlu1 %v726_v27 }
 0x140   : > { %v683_v36 = vpop.xlane.xlu0 %682 }
 0x141   : > { %v687_v37 = vmul.f32 0.03125, %v683_v36 }
 0x143   : > { %v689_v38 = vadd.f32 1e-05, %v687_v37  ;;  %v932_v37 = vld [vmem:[%s16945_s4 + $0x88] sm:$0xff] }
 0x144   : > { %v686_v39 = vpop.xlane.xlu1 %685  ;;  %v725_v40 = vpop.xlane.xlu0 %724 }
 0x145   : > { %10541 = vrsqrt.f32 %v689_v38  ;;  %v688_v41 = vmul.f32 0.03125, %v686_v39  ;;  %v729_v42 = vmul.f32 0.03125, %v725_v40  ;;  %v935_v38 = vld [vmem:[%s16945_s4 + $0xa0] sm:$0xff] }
 0x147   : > { %v690_v43 = vadd.f32 1e-05, %v688_v41  ;;  %v731_v44 = vadd.f32 1e-05, %v729_v42 }
 0x148   : > { %v728_v45 = vpop.xlane.xlu1 %727 }
 0x149   : > { %10543 = vrsqrt.f32 %v690_v43  ;;  %v730_v46 = vmul.f32 0.03125, %v728_v45  ;;  %v934_v43 = vld [vmem:[%s16945_s4 + $0x98] sm:$0xff] }
 0x14a   : > { %10545 = vrsqrt.f32 %v731_v44  ;;  %v923_v44 = vld [vmem:[%s16945_s4 + $0x40] sm:$0xff] }
 0x14b   : > { %v732_v47 = vadd.f32 1e-05, %v730_v46 }
 0x14d   : > { %10547 = vrsqrt.f32 %v732_v47 }
 0x152   : > { %v10542_v48 = vpop.eup %10541 }
 0x153   : > { %v693_v50 = vmul.f32 %v10542_v48, %v677_v12  ;;  %v915_v12 = vld [vmem:[%s16945_s4] sm:$0xff] }
 0x155   : > { %v701_v52 = vmul.f32 %v10095_v49, %v693_v50  ;;  %v937_v50 = vld [vmem:[%s16945_s4 + $0xb0] sm:$0xff] }
 0x156   : > { %v10544_v53 = vpop.eup %10543 }
 0x157   : > { %v10546_v54 = vpop.eup %10545  ;;  %v10925_v55 = vadd.f32 %v10096_v51, %v701_v52  ;;  %v694_v56 = vmul.f32 %v10544_v53, %v678_v20  ;;  %v916_v20 = vld [vmem:[%s16945_s4 + $0x8] sm:$0xff] }
 0x158   : > { %v735_v57 = vmul.f32 %v10546_v54, %v10883_v13 }
 0x159   : > { %16939 = vst [vmem:[#allocation10_spill] sm:$0xff] %v10925_v55  ;;  %10315 = vmatprep.mubr.msk.f32.mxu1 %vm667_vm0, %v10925_v55  ;;  %v702_v58 = vmul.f32 %v10095_v49, %v694_v56  ;;  %v936_v56 = vld [vmem:[%s16945_s4 + $0xa8] sm:$0xff] }
 0x15a   : > { %v10548_v59 = vpop.eup %10547  ;;  %v737_v60 = vmul.f32 %v10095_v49, %v735_v57  ;;  %v925_v57 = vld [vmem:[%s16945_s4 + $0x50] sm:$0xff] }
 0x15b   : > { %v10930_v61 = vadd.f32 %v10096_v51, %v702_v58  ;;  %v736_v62 = vmul.f32 %v10548_v59, %v10888_v22 }
 0x15c   : > { %v739_v63 = vadd.f32 %v10096_v51, %v737_v60 }
 0x15d   : > { %16940 = vst [vmem:[#allocation11_spill] sm:$0xff] %v10930_v61  ;;  %10316 = vmatmul.mubr.msk.f32.vlgmr.msra.gmra.mxu1 %vm667_vm0, %v10930_v61  ;;  %v738_v0 = vmul.f32 %v10095_v49, %v736_v62  ;;  %v922_v49 = vld [vmem:[%s16945_s4 + $0x38] sm:$0xff]  ;;  %v968_v61 = vld [vmem:[%s16976_s5 + $0xa8] sm:$0xff] }
 0x15e   : > { %10304 = vmatprep.mubr.msk.f32.mxu0 %vm667_vm0, %v739_v63  ;;  %v924_v63 = vld [vmem:[%s16945_s4 + $0x48] sm:$0xff] }
 0x15f   : > { %v740_v1 = vadd.f32 %v10096_v51, %v738_v0  ;;  %v939_v0 = vld [vmem:[%s16945_s4 + $0xc0] sm:$0xff] }
 0x161   : > { %10305 = vmatmul.mubr.msk.f32.vlgmr.msra.gmra.mxu0 %vm667_vm0, %v740_v1 }
 0x21d   : > { %v10317_v3 = vpop.f32.mrf.mxu1 }
 0x21e   : > { %v10940_v4 = vadd.f32 %v10317_v3, %v10100_v2 }
 0x21f   : > { %v906_v5 = vpop.f32.mrf.mxu1 }
 0x220   : > { %16941 = vst [vmem:[#allocation12_spill] sm:$0xff] %v10940_v4  ;;  %v10945_v7 = vadd.f32 %v10100_v2, %v906_v5  ;;  %2238 = vrot.lane.b32.xlu1 %v10940_v4, %s10700_s20  ;;  %1923 = vrot.lane.b32.xlu0 %v10940_v4, %s16765_s2  ;;  %v11004_v22 = vmul.f32 %v916_v20, %v10940_v4 }
 0x221   : > { %10318 = vmatprep.subr.msk.mxu0 %vm1191_vm1, %v10940_v4  ;;  %v10306_v8 = vpop.f32.mrf.mxu0  ;;  %v11020_v28 = vmul.f32 %v918_v25, %v10940_v4  ;;  %v11036_v34 = vmul.f32 %v920_v31, %v10940_v4  ;;  %v11052_v40 = vmul.f32 %v932_v37, %v10940_v4  ;;  %v11068_v46 = vmul.f32 %v934_v43, %v10940_v4  ;;  %v929_v37 = vld [vmem:[%s16945_s4 + $0x70] sm:$0xff] }
 0x222   : > { %16942 = vst [vmem:[#allocation13_spill] sm:$0xff] %v10945_v7  ;;  %v10953_v9 = vadd.f32 %v10306_v8, %v10097_v6  ;;  %10319 = vmatpush3.xpose.msk.msra.mxu0 %vm1191_vm1, %v10940_v4  ;;  %v10979_v13 = vmul.f32 %v915_v12, %v10945_v7  ;;  %v10987_v16 = vmul.f32 %v917_v14, %v10945_v7  ;;  %16949 = vst [vmem:[#allocation19_spill] sm:$0xff] %v11004_v22  ;;  %v10702_v8 = vmov 1966171168   ;;  %v927_v14 = vld [vmem:[%s16945_s4 + $0x60] sm:$0xff] }
 0x223   : > { %10320 = vmatprep.subr.msk.mxu0 %vm1191_vm1, %v10945_v7  ;;  %v819_v10 = vpop.f32.mrf.mxu0  ;;  %v10995_v19 = vmul.f32 %v919_v17, %v10945_v7  ;;  %v11009_v24 = vmul.f32 %v931_v21, %v10945_v7  ;;  %v1611_v27 = vsel %vm1191_vm1, %v11004_v22, 0.0  ;;  %16951 = vst [vmem:[#allocation21_spill] sm:$0xff] %v11020_v28  ;;  %v11025_v30 = vmul.f32 %v933_v26, %v10945_v7  ;;  %v926_v21 = vld [vmem:[%s16945_s4 + $0x58] sm:$0xff]  ;;  %v941_v26 = vld [vmem:[%s16945_s4 + $0xd0] sm:$0xff] }
 0x224   : > { %16943 = vst [vmem:[#allocation14_spill] sm:$0xff] %v10953_v9  ;;  %v10959_v11 = vadd.f32 %v10097_v6, %v819_v10  ;;  %2234 = vrot.lane.b32.xlu1 %v10953_v9, %s10700_s20  ;;  %16946 = vst [vmem:[#allocation16_spill] sm:$0xff] %v10979_v13  ;;  %v1608_v15 = vsel %vm1191_vm1, %v10979_v13, 0.0  ;;  %v1614_v18 = vsel %vm1191_vm1, %v10987_v16, 0.0  ;;  %v1617_v33 = vsel %vm1191_vm1, %v11020_v28, 0.0  ;;  %v938_v6 = vld [vmem:[%s16945_s4 + $0xb8] sm:$0xff] }
 0x225   : > { %16947 = vst [vmem:[#allocation17_spill] sm:$0xff] %v10987_v16  ;;  %16948 = vst [vmem:[#allocation18_spill] sm:$0xff] %v10995_v19  ;;  %v1620_v23 = vsel %vm1191_vm1, %v10995_v19, 0.0  ;;  %v1656_v29 = vsel %vm1191_vm1, %v11009_v24, 0.0  ;;  %v1662_v35 = vsel %vm1191_vm1, %v11025_v30, 0.0  ;;  %v11041_v36 = vmul.f32 %v921_v32, %v10945_v7 }
 0x226   : > { %16944 = vst [vmem:[#allocation15_spill] sm:$0xff] %v10959_v11  ;;  %10321 = vmatpush3.xpose.msk.msra.mxu0 %vm1191_vm1, %v10945_v7  ;;  %2232 = vrot.lane.b32.xlu0 %v10959_v11, %s10700_s20  ;;  %16950 = vst [vmem:[#allocation20_spill] sm:$0xff] %v11009_v24  ;;  %v1623_v39 = vsel %vm1191_vm1, %v11036_v34, 0.0  ;;  %v11057_v42 = vmul.f32 %v935_v38, %v10945_v7  ;;  %v1659_v45 = vsel %vm1191_vm1, %v11052_v40, 0.0  ;;  %v1665_v51 = vsel %vm1191_vm1, %v11068_v46, 0.0 }
 0x227   : > { %10322 = vmatprep.mubr.msk.f32.mxu0 %vm1191_vm1, %v10959_v11  ;;  %16952 = vst [vmem:[#allocation22_spill] sm:$0xff] %v11025_v30  ;;  %16953 = vst [vmem:[#allocation23_spill] sm:$0xff] %v11041_v36  ;;  %v1626_v41 = vsel %vm1191_vm1, %v11041_v36, 0.0  ;;  %v11073_v48 = vmul.f32 %v923_v44, %v10945_v7  ;;  %v11084_v52 = vmul.f32 %v922_v49, %v10940_v4  ;;  %v983_v10 = vunpack.c.l.s4 %v10702_v8  ;;  %v928_v44 = vld [vmem:[%s16945_s4 + $0x68] sm:$0xff] }
 0x228   : > { %1921 = vrot.lane.b32.xlu1 %v10945_v7, %s16765_s2  ;;  %16954 = vst [vmem:[#allocation24_spill] sm:$0xff] %v11052_v40  ;;  %16955 = vst [vmem:[#allocation25_spill] sm:$0xff] %v11057_v42  ;;  %v1668_v47 = vsel %vm1191_vm1, %v11057_v42, 0.0  ;;  %v11089_v54 = vmul.f32 %v937_v50, %v10945_v7  ;;  %v11100_v59 = vmul.f32 %v936_v56, %v10940_v4  ;;  %v16614_v12 = vlaneseq  ;;  %v942_v56 = vld [vmem:[%s16945_s4 + $0xd8] sm:$0xff]  ;;  %s17284_s2 = sld [smem:[#allocation94_spill]] }
 0x229   : > { %10323 = vmatmul.mubr.msk.f32.vlgmr.msra.gmra.mxu0 %vm1191_vm1, %v10953_v9  ;;  %16956 = vst [vmem:[#allocation26_spill] sm:$0xff] %v11068_v46  ;;  %16957 = vst [vmem:[#allocation27_spill] sm:$0xff] %v11073_v48  ;;  %v1632_v53 = vsel %vm1191_vm1, %v11073_v48, 0.0  ;;  %v1629_v58 = vsel %vm1191_vm1, %v11084_v52, 0.0  ;;  %v11105_v62 = vmul.f32 %v925_v57, %v10945_v7  ;;  %v11116_v2 = vmul.f32 %v924_v63, %v10940_v4 }
 0x22a   : > { %16958 = vst [vmem:[#allocation28_spill] sm:$0xff] %v11084_v52  ;;  %16959 = vst [vmem:[#allocation29_spill] sm:$0xff] %v11089_v54  ;;  %v1674_v60 = vsel %vm1191_vm1, %v11089_v54, 0.0  ;;  %v1671_v1 = vsel %vm1191_vm1, %v11100_v59, 0.0  ;;  %v11121_v5 = vmul.f32 %v939_v0, %v10945_v7  ;;  %v11132_v17 = vmul.f32 %v938_v6, %v10940_v4  ;;  %v930_v6 = vld [vmem:[%s16945_s4 + $0x78] sm:$0xff] }
 0x22b   : > { %16960 = vst [vmem:[#allocation30_spill] sm:$0xff] %v11100_v59  ;;  %16961 = vst [vmem:[#allocation31_spill] sm:$0xff] %v11105_v62  ;;  %v1638_v3 = vsel %vm1191_vm1, %v11105_v62, 0.0  ;;  %v11137_v20 = vmul.f32 %v927_v14, %v10945_v7  ;;  %v11143_v25 = vshrl.u32 %v16614_v12, 7  ;;  %v11156_v32 = vmul.f32 %v941_v26, %v10945_v7 }
 0x22c   : > { %2236 = vrot.lane.b32.xlu1 %v10945_v7, %s10700_s20  ;;  %16962 = vst [vmem:[#allocation32_spill] sm:$0xff] %v11116_v2  ;;  %16963 = vst [vmem:[#allocation33_spill] sm:$0xff] %v11121_v5  ;;  %v11175_v43 = vmul.f32 %v929_v37, %v10945_v7  ;;  %v11190_v50 = vmul.f32 %v928_v44, %v10940_v4  ;;  %v11213_v0 = vmul.f32 %v942_v56, %v10940_v4  ;;  %v17020_v36 = vlaneseq }
 0x22d   : > { %16964 = vst [vmem:[#allocation34_spill] sm:$0xff] %v11132_v17  ;;  %16965 = vst [vmem:[#allocation35_spill] sm:$0xff] %v11137_v20  ;;  %v1644_v31 = vsel %vm1191_vm1, %v11137_v20, 0.0 }
 0x22e   : > { %16967 = vst [vmem:[#allocation37_spill] sm:$0xff] %v11156_v32  ;;  %16970 = vst [vmem:[#allocation40_spill] sm:$0xff] %v11175_v43  ;;  %v1647_v63 = vsel %vm1191_vm1, %v11190_v50, 0.0  ;;  %v1689_v14 = vsel %vm1191_vm1, %v11213_v0, 0.0  ;;  %v1321_v59 = vand.u32 127, %v17020_v36 }
 0x22f   : > { %16971 = vst [vmem:[#allocation41_spill] sm:$0xff] %v11190_v50  ;;  %16974 = vst [vmem:[#allocation44_spill] sm:$0xff] %v11213_v0 }
 0x245   : > { %1609 = vadd.xlane.f32.xlu0 %v1608_v15  ;;  %v1635_v15 = vsel %vm1191_vm1, %v11116_v2, 0.0 }
 0x249   : > { %1615 = vadd.xlane.f32.xlu0 %v1614_v18  ;;  %v1680_v18 = vsel %vm1191_vm1, %v11121_v5, 0.0 }
 0x24d   : > { %1621 = vadd.xlane.f32.xlu0 %v1620_v23  ;;  %v984_v23 = vunpack.c.0.s8 %v983_v10  ;;  %v963_v10 = vld [vmem:[%s16976_s5 + $0x80] sm:$0xff] }
 0x250   : > { %1612 = vadd.xlane.f32.xlu1 %v1611_v27  ;;  %v1677_v27 = vsel %vm1191_vm1, %v11132_v17, 0.0 }
 0x251   : > { %1657 = vadd.xlane.f32.xlu0 %v1656_v29  ;;  %v11151_v29 = vmul.f32 %v926_v21, %v10940_v4 }
 0x253   : > { %16966 = vst [vmem:[#allocation36_spill] sm:$0xff] %v11151_v29  ;;  %v1641_v38 = vsel %vm1191_vm1, %v11151_v29, 0.0 }
 0x254   : > { %1618 = vadd.xlane.f32.xlu1 %v1617_v33  ;;  %v940_v33 = vld [vmem:[%s16945_s4 + $0xc8] sm:$0xff] }
 0x255   : > { %1663 = vadd.xlane.f32.xlu0 %v1662_v35  ;;  %v11162_v35 = vsub.s32 %v984_v23, %v11143_v25  ;;  %v944_v23 = vld [vmem:[%s16945_s4 + $0xe8] sm:$0xff] }
 0x257   : > { %16968 = vst [vmem:[#allocation38_spill] sm:$0xff] %v11162_v35 }
 0x258   : > { %1624 = vadd.xlane.f32.xlu1 %v1623_v39  ;;  %v11170_v39 = vmul.f32 %v940_v33, %v10940_v4  ;;  %v946_v33 = vld [vmem:[%s16945_s4 + $0xf8] sm:$0xff] }
 0x259   : > { %1627 = vadd.xlane.f32.xlu0 %v1626_v41  ;;  %v1686_v41 = vsel %vm1191_vm1, %v11156_v32, 0.0 }
 0x25a   : > { %16969 = vst [vmem:[#allocation39_spill] sm:$0xff] %v11170_v39  ;;  %v1683_v49 = vsel %vm1191_vm1, %v11170_v39, 0.0 }
 0x25c   : > { %1660 = vadd.xlane.f32.xlu1 %v1659_v45  ;;  %v11182_v45 = vrot.slane %v10953_v9, %v11162_v35 }
 0x25d   : > { %1669 = vadd.xlane.f32.xlu0 %v1668_v47  ;;  %v943_v47 = vld [vmem:[%s16945_s4 + $0xe0] sm:$0xff] }
 0x25e   : > { %v11202_v57 = vrot.slane %v11182_v45, %v11162_v35 }
 0x260   : > { %1666 = vadd.xlane.f32.xlu1 %v1665_v51  ;;  %v1650_v51 = vsel %vm1191_vm1, %v11175_v43, 0.0 }
 0x261   : > { %1633 = vadd.xlane.f32.xlu0 %v1632_v53  ;;  %v11195_v53 = vmul.f32 %v943_v47, %v10945_v7 }
 0x263   : > { %16972 = vst [vmem:[#allocation42_spill] sm:$0xff] %v11195_v53 }
 0x264   : > { %1630 = vadd.xlane.f32.xlu1 %v1629_v58  ;;  %v11205_v58 = vsub.s32 0, %v11143_v25 }
 0x265   : > { %1675 = vadd.xlane.f32.xlu0 %v1674_v60  ;;  %v945_v60 = vld [vmem:[%s16945_s4 + $0xf0] sm:$0xff] }
 0x266   : > { %16973 = vst [vmem:[#allocation43_spill] sm:$0xff] %v11205_v58  ;;  %v1114_v8 = vrot.slane %v11202_v57, %v11205_v58 }
 0x268   : > { %1672 = vadd.xlane.f32.xlu1 %v1671_v1  ;;  %v1692_v1 = vsel %vm1191_vm1, %v11195_v53, 0.0  ;;  %v11235_v21 = vmul.f32 %v1114_v8, %v963_v10  ;;  %v970_v53 = vld [vmem:[%s16976_s5 + $0xb8] sm:$0xff] }
 0x269   : > { %1639 = vadd.xlane.f32.xlu0 %v1638_v3  ;;  %v11218_v3 = vmul.f32 %v945_v60, %v10945_v7 }
 0x26a   : > { %16978 = vst [vmem:[#allocation47_spill] sm:$0xff] %v11235_v21 }
 0x26b   : > { %16975 = vst [vmem:[#allocation45_spill] sm:$0xff] %v11218_v3 }
 0x26c   : > { %1636 = vadd.xlane.f32.xlu1 %v1635_v15  ;;  %v11231_v15 = vmul.f32 %v930_v6, %v10940_v4 }
 0x26d   : > { %1681 = vadd.xlane.f32.xlu0 %v1680_v18  ;;  %v1698_v18 = vsel %vm1191_vm1, %v11218_v3, 0.0 }
 0x26e   : > { %16977 = vst [vmem:[#allocation46_spill] sm:$0xff] %v11231_v15  ;;  %v1653_v26 = vsel %vm1191_vm1, %v11231_v15, 0.0 }
 0x270   : > { %1678 = vadd.xlane.f32.xlu1 %v1677_v27  ;;  %v11243_v27 = vmul.f32 %v944_v23, %v10940_v4 }
 0x271   : > { %1645 = vadd.xlane.f32.xlu0 %v1644_v31  ;;  %v1240_v31 = vsel %vm1191_vm1, %v11235_v21, 0.0 }
 0x272   : > { %16979 = vst [vmem:[#allocation48_spill] sm:$0xff] %v11243_v27  ;;  %v1695_v37 = vsel %vm1191_vm1, %v11243_v27, 0.0 }
 0x274   : > { %1642 = vadd.xlane.f32.xlu1 %v1641_v38  ;;  %v11253_v38 = vmul.f32 %v946_v33, %v10940_v4  ;;  %v1030_v33 = vcombine.high %v10953_v9, %v10953_v9 }
 0x275   : > { %1687 = vadd.xlane.f32.xlu0 %v1686_v41  ;;  %v964_v41 = vld [vmem:[%s16976_s5 + $0x88] sm:$0xff] }
 0x276   : > { %16980 = vst [vmem:[#allocation49_spill] sm:$0xff] %v11253_v38  ;;  %v1701_v44 = vsel %vm1191_vm1, %v11253_v38, 0.0  ;;  %v11260_v47 = vmul.f32 %v1114_v8, %v964_v41  ;;  %v947_v8 = vld [vmem:[%s16976_s5] sm:$0xff]  ;;  %v1075_v41 = vcombine.high %v11202_v57, %v11202_v57 }
 0x277   : > { %v967_v57 = vld [vmem:[%s16976_s5 + $0xa0] sm:$0xff] }
 0x278   : > { %1684 = vadd.xlane.f32.xlu1 %v1683_v49  ;;  %16981 = vst [vmem:[#allocation50_spill] sm:$0xff] %v11260_v47  ;;  %v988_v49 = vrot.slane %v10959_v11, %v11162_v35 }
 0x279   : > { %1651 = vadd.xlane.f32.xlu0 %v1650_v51  ;;  %v1243_v51 = vsel %vm1191_vm1, %v11260_v47, 0.0 }
 0x27a   : > { %v1004_v56 = vrot.slane %v988_v49, %v11162_v35 }
 0x27c   : > { %1648 = vadd.xlane.f32.xlu1 %v1647_v63 }
 0x27d   : > { %1693 = vadd.xlane.f32.xlu0 %v1692_v1  ;;  %v1082_v1 = vrot.slane %v1004_v56, %v11205_v58 }
 0x27f   : > { %v11275_v10 = vmul.f32 %v1082_v1, %v947_v8 }
 0x280   : > { %1690 = vadd.xlane.f32.xlu1 %v1689_v14 }
 0x281   : > { %1699 = vadd.xlane.f32.xlu0 %v1698_v18  ;;  %16984 = vst [vmem:[#allocation53_spill] sm:$0xff] %v11275_v10  ;;  %v948_v18 = vld [vmem:[%s16976_s5 + $0x8] sm:$0xff] }
 0x282   : > { %v11284_v23 = vmul.f32 %v1082_v1, %v948_v18  ;;  %v1122_v1 = vrot.slane %v1075_v41, %v11205_v58 }
 0x284   : > { %1654 = vadd.xlane.f32.xlu1 %v1653_v26  ;;  %16985 = vst [vmem:[#allocation54_spill] sm:$0xff] %v11284_v23  ;;  %v1045_v26 = vcombine.high %v11182_v45, %v11182_v45  ;;  %v1192_v45 = vsel %vm1191_vm1, %v11275_v10, 0.0  ;;  %v11319_v18 = vmul.f32 %v1122_v1, %v967_v57  ;;  %v1195_v57 = vsel %vm1191_vm1, %v11284_v23, 0.0 }
 0x285   : > { %1241 = vadd.xlane.f32.xlu0 %v1240_v31  ;;  %v11344_v55 = vmul.f32 %v1122_v1, %v968_v61  ;;  %v1026_v1 = vcombine.high %v1004_v56, %v1004_v56 }
 0x286   : > { %v11291_v31 = vrot.slane %v1045_v26, %v11162_v35  ;;  %16987 = vst [vmem:[#allocation56_spill] sm:$0xff] %v11319_v18  ;;  %v1252_v41 = vsel %vm1191_vm1, %v11319_v18, 0.0 }
 0x287   : > { %16990 = vst [vmem:[#allocation59_spill] sm:$0xff] %v11344_v55 }
 0x288   : > { %1696 = vadd.xlane.f32.xlu1 %v1695_v37  ;;  %v1118_v37 = vrot.slane %v11291_v31, %v11205_v58 }
 0x28c   : > { %1702 = vadd.xlane.f32.xlu1 %v1701_v44  ;;  %v11300_v44 = vrot.slane %v1030_v33, %v11162_v35  ;;  %v971_v33 = vld [vmem:[%s16976_s5 + $0xc0] sm:$0xff] }
 0x28e   : > { %v11312_v8 = vrot.slane %v11300_v44, %v11162_v35 }
 0x290   : > { %1244 = vadd.xlane.f32.xlu1 %v1243_v51  ;;  %v965_v51 = vld [vmem:[%s16976_s5 + $0x90] sm:$0xff]  ;;  %v1130_v26 = vrot.slane %v11312_v8, %v11205_v58 }
 0x292   : > { %v11267_v60 = vpop.permute.xlu1 %2238  ;;  %v1924_v63 = vpop.permute.xlu0 %1923 }
 0x293   : > { %16982 = vst [vmem:[#allocation51_spill] sm:$0xff] %v11267_v60  ;;  %10325 = vmatprep.subr.mxu1 %v1924_v63 }
 0x294   : > { %10326 = vmatpush3.msra.mxu1 %v1924_v63  ;;  %v11307_v63 = vmul.f32 %v1118_v37, %v965_v51  ;;  %v11328_v51 = vmul.f32 %v1130_v26, %v971_v33 }
 0x296   : > { %v11270_v6 = vpop.permute.xlu1 %2234  ;;  %16986 = vst [vmem:[#allocation55_spill] sm:$0xff] %v11307_v63  ;;  %16988 = vst [vmem:[#allocation57_spill] sm:$0xff] %v11328_v51 }
 0x297   : > { %16983 = vst [vmem:[#allocation52_spill] sm:$0xff] %v11270_v6  ;;  %v952_v6 = vld [vmem:[%s16976_s5 + $0x28] sm:$0xff] }
 0x29a   : > { %v1922_v14 = vpop.permute.xlu1 %1921 }
 0x29b   : > { %2040 = vrot.lane.b32.xlu0 %v11275_v10, %s10700_s20  ;;  %10327 = vmatprep.subr.mxu1 %v1922_v14 }
 0x29c   : > { %10328 = vmatpush3.msra.mxu1 %v1922_v14  ;;  %v1246_v14 = vsel %vm1191_vm1, %v11307_v63, 0.0 }
 0x29d   : > { %10332 = vmatprep.subr.msk.mxu1 %vm1191_vm1, %v11267_v60 }
 0x2a1   : > { %2042 = vrot.lane.b32.xlu1 %v11284_v23, %s10700_s20 }
 0x2ba   : > { %1193 = vadd.xlane.f32.xlu0 %v1192_v45  ;;  %v966_v45 = vld [vmem:[%s16976_s5 + $0x98] sm:$0xff] }
 0x2bb   : > { %v11335_v12 = vmul.f32 %v1118_v37, %v966_v45  ;;  %v972_v37 = vld [vmem:[%s16976_s5 + $0xc8] sm:$0xff] }
 0x2bc   : > { %v11351_v45 = vmul.f32 %v1130_v26, %v972_v37  ;;  %v1090_v26 = vrot.slane %v1026_v1, %v11205_v58  ;;  %v950_v37 = vld [vmem:[%s16976_s5 + $0x18] sm:$0xff]  ;;  %v11385_v1 = vpop.permute.xlu0 %2232 }
 0x2bd   : > { %16989 = vst [vmem:[#allocation58_spill] sm:$0xff] %v11335_v12  ;;  %v1249_v33 = vsel %vm1191_vm1, %v11335_v12, 0.0  ;;  %16995 = vst [vmem:[#allocation64_spill] sm:$0xff] %v11385_v1  ;;  %v11419_v1 = vpop.permute.xlu1 %2236 }
 0x2be   : > { %1247 = vadd.xlane.f32.xlu0 %v1246_v14  ;;  %v1264_v14 = vsel %vm1191_vm1, %v11328_v51, 0.0  ;;  %16991 = vst [vmem:[#allocation60_spill] sm:$0xff] %v11351_v45  ;;  %16997 = vst [vmem:[#allocation66_spill] sm:$0xff] %v11419_v1  ;;  %v1076_v1 = vcombine.high %v11312_v8, %v11312_v8  ;;  %v1326_v51 = vadd.s32 4294967288, %v1321_v59 }
 0x2c0   : > { %v1138_v38 = vrot.slane %v1076_v1, %v11205_v58 }
 0x2c2   : > { %1253 = vadd.xlane.f32.xlu0 %v1252_v41  ;;  %v1255_v41 = vsel %vm1191_vm1, %v11344_v55, 0.0 }
 0x2c5   : > { %1196 = vadd.xlane.f32.xlu1 %v1195_v57  ;;  %v996_v57 = vcombine.high %v988_v49, %v988_v49  ;;  %v951_v49 = vld [vmem:[%s16976_s5 + $0x20] sm:$0xff] }
 0x2c6   : > { %1265 = vadd.xlane.f32.xlu0 %v1264_v14  ;;  %v1267_v14 = vsel %vm1191_vm1, %v11351_v45, 0.0  ;;  %v11374_v56 = vmul.f32 %v1090_v26, %v951_v49 }
 0x2c7   : > { %v11356_v23 = vrot.slane %v996_v57, %v11162_v35  ;;  %v981_v57 = vcombine.high %v10959_v11, %v10959_v11  ;;  %v1046_v11 = vcombine.high %v11300_v44, %v11300_v44 }
 0x2c8   : > { %16993 = vst [vmem:[#allocation62_spill] sm:$0xff] %v11374_v56  ;;  %v1204_v7 = vsel %vm1191_vm1, %v11374_v56, 0.0 }
 0x2c9   : > { %1250 = vadd.xlane.f32.xlu1 %v1249_v33  ;;  %v1086_v61 = vrot.slane %v11356_v23, %v11205_v58  ;;  %v949_v33 = vld [vmem:[%s16976_s5 + $0x10] sm:$0xff]  ;;  %v11414_v44 = vrot.slane %v1046_v11, %v11162_v35  ;;  %v1028_v3 = vcombine.high %v11356_v23, %v11356_v23 }
 0x2cb   : > { %v11363_v9 = vmul.f32 %v1086_v61, %v949_v33  ;;  %v1134_v11 = vrot.slane %v11414_v44, %v11205_v58  ;;  %v1094_v1 = vrot.slane %v1028_v3, %v11205_v58  ;;  %v1078_v50 = vcombine.high %v11414_v44, %v11414_v44 }
 0x2cd   : > { %1256 = vadd.xlane.f32.xlu1 %v1255_v41  ;;  %16992 = vst [vmem:[#allocation61_spill] sm:$0xff] %v11363_v9  ;;  %v11378_v41 = vmul.f32 %v1086_v61, %v950_v37  ;;  %v1198_v10 = vsel %vm1191_vm1, %v11363_v9, 0.0  ;;  %v1077_v37 = vcombine.high %v11291_v31, %v11291_v31  ;;  %v1142_v44 = vrot.slane %v1078_v50, %v11205_v58  ;;  %v960_v50 = vld [vmem:[%s16976_s5 + $0x68] sm:$0xff] }
 0x2ce   : > { %v11390_v49 = vpop.xlane.xlu0 %1609 }
 0x2cf   : > { %16994 = vst [vmem:[#allocation63_spill] sm:$0xff] %v11378_v41  ;;  %v1126_v31 = vrot.slane %v1077_v37, %v11205_v58 }
 0x2d1   : > { %1268 = vadd.xlane.f32.xlu1 %v1267_v14  ;;  %v995_v14 = vrot.slane %v981_v57, %v11162_v35  ;;  %v955_v57 = vld [vmem:[%s16976_s5 + $0x40] sm:$0xff] }
 0x2d2   : > { %v11403_v4 = vpop.xlane.xlu0 %1615 }
 0x2d3   : > { %v11388_v33 = vrot.slane %v995_v14, %v11162_v35  ;;  %v997_v43 = vcombine.high %v995_v14, %v995_v14  ;;  %v974_v14 = vld [vmem:[%s16976_s5 + $0xd8] sm:$0xff] }
 0x2d5   : > { %v1098_v61 = vrot.slane %v11388_v33, %v11205_v58 }
 0x2dc   : > { %2044 = vrot.lane.b32.xlu0 %v11363_v9, %s10700_s20  ;;  %v11407_v9 = vmul.f32 %v1098_v61, %v955_v57  ;;  %v1201_v57 = vsel %vm1191_vm1, %v11378_v41, 0.0 }
 0x2de   : > { %16996 = vst [vmem:[#allocation65_spill] sm:$0xff] %v11407_v9  ;;  %v1216_v60 = vsel %vm1191_vm1, %v11407_v9, 0.0 }
 0x2e0   : > { %2048 = vrot.lane.b32.xlu0 %v11374_v56, %s10700_s20  ;;  %v11423_v56 = vmul.f32 %v1090_v26, %v952_v6  ;;  %v973_v6 = vld [vmem:[%s16976_s5 + $0xd0] sm:$0xff]  ;;  %v11439_v26 = vpop.xlane.xlu0 %1621 }
 0x2e1   : > { %v11451_v8 = vmul.f32 %v1134_v11, %v973_v6 }
 0x2e2   : > { %2046 = vrot.lane.b32.xlu1 %v11378_v41, %s10700_s20  ;;  %16998 = vst [vmem:[#allocation67_spill] sm:$0xff] %v11423_v56 }
 0x2e3   : > { %17001 = vst [vmem:[#allocation70_spill] sm:$0xff] %v11451_v8  ;;  %v1270_v6 = vsel %vm1191_vm1, %v11451_v8, 0.0 }
 0x2ff   : > { %1199 = vadd.xlane.f32.xlu0 %v1198_v10  ;;  %v969_v10 = vld [vmem:[%s16976_s5 + $0xb0] sm:$0xff] }
 0x300   : > { %v11427_v37 = vmul.f32 %v1126_v31, %v969_v10  ;;  %v1207_v10 = vsel %vm1191_vm1, %v11423_v56, 0.0 }
 0x302   : > { %16999 = vst [vmem:[#allocation68_spill] sm:$0xff] %v11427_v37 }
 0x303   : > { %1205 = vadd.xlane.f32.xlu0 %v1204_v7  ;;  %v956_v7 = vld [vmem:[%s16976_s5 + $0x48] sm:$0xff] }
 0x304   : > { %v11445_v41 = vmul.f32 %v1098_v61, %v956_v7  ;;  %v975_v61 = vld [vmem:[%s16976_s5 + $0xe0] sm:$0xff]  ;;  %v11462_v7 = vmul.f32 %v1126_v31, %v970_v53  ;;  %v953_v53 = vld [vmem:[%s16976_s5 + $0x30] sm:$0xff] }
 0x305   : > { %v11468_v27 = vmul.f32 %v1138_v38, %v975_v61  ;;  %v11482_v61 = vmul.f32 %v1134_v11, %v974_v14  ;;  %v11486_v15 = vmul.f32 %v1094_v1, %v953_v53  ;;  %v957_v11 = vld [vmem:[%s16976_s5 + $0x50] sm:$0xff] }
 0x306   : > { %1202 = vadd.xlane.f32.xlu1 %v1201_v57  ;;  %v11441_v57 = vpop.xlane.xlu1 %1612  ;;  %17000 = vst [vmem:[#allocation69_spill] sm:$0xff] %v11445_v41  ;;  %v1219_v23 = vsel %vm1191_vm1, %v11445_v41, 0.0  ;;  %v1261_v31 = vsel %vm1191_vm1, %v11462_v7, 0.0 }
 0x307   : > { %1217 = vadd.xlane.f32.xlu0 %v1216_v60  ;;  %v1258_v60 = vsel %vm1191_vm1, %v11427_v37, 0.0  ;;  %17002 = vst [vmem:[#allocation71_spill] sm:$0xff] %v11468_v27  ;;  %17003 = vst [vmem:[#allocation72_spill] sm:$0xff] %v11482_v61  ;;  %v1273_v53 = vsel %vm1191_vm1, %v11482_v61, 0.0  ;;  %v1210_v20 = vsel %vm1191_vm1, %v11486_v15, 0.0 }
 0x308   : > { %17004 = vst [vmem:[#allocation73_spill] sm:$0xff] %v11486_v15 }
 0x30a   : > { %1208 = vadd.xlane.f32.xlu1 %v1207_v10  ;;  %v11464_v10 = vpop.xlane.xlu0 %1657  ;;  %v11475_v32 = vpop.xlane.xlu1 %1618 }
 0x30b   : > { %1259 = vadd.xlane.f32.xlu0 %v1258_v60  ;;  %v1025_v60 = vrot.slane %v997_v43, %v11162_v35  ;;  %v976_v43 = vld [vmem:[%s16976_s5 + $0xe8] sm:$0xff] }
 0x30c   : > { %v11503_v35 = vmul.f32 %v1138_v38, %v976_v43  ;;  %v959_v38 = vld [vmem:[%s16976_s5 + $0x60] sm:$0xff] }
 0x30d   : > { %v1102_v3 = vrot.slane %v1025_v60, %v11205_v58  ;;  %v1029_v62 = vcombine.high %v1025_v60, %v1025_v60  ;;  %v961_v60 = vld [vmem:[%s16976_s5 + $0x70] sm:$0xff] }
 0x30e   : > { %1220 = vadd.xlane.f32.xlu1 %v1219_v23  ;;  %v1276_v23 = vsel %vm1191_vm1, %v11468_v27, 0.0  ;;  %v11497_v14 = vpop.xlane.xlu0 %1663  ;;  %17005 = vst [vmem:[#allocation74_spill] sm:$0xff] %v11503_v35  ;;  %v1279_v43 = vsel %vm1191_vm1, %v11503_v35, 0.0 }
 0x30f   : > { %1271 = vadd.xlane.f32.xlu0 %v1270_v6  ;;  %v1027_v6 = vcombine.high %v11388_v33, %v11388_v33  ;;  %v11507_v0 = vmul.f32 %v1102_v3, %v957_v11  ;;  %v954_v33 = vld [vmem:[%s16976_s5 + $0x38] sm:$0xff] }
 0x311   : > { %17006 = vst [vmem:[#allocation75_spill] sm:$0xff] %v11507_v0  ;;  %v1222_v5 = vsel %vm1191_vm1, %v11507_v0, 0.0 }
 0x312   : > { %1262 = vadd.xlane.f32.xlu1 %v1261_v31  ;;  %v11499_v31 = vpop.xlane.xlu1 %1624  ;;  %v11522_v11 = vpop.xlane.xlu0 %1627 }
 0x313   : > { %1277 = vadd.xlane.f32.xlu0 %v1276_v23  ;;  %v1106_v23 = vrot.slane %v1027_v6, %v11205_v58 }
 0x315   : > { %v11526_v6 = vmul.f32 %v1106_v23, %v959_v38 }
 0x316   : > { %1274 = vadd.xlane.f32.xlu1 %v1273_v53  ;;  %v11520_v53 = vmul.f32 %v1094_v1, %v954_v33  ;;  %v11532_v39 = vpop.xlane.xlu1 %1660  ;;  %v977_v1 = vld [vmem:[%s16976_s5 + $0xf0] sm:$0xff]  ;;  %v11552_v29 = vpop.xlane.xlu0 %1669 }
 0x317   : > { %1211 = vadd.xlane.f32.xlu0 %v1210_v20  ;;  %17008 = vst [vmem:[#allocation77_spill] sm:$0xff] %v11526_v6  ;;  %v958_v20 = vld [vmem:[%s16976_s5 + $0x58] sm:$0xff]  ;;  %v1228_v38 = vsel %vm1191_vm1, %v11526_v6, 0.0  ;;  %v11543_v27 = vmul.f32 %v1142_v44, %v977_v1  ;;  %v11558_v1 = vmul.f32 %v1106_v23, %v960_v50 }
 0x318   : > { %17007 = vst [vmem:[#allocation76_spill] sm:$0xff] %v11520_v53  ;;  %v1213_v33 = vsel %vm1191_vm1, %v11520_v53, 0.0  ;;  %v962_v50 = vld [vmem:[%s16976_s5 + $0x78] sm:$0xff] }
 0x319   : > { %17010 = vst [vmem:[#allocation79_spill] sm:$0xff] %v11543_v27  ;;  %17011 = vst [vmem:[#allocation80_spill] sm:$0xff] %v11558_v1 }
 0x31a   : > { %1280 = vadd.xlane.f32.xlu1 %v1279_v43  ;;  %v11539_v43 = vmul.f32 %v1102_v3, %v958_v20  ;;  %v11554_v3 = vpop.xlane.xlu1 %1666  ;;  %v11571_v54 = vpop.xlane.xlu0 %1633 }
 0x31b   : > { %1223 = vadd.xlane.f32.xlu0 %v1222_v5  ;;  %v1110_v5 = vrot.slane %v1029_v62, %v11205_v58  ;;  %v978_v62 = vld [vmem:[%s16976_s5 + $0xf8] sm:$0xff] }
 0x31c   : > { %17009 = vst [vmem:[#allocation78_spill] sm:$0xff] %v11539_v43  ;;  %v1225_v20 = vsel %vm1191_vm1, %v11539_v43, 0.0  ;;  %v11569_v58 = vmul.f32 %v1142_v44, %v978_v62 }
 0x31d   : > { %v11562_v35 = vmul.f32 %v1110_v5, %v961_v60 }
 0x31e   : > { %1214 = vadd.xlane.f32.xlu1 %v1213_v33  ;;  %v1282_v33 = vsel %vm1191_vm1, %v11543_v27, 0.0  ;;  %17013 = vst [vmem:[#allocation82_spill] sm:$0xff] %v11569_v58  ;;  %v11578_v60 = vpop.xlane.xlu1 %1630  ;;  %v11584_v44 = vpop.xlane.xlu0 %1675 }
 0x31f   : > { %1229 = vadd.xlane.f32.xlu0 %v1228_v38  ;;  %17012 = vst [vmem:[#allocation81_spill] sm:$0xff] %v11562_v35  ;;  %v1231_v38 = vsel %vm1191_vm1, %v11558_v1, 0.0  ;;  %v1234_v23 = vsel %vm1191_vm1, %v11562_v35, 0.0 }
 0x322   : > { %1226 = vadd.xlane.f32.xlu1 %v1225_v20  ;;  %v1285_v20 = vsel %vm1191_vm1, %v11569_v58, 0.0  ;;  %v11586_v62 = vpop.xlane.xlu1 %1672  ;;  %v11590_v27 = vpop.xlane.xlu0 %1639 }
 0x323   : > { %1283 = vadd.xlane.f32.xlu0 %v1282_v33  ;;  %v11582_v33 = vmul.f32 %v1110_v5, %v962_v50 }
 0x325   : > { %17014 = vst [vmem:[#allocation83_spill] sm:$0xff] %v11582_v33 }
 0x326   : > { %1232 = vadd.xlane.f32.xlu1 %v1231_v38  ;;  %v1237_v38 = vsel %vm1191_vm1, %v11582_v33, 0.0  ;;  %v11592_v35 = vpop.xlane.xlu1 %1636  ;;  %v11594_v17 = vpop.xlane.xlu0 %1681 }
 0x327   : > { %1235 = vadd.xlane.f32.xlu0 %v1234_v23 }
 0x32a   : > { %1286 = vadd.xlane.f32.xlu1 %v1285_v20  ;;  %v11596_v23 = vpop.xlane.xlu1 %1678  ;;  %v11600_v5 = vpop.xlane.xlu0 %1645 }
 0x32e   : > { %1238 = vadd.xlane.f32.xlu1 %v1237_v38  ;;  %v11602_v50 = vpop.xlane.xlu1 %1642  ;;  %v11610_v20 = vpop.xlane.xlu0 %1687 }
 0x332   : > { %v11612_v38 = vpop.xlane.xlu1 %1684 }
 0x33d   : > { %2072 = vrot.lane.b32.xlu0 %v11235_v21, %s10700_s20  ;;  %v11622_v21 = vpop.xlane.xlu1 %1648 }
 0x33f   : > { %2050 = vrot.lane.b32.xlu1 %v11423_v56, %s10700_s20  ;;  %v11620_v56 = vpop.xlane.xlu0 %1651 }
 0x341   : > { %2076 = vrot.lane.b32.xlu0 %v11307_v63, %s10700_s20 }
 0x343   : > { %2074 = vrot.lane.b32.xlu1 %v11260_v47, %s10700_s20  ;;  %v11632_v47 = vpop.xlane.xlu1 %1690 }
 0x345   : > { %2052 = vrot.lane.b32.xlu0 %v11486_v15, %s10700_s20  ;;  %v11630_v15 = vpop.xlane.xlu0 %1693 }
 0x347   : > { %2078 = vrot.lane.b32.xlu1 %v11335_v12, %s10700_s20 }
 0x349   : > { %2080 = vrot.lane.b32.xlu0 %v11319_v18, %s10700_s20  ;;  %v11642_v18 = vpop.xlane.xlu1 %1654 }
 0x34b   : > { %2054 = vrot.lane.b32.xlu1 %v11520_v53, %s10700_s20  ;;  %v11640_v53 = vpop.xlane.xlu0 %1699 }
 0x34d   : > { %2547 = vrot.lane.b32.xlu0 %v10979_v13, %s10700_s20 }
 0x34f   : > { %2082 = vrot.lane.b32.xlu1 %v11344_v55, %s10700_s20  ;;  %v11652_v55 = vpop.xlane.xlu1 %1696 }
 0x351   : > { %2551 = vrot.lane.b32.xlu0 %v10987_v16, %s10700_s20  ;;  %v11650_v16 = vpop.xlane.xlu0 %1241 }
 0x353   : > { %2549 = vrot.lane.b32.xlu1 %v11004_v22, %s10700_s20 }
 0x355   : > { %2056 = vrot.lane.b32.xlu0 %v11407_v9, %s10700_s20  ;;  %v11654_v22 = vpop.permute.xlu0 %2040  ;;  %v11656_v9 = vpop.xlane.xlu1 %1702 }
 0x356   : > { %17015 = vst [vmem:[#allocation84_spill] sm:$0xff] %v11654_v22 }
 0x357   : > { %2553 = vrot.lane.b32.xlu1 %v11020_v28, %s10700_s20 }
 0x359   : > { %2084 = vrot.lane.b32.xlu0 %v11427_v37, %s10700_s20  ;;  %v11658_v13 = vpop.xlane.xlu0 %1193  ;;  %v11660_v12 = vpop.xlane.xlu1 %1244 }
 0x35b   : > { %2058 = vrot.lane.b32.xlu1 %v11445_v41, %s10700_s20 }
 0x35d   : > { %v11662_v63 = vpop.xlane.xlu0 %1247  ;;  %v11664_v28 = vpop.permute.xlu1 %2042 }
 0x35e   : > { %17016 = vst [vmem:[#allocation85_spill] sm:$0xff] %v11664_v28 }
 0x361   : > { %v11666_v37 = vpop.xlane.xlu0 %1253  ;;  %v11668_v58 = vpop.xlane.xlu1 %1196 }
 0x365   : > { %v11670_v41 = vpop.xlane.xlu0 %1265  ;;  %v11672_v33 = vpop.xlane.xlu1 %1250 }
 0x369   : > { %v11674_v2 = vpop.permute.xlu0 %2044  ;;  %v11676_v22 = vpop.xlane.xlu1 %1256 }
 0x36a   : > { %17017 = vst [vmem:[#allocation86_spill] sm:$0xff] %v11674_v2 }
 0x36d   : > { %v11678_v48 = vpop.permute.xlu0 %2048  ;;  %v11680_v8 = vpop.xlane.xlu1 %1268 }
 0x36e   : > { %17018 = vst [vmem:[#allocation87_spill] sm:$0xff] %v11678_v48  ;;  %v11698_v48 = vsub.s32 %v1326_v51, %v11143_v25 }
 0x370   : > { %17021 = vst [vmem:[#allocation89_spill] sm:$0xff] %v11698_v48  ;;  %v1752_v30 = vrot.slane %v11475_v32, %v11698_v48  ;;  %v1743_v43 = vrot.slane %v11441_v57, %v11698_v48  ;;  %v1824_v32 = vrot.slane %v11554_v3, %v11698_v48  ;;  %v1770_v19 = vrot.slane %v11578_v60, %v11698_v48 }
 0x371   : > { %v11684_v61 = vpop.permute.xlu1 %2046  ;;  %v1815_v3 = vrot.slane %v11532_v39, %v11698_v48 }
 0x372   : > { %17019 = vst [vmem:[#allocation88_spill] sm:$0xff] %v11684_v61  ;;  %v11705_v61 = vsub.s32 %v1321_v59, %v11143_v25 }
 0x374   : > { %17022 = vst [vmem:[#allocation90_spill] sm:$0xff] %v11705_v61  ;;  %v1748_v36 = vrot.slane %v11403_v4, %v11705_v61  ;;  %v1739_v59 = vrot.slane %v11390_v49, %v11705_v61  ;;  %v1761_v4 = vrot.slane %v11499_v31, %v11698_v48  ;;  %v1757_v57 = vrot.slane %v11439_v26, %v11705_v61 }
 0x375   : > { %v1811_v46 = vrot.slane %v11464_v10, %v11705_v61  ;;  %v1833_v49 = vrot.slane %v11586_v62, %v11698_v48  ;;  %v1820_v31 = vrot.slane %v11497_v14, %v11705_v61  ;;  %v1779_v26 = vrot.slane %v11592_v35, %v11698_v48 }
 0x376   : > { %v1753_v25 = vsel %vm1331_vm2, %v1752_v30, %v1748_v36  ;;  %v1744_v30 = vsel %vm1331_vm2, %v1743_v43, %v1739_v59  ;;  %v1766_v60 = vrot.slane %v11522_v11, %v11705_v61  ;;  %v1829_v62 = vrot.slane %v11552_v29, %v11705_v61 }
 0x377   : > { %v1880_v10 = vsel %vm1468_vm3, %v1753_v25, %v1744_v30  ;;  %v1842_v43 = vrot.slane %v11596_v23, %v11698_v48  ;;  %v1762_v39 = vsel %vm1331_vm2, %v1761_v4, %v1757_v57  ;;  %v1825_v35 = vsel %vm1331_vm2, %v1824_v32, %v1820_v31 }
 0x378   : > { %v1775_v59 = vrot.slane %v11571_v54, %v11705_v61  ;;  %v1851_v25 = vrot.slane %v11612_v38, %v11698_v48  ;;  %v1771_v11 = vsel %vm1331_vm2, %v1770_v19, %v1766_v60  ;;  %v1838_v29 = vrot.slane %v11584_v44, %v11705_v61 }
 0x379   : > { %v1834_v23 = vsel %vm1331_vm2, %v1833_v49, %v1829_v62  ;;  %v1860_v30 = vrot.slane %v11632_v47, %v11698_v48  ;;  %v1816_v4 = vsel %vm1331_vm2, %v1815_v3, %v1811_v46  ;;  %v1847_v54 = vrot.slane %v11594_v17, %v11705_v61 }
 0x37a   : > { %v1780_v32 = vsel %vm1331_vm2, %v1779_v26, %v1775_v59  ;;  %v1788_v38 = vrot.slane %v11602_v50, %v11698_v48  ;;  %v1881_v19 = vsel %vm1470_vm4, %v1762_v39, %v1880_v10  ;;  %v1887_v44 = vsel %vm1468_vm3, %v1825_v35, %v1816_v4 }
 0x37b   : > { %v1843_v49 = vsel %vm1331_vm2, %v1842_v43, %v1838_v29  ;;  %v1856_v47 = vrot.slane %v11610_v20, %v11705_v61  ;;  %v1882_v31 = vsel %vm1472_vm5, %v1771_v11, %v1881_v19  ;;  %v1888_v17 = vsel %vm1470_vm4, %v1834_v23, %v1887_v44 }
 0x37c   : > { %v1784_v50 = vrot.slane %v11590_v27, %v11705_v61  ;;  %v1852_v3 = vsel %vm1331_vm2, %v1851_v25, %v1847_v54  ;;  %v11783_v26 = vsel %vm1474_vm6, %v1780_v32, %v1882_v31  ;;  %v1793_v10 = vrot.slane %v11600_v5, %v11705_v61 }
 0x37d   : > { %v1861_v60 = vsel %vm1331_vm2, %v1860_v30, %v1856_v47  ;;  %v1869_v20 = vrot.slane %v11652_v55, %v11698_v48  ;;  %v1889_v62 = vsel %vm1472_vm5, %v1843_v49, %v1888_v17  ;;  %v1802_v27 = vrot.slane %v11620_v56, %v11705_v61 }
 0x37e   : > { %v11792_v43 = vsel %vm1331_vm2, %v1788_v38, %v1784_v50  ;;  %v1403_v39 = vrot.slane %v11660_v12, %v11698_v48  ;;  %v1890_v59 = vsel %vm1474_vm6, %v1852_v3, %v1889_v62  ;;  %v1797_v25 = vrot.slane %v11622_v21, %v11698_v48 }
 0x37f   : > { %v1865_v55 = vrot.slane %v11630_v15, %v11705_v61  ;;  %v1412_v11 = vrot.slane %v11672_v33, %v11698_v48  ;;  %v11806_v29 = vsel %vm1476_vm7, %v1861_v60, %v1890_v59  ;;  %v1874_v23 = vrot.slane %v11640_v53, %v11705_v61 }
 0x380   : > { %v1399_v12 = vrot.slane %v11650_v16, %v11705_v61  ;;  %v1421_v30 = vrot.slane %v11676_v22, %v11698_v48  ;;  %v1806_v15 = vrot.slane %v11642_v18, %v11698_v48  ;;  %v1408_v33 = vrot.slane %v11662_v63, %v11705_v61 }
 0x381   : > { %v11819_v32 = vsel %vm1331_vm2, %v1869_v20, %v1865_v55  ;;  %v1878_v16 = vrot.slane %v11656_v9, %v11698_v48  ;;  %v1417_v22 = vrot.slane %v11666_v37, %v11705_v61  ;;  %v1325_v44 = vrot.slane %v11658_v13, %v11705_v61 }
 0x382   : > { %v1404_v54 = vsel %vm1331_vm2, %v1403_v39, %v1399_v12  ;;  %v1413_v63 = vsel %vm1331_vm2, %v1412_v11, %v1408_v33  ;;  %v1330_v49 = vrot.slane %v11668_v58, %v11698_v48  ;;  %v1435_v58 = vrot.slane %v11670_v41, %v11705_v61 }
 0x383   : > { %v1422_v37 = vsel %vm1331_vm2, %v1421_v30, %v1417_v22 }
 0x384   : > { %v1332_v41 = vsel %vm1331_vm2, %v1330_v49, %v1325_v44 }
 0x388   : > { %v11682_v6 = vpop.xlane.xlu0 %1199 }
 0x389   : > { %v1336_v47 = vrot.slane %v11682_v6, %v11705_v61 }
 0x38c   : > { %v11686_v28 = vpop.xlane.xlu0 %1205 }
 0x38d   : > { %v1345_v13 = vrot.slane %v11686_v28, %v11705_v61 }
 0x38f   : > { %v11688_v42 = vpop.xlane.xlu1 %1202 }
 0x390   : > { %v11690_v1 = vpop.xlane.xlu0 %1217  ;;  %v1340_v38 = vrot.slane %v11688_v42, %v11698_v48  ;;  %v1439_v42 = vrot.slane %v11680_v8, %v11698_v48  ;;  %v1482_v8 = vsel %vm1468_vm3, %v1413_v63, %v1404_v54 }
 0x391   : > { %v1483_v3 = vsel %vm1470_vm4, %v1422_v37, %v1482_v8  ;;  %v10324_v37 = vpop.f32.mrf.mxu0 }
 0x392   : > { %v1341_v17 = vsel %vm1331_vm2, %v1340_v38, %v1336_v47  ;;  %v1440_v62 = vsel %vm1331_vm2, %v1439_v42, %v1435_v58  ;;  %v1363_v38 = vrot.slane %v11690_v1, %v11705_v61 }
 0x393   : > { %v11693_v2 = vpop.xlane.xlu1 %1208 }
 0x394   : > { %v11695_v52 = vpop.xlane.xlu0 %1259 }
 0x395   : > { %v1426_v9 = vrot.slane %v11695_v52, %v11705_v61 }
 0x397   : > { %v11700_v0 = vpop.xlane.xlu1 %1220 }
 0x398   : > { %v11702_v45 = vpop.xlane.xlu0 %1271 }
 0x39b   : > { %v11713_v24 = vpop.xlane.xlu1 %1262 }
 0x39c   : > { %v11715_v51 = vpop.xlane.xlu0 %1277  ;;  %v1430_v53 = vrot.slane %v11713_v24, %v11698_v48  ;;  %v1349_v24 = vrot.slane %v11693_v2, %v11698_v48 }
 0x39e   : > { %v1431_v2 = vsel %vm1331_vm2, %v1430_v53, %v1426_v9  ;;  %v1350_v60 = vsel %vm1331_vm2, %v1349_v24, %v1345_v13  ;;  %v1879_v24 = vsel %vm1331_vm2, %v1878_v16, %v1874_v23 }
 0x39f   : > { %v11739_v36 = vpop.xlane.xlu1 %1274  ;;  %v1484_v39 = vsel %vm1472_vm5, %v1431_v2, %v1483_v3  ;;  %v17026_v3 = vld [vmem:[#allocation78_spill] sm:$0xff] }
 0x3a0   : > { %v11748_v14 = vpop.xlane.xlu0 %1211  ;;  %v1448_v52 = vrot.slane %v11739_v36, %v11698_v48  ;;  %v1444_v36 = vrot.slane %v11702_v45, %v11705_v61 }
 0x3a1   : > { %v1354_v20 = vrot.slane %v11748_v14, %v11705_v61  ;;  %v1367_v14 = vrot.slane %v11700_v0, %v11698_v48 }
 0x3a2   : > { %v1449_v59 = vsel %vm1331_vm2, %v1448_v52, %v1444_v36  ;;  %v17028_v36 = vld [vmem:[#allocation60_spill] sm:$0xff] }
 0x3a3   : > { %v11768_v57 = vpop.xlane.xlu1 %1280  ;;  %v1368_v42 = vsel %vm1331_vm2, %v1367_v14, %v1363_v38  ;;  %v17039_v14 = vld [vmem:[#allocation27_spill] sm:$0xff] }
 0x3a4   : > { %v11775_v46 = vpop.xlane.xlu0 %1223  ;;  %v1457_v6 = vrot.slane %v11768_v57, %v11698_v48  ;;  %v1453_v57 = vrot.slane %v11715_v51, %v11705_v61  ;;  %v1485_v51 = vsel %vm1474_vm6, %v1440_v62, %v1484_v39  ;;  %v17031_v62 = vld [vmem:[#allocation57_spill] sm:$0xff]  ;;  %v17032_v39 = vld [vmem:[#allocation30_spill] sm:$0xff] }
 0x3a5   : > { %v1372_v53 = vrot.slane %v11775_v46, %v11705_v61 }
 0x3a6   : > { %v1458_v12 = vsel %vm1331_vm2, %v1457_v6, %v1453_v57  ;;  %v17033_v57 = vld [vmem:[#allocation23_spill] sm:$0xff] }
 0x3a7   : > { %v1215_v35 = vpop.xlane.xlu1 %1214 }
 0x3a8   : > { %v11814_v4 = vpop.xlane.xlu0 %1229  ;;  %v1358_v31 = vrot.slane %v1215_v35, %v11698_v48  ;;  %v1469_v35 = vsel %vm1468_vm3, %v1341_v17, %v1332_v41  ;;  %v1567_v17 = vpop.f32.mrf.mxu0  ;;  %v17030_v41 = vld [vmem:[#allocation28_spill] sm:$0xff] }
 0x3a9   : > { %v1471_v11 = vsel %vm1470_vm4, %v1350_v60, %v1469_v35  ;;  %v1381_v44 = vrot.slane %v11814_v4, %v11705_v61  ;;  %v1892_v4 = vsel %vm1478_vm8, %v11819_v32, %v11806_v29  ;;  %v1807_v29 = vsel %vm1331_vm2, %v1806_v15, %v1802_v27  ;;  %v17027_v60 = vld [vmem:[#allocation22_spill] sm:$0xff]  ;;  %v17034_v35 = vld [vmem:[#allocation80_spill] sm:$0xff] }
 0x3aa   : > { %v1359_v55 = vsel %vm1331_vm2, %v1358_v31, %v1354_v20  ;;  %v1798_v31 = vsel %vm1331_vm2, %v1797_v25, %v1793_v10  ;;  %v1893_v8 = vsel %vm1480_vm9, %v1879_v24, %v1892_v4  ;;  %v1884_v10 = vsel %vm1476_vm7, %v11792_v43, %v11783_v26  ;;  %v17023_v26 = vld [vmem:[#allocation18_spill] sm:$0xff]  ;;  %v17029_v20 = vld [vmem:[#allocation75_spill] sm:$0xff] }
 0x3ab   : > { %v1227_v19 = vpop.xlane.xlu1 %1226  ;;  %v1473_v0 = vsel %vm1472_vm5, %v1359_v55, %v1471_v11  ;;  %v17024_v43 = vld [vmem:[#allocation26_spill] sm:$0xff]  ;;  %v17036_v55 = vld [vmem:[#allocation72_spill] sm:$0xff] }
 0x3ac   : > { %v1284_v50 = vpop.xlane.xlu0 %1283  ;;  %v1376_v45 = vrot.slane %v1227_v19, %v11698_v48  ;;  %v1486_v19 = vsel %vm1476_vm7, %v1449_v59, %v1485_v51  ;;  %v1475_v23 = vsel %vm1474_vm6, %v1368_v42, %v1473_v0  ;;  %v17035_v59 = vld [vmem:[#allocation25_spill] sm:$0xff]  ;;  %v17038_v11 = vld [vmem:[#allocation70_spill] sm:$0xff] }
 0x3ad   : > { %v1462_v54 = vrot.slane %v1284_v50, %v11705_v61  ;;  %v1487_v9 = vsel %vm1478_vm8, %v1458_v12, %v1486_v19  ;;  %v1885_v50 = vsel %vm1478_vm8, %v1798_v31, %v1884_v10  ;;  %v17040_v31 = vld [vmem:[#allocation32_spill] sm:$0xff]  ;;  %v17048_v10 = vld [vmem:[#allocation39_spill] sm:$0xff] }
 0x3ae   : > { %v1377_v46 = vsel %vm1331_vm2, %v1376_v45, %v1372_v53  ;;  %v1886_v18 = vsel %vm1480_vm9, %v1807_v29, %v1885_v50  ;;  %v17037_v45 = vld [vmem:[#allocation77_spill] sm:$0xff] }
 0x3af   : > { %v1233_v28 = vpop.xlane.xlu1 %1232  ;;  %v1477_v58 = vsel %vm1476_vm7, %v1377_v46, %v1475_v23  ;;  %v17043_v29 = vld [vmem:[#allocation29_spill] sm:$0xff] }
 0x3b0   : > { %v1385_v30 = vrot.slane %v1233_v28, %v11698_v48  ;;  %v1236_v63 = vpop.xlane.xlu0 %1235  ;;  %v17025_v28 = vld [vmem:[#allocation20_spill] sm:$0xff]  ;;  %v17052_v50 = vld [vmem:[#allocation41_spill] sm:$0xff] }
 0x3b1   : > { %v1390_v16 = vrot.slane %v1236_v63, %v11705_v61 }
 0x3b2   : > { %v1386_v1 = vsel %vm1331_vm2, %v1385_v30, %v1381_v44 }
 0x3b3   : > { %v1287_v33 = vpop.xlane.xlu1 %1286  ;;  %v1479_v5 = vsel %vm1478_vm8, %v1386_v1, %v1477_v58  ;;  %v17041_v58 = vld [vmem:[#allocation34_spill] sm:$0xff] }
 0x3b4   : > { %v1466_v22 = vrot.slane %v1287_v33, %v11698_v48  ;;  %v11970_v30 = vpop.permute.xlu0 %2072 }
 0x3b6   : > { %v1467_v49 = vsel %vm1331_vm2, %v1466_v22, %v1462_v54 }
 0x3b7   : > { %v1239_v47 = vpop.xlane.xlu1 %1238  ;;  %v1488_v13 = vsel %vm1480_vm9, %v1467_v49, %v1487_v9 }
 0x3b8   : > { %v1394_v2 = vrot.slane %v1239_v47, %v11698_v48  ;;  %v1573_v52 = vadd.f32 %v10324_v37, %v1488_v13  ;;  %v11974_v51 = vpop.permute.xlu0 %2076 }
 0x3ba   : > { %v1395_v32 = vsel %vm1331_vm2, %v1394_v2, %v1390_v16  ;;  %v1897_v21 = vadd.f32 %v1893_v8, %v1573_v52  ;;  %v17042_v8 = vld [vmem:[#allocation83_spill] sm:$0xff] }
 0x3bb   : > { %v1481_v25 = vsel %vm1480_vm9, %v1395_v32, %v1479_v5  ;;  %v11968_v12 = vpop.permute.xlu1 %2050  ;;  %v17044_v5 = vld [vmem:[#allocation74_spill] sm:$0xff]  ;;  %v17045_v32 = vld [vmem:[#allocation81_spill] sm:$0xff] }
 0x3bc   : > { %v1902_v6 = vsel %vm1898_vm10, %v1897_v21, -inf  ;;  %v1568_v56 = vadd.f32 %v1567_v17, %v1481_v25  ;;  %v11978_v54 = vpop.permute.xlu0 %2052  ;;  %v17047_v17 = vld [vmem:[#allocation71_spill] sm:$0xff] }
 0x3bd   : > { %1903 = vmax.xlane.f32.xlu1 %v1902_v6  ;;  %v17049_v25 = vld [vmem:[#allocation31_spill] sm:$0xff]  ;;  %v17050_v6 = vld [vmem:[#allocation82_spill] sm:$0xff] }
 0x3be   : > { %v1896_v27 = vadd.f32 %v1886_v18, %v1568_v56  ;;  %v17051_v56 = vld [vmem:[#allocation33_spill] sm:$0xff]  ;;  %v17053_v18 = vld [vmem:[#allocation79_spill] sm:$0xff] }
 0x3bf   : > { %v11972_v33 = vpop.permute.xlu1 %2074 }
 0x3c0   : > { %v1899_v15 = vsel %vm1898_vm10, %v1896_v27, -inf  ;;  %v11982_v38 = vpop.permute.xlu0 %2080 }
 0x3c1   : > { %1900 = vmax.xlane.f32.xlu0 %v1899_v15  ;;  %v17055_v15 = vld [vmem:[#allocation35_spill] sm:$0xff] }
 0x3c3   : > { %v11976_v53 = vpop.permute.xlu1 %2078 }
 0x3c4   : > { %v11986_v0 = vpop.permute.xlu0 %2547 }
 0x3c7   : > { %v11980_v22 = vpop.permute.xlu1 %2054 }
 0x3c8   : > { %v11990_v63 = vpop.permute.xlu0 %2551 }
 0x3cb   : > { %v11984_v19 = vpop.permute.xlu1 %2082 }
 0x3cc   : > { %v11994_v9 = vpop.permute.xlu0 %2056 }
 0x3ce   : > { %2086 = vrot.lane.b32.xlu1 %v11462_v7, %s10700_s20 }
 0x3cf   : > { %v11988_v44 = vpop.permute.xlu1 %2549 }
 0x3d0   : > { %v11998_v49 = vpop.permute.xlu0 %2084 }
 0x3d2   : > { %2557 = vrot.lane.b32.xlu1 %v11036_v34, %s10700_s20 }
 0x3d3   : > { %v11992_v24 = vpop.permute.xlu1 %2553 }
 0x3d6   : > { %2581 = vrot.lane.b32.xlu1 %v11052_v40, %s10700_s20 }
 0x3d7   : > { %2555 = vrot.lane.b32.xlu0 %v17023_v26, %s10700_s20  ;;  %v11996_v46 = vpop.permute.xlu1 %2058 }
 0x3da   : > { %2585 = vrot.lane.b32.xlu1 %v17024_v43, %s10700_s20 }
 0x3db   : > { %2579 = vrot.lane.b32.xlu0 %v17025_v28, %s10700_s20 }
 0x3de   : > { %2062 = vrot.lane.b32.xlu1 %v17026_v3, %s10700_s20 }
 0x3df   : > { %2583 = vrot.lane.b32.xlu0 %v17027_v60, %s10700_s20 }
 0x3e2   : > { %2090 = vrot.lane.b32.xlu1 %v17028_v36, %s10700_s20 }
 0x3e3   : > { %2060 = vrot.lane.b32.xlu0 %v17029_v20, %s10700_s20 }
 0x3e6   : > { %2561 = vrot.lane.b32.xlu1 %v17030_v41, %s10700_s20 }
 0x3e7   : > { %2088 = vrot.lane.b32.xlu0 %v17031_v62, %s10700_s20 }
 0x3ea   : > { %2589 = vrot.lane.b32.xlu1 %v17032_v39, %s10700_s20 }
 0x3eb   : > { %2559 = vrot.lane.b32.xlu0 %v17033_v57, %s10700_s20 }
 0x3ee   : > { %2066 = vrot.lane.b32.xlu1 %v17034_v35, %s10700_s20 }
 0x3ef   : > { %2587 = vrot.lane.b32.xlu0 %v17035_v59, %s10700_s20 }
 0x3f2   : > { %2094 = vrot.lane.b32.xlu1 %v17036_v55, %s10700_s20 }
 0x3f3   : > { %2064 = vrot.lane.b32.xlu0 %v17037_v45, %s10700_s20 }
 0x3f7   : > { %2092 = vrot.lane.b32.xlu0 %v17038_v11, %s10700_s20 }
 0x3fb   : > { %2563 = vrot.lane.b32.xlu0 %v17039_v14, %s10700_s20 }
 0x446   : > { %v1904_v37 = vpop.xlane.xlu1 %1903 }
 0x447   : > { %v1906_v42 = vsub.f32 %v1897_v21, %v1904_v37  ;;  %v17046_v21 = vld [vmem:[#allocation36_spill] sm:$0xff]  ;;  %v17056_v37 = vld [vmem:[#allocation46_spill] sm:$0xff] }
 0x449   : > { %v1909_v1 = vmul.f32 1.442695, %v1906_v42  ;;  %v17057_v42 = vld [vmem:[#allocation37_spill] sm:$0xff] }
 0x44a   : > { %v1901_v47 = vpop.xlane.xlu0 %1900 }
 0x44b   : > { %10549 = vpow2.f32 %v1909_v1  ;;  %v1905_v13 = vsub.f32 %v1896_v27, %v1901_v47  ;;  %v17054_v27 = vld [vmem:[#allocation44_spill] sm:$0xff] }
 0x44c   : > { %v17058_v1 = vld [vmem:[#allocation48_spill] sm:$0xff] }
 0x44d   : > { %v1907_v4 = vmul.f32 1.442695, %v1905_v13  ;;  %v17059_v47 = vld [vmem:[#allocation40_spill] sm:$0xff]  ;;  %v17060_v13 = vld [vmem:[#allocation49_spill] sm:$0xff] }
 0x44f   : > { %10551 = vpow2.f32 %v1907_v4  ;;  %v17061_v4 = vld [vmem:[#allocation42_spill] sm:$0xff] }
 0x458   : > { %v12000_v23 = vpop.eup %10549 }
 0x459   : > { %v1914_v16 = vsel %vm1898_vm10, %v12000_v23, 0.0 }
 0x45a   : > { %1915 = vadd.xlane.f32.xlu1 %v1914_v16  ;;  %v17062_v16 = vld [vmem:[#allocation45_spill] sm:$0xff] }
 0x45c   : > { %v12004_v2 = vpop.eup %10551 }
 0x45d   : > { %v1911_v52 = vsel %vm1898_vm10, %v12004_v2, 0.0 }
 0x45e   : > { %1912 = vadd.xlane.f32.xlu0 %v1911_v52  ;;  %v2087_v52 = vpop.permute.xlu1 %2086 }
 0x46b   : > { %2565 = vrot.lane.b32.xlu1 %v17040_v31, %s10700_s20 }
 0x46f   : > { %2593 = vrot.lane.b32.xlu1 %v17041_v58, %s10700_s20 }
 0x473   : > { %2070 = vrot.lane.b32.xlu1 %v17042_v8, %s10700_s20 }
 0x474   : > { %2591 = vrot.lane.b32.xlu0 %v17043_v29, %s10700_s20 }
 0x477   : > { %2098 = vrot.lane.b32.xlu1 %v17044_v5, %s10700_s20 }
 0x478   : > { %2068 = vrot.lane.b32.xlu0 %v17045_v32, %s10700_s20 }
 0x47b   : > { %2569 = vrot.lane.b32.xlu1 %v17046_v21, %s10700_s20 }
 0x47c   : > { %2096 = vrot.lane.b32.xlu0 %v17047_v17, %s10700_s20 }
 0x47f   : > { %2597 = vrot.lane.b32.xlu1 %v17048_v10, %s10700_s20 }
 0x480   : > { %2567 = vrot.lane.b32.xlu0 %v17049_v25, %s10700_s20  ;;  %v17066_v25 = vld [vmem:[#allocation88_spill] sm:$0xff] }
 0x483   : > { %2102 = vrot.lane.b32.xlu1 %v17050_v6, %s10700_s20  ;;  %v17064_v6 = vld [vmem:[#allocation84_spill] sm:$0xff] }
 0x484   : > { %2595 = vrot.lane.b32.xlu0 %v17051_v56, %s10700_s20 }
 0x487   : > { %2573 = vrot.lane.b32.xlu1 %v17052_v50, %s10700_s20 }
 0x488   : > { %2100 = vrot.lane.b32.xlu0 %v17053_v18, %s10700_s20  ;;  %v17065_v18 = vld [vmem:[#allocation86_spill] sm:$0xff] }
 0x489   : > { %v2142_v10 = vsel %vm1191_vm1, %v17065_v18, 0.0 }
 0x48b   : > { %2601 = vrot.lane.b32.xlu1 %v17054_v27, %s10700_s20  ;;  %v2558_v27 = vpop.permute.xlu1 %2557 }
 0x48c   : > { %2571 = vrot.lane.b32.xlu0 %v17055_v15, %s10700_s20  ;;  %v17063_v15 = vld [vmem:[#allocation85_spill] sm:$0xff] }
 0x48f   : > { %2577 = vrot.lane.b32.xlu1 %v17056_v37, %s10700_s20  ;;  %v12054_v37 = vpop.permute.xlu0 %2555  ;;  %v2582_v50 = vpop.permute.xlu1 %2581 }
 0x490   : > { %2599 = vrot.lane.b32.xlu0 %v17057_v42, %s10700_s20 }
 0x493   : > { %2605 = vrot.lane.b32.xlu1 %v17058_v1, %s10700_s20  ;;  %v12056_v42 = vpop.permute.xlu0 %2579 }
 0x494   : > { %2575 = vrot.lane.b32.xlu0 %v17059_v47, %s10700_s20  ;;  %v2139_v47 = vsel %vm1191_vm1, %v17063_v15, 0.0  ;;  %v2187_v15 = vsel %vm1191_vm1, %v11972_v33, 0.0  ;;  %v2184_v33 = vsel %vm1191_vm1, %v11970_v30, 0.0  ;;  %v2154_v30 = vsel %vm1191_vm1, %v11978_v54, 0.0 }
 0x495   : > { %v2643_v54 = vsel %vm1191_vm1, %v11986_v0, 0.0 }
 0x497   : > { %2609 = vrot.lane.b32.xlu1 %v17060_v13, %s10700_s20  ;;  %v12058_v1 = vpop.permute.xlu0 %2583  ;;  %v2136_v13 = vsel %vm1191_vm1, %v17064_v6, 0.0  ;;  %v2145_v6 = vsel %vm1191_vm1, %v17066_v25, 0.0 }
 0x498   : > { %2603 = vrot.lane.b32.xlu0 %v17061_v4, %s10700_s20  ;;  %v2586_v4 = vpop.permute.xlu1 %2585 }
 0x49b   : > { %v12068_v56 = vpop.permute.xlu0 %2060 }
 0x49c   : > { %2607 = vrot.lane.b32.xlu0 %v17062_v16, %s10700_s20  ;;  %v2151_v16 = vsel %vm1191_vm1, %v11968_v12, 0.0  ;;  %v2063_v21 = vpop.permute.xlu1 %2062  ;;  %v2193_v12 = vsel %vm1191_vm1, %v11976_v53, 0.0  ;;  %v2199_v53 = vsel %vm1191_vm1, %v11984_v19, 0.0  ;;  %v2196_v19 = vsel %vm1191_vm1, %v11982_v38, 0.0 }
 0x49d   : > { %v2649_v38 = vsel %vm1191_vm1, %v11990_v63, 0.0 }
 0x4bb   : > { %2140 = vadd.xlane.f32.xlu1 %v2139_v47  ;;  %2137 = vadd.xlane.f32.xlu0 %v2136_v13  ;;  %v12074_v47 = vpop.permute.xlu0 %2088  ;;  %v17067_v13 = vld [vmem:[#allocation87_spill] sm:$0xff] }
 0x4bc   : > { %v2148_v18 = vsel %vm1191_vm1, %v17067_v13, 0.0 }
 0x4bf   : > { %2152 = vadd.xlane.f32.xlu1 %v2151_v16  ;;  %2143 = vadd.xlane.f32.xlu0 %v2142_v10  ;;  %v2091_v10 = vpop.permute.xlu1 %2090  ;;  %v2157_v16 = vsel %vm1191_vm1, %v11980_v22, 0.0  ;;  %v12084_v25 = vpop.permute.xlu0 %2559  ;;  %v2646_v22 = vsel %vm1191_vm1, %v11988_v44, 0.0  ;;  %v2163_v44 = vsel %vm1191_vm1, %v11996_v46, 0.0  ;;  %v2160_v46 = vsel %vm1191_vm1, %v11994_v9, 0.0 }
 0x4c0   : > { %v2655_v9 = vsel %vm1191_vm1, %v12054_v37, 0.0 }
 0x4c3   : > { %2188 = vadd.xlane.f32.xlu1 %v2187_v15  ;;  %2146 = vadd.xlane.f32.xlu0 %v2145_v6  ;;  %v2562_v15 = vpop.permute.xlu1 %2561  ;;  %v2190_v6 = vsel %vm1191_vm1, %v11974_v51, 0.0 }
 0x4c7   : > { %2194 = vadd.xlane.f32.xlu1 %v2193_v12  ;;  %2149 = vadd.xlane.f32.xlu0 %v2148_v18  ;;  %v12090_v12 = vpop.permute.xlu0 %2587  ;;  %v2590_v13 = vpop.permute.xlu1 %2589  ;;  %v2652_v18 = vsel %vm1191_vm1, %v11992_v24, 0.0  ;;  %v2205_v24 = vsel %vm1191_vm1, %v2087_v52, 0.0  ;;  %v2202_v52 = vsel %vm1191_vm1, %v11998_v49, 0.0  ;;  %v2211_v49 = vsel %vm1191_vm1, %v2091_v10, 0.0 }
 0x4cb   : > { %2158 = vadd.xlane.f32.xlu1 %v2157_v16  ;;  %2185 = vadd.xlane.f32.xlu0 %v2184_v33  ;;  %v12100_v51 = vpop.permute.xlu0 %2064  ;;  %v2067_v16 = vpop.permute.xlu1 %2066 }
 0x4cf   : > { %2200 = vadd.xlane.f32.xlu1 %v2199_v53  ;;  %2191 = vadd.xlane.f32.xlu0 %v2190_v6  ;;  %v12106_v33 = vpop.permute.xlu0 %2092  ;;  %v2095_v53 = vpop.permute.xlu1 %2094  ;;  %v2658_v6 = vsel %vm1191_vm1, %v2558_v27, 0.0  ;;  %v2700_v27 = vsel %vm1191_vm1, %v2586_v4, 0.0 }
 0x4d3   : > { %2647 = vadd.xlane.f32.xlu1 %v2646_v22  ;;  %2155 = vadd.xlane.f32.xlu0 %v2154_v30  ;;  %v12114_v22 = vpop.permute.xlu0 %2563  ;;  %v2694_v30 = vsel %vm1191_vm1, %v2582_v50, 0.0  ;;  %v2691_v50 = vsel %vm1191_vm1, %v12056_v42, 0.0 }
 0x4d7   : > { %2653 = vadd.xlane.f32.xlu1 %v2652_v18  ;;  %2197 = vadd.xlane.f32.xlu0 %v2196_v19  ;;  %v2169_v19 = vsel %vm1191_vm1, %v2063_v21, 0.0  ;;  %v2166_v21 = vsel %vm1191_vm1, %v12068_v56, 0.0  ;;  %v17070_v56 = vld [vmem:[#allocation66_spill] sm:$0xff] }
 0x4db   : > { %2164 = vadd.xlane.f32.xlu1 %v2163_v44  ;;  %2644 = vadd.xlane.f32.xlu0 %v2643_v54  ;;  %v2697_v44 = vsel %vm1191_vm1, %v12058_v1, 0.0  ;;  %v17068_v1 = vld [vmem:[#allocation51_spill] sm:$0xff] }
 0x4df   : > { %2206 = vadd.xlane.f32.xlu1 %v2205_v24  ;;  %2650 = vadd.xlane.f32.xlu0 %v2649_v38  ;;  %v2664_v24 = vsel %vm1191_vm1, %v2562_v15, 0.0  ;;  %v2706_v15 = vsel %vm1191_vm1, %v2590_v13, 0.0  ;;  %v17071_v13 = vld [vmem:[#allocation52_spill] sm:$0xff] }
 0x4e3   : > { %2659 = vadd.xlane.f32.xlu1 %v2658_v6  ;;  %2161 = vadd.xlane.f32.xlu0 %v2160_v46  ;;  %v1916_v0 = vpop.xlane.xlu1 %1915  ;;  %v17069_v6 = vld [vmem:[#allocation64_spill] sm:$0xff]  ;;  %v2175_v46 = vsel %vm1191_vm1, %v2067_v16, 0.0 }
 0x4e4   : > { %10553 = vrcp.f32 %v1916_v0 }
 0x4e7   : > { %2695 = vadd.xlane.f32.xlu1 %v2694_v30  ;;  %2203 = vadd.xlane.f32.xlu0 %v2202_v52  ;;  %v1913_v63 = vpop.xlane.xlu0 %1912  ;;  %v2566_v18 = vpop.permute.xlu1 %2565  ;;  %v2661_v30 = vsel %vm1191_vm1, %v12084_v25, 0.0 }
 0x4e8   : > { %10555 = vrcp.f32 %v1913_v63  ;;  %v2217_v63 = vsel %vm1191_vm1, %v2095_v53, 0.0  ;;  %v2670_v16 = vsel %vm1191_vm1, %v2566_v18, 0.0  ;;  %v2214_v53 = vsel %vm1191_vm1, %v12106_v33, 0.0 }
 0x4e9   : > { %v2667_v18 = vsel %vm1191_vm1, %v12114_v22, 0.0 }
 0x4eb   : > { %2701 = vadd.xlane.f32.xlu1 %v2700_v27  ;;  %2656 = vadd.xlane.f32.xlu0 %v2655_v9  ;;  %v2594_v54 = vpop.permute.xlu1 %2593  ;;  %v2172_v9 = vsel %vm1191_vm1, %v12100_v51, 0.0 }
 0x4ef   : > { %2170 = vadd.xlane.f32.xlu1 %v2169_v19  ;;  %2692 = vadd.xlane.f32.xlu0 %v2691_v50  ;;  %v2071_v10 = vpop.permute.xlu1 %2070  ;;  %v2712_v19 = vsel %vm1191_vm1, %v2594_v54, 0.0 }
 0x4f1   : > { %v10554_v4 = vpop.eup %10553 }
 0x4f2   : > { %v1920_v42 = vmul.f32 %v10554_v4, %v12000_v23  ;;  %v2208_v23 = vsel %vm1191_vm1, %v12074_v47, 0.0  ;;  %v2703_v47 = vsel %vm1191_vm1, %v12090_v12, 0.0  ;;  %v2181_v12 = vsel %vm1191_vm1, %v2071_v10, 0.0 }
 0x4f3   : > { %2212 = vadd.xlane.f32.xlu1 %v2211_v49  ;;  %2698 = vadd.xlane.f32.xlu0 %v2697_v44  ;;  %v2099_v0 = vpop.permute.xlu1 %2098 }
 0x4f4   : > { %v2223_v51 = vsel %vm1191_vm1, %v2099_v0, 0.0 }
 0x4f5   : > { %v10556_v37 = vpop.eup %10555 }
 0x4f6   : > { %v1919_v38 = vmul.f32 %v10556_v37, %v12004_v2  ;;  %v2592_v2 = vpop.permute.xlu0 %2591 }
 0x4f7   : > { %2665 = vadd.xlane.f32.xlu1 %v2664_v24  ;;  %2167 = vadd.xlane.f32.xlu0 %v2166_v21  ;;  %v2570_v27 = vpop.permute.xlu1 %2569  ;;  %v2709_v54 = vsel %vm1191_vm1, %v2592_v2, 0.0 }
 0x4f8   : > { %10329 = vmatprep.mubr.msk.f32.mxu1 %vm1898_vm10, %v1919_v38  ;;  %v2676_v37 = vsel %vm1191_vm1, %v2570_v27, 0.0 }
 0x4f9   : > { %10330 = vmatmul.mubr.msk.f32.vlgmr.msra.gmra.mxu1 %vm1898_vm10, %v1920_v42 }
 0x4fa   : > { %10333 = vmatpush3.xpose.msk.msra.mxu1 %vm1191_vm1, %v17068_v1  ;;  %10336 = vmatprep.mubr.msk.f32.mxu1 %vm1191_vm1, %v17069_v6  ;;  %v2069_v52 = vpop.permute.xlu0 %2068 }
 0x4fb   : > { %10334 = vmatprep.subr.msk.mxu1 %vm1191_vm1, %v17070_v56  ;;  %2707 = vadd.xlane.f32.xlu1 %v2706_v15  ;;  %v2598_v50 = vpop.permute.xlu1 %2597  ;;  %v2178_v24 = vsel %vm1191_vm1, %v2069_v52, 0.0 }
 0x4fc   : > { %2209 = vadd.xlane.f32.xlu0 %v2208_v23  ;;  %v2718_v38 = vsel %vm1191_vm1, %v2598_v50, 0.0 }
 0x4fe   : > { %10335 = vmatpush3.xpose.msk.msra.mxu1 %vm1191_vm1, %v17070_v56  ;;  %v2097_v25 = vpop.permute.xlu0 %2096 }
 0x4ff   : > { %2176 = vadd.xlane.f32.xlu1 %v2175_v46  ;;  %v2103_v44 = vpop.permute.xlu1 %2102  ;;  %v2220_v22 = vsel %vm1191_vm1, %v2097_v25, 0.0 }
 0x500   : > { %2662 = vadd.xlane.f32.xlu0 %v2661_v30  ;;  %v2229_v10 = vsel %vm1191_vm1, %v2103_v44, 0.0 }
 0x501   : > { %10337 = vmatmul.mubr.msk.f32.vlgmr.msra.gmra.mxu1 %vm1191_vm1, %v17071_v13 }
 0x502   : > { %v2568_v49 = vpop.permute.xlu0 %2567 }
 0x503   : > { %2218 = vadd.xlane.f32.xlu1 %v2217_v63  ;;  %v2574_v33 = vpop.permute.xlu1 %2573  ;;  %v2673_v1 = vsel %vm1191_vm1, %v2568_v49, 0.0 }
 0x504   : > { %2704 = vadd.xlane.f32.xlu0 %v2703_v47  ;;  %v2682_v15 = vsel %vm1191_vm1, %v2574_v33, 0.0 }
 0x506   : > { %v2596_v4 = vpop.permute.xlu0 %2595 }
 0x507   : > { %2671 = vadd.xlane.f32.xlu1 %v2670_v16  ;;  %v2602_v42 = vpop.permute.xlu1 %2601  ;;  %v2715_v23 = vsel %vm1191_vm1, %v2596_v4, 0.0 }
 0x508   : > { %2173 = vadd.xlane.f32.xlu0 %v2172_v9  ;;  %v2724_v46 = vsel %vm1191_vm1, %v2602_v42, 0.0 }
 0x50a   : > { %v2101_v21 = vpop.permute.xlu0 %2100 }
 0x50b   : > { %2713 = vadd.xlane.f32.xlu1 %v2712_v19  ;;  %v2578_v56 = vpop.permute.xlu1 %2577  ;;  %v2226_v0 = vsel %vm1191_vm1, %v2101_v21, 0.0 }
 0x50c   : > { %2215 = vadd.xlane.f32.xlu0 %v2214_v53  ;;  %v2688_v13 = vsel %vm1191_vm1, %v2578_v56, 0.0 }
 0x50e   : > { %v2572_v6 = vpop.permute.xlu0 %2571 }
 0x50f   : > { %2182 = vadd.xlane.f32.xlu1 %v2181_v12  ;;  %v2606_v30 = vpop.permute.xlu1 %2605  ;;  %v2679_v52 = vsel %vm1191_vm1, %v2572_v6, 0.0  ;;  %v660_v12 = vld [vmem:[%s16602_s15] sm:$0xff] }
 0x510   : > { %2668 = vadd.xlane.f32.xlu0 %v2667_v18  ;;  %v2730_v47 = vsel %vm1191_vm1, %v2606_v30, 0.0  ;;  %10351 = vmatprep.subr.mxu1 %v660_v12 }
 0x511   : > { %10352 = vmatpush3.msra.mxu1 %v660_v12 }
 0x512   : > { %v2600_v2 = vpop.permute.xlu0 %2599 }
 0x513   : > { %2224 = vadd.xlane.f32.xlu1 %v2223_v51  ;;  %v2610_v27 = vpop.permute.xlu1 %2609  ;;  %v2721_v16 = vsel %vm1191_vm1, %v2600_v2, 0.0 }
 0x514   : > { %2710 = vadd.xlane.f32.xlu0 %v2709_v54  ;;  %v2736_v25 = vsel %vm1191_vm1, %v2610_v27, 0.0 }
 0x516   : > { %v2576_v63 = vpop.permute.xlu0 %2575 }
 0x517   : > { %2677 = vadd.xlane.f32.xlu1 %v2676_v37  ;;  %v2685_v19 = vsel %vm1191_vm1, %v2576_v63, 0.0 }
 0x518   : > { %2179 = vadd.xlane.f32.xlu0 %v2178_v24 }
 0x51a   : > { %v2604_v9 = vpop.permute.xlu0 %2603 }
 0x51b   : > { %2719 = vadd.xlane.f32.xlu1 %v2718_v38  ;;  %v2727_v50 = vsel %vm1191_vm1, %v2604_v9, 0.0 }
 0x51c   : > { %2221 = vadd.xlane.f32.xlu0 %v2220_v22 }
 0x51e   : > { %v2608_v53 = vpop.permute.xlu0 %2607 }
 0x51f   : > { %2230 = vadd.xlane.f32.xlu1 %v2229_v10  ;;  %v2733_v49 = vsel %vm1191_vm1, %v2608_v53, 0.0 }
 0x520   : > { %2674 = vadd.xlane.f32.xlu0 %v2673_v1 }
 0x523   : > { %2683 = vadd.xlane.f32.xlu1 %v2682_v15 }
 0x524   : > { %2716 = vadd.xlane.f32.xlu0 %v2715_v23 }
 0x527   : > { %2725 = vadd.xlane.f32.xlu1 %v2724_v46 }
 0x528   : > { %2227 = vadd.xlane.f32.xlu0 %v2226_v0 }
 0x52b   : > { %2689 = vadd.xlane.f32.xlu1 %v2688_v13 }
 0x52c   : > { %2680 = vadd.xlane.f32.xlu0 %v2679_v52 }
 0x52f   : > { %2731 = vadd.xlane.f32.xlu1 %v2730_v47 }
 0x530   : > { %2722 = vadd.xlane.f32.xlu0 %v2721_v16 }
 0x533   : > { %2737 = vadd.xlane.f32.xlu1 %v2736_v25 }
 0x534   : > { %2686 = vadd.xlane.f32.xlu0 %v2685_v19 }
 0x538   : > { %2728 = vadd.xlane.f32.xlu0 %v2727_v50 }
 0x53c   : > { %2734 = vadd.xlane.f32.xlu0 %v2733_v49 }
 0x544   : > { %v12186_v18 = vpop.xlane.xlu1 %2140  ;;  %v12188_v44 = vpop.xlane.xlu0 %2137 }
 0x545   : > { %v2279_v36 = vrot.slane %v12186_v18, %v11698_v48  ;;  %v2275_v62 = vrot.slane %v12188_v44, %v11705_v61 }
 0x548   : > { %v12190_v51 = vpop.xlane.xlu1 %2152  ;;  %v2144_v54 = vpop.xlane.xlu0 %2143 }
 0x549   : > { %v2284_v20 = vrot.slane %v2144_v54, %v11705_v61  ;;  %v2297_v60 = vrot.slane %v12190_v51, %v11698_v48  ;;  %v2280_v51 = vsel %vm1331_vm2, %v2279_v36, %v2275_v62 }
 0x54c   : > { %v12192_v4 = vpop.xlane.xlu1 %2188  ;;  %v2147_v37 = vpop.xlane.xlu0 %2146 }
 0x54d   : > { %v2288_v41 = vrot.slane %v2147_v37, %v11698_v48 }
 0x54f   : > { %v2289_v28 = vsel %vm1331_vm2, %v2288_v41, %v2284_v20 }
 0x550   : > { %v12194_v33 = vpop.xlane.xlu1 %2194  ;;  %v2150_v24 = vpop.xlane.xlu0 %2149 }
 0x551   : > { %v2293_v3 = vrot.slane %v2150_v24, %v11705_v61  ;;  %v2360_v18 = vrot.slane %v12194_v33, %v11698_v48 }
 0x554   : > { %v12196_v21 = vpop.xlane.xlu1 %2158  ;;  %v12198_v38 = vpop.xlane.xlu0 %2185 }
 0x555   : > { %v2347_v37 = vrot.slane %v12198_v38, %v11705_v61  ;;  %v2351_v38 = vrot.slane %v12192_v4, %v11698_v48  ;;  %v2306_v20 = vrot.slane %v12196_v21, %v11698_v48 }
 0x557   : > { %v2352_v36 = vsel %vm1331_vm2, %v2351_v38, %v2347_v37 }
 0x558   : > { %v12200_v22 = vpop.xlane.xlu1 %2200  ;;  %v2192_v42 = vpop.xlane.xlu0 %2191 }
 0x559   : > { %v2356_v43 = vrot.slane %v2192_v42, %v11705_v61  ;;  %v2298_v42 = vsel %vm1331_vm2, %v2297_v60, %v2293_v3  ;;  %v2369_v41 = vrot.slane %v12200_v22, %v11698_v48 }
 0x55b   : > { %v2361_v33 = vsel %vm1331_vm2, %v2360_v18, %v2356_v43 }
 0x55c   : > { %v12202_v10 = vpop.xlane.xlu1 %2647  ;;  %v12204_v1 = vpop.xlane.xlu0 %2155 }
 0x55d   : > { %v2302_v44 = vrot.slane %v12204_v1, %v11705_v61 }
 0x55f   : > { %v2307_v4 = vsel %vm1331_vm2, %v2306_v20, %v2302_v44 }
 0x560   : > { %v12206_v6 = vpop.xlane.xlu1 %2653  ;;  %v12208_v15 = vpop.xlane.xlu0 %2197 }
 0x561   : > { %v2365_v54 = vrot.slane %v12208_v15, %v11705_v61  ;;  %v2416_v15 = vsel %vm1468_vm3, %v2289_v28, %v2280_v51  ;;  %v2787_v3 = vrot.slane %v12206_v6, %v11698_v48  ;;  %v2423_v28 = vsel %vm1468_vm3, %v2361_v33, %v2352_v36 }
 0x562   : > { %v2417_v22 = vsel %vm1470_vm4, %v2298_v42, %v2416_v15 }
 0x563   : > { %v2370_v60 = vsel %vm1331_vm2, %v2369_v41, %v2365_v54  ;;  %v2418_v44 = vsel %vm1472_vm5, %v2307_v4, %v2417_v22 }
 0x564   : > { %v12210_v56 = vpop.xlane.xlu1 %2164  ;;  %v12212_v23 = vpop.xlane.xlu0 %2644 }
 0x565   : > { %v2774_v21 = vrot.slane %v12212_v23, %v11705_v61  ;;  %v2424_v23 = vsel %vm1470_vm4, %v2370_v60, %v2423_v28  ;;  %v2315_v54 = vrot.slane %v12210_v56, %v11698_v48 }
 0x568   : > { %v12214_v2 = vpop.xlane.xlu1 %2206  ;;  %v12216_v46 = vpop.xlane.xlu0 %2650 }
 0x569   : > { %v2783_v1 = vrot.slane %v12216_v46, %v11705_v61  ;;  %v2778_v46 = vrot.slane %v12202_v10, %v11698_v48  ;;  %v2378_v10 = vrot.slane %v12214_v2, %v11698_v48 }
 0x56b   : > { %v2788_v37 = vsel %vm1331_vm2, %v2787_v3, %v2783_v1  ;;  %v2779_v51 = vsel %vm1331_vm2, %v2778_v46, %v2774_v21 }
 0x56c   : > { %v12218_v0 = vpop.xlane.xlu1 %2659  ;;  %v12220_v30 = vpop.xlane.xlu0 %2161 }
 0x56d   : > { %v2311_v18 = vrot.slane %v12220_v30, %v11705_v61  ;;  %v2796_v20 = vrot.slane %v12218_v0, %v11698_v48 }
 0x56f   : > { %v2316_v2 = vsel %vm1331_vm2, %v2315_v54, %v2311_v18 }
 0x570   : > { %v12222_v13 = vpop.xlane.xlu1 %2695  ;;  %v12224_v52 = vpop.xlane.xlu0 %2203 }
 0x571   : > { %v2374_v6 = vrot.slane %v12224_v52, %v11705_v61  ;;  %v2915_v52 = vsel %vm1468_vm3, %v2788_v37, %v2779_v51 }
 0x573   : > { %v2379_v33 = vsel %vm1331_vm2, %v2378_v10, %v2374_v6 }
 0x574   : > { %v12226_v63 = vpop.xlane.xlu1 %2701  ;;  %v12228_v47 = vpop.xlane.xlu0 %2656  ;;  %v2425_v22 = vsel %vm1472_vm5, %v2379_v33, %v2424_v23 }
 0x575   : > { %v2792_v38 = vrot.slane %v12228_v47, %v11705_v61  ;;  %v2850_v47 = vrot.slane %v12222_v13, %v11698_v48  ;;  %v2859_v15 = vrot.slane %v12226_v63, %v11698_v48 }
 0x577   : > { %v2797_v36 = vsel %vm1331_vm2, %v2796_v20, %v2792_v38 }
 0x578   : > { %v12230_v27 = vpop.xlane.xlu1 %2170  ;;  %v12232_v16 = vpop.xlane.xlu0 %2692  ;;  %v2916_v6 = vsel %vm1470_vm4, %v2797_v36, %v2915_v52 }
 0x579   : > { %v2324_v0 = vrot.slane %v12230_v27, %v11698_v48 }
 0x57c   : > { %v12234_v9 = vpop.xlane.xlu1 %2212  ;;  %v12236_v25 = vpop.xlane.xlu0 %2698 }
 0x57d   : > { %v2855_v56 = vrot.slane %v12236_v25, %v11705_v61  ;;  %v2846_v25 = vrot.slane %v12232_v16, %v11705_v61  ;;  %v2387_v13 = vrot.slane %v12234_v9, %v11698_v48 }
 0x57f   : > { %v2860_v27 = vsel %vm1331_vm2, %v2859_v15, %v2855_v56 }
 0x580   : > { %v12238_v19 = vpop.xlane.xlu1 %2665  ;;  %v12240_v50 = vpop.xlane.xlu0 %2167 }
 0x581   : > { %v2320_v41 = vrot.slane %v12240_v50, %v11705_v61  ;;  %v2805_v16 = vrot.slane %v12238_v19, %v11698_v48  ;;  %v2851_v19 = vsel %vm1331_vm2, %v2850_v47, %v2846_v25 }
 0x582   : > { %v2922_v23 = vsel %vm1468_vm3, %v2860_v27, %v2851_v19 }
 0x583   : > { %v2325_v3 = vsel %vm1331_vm2, %v2324_v0, %v2320_v41 }
 0x584   : > { %v12242_v53 = vpop.xlane.xlu1 %2707 }
 0x585   : > { %v12244_v49 = vpop.xlane.xlu0 %2209 }
 0x586   : > { %v2383_v1 = vrot.slane %v12244_v49, %v11705_v61 }
 0x588   : > { %v12246_v12 = vpop.xlane.xlu1 %2176  ;;  %v2388_v60 = vsel %vm1331_vm2, %v2387_v13, %v2383_v1 }
 0x589   : > { %v12248_v5 = vpop.xlane.xlu0 %2662  ;;  %v2333_v9 = vrot.slane %v12246_v12, %v11698_v48  ;;  %v2426_v54 = vsel %vm1474_vm6, %v2388_v60, %v2425_v22 }
 0x58a   : > { %v2801_v50 = vrot.slane %v12248_v5, %v11705_v61  ;;  %v2868_v5 = vrot.slane %v12242_v53, %v11698_v48  ;;  %v2419_v53 = vsel %vm1474_vm6, %v2316_v2, %v2418_v44 }
 0x58b   : > { %v2420_v44 = vsel %vm1476_vm7, %v2325_v3, %v2419_v53 }
 0x58c   : > { %v12250_v17 = vpop.xlane.xlu1 %2218  ;;  %v2806_v28 = vsel %vm1331_vm2, %v2805_v16, %v2801_v50 }
 0x58d   : > { %v12252_v8 = vpop.xlane.xlu0 %2704  ;;  %v2396_v46 = vrot.slane %v12250_v17, %v11698_v48  ;;  %v2917_v51 = vsel %vm1472_vm5, %v2806_v28, %v2916_v6 }
 0x58e   : > { %v2864_v49 = vrot.slane %v12252_v8, %v11705_v61 }
 0x590   : > { %v12254_v32 = vpop.xlane.xlu1 %2671  ;;  %v2869_v12 = vsel %vm1331_vm2, %v2868_v5, %v2864_v49 }
 0x591   : > { %v12256_v58 = vpop.xlane.xlu0 %2173  ;;  %v2923_v20 = vsel %vm1470_vm4, %v2869_v12, %v2922_v23 }
 0x592   : > { %v2329_v63 = vrot.slane %v12256_v58, %v11705_v61 }
 0x594   : > { %v12258_v29 = vpop.xlane.xlu1 %2713 }
 0x595   : > { %v12260_v31 = vpop.xlane.xlu0 %2215  ;;  %v2877_v52 = vrot.slane %v12258_v29, %v11698_v48 }
 0x596   : > { %v2392_v8 = vrot.slane %v12260_v31, %v11705_v61  ;;  %v2814_v31 = vrot.slane %v12254_v32, %v11698_v48 }
 0x598   : > { %v12262_v14 = vpop.xlane.xlu1 %2182  ;;  %v2397_v17 = vsel %vm1331_vm2, %v2396_v46, %v2392_v8 }
 0x599   : > { %v12264_v55 = vpop.xlane.xlu0 %2668  ;;  %v2342_v2 = vrot.slane %v12262_v14, %v11698_v48  ;;  %v2427_v14 = vsel %vm1476_vm7, %v2397_v17, %v2426_v54 }
 0x59a   : > { %v2810_v58 = vrot.slane %v12264_v55, %v11705_v61  ;;  %v2334_v55 = vsel %vm1331_vm2, %v2333_v9, %v2329_v63 }
 0x59b   : > { %v2421_v41 = vsel %vm1478_vm8, %v2334_v55, %v2420_v44 }
 0x59c   : > { %v12266_v11 = vpop.xlane.xlu1 %2224  ;;  %v2815_v10 = vsel %vm1331_vm2, %v2814_v31, %v2810_v58 }
 0x59d   : > { %v12268_v35 = vpop.xlane.xlu0 %2710 }
 0x59e   : > { %v2873_v47 = vrot.slane %v12268_v35, %v11705_v61  ;;  %v2405_v35 = vrot.slane %v12266_v11, %v11698_v48 }
 0x5a0   : > { %v12270_v45 = vpop.xlane.xlu1 %2677  ;;  %v2878_v63 = vsel %vm1331_vm2, %v2877_v52, %v2873_v47  ;;  %v17072_v52 = vld [vmem:[#allocation13_spill] sm:$0xff]  ;;  %v17076_v47 = vld [vmem:[#allocation14_spill] sm:$0xff] }
 0x5a1   : > { %v12272_v39 = vpop.xlane.xlu0 %2179  ;;  %v2823_v15 = vrot.slane %v12270_v45, %v11698_v48  ;;  %v2924_v28 = vsel %vm1472_vm5, %v2878_v63, %v2923_v20 }
 0x5a2   : > { %v2338_v32 = vrot.slane %v12272_v39, %v11705_v61 }
 0x5a4   : > { %v12274_v59 = vpop.xlane.xlu1 %2719  ;;  %v2343_v50 = vsel %vm1331_vm2, %v2342_v2, %v2338_v32  ;;  %v17075_v2 = vld [vmem:[#allocation53_spill] sm:$0xff] }
 0x5a5   : > { %v12277_v57 = vpop.xlane.xlu0 %2221  ;;  %v2886_v11 = vrot.slane %v12274_v59, %v11698_v48  ;;  %v2422_v8 = vsel %vm1480_vm9, %v2343_v50, %v2421_v41  ;;  %v17074_v41 = vld [vmem:[#allocation15_spill] sm:$0xff]  ;;  %v17088_v50 = vld [vmem:[#allocation76_spill] sm:$0xff] }
 0x5a6   : > { %v2401_v39 = vrot.slane %v12277_v57, %v11705_v61 }
 0x5a8   : > { %v12290_v40 = vpop.xlane.xlu1 %2230 }
 0x5a9   : > { %v12299_v24 = vpop.xlane.xlu0 %2674  ;;  %v2414_v16 = vrot.slane %v12290_v40, %v11698_v48 }
 0x5aa   : > { %v2819_v56 = vrot.slane %v12299_v24, %v11705_v61  ;;  %v2918_v24 = vsel %vm1474_vm6, %v2815_v10, %v2917_v51 }
 0x5ac   : > { %v12314_v62 = vpop.xlane.xlu1 %2683  ;;  %v2824_v36 = vsel %vm1331_vm2, %v2823_v15, %v2819_v56  ;;  %v17073_v56 = vld [vmem:[#allocation12_spill] sm:$0xff]  ;;  %v17082_v15 = vld [vmem:[#allocation67_spill] sm:$0xff] }
 0x5ad   : > { %v12322_v43 = vpop.xlane.xlu0 %2716  ;;  %v2832_v57 = vrot.slane %v12314_v62, %v11698_v48 }
 0x5ae   : > { %v2882_v25 = vrot.slane %v12322_v43, %v11705_v61  ;;  %v2406_v43 = vsel %vm1331_vm2, %v2405_v35, %v2401_v39  ;;  %v17077_v39 = vld [vmem:[#allocation61_spill] sm:$0xff] }
 0x5af   : > { %v2428_v53 = vsel %vm1478_vm8, %v2406_v43, %v2427_v14  ;;  %v17084_v14 = vld [vmem:[#allocation50_spill] sm:$0xff]  ;;  %v17085_v35 = vld [vmem:[#allocation73_spill] sm:$0xff] }
 0x5b0   : > { %v12342_v42 = vpop.xlane.xlu1 %2725  ;;  %v2887_v60 = vsel %vm1331_vm2, %v2886_v11, %v2882_v25  ;;  %v17087_v25 = vld [vmem:[#allocation56_spill] sm:$0xff] }
 0x5b1   : > { %v12344_v30 = vpop.xlane.xlu0 %2227 }
 0x5b2   : > { %v2410_v45 = vrot.slane %v12344_v30, %v11705_v61  ;;  %v2895_v30 = vrot.slane %v12342_v42, %v11698_v48 }
 0x5b4   : > { %v2690_v21 = vpop.xlane.xlu1 %2689  ;;  %v2415_v40 = vsel %vm1331_vm2, %v2414_v16, %v2410_v45  ;;  %v17090_v45 = vld [vmem:[#allocation59_spill] sm:$0xff] }
 0x5b5   : > { %v2681_v4 = vpop.xlane.xlu0 %2680  ;;  %v2841_v13 = vrot.slane %v2690_v21, %v11698_v48  ;;  %v2919_v21 = vsel %vm1476_vm7, %v2824_v36, %v2918_v24  ;;  %v2429_v54 = vsel %vm1480_vm9, %v2415_v40, %v2428_v53  ;;  %v17081_v24 = vld [vmem:[#allocation47_spill] sm:$0xff]  ;;  %v17089_v36 = vld [vmem:[#allocation16_spill] sm:$0xff] }
 0x5b6   : > { %v2828_v33 = vrot.slane %v2681_v4, %v11705_v61  ;;  %v17097_v40 = vld [vmem:[#allocation20_spill] sm:$0xff]  ;;  %v17101_v53 = vld [vmem:[#allocation75_spill] sm:$0xff] }
 0x5b8   : > { %v2732_v1 = vpop.xlane.xlu1 %2731  ;;  %v2833_v62 = vsel %vm1331_vm2, %v2832_v57, %v2828_v33  ;;  %v17078_v33 = vld [vmem:[#allocation54_spill] sm:$0xff] }
 0x5b9   : > { %v2723_v37 = vpop.xlane.xlu0 %2722  ;;  %v10331_v18 = vpop.f32.mrf.mxu1  ;;  %v2904_v59 = vrot.slane %v2732_v1, %v11698_v48  ;;  %v2920_v42 = vsel %vm1478_vm8, %v2833_v62, %v2919_v21  ;;  %v17079_v1 = vld [vmem:[#allocation62_spill] sm:$0xff]  ;;  %v12533_v21 = vld [vmem:[%s16602_s15 + $0x8] sm:$0xff] }
 0x5ba   : > { %v2891_v49 = vrot.slane %v2723_v37, %v11705_v61  ;;  %v2925_v37 = vsel %vm1474_vm6, %v2887_v60, %v2924_v28  ;;  %v17086_v57 = vld [vmem:[#allocation58_spill] sm:$0xff]  ;;  %v17091_v60 = vld [vmem:[#allocation19_spill] sm:$0xff] }
 0x5bb   : > { %v1999_v38 = vpop.f32.mrf.mxu1  ;;  %v17100_v28 = vld [vmem:[#allocation26_spill] sm:$0xff] }
 0x5bc   : > { %10353 = vmatprep.mubr.msk.f32.mxu1 %vm1191_vm1, %v1999_v38  ;;  %v2738_v9 = vpop.xlane.xlu1 %2737  ;;  %v2896_v22 = vsel %vm1331_vm2, %v2895_v30, %v2891_v49 }
 0x5bd   : > { %v2687_v29 = vpop.xlane.xlu0 %2686  ;;  %10354 = vmatmul.mubr.msk.f32.vlgmr.msra.gmra.mxu1 %vm1191_vm1, %v10331_v18  ;;  %v2913_v18 = vrot.slane %v2738_v9, %v11698_v48  ;;  %v2926_v23 = vsel %vm1476_vm7, %v2896_v22, %v2925_v37  ;;  %v17093_v9 = vld [vmem:[#allocation21_spill] sm:$0xff]  ;;  %v17096_v22 = vld [vmem:[#allocation68_spill] sm:$0xff]  ;;  %v17105_v37 = vld [vmem:[#allocation23_spill] sm:$0xff] }
 0x5be   : > { %v2837_v0 = vrot.slane %v2687_v29, %v11705_v61  ;;  %v17080_v29 = vld [vmem:[#allocation63_spill] sm:$0xff] }
 0x5bf   : > { %v17127_v48 = vld [vmem:[#allocation79_spill] sm:$0xff] }
 0x5c0   : > { %v2842_v5 = vsel %vm1331_vm2, %v2841_v13, %v2837_v0  ;;  %v17083_v0 = vld [vmem:[#allocation55_spill] sm:$0xff] }
 0x5c1   : > { %v10338_v4 = vpop.f32.mrf.mxu1  ;;  %v2729_v27 = vpop.xlane.xlu0 %2728  ;;  %v2921_v12 = vsel %vm1480_vm9, %v2842_v5, %v2920_v42  ;;  %v17099_v42 = vld [vmem:[#allocation22_spill] sm:$0xff] }
 0x5c2   : > { %v2900_v3 = vrot.slane %v2729_v27, %v11705_v61  ;;  %v2512_v44 = vadd.f32 %v10338_v4, %v2429_v54  ;;  %v17110_v54 = vld [vmem:[#allocation80_spill] sm:$0xff] }
 0x5c3   : > { %v2506_v58 = vpop.f32.mrf.mxu1 }
 0x5c4   : > { %v2507_v19 = vadd.f32 %v2506_v58, %v2422_v8  ;;  %v2905_v46 = vsel %vm1331_vm2, %v2904_v59, %v2900_v3  ;;  %v17092_v59 = vld [vmem:[#allocation17_spill] sm:$0xff] }
 0x5c5   : > { %v2735_v31 = vpop.xlane.xlu0 %2734  ;;  %v2927_v10 = vsel %vm1478_vm8, %v2905_v46, %v2926_v23  ;;  %v17094_v8 = vld [vmem:[#allocation65_spill] sm:$0xff]  ;;  %v17102_v46 = vld [vmem:[#allocation78_spill] sm:$0xff] }
 0x5c6   : > { %v2931_v55 = vadd.f32 %v2921_v12, %v2507_v19  ;;  %v2909_v6 = vrot.slane %v2735_v31, %v11705_v61  ;;  %v17095_v58 = vld [vmem:[#allocation69_spill] sm:$0xff]  ;;  %v17098_v19 = vld [vmem:[#allocation24_spill] sm:$0xff]  ;;  %v17126_v61 = vld [vmem:[#allocation39_spill] sm:$0xff] }
 0x5c7   : > { %v17103_v12 = vld [vmem:[#allocation57_spill] sm:$0xff]  ;;  %v17104_v31 = vld [vmem:[#allocation60_spill] sm:$0xff] }
 0x5c8   : > { %v2914_v51 = vsel %vm1331_vm2, %v2913_v18, %v2909_v6  ;;  %v2933_v17 = vsel %vm1898_vm10, %v2931_v55, -inf  ;;  %v17106_v18 = vld [vmem:[#allocation28_spill] sm:$0xff]  ;;  %v17108_v6 = vld [vmem:[#allocation30_spill] sm:$0xff]  ;;  %v17109_v23 = vld [vmem:[#allocation77_spill] sm:$0xff] }
 0x5c9   : > { %2934 = vmax.xlane.f32.xlu0 %v2933_v17  ;;  %v2928_v32 = vsel %vm1480_vm9, %v2914_v51, %v2927_v10  ;;  %v17112_v51 = vld [vmem:[#allocation72_spill] sm:$0xff]  ;;  %v17113_v17 = vld [vmem:[#allocation27_spill] sm:$0xff] }
 0x5ca   : > { %v2932_v38 = vadd.f32 %v2928_v32, %v2512_v44  ;;  %v17111_v44 = vld [vmem:[#allocation70_spill] sm:$0xff]  ;;  %v17114_v10 = vld [vmem:[#allocation32_spill] sm:$0xff]  ;;  %v17115_v32 = vld [vmem:[#allocation29_spill] sm:$0xff] }
 0x5cc   : > { %v2936_v20 = vsel %vm1898_vm10, %v2932_v38, -inf }
 0x5cd   : > { %2937 = vmax.xlane.f32.xlu1 %v2936_v20  ;;  %v17117_v20 = vld [vmem:[#allocation81_spill] sm:$0xff] }
 0x5de   : > { %2955 = vrot.lane.b32.xlu1 %v17072_v52, %s16763_s0 }
 0x5df   : > { %2957 = vrot.lane.b32.xlu0 %v17073_v56, %s16763_s0 }
 0x5e2   : > { %3402 = vrot.lane.b32.xlu1 %v17073_v56, %s16761_s23 }
 0x5e3   : > { %3396 = vrot.lane.b32.xlu0 %v17074_v41, %s16761_s23 }
 0x5e6   : > { %3400 = vrot.lane.b32.xlu1 %v17072_v52, %s16761_s23 }
 0x5e7   : > { %3204 = vrot.lane.b32.xlu0 %v17075_v2, %s16761_s23 }
 0x5ea   : > { %3398 = vrot.lane.b32.xlu1 %v17076_v47, %s16761_s23 }
 0x5eb   : > { %3208 = vrot.lane.b32.xlu0 %v17077_v39, %s16761_s23 }
 0x5ee   : > { %3206 = vrot.lane.b32.xlu1 %v17078_v33, %s16761_s23 }
 0x5ef   : > { %3212 = vrot.lane.b32.xlu0 %v17079_v1, %s16761_s23 }
 0x5f2   : > { %3210 = vrot.lane.b32.xlu1 %v17080_v29, %s16761_s23 }
 0x5f3   : > { %3236 = vrot.lane.b32.xlu0 %v17081_v24, %s16761_s23 }
 0x5f6   : > { %3214 = vrot.lane.b32.xlu1 %v17082_v15, %s16761_s23 }
 0x5f7   : > { %3240 = vrot.lane.b32.xlu0 %v17083_v0, %s16761_s23 }
 0x5fa   : > { %3238 = vrot.lane.b32.xlu1 %v17084_v14, %s16761_s23 }
 0x5fb   : > { %3216 = vrot.lane.b32.xlu0 %v17085_v35, %s16761_s23 }
 0x5fe   : > { %3242 = vrot.lane.b32.xlu1 %v17086_v57, %s16761_s23 }
 0x5ff   : > { %3244 = vrot.lane.b32.xlu0 %v17087_v25, %s16761_s23 }
 0x602   : > { %3218 = vrot.lane.b32.xlu1 %v17088_v50, %s16761_s23 }
 0x603   : > { %3679 = vrot.lane.b32.xlu0 %v17089_v36, %s16761_s23 }
 0x606   : > { %3246 = vrot.lane.b32.xlu1 %v17090_v45, %s16761_s23 }
 0x652   : > { %v2935_v13 = vpop.xlane.xlu0 %2934 }
 0x653   : > { %v2939_v49 = vsub.f32 %v2931_v55, %v2935_v13  ;;  %v17107_v55 = vld [vmem:[#allocation25_spill] sm:$0xff]  ;;  %v17118_v13 = vld [vmem:[#allocation83_spill] sm:$0xff] }
 0x655   : > { %v2941_v63 = vmul.f32 1.442695, %v2939_v49  ;;  %v17119_v49 = vld [vmem:[#allocation71_spill] sm:$0xff] }
 0x656   : > { %v2938_v11 = vpop.xlane.xlu1 %2937  ;;  %v2958_v62 = vpop.permute.xlu0 %2957 }
 0x657   : > { %10557 = vpow2.f32 %v2941_v63  ;;  %v2940_v43 = vsub.f32 %v2932_v38, %v2938_v11  ;;  %10339 = vmatprep.subr.mxu0 %v2958_v62  ;;  %v17116_v38 = vld [vmem:[#allocation34_spill] sm:$0xff] }
 0x658   : > { %10340 = vmatpush3.msra.mxu0 %v2958_v62  ;;  %v17121_v62 = vld [vmem:[#allocation74_spill] sm:$0xff] }
 0x659   : > { %v2943_v4 = vmul.f32 1.442695, %v2940_v43  ;;  %v17122_v43 = vld [vmem:[#allocation31_spill] sm:$0xff] }
 0x65a   : > { %v2956_v27 = vpop.permute.xlu1 %2955  ;;  %v12592_v11 = vpop.permute.xlu0 %3396 }
 0x65b   : > { %10559 = vpow2.f32 %v2943_v4  ;;  %10341 = vmatprep.subr.mxu0 %v2956_v27  ;;  %17120 = vst [vmem:[#allocation18_spill] sm:$0xff] %v12592_v11 }
 0x65c   : > { %10342 = vmatpush3.msra.mxu0 %v2956_v27  ;;  %v17124_v27 = vld [vmem:[#allocation36_spill] sm:$0xff] }
 0x65d   : > { %10346 = vmatprep.subr.mxu0 %v12533_v21 }
 0x65e   : > { %v12590_v63 = vpop.permute.xlu1 %3402 }
 0x662   : > { %v12598_v4 = vpop.permute.xlu1 %3400 }
 0x663   : > { %17123 = vst [vmem:[#allocation85_spill] sm:$0xff] %v12598_v4 }
 0x664   : > { %v12512_v16 = vpop.eup %10557 }
 0x665   : > { %v2945_v30 = vsel %vm1898_vm10, %v12512_v16, 0.0 }
 0x666   : > { %2946 = vadd.xlane.f32.xlu0 %v2945_v30  ;;  %v17125_v30 = vld [vmem:[#allocation33_spill] sm:$0xff] }
 0x668   : > { %v12516_v3 = vpop.eup %10559 }
 0x669   : > { %v2948_v5 = vsel %vm1898_vm10, %v12516_v3, 0.0 }
 0x66a   : > { %2949 = vadd.xlane.f32.xlu1 %v2948_v5  ;;  %v3205_v5 = vpop.permute.xlu0 %3204 }
 0x67b   : > { %3681 = vrot.lane.b32.xlu1 %v17091_v60, %s16761_s23 }
 0x67c   : > { %3683 = vrot.lane.b32.xlu0 %v17092_v59, %s16761_s23 }
 0x67f   : > { %3685 = vrot.lane.b32.xlu1 %v17093_v9, %s16761_s23 }
 0x680   : > { %3220 = vrot.lane.b32.xlu0 %v17094_v8, %s16761_s23 }
 0x683   : > { %3222 = vrot.lane.b32.xlu1 %v17095_v58, %s16761_s23 }
 0x684   : > { %3248 = vrot.lane.b32.xlu0 %v17096_v22, %s16761_s23 }
 0x687   : > { %3250 = vrot.lane.b32.xlu1 %v11462_v7, %s16761_s23 }
 0x688   : > { %3687 = vrot.lane.b32.xlu0 %v17023_v26, %s16761_s23 }
 0x68b   : > { %3689 = vrot.lane.b32.xlu1 %v11036_v34, %s16761_s23 }
 0x68c   : > { %3711 = vrot.lane.b32.xlu0 %v17097_v40, %s16761_s23 }
 0x68f   : > { %3713 = vrot.lane.b32.xlu1 %v17098_v19, %s16761_s23 }
 0x690   : > { %3715 = vrot.lane.b32.xlu0 %v17099_v42, %s16761_s23 }
 0x693   : > { %3717 = vrot.lane.b32.xlu1 %v17100_v28, %s16761_s23 }
 0x694   : > { %3224 = vrot.lane.b32.xlu0 %v17101_v53, %s16761_s23 }
 0x697   : > { %3226 = vrot.lane.b32.xlu1 %v17102_v46, %s16761_s23 }
 0x698   : > { %3252 = vrot.lane.b32.xlu0 %v17103_v12, %s16761_s23 }
 0x69b   : > { %3254 = vrot.lane.b32.xlu1 %v17104_v31, %s16761_s23 }
 0x69c   : > { %3691 = vrot.lane.b32.xlu0 %v17105_v37, %s16761_s23 }
 0x69f   : > { %3693 = vrot.lane.b32.xlu1 %v17106_v18, %s16761_s23 }
 0x6a0   : > { %3719 = vrot.lane.b32.xlu0 %v17107_v55, %s16761_s23 }
 0x6a3   : > { %3721 = vrot.lane.b32.xlu1 %v17108_v6, %s16761_s23 }
 0x6a4   : > { %3228 = vrot.lane.b32.xlu0 %v17109_v23, %s16761_s23 }
 0x6a7   : > { %3230 = vrot.lane.b32.xlu1 %v17110_v54, %s16761_s23 }
 0x6a8   : > { %3256 = vrot.lane.b32.xlu0 %v17111_v44, %s16761_s23 }
 0x6ab   : > { %3258 = vrot.lane.b32.xlu1 %v17112_v51, %s16761_s23 }
 0x6ac   : > { %3695 = vrot.lane.b32.xlu0 %v17113_v17, %s16761_s23 }
 0x6af   : > { %3697 = vrot.lane.b32.xlu1 %v17114_v10, %s16761_s23 }
 0x6b0   : > { %3723 = vrot.lane.b32.xlu0 %v17115_v32, %s16761_s23 }
 0x6b3   : > { %3725 = vrot.lane.b32.xlu1 %v17116_v38, %s16761_s23  ;;  %v17133_v38 = vld [vmem:[#allocation44_spill] sm:$0xff] }
 0x6b4   : > { %3232 = vrot.lane.b32.xlu0 %v17117_v20, %s16761_s23  ;;  %v17131_v20 = vld [vmem:[#allocation41_spill] sm:$0xff] }
 0x6b7   : > { %3234 = vrot.lane.b32.xlu1 %v17118_v13, %s16761_s23  ;;  %v17130_v13 = vld [vmem:[#allocation35_spill] sm:$0xff] }
 0x6b8   : > { %3260 = vrot.lane.b32.xlu0 %v17119_v49, %s16761_s23  ;;  %v12608_v49 = vpop.permute.xlu1 %3398 }
 0x6b9   : > { %17128 = vst [vmem:[#allocation84_spill] sm:$0xff] %v12608_v49 }
 0x6bb   : > { %3262 = vrot.lane.b32.xlu1 %v17121_v62, %s16761_s23  ;;  %v3209_v62 = vpop.permute.xlu0 %3208 }
 0x6bc   : > { %3699 = vrot.lane.b32.xlu0 %v17122_v43, %s16761_s23  ;;  %v17129_v43 = vld [vmem:[#allocation82_spill] sm:$0xff]  ;;  %v3306_v49 = vsel %vm1191_vm1, %v3209_v62, 0.0 }
 0x6bf   : > { %3701 = vrot.lane.b32.xlu1 %v17124_v27, %s16761_s23  ;;  %v3207_v27 = vpop.permute.xlu1 %3206 }
 0x6c0   : > { %3727 = vrot.lane.b32.xlu0 %v17125_v30, %s16761_s23  ;;  %v17132_v30 = vld [vmem:[#allocation37_spill] sm:$0xff]  ;;  %v3303_v53 = vsel %vm1191_vm1, %v3207_v27, 0.0 }
 0x6c3   : > { %3729 = vrot.lane.b32.xlu1 %v17126_v61, %s16761_s23  ;;  %v3213_v61 = vpop.permute.xlu0 %3212  ;;  %v3211_v32 = vpop.permute.xlu1 %3210 }
 0x6c4   : > { %3264 = vrot.lane.b32.xlu0 %v17127_v48, %s16761_s23  ;;  %v17134_v48 = vld [vmem:[#allocation40_spill] sm:$0xff]  ;;  %v3309_v4 = vsel %vm1191_vm1, %v3211_v32, 0.0  ;;  %v3312_v62 = vsel %vm1191_vm1, %v3213_v61, 0.0 }
 0x6c7   : > { %3266 = vrot.lane.b32.xlu1 %v17129_v43, %s16761_s23  ;;  %v3237_v10 = vpop.permute.xlu0 %3236  ;;  %v17135_v43 = vld [vmem:[#allocation46_spill] sm:$0xff]  ;;  %v3215_v17 = vpop.permute.xlu1 %3214 }
 0x6c8   : > { %3703 = vrot.lane.b32.xlu0 %v17130_v13, %s16761_s23  ;;  %v17136_v13 = vld [vmem:[#allocation42_spill] sm:$0xff] }
 0x6cb   : > { %3705 = vrot.lane.b32.xlu1 %v17131_v20, %s16761_s23  ;;  %v17137_v20 = vld [vmem:[#allocation48_spill] sm:$0xff]  ;;  %v3241_v51 = vpop.permute.xlu0 %3240 }
 0x6cc   : > { %3731 = vrot.lane.b32.xlu0 %v17132_v30, %s16761_s23  ;;  %v17138_v30 = vld [vmem:[#allocation45_spill] sm:$0xff] }
 0x6cf   : > { %3733 = vrot.lane.b32.xlu1 %v17133_v38, %s16761_s23  ;;  %v17139_v38 = vld [vmem:[#allocation49_spill] sm:$0xff]  ;;  %v3217_v44 = vpop.permute.xlu0 %3216 }
 0x6d0   : > { %3707 = vrot.lane.b32.xlu0 %v17134_v48, %s16761_s23  ;;  %v3239_v48 = vpop.permute.xlu1 %3238 }
 0x6d3   : > { %3709 = vrot.lane.b32.xlu1 %v17135_v43, %s16761_s23  ;;  %v3245_v23 = vpop.permute.xlu0 %3244 }
 0x6d4   : > { %3735 = vrot.lane.b32.xlu0 %v17136_v13, %s16761_s23  ;;  %v3243_v54 = vpop.permute.xlu1 %3242 }
 0x6d7   : > { %3737 = vrot.lane.b32.xlu1 %v17137_v20, %s16761_s23  ;;  %v3680_v43 = vpop.permute.xlu0 %3679  ;;  %v3300_v20 = vsel %vm1191_vm1, %v3205_v5, 0.0  ;;  %v3315_v5 = vsel %vm1191_vm1, %v3215_v17, 0.0  ;;  %v3354_v17 = vsel %vm1191_vm1, %v3241_v51, 0.0 }
 0x6d8   : > { %3739 = vrot.lane.b32.xlu0 %v17138_v30, %s16761_s23  ;;  %v3219_v6 = vpop.permute.xlu1 %3218 }
 0x6db   : > { %3741 = vrot.lane.b32.xlu1 %v17139_v38, %s16761_s23  ;;  %s16771_s23 = smov 72  }
 0x6dc   : > { %v3247_v55 = vpop.permute.xlu1 %3246 }
 0x6ef   : > { %v2947_v18 = vpop.xlane.xlu0 %2946 }
 0x6f0   : > { %10561 = vrcp.f32 %v2947_v18 }
 0x6f3   : > { %v2950_v13 = vpop.xlane.xlu1 %2949  ;;  %v3684_v37 = vpop.permute.xlu0 %3683 }
 0x6f4   : > { %10563 = vrcp.f32 %v2950_v13 }
 0x6f7   : > { %v3682_v31 = vpop.permute.xlu1 %3681  ;;  %3301 = vadd.xlane.f32.xlu0 %v3300_v20  ;;  %v3221_v30 = vpop.permute.xlu0 %3220 }
 0x6f8   : > { %v3778_v51 = vsel %vm1191_vm1, %v3682_v31, 0.0 }
 0x6fb   : > { %v3686_v38 = vpop.permute.xlu1 %3685  ;;  %3307 = vadd.xlane.f32.xlu0 %v3306_v49  ;;  %v3249_v12 = vpop.permute.xlu0 %3248 }
 0x6fd   : > { %v10562_v46 = vpop.eup %10561 }
 0x6fe   : > { %v2953_v18 = vmul.f32 %v10562_v46, %v12512_v16  ;;  %v3351_v16 = vsel %vm1191_vm1, %v3239_v48, 0.0 }
 0x6ff   : > { %3304 = vadd.xlane.f32.xlu1 %v3303_v53  ;;  %v3223_v11 = vpop.permute.xlu1 %3222  ;;  %3310 = vadd.xlane.f32.xlu0 %v3309_v4  ;;  %v3688_v13 = vpop.permute.xlu0 %3687  ;;  %v3348_v53 = vsel %vm1191_vm1, %v3237_v10, 0.0  ;;  %v3363_v10 = vsel %vm1191_vm1, %v3247_v55, 0.0 }
 0x700   : > { %10343 = vmatprep.mubr.msk.f32.mxu0 %vm1898_vm10, %v2953_v18  ;;  %v3318_v18 = vsel %vm1191_vm1, %v3217_v44, 0.0  ;;  %v3784_v44 = vsel %vm1191_vm1, %v3686_v38, 0.0 }
 0x701   : > { %v10564_v20 = vpop.eup %10563 }
 0x702   : > { %v2954_v49 = vmul.f32 %v10564_v20, %v12516_v3  ;;  %v3357_v3 = vsel %vm1191_vm1, %v3243_v54, 0.0  ;;  %v3360_v20 = vsel %vm1191_vm1, %v3245_v23, 0.0  ;;  %v3327_v23 = vsel %vm1191_vm1, %v3223_v11, 0.0 }
 0x703   : > { %3316 = vadd.xlane.f32.xlu1 %v3315_v5  ;;  %v3251_v28 = vpop.permute.xlu1 %3250  ;;  %3313 = vadd.xlane.f32.xlu0 %v3312_v62  ;;  %v3712_v27 = vpop.permute.xlu0 %3711  ;;  %v3775_v62 = vsel %vm1191_vm1, %v3680_v43, 0.0 }
 0x704   : > { %10344 = vmatmul.mubr.msk.f32.vlgmr.msra.gmra.mxu0 %vm1898_vm10, %v2954_v49  ;;  %v3369_v43 = vsel %vm1191_vm1, %v3251_v28, 0.0 }
 0x705   : > { %10347 = vmatpush3.msra.mxu0 %v12533_v21  ;;  %v3321_v21 = vsel %vm1191_vm1, %v3219_v6, 0.0 }
 0x706   : > { %10356 = vmatprep.subr.msk.mxu0 %vm1191_vm1, %v12590_v63 }
 0x707   : > { %3352 = vadd.xlane.f32.xlu1 %v3351_v16  ;;  %v3690_v46 = vpop.permute.xlu1 %3689  ;;  %3349 = vadd.xlane.f32.xlu0 %v3348_v53  ;;  %v3716_v61 = vpop.permute.xlu0 %3715  ;;  %v3781_v16 = vsel %vm1191_vm1, %v3684_v37, 0.0  ;;  %v3324_v53 = vsel %vm1191_vm1, %v3221_v30, 0.0  ;;  %v3823_v30 = vsel %vm1191_vm1, %v3712_v27, 0.0 }
 0x708   : > { %v3790_v37 = vsel %vm1191_vm1, %v3690_v46, 0.0 }
 0x70b   : > { %3358 = vadd.xlane.f32.xlu1 %v3357_v3  ;;  %v3714_v32 = vpop.permute.xlu1 %3713  ;;  %3355 = vadd.xlane.f32.xlu0 %v3354_v17  ;;  %v3225_v4 = vpop.permute.xlu0 %3224  ;;  %v3366_v17 = vsel %vm1191_vm1, %v3249_v12, 0.0  ;;  %v3829_v12 = vsel %vm1191_vm1, %v3716_v61, 0.0 }
 0x70c   : > { %v3826_v11 = vsel %vm1191_vm1, %v3714_v32, 0.0 }
 0x70f   : > { %3322 = vadd.xlane.f32.xlu1 %v3321_v21  ;;  %v3718_v48 = vpop.permute.xlu1 %3717  ;;  %3319 = vadd.xlane.f32.xlu0 %v3318_v18  ;;  %v3253_v5 = vpop.permute.xlu0 %3252  ;;  %v3787_v18 = vsel %vm1191_vm1, %v3688_v13, 0.0 }
 0x710   : > { %v3832_v28 = vsel %vm1191_vm1, %v3718_v48, 0.0  ;;  %v3372_v32 = vsel %vm1191_vm1, %v3253_v5, 0.0 }
 0x713   : > { %3364 = vadd.xlane.f32.xlu1 %v3363_v10  ;;  %v3227_v54 = vpop.permute.xlu1 %3226  ;;  %3361 = vadd.xlane.f32.xlu0 %v3360_v20  ;;  %v3692_v6 = vpop.permute.xlu0 %3691 }
 0x714   : > { %v3333_v13 = vsel %vm1191_vm1, %v3227_v54, 0.0  ;;  %v3793_v48 = vsel %vm1191_vm1, %v3692_v6, 0.0 }
 0x717   : > { %3779 = vadd.xlane.f32.xlu1 %v3778_v51  ;;  %v3255_v49 = vpop.permute.xlu1 %3254  ;;  %3776 = vadd.xlane.f32.xlu0 %v3775_v62  ;;  %v3720_v3 = vpop.permute.xlu0 %3719  ;;  %v3330_v62 = vsel %vm1191_vm1, %v3225_v4, 0.0 }
 0x718   : > { %v3375_v27 = vsel %vm1191_vm1, %v3255_v49, 0.0 }
 0x71b   : > { %3785 = vadd.xlane.f32.xlu1 %v3784_v44  ;;  %v3694_v55 = vpop.permute.xlu1 %3693  ;;  %3782 = vadd.xlane.f32.xlu0 %v3781_v16  ;;  %v3229_v38 = vpop.permute.xlu0 %3228 }
 0x71c   : > { %v3796_v61 = vsel %vm1191_vm1, %v3694_v55, 0.0  ;;  %v3336_v49 = vsel %vm1191_vm1, %v3229_v38, 0.0 }
 0x71f   : > { %3328 = vadd.xlane.f32.xlu1 %v3327_v23  ;;  %v3722_v31 = vpop.permute.xlu1 %3721  ;;  %3325 = vadd.xlane.f32.xlu0 %v3324_v53  ;;  %v3257_v10 = vpop.permute.xlu0 %3256  ;;  %v3835_v53 = vsel %vm1191_vm1, %v3720_v3, 0.0 }
 0x720   : > { %v3838_v4 = vsel %vm1191_vm1, %v3722_v31, 0.0  ;;  %v3378_v55 = vsel %vm1191_vm1, %v3257_v10, 0.0 }
 0x723   : > { %3370 = vadd.xlane.f32.xlu1 %v3369_v43  ;;  %3367 = vadd.xlane.f32.xlu0 %v3366_v17  ;;  %v3231_v21 = vpop.permute.xlu1 %3230  ;;  %v3696_v51 = vpop.permute.xlu0 %3695 }
 0x724   : > { %v3339_v5 = vsel %vm1191_vm1, %v3231_v21, 0.0 }
 0x727   : > { %3791 = vadd.xlane.f32.xlu1 %v3790_v37  ;;  %3788 = vadd.xlane.f32.xlu0 %v3787_v18  ;;  %v3259_v20 = vpop.permute.xlu1 %3258  ;;  %v3724_v44 = vpop.permute.xlu0 %3723  ;;  %v3799_v18 = vsel %vm1191_vm1, %v3696_v51, 0.0 }
 0x728   : > { %v3381_v6 = vsel %vm1191_vm1, %v3259_v20, 0.0  ;;  %v3841_v21 = vsel %vm1191_vm1, %v3724_v44, 0.0 }
 0x72b   : > { %3827 = vadd.xlane.f32.xlu1 %v3826_v11  ;;  %3824 = vadd.xlane.f32.xlu0 %v3823_v30  ;;  %v3698_v46 = vpop.permute.xlu1 %3697  ;;  %v3233_v23 = vpop.permute.xlu0 %3232 }
 0x72c   : > { %v3802_v3 = vsel %vm1191_vm1, %v3698_v46, 0.0  ;;  %v3342_v20 = vsel %vm1191_vm1, %v3233_v23, 0.0 }
 0x72f   : > { %3833 = vadd.xlane.f32.xlu1 %v3832_v28  ;;  %3830 = vadd.xlane.f32.xlu0 %v3829_v12  ;;  %v3726_v16 = vpop.permute.xlu1 %3725  ;;  %v3261_v43 = vpop.permute.xlu0 %3260 }
 0x730   : > { %v3844_v38 = vsel %vm1191_vm1, %v3726_v16, 0.0  ;;  %v3384_v46 = vsel %vm1191_vm1, %v3261_v43, 0.0 }
 0x733   : > { %3334 = vadd.xlane.f32.xlu1 %v3333_v13  ;;  %3331 = vadd.xlane.f32.xlu0 %v3330_v62  ;;  %v3235_v54 = vpop.permute.xlu1 %3234  ;;  %v3700_v37 = vpop.permute.xlu0 %3699 }
 0x734   : > { %v3345_v10 = vsel %vm1191_vm1, %v3235_v54, 0.0  ;;  %v3805_v62 = vsel %vm1191_vm1, %v3700_v37, 0.0 }
 0x737   : > { %3376 = vadd.xlane.f32.xlu1 %v3375_v27  ;;  %3373 = vadd.xlane.f32.xlu0 %v3372_v32  ;;  %v3263_v17 = vpop.permute.xlu1 %3262  ;;  %v3728_v11 = vpop.permute.xlu0 %3727 }
 0x738   : > { %v3387_v51 = vsel %vm1191_vm1, %v3263_v17, 0.0  ;;  %v3847_v16 = vsel %vm1191_vm1, %v3728_v11, 0.0 }
 0x73b   : > { %3797 = vadd.xlane.f32.xlu1 %v3796_v61  ;;  %3794 = vadd.xlane.f32.xlu0 %v3793_v48  ;;  %v3702_v31 = vpop.permute.xlu1 %3701  ;;  %v3265_v28 = vpop.permute.xlu0 %3264 }
 0x73c   : > { %v3808_v13 = vsel %vm1191_vm1, %v3702_v31, 0.0  ;;  %v3390_v54 = vsel %vm1191_vm1, %v3265_v28, 0.0 }
 0x73f   : > { %3839 = vadd.xlane.f32.xlu1 %v3838_v4  ;;  %3836 = vadd.xlane.f32.xlu0 %v3835_v53  ;;  %v3730_v30 = vpop.permute.xlu1 %3729  ;;  %v3704_v27 = vpop.permute.xlu0 %3703 }
 0x740   : > { %v3850_v44 = vsel %vm1191_vm1, %v3730_v30, 0.0  ;;  %v3811_v53 = vsel %vm1191_vm1, %v3704_v27, 0.0 }
 0x743   : > { %3340 = vadd.xlane.f32.xlu1 %v3339_v5  ;;  %3337 = vadd.xlane.f32.xlu0 %v3336_v49  ;;  %v3267_v12 = vpop.permute.xlu1 %3266  ;;  %v3732_v61 = vpop.permute.xlu0 %3731 }
 0x744   : > { %v3393_v23 = vsel %vm1191_vm1, %v3267_v12, 0.0  ;;  %v3853_v17 = vsel %vm1191_vm1, %v3732_v61, 0.0  ;;  %v17142_v61 = vld [vmem:[#allocation85_spill] sm:$0xff] }
 0x747   : > { %3382 = vadd.xlane.f32.xlu1 %v3381_v6  ;;  %3379 = vadd.xlane.f32.xlu0 %v3378_v55  ;;  %v3706_v32 = vpop.permute.xlu1 %3705  ;;  %v3708_v5 = vpop.permute.xlu0 %3707 }
 0x748   : > { %v3814_v4 = vsel %vm1191_vm1, %v3706_v32, 0.0  ;;  %v3817_v31 = vsel %vm1191_vm1, %v3708_v5, 0.0 }
 0x74b   : > { %3803 = vadd.xlane.f32.xlu1 %v3802_v3  ;;  %3800 = vadd.xlane.f32.xlu0 %v3799_v18  ;;  %v3734_v48 = vpop.permute.xlu1 %3733  ;;  %v3736_v6 = vpop.permute.xlu0 %3735 }
 0x74c   : > { %v3856_v43 = vsel %vm1191_vm1, %v3734_v48, 0.0  ;;  %v3859_v18 = vsel %vm1191_vm1, %v3736_v6, 0.0  ;;  %v17144_v48 = vld [vmem:[#allocation78_spill] sm:$0xff] }
 0x74f   : > { %3845 = vadd.xlane.f32.xlu1 %v3844_v38  ;;  %3842 = vadd.xlane.f32.xlu0 %v3841_v21  ;;  %v3710_v49 = vpop.permute.xlu1 %3709  ;;  %v3740_v38 = vpop.permute.xlu0 %3739 }
 0x750   : > { %v3820_v37 = vsel %vm1191_vm1, %v3710_v49, 0.0  ;;  %v3865_v30 = vsel %vm1191_vm1, %v3740_v38, 0.0  ;;  %v17152_v38 = vld [vmem:[#allocation77_spill] sm:$0xff] }
 0x753   : > { %3346 = vadd.xlane.f32.xlu1 %v3345_v10  ;;  %3343 = vadd.xlane.f32.xlu0 %v3342_v20  ;;  %v3738_v55 = vpop.permute.xlu1 %3737 }
 0x754   : > { %v3862_v3 = vsel %vm1191_vm1, %v3738_v55, 0.0 }
 0x757   : > { %3388 = vadd.xlane.f32.xlu1 %v3387_v51  ;;  %3385 = vadd.xlane.f32.xlu0 %v3384_v46  ;;  %v3742_v21 = vpop.permute.xlu1 %3741 }
 0x758   : > { %v3868_v11 = vsel %vm1191_vm1, %v3742_v21, 0.0  ;;  %v17153_v21 = vld [vmem:[#allocation80_spill] sm:$0xff] }
 0x75b   : > { %3809 = vadd.xlane.f32.xlu1 %v3808_v13  ;;  %3806 = vadd.xlane.f32.xlu0 %v3805_v62 }
 0x75f   : > { %3851 = vadd.xlane.f32.xlu1 %v3850_v44  ;;  %3848 = vadd.xlane.f32.xlu0 %v3847_v16 }
 0x763   : > { %3394 = vadd.xlane.f32.xlu1 %v3393_v23  ;;  %3391 = vadd.xlane.f32.xlu0 %v3390_v54  ;;  %v17145_v54 = vld [vmem:[#allocation57_spill] sm:$0xff] }
 0x767   : > { %3815 = vadd.xlane.f32.xlu1 %v3814_v4  ;;  %3812 = vadd.xlane.f32.xlu0 %v3811_v53  ;;  %v17146_v4 = vld [vmem:[#allocation84_spill] sm:$0xff] }
 0x768   : > { %v17147_v53 = vld [vmem:[#allocation60_spill] sm:$0xff] }
 0x76b   : > { %3857 = vadd.xlane.f32.xlu1 %v3856_v43  ;;  %3854 = vadd.xlane.f32.xlu0 %v3853_v17  ;;  %v17148_v43 = vld [vmem:[#allocation23_spill] sm:$0xff]  ;;  %v17149_v17 = vld [vmem:[#allocation28_spill] sm:$0xff] }
 0x76f   : > { %3821 = vadd.xlane.f32.xlu1 %v3820_v37  ;;  %3818 = vadd.xlane.f32.xlu0 %v3817_v31  ;;  %v17150_v37 = vld [vmem:[#allocation25_spill] sm:$0xff]  ;;  %v17151_v31 = vld [vmem:[#allocation30_spill] sm:$0xff] }
 0x773   : > { %3863 = vadd.xlane.f32.xlu1 %v3862_v3  ;;  %3860 = vadd.xlane.f32.xlu0 %v3859_v18 }
 0x777   : > { %3869 = vadd.xlane.f32.xlu1 %v3868_v11  ;;  %3866 = vadd.xlane.f32.xlu0 %v3865_v30 }
 0x780   : > { %v12703_v10 = vpop.xlane.xlu0 %3301 }
 0x784   : > { %v12705_v20 = vpop.xlane.xlu0 %3307 }
 0x788   : > { %4453 = vrot.lane.b32.xlu1 %v17072_v52, %s16775_s29  ;;  %v12709_v28 = vpop.xlane.xlu1 %3304  ;;  %v12711_v12 = vpop.xlane.xlu0 %3310  ;;  %v17173_v52 = vld [vmem:[#allocation33_spill] sm:$0xff] }
 0x78c   : > { %4449 = vrot.lane.b32.xlu1 %v17074_v41, %s16775_s29  ;;  %v12715_v51 = vpop.xlane.xlu1 %3316  ;;  %v12717_v46 = vpop.xlane.xlu0 %3313 }
 0x78d   : > { %4455 = vrot.lane.b32.xlu0 %v17073_v56, %s16775_s29 }
 0x790   : > { %4451 = vrot.lane.b32.xlu1 %v17076_v47, %s16775_s29  ;;  %v12723_v13 = vpop.xlane.xlu1 %3352  ;;  %v12725_v62 = vpop.xlane.xlu0 %3349 }
 0x791   : > { %4257 = vrot.lane.b32.xlu0 %v17075_v2, %s16775_s29 }
 0x794   : > { %4259 = vrot.lane.b32.xlu1 %v17078_v33, %s16775_s29  ;;  %v12731_v41 = vpop.xlane.xlu1 %3358  ;;  %v12733_v27 = vpop.xlane.xlu0 %3355 }
 0x795   : > { %4261 = vrot.lane.b32.xlu0 %v17077_v39, %s16775_s29 }
 0x798   : > { %4263 = vrot.lane.b32.xlu1 %v17080_v29, %s16775_s29  ;;  %v12739_v47 = vpop.xlane.xlu1 %3322  ;;  %v12741_v32 = vpop.xlane.xlu0 %3319 }
 0x799   : > { %4265 = vrot.lane.b32.xlu0 %v17079_v1, %s16775_s29 }
 0x79c   : > { %4267 = vrot.lane.b32.xlu1 %v17082_v15, %s16775_s29  ;;  %v12747_v2 = vpop.xlane.xlu1 %3364  ;;  %v12749_v33 = vpop.xlane.xlu0 %3361 }
 0x79d   : > { %4289 = vrot.lane.b32.xlu0 %v17081_v24, %s16775_s29 }
 0x7a0   : > { %4291 = vrot.lane.b32.xlu1 %v17084_v14, %s16775_s29  ;;  %v12755_v39 = vpop.xlane.xlu1 %3779  ;;  %v12757_v29 = vpop.xlane.xlu0 %3776 }
 0x7a1   : > { %4293 = vrot.lane.b32.xlu0 %v17083_v0, %s16775_s29 }
 0x7a4   : > { %4295 = vrot.lane.b32.xlu1 %v17086_v57, %s16775_s29  ;;  %v12763_v1 = vpop.xlane.xlu1 %3785  ;;  %v12765_v15 = vpop.xlane.xlu0 %3782 }
 0x7a5   : > { %4269 = vrot.lane.b32.xlu0 %v17085_v35, %s16775_s29 }
 0x7a8   : > { %4271 = vrot.lane.b32.xlu1 %v17088_v50, %s16775_s29  ;;  %v12771_v24 = vpop.xlane.xlu1 %3328  ;;  %v12773_v14 = vpop.xlane.xlu0 %3325 }
 0x7a9   : > { %4297 = vrot.lane.b32.xlu0 %v17087_v25, %s16775_s29 }
 0x7ac   : > { %4299 = vrot.lane.b32.xlu1 %v17090_v45, %s16775_s29  ;;  %v12779_v0 = vpop.xlane.xlu1 %3370  ;;  %v12781_v57 = vpop.xlane.xlu0 %3367 }
 0x7ad   : > { %4732 = vrot.lane.b32.xlu0 %v17089_v36, %s16775_s29 }
 0x7b0   : > { %4734 = vrot.lane.b32.xlu1 %v17091_v60, %s16775_s29  ;;  %v12787_v35 = vpop.xlane.xlu1 %3791  ;;  %v12789_v50 = vpop.xlane.xlu0 %3788 }
 0x7b1   : > { %4736 = vrot.lane.b32.xlu0 %v17092_v59, %s16775_s29 }
 0x7b4   : > { %4738 = vrot.lane.b32.xlu1 %v17093_v9, %s16775_s29  ;;  %v12795_v25 = vpop.xlane.xlu1 %3827  ;;  %v12797_v45 = vpop.xlane.xlu0 %3824 }
 0x7b5   : > { %4273 = vrot.lane.b32.xlu0 %v17094_v8, %s16775_s29 }
 0x7b8   : > { %4275 = vrot.lane.b32.xlu1 %v17095_v58, %s16775_s29  ;;  %v12803_v36 = vpop.xlane.xlu1 %3833  ;;  %v12805_v60 = vpop.xlane.xlu0 %3830 }
 0x7b9   : > { %4301 = vrot.lane.b32.xlu0 %v17096_v22, %s16775_s29 }
 0x7bc   : > { %4303 = vrot.lane.b32.xlu1 %v11462_v7, %s16775_s29  ;;  %v12811_v59 = vpop.xlane.xlu1 %3334  ;;  %v12813_v9 = vpop.xlane.xlu0 %3331 }
 0x7bd   : > { %4740 = vrot.lane.b32.xlu0 %v17023_v26, %s16775_s29 }
 0x7c0   : > { %4742 = vrot.lane.b32.xlu1 %v11036_v34, %s16775_s29  ;;  %v12819_v8 = vpop.xlane.xlu1 %3376  ;;  %v12821_v58 = vpop.xlane.xlu0 %3373  ;;  %v17140_v34 = vld [vmem:[#allocation26_spill] sm:$0xff] }
 0x7c1   : > { %4764 = vrot.lane.b32.xlu0 %v17097_v40, %s16775_s29 }
 0x7c4   : > { %4766 = vrot.lane.b32.xlu1 %v17098_v19, %s16775_s29  ;;  %v12827_v7 = vpop.xlane.xlu1 %3797  ;;  %v10345_v22 = vpop.f32.mrf.mxu0  ;;  %v17141_v19 = vld [vmem:[#allocation18_spill] sm:$0xff] }
 0x7c5   : > { %v12829_v44 = vpop.xlane.xlu0 %3794  ;;  %4768 = vrot.lane.b32.xlu0 %v17099_v42, %s16775_s29  ;;  %v17143_v42 = vld [vmem:[#allocation75_spill] sm:$0xff] }
 0x7c6   : > { %v3033_v26 = vpop.f32.mrf.mxu0 }
 0x7c7   : > { %10348 = vmatprep.mubr.msk.f32.mxu0 %vm1191_vm1, %v3033_v26  ;;  %v17157_v26 = vld [vmem:[#allocation72_spill] sm:$0xff] }
 0x7c8   : > { %4770 = vrot.lane.b32.xlu1 %v17140_v34, %s16775_s29  ;;  %v12836_v16 = vpop.xlane.xlu1 %3839  ;;  %10349 = vmatmul.mubr.msk.f32.vlgmr.msra.gmra.mxu0 %vm1191_vm1, %v10345_v22  ;;  %v17156_v22 = vld [vmem:[#allocation70_spill] sm:$0xff] }
 0x7c9   : > { %10357 = vmatpush3.xpose.msk.msra.mxu0 %vm1191_vm1, %v12590_v63  ;;  %v12841_v40 = vpop.xlane.xlu0 %3836  ;;  %10360 = vmatprep.mubr.msk.f32.mxu0 %vm1191_vm1, %v17141_v19 }
 0x7ca   : > { %10358 = vmatprep.subr.msk.mxu0 %vm1191_vm1, %v17142_v61  ;;  %4277 = vrot.lane.b32.xlu0 %v17143_v42, %s16775_s29  ;;  %v17159_v42 = vld [vmem:[#allocation32_spill] sm:$0xff] }
 0x7cc   : > { %4279 = vrot.lane.b32.xlu1 %v17144_v48, %s16775_s29  ;;  %v12851_v23 = vpop.xlane.xlu1 %3340 }
 0x7cd   : > { %10359 = vmatpush3.xpose.msk.msra.mxu0 %vm1191_vm1, %v17142_v61  ;;  %v12855_v63 = vpop.xlane.xlu0 %3337  ;;  %v17158_v61 = vld [vmem:[#allocation27_spill] sm:$0xff] }
 0x7ce   : > { %4305 = vrot.lane.b32.xlu0 %v17145_v54, %s16775_s29 }
 0x7d0   : > { %10361 = vmatmul.mubr.msk.f32.vlgmr.msra.gmra.mxu0 %vm1191_vm1, %v17146_v4  ;;  %4307 = vrot.lane.b32.xlu1 %v17147_v53, %s16775_s29  ;;  %v12863_v5 = vpop.xlane.xlu1 %3382  ;;  %v17162_v4 = vld [vmem:[#allocation29_spill] sm:$0xff]  ;;  %v17163_v53 = vld [vmem:[#allocation34_spill] sm:$0xff] }
 0x7d1   : > { %v12865_v49 = vpop.xlane.xlu0 %3379 }
 0x7d2   : > { %4744 = vrot.lane.b32.xlu0 %v17148_v43, %s16775_s29 }
 0x7d4   : > { %4746 = vrot.lane.b32.xlu1 %v17149_v17, %s16775_s29  ;;  %v12871_v6 = vpop.xlane.xlu1 %3803 }
 0x7d5   : > { %v12873_v55 = vpop.xlane.xlu0 %3800 }
 0x7d6   : > { %4772 = vrot.lane.b32.xlu0 %v17150_v37, %s16775_s29  ;;  %v17164_v37 = vld [vmem:[#allocation81_spill] sm:$0xff] }
 0x7d8   : > { %4774 = vrot.lane.b32.xlu1 %v17151_v31, %s16775_s29  ;;  %v12879_v3 = vpop.xlane.xlu1 %3845  ;;  %v17165_v31 = vld [vmem:[#allocation83_spill] sm:$0xff] }
 0x7d9   : > { %v12881_v18 = vpop.xlane.xlu0 %3842 }
 0x7da   : > { %4281 = vrot.lane.b32.xlu0 %v17152_v38, %s16775_s29 }
 0x7dc   : > { %4283 = vrot.lane.b32.xlu1 %v17153_v21, %s16775_s29  ;;  %v12887_v11 = vpop.xlane.xlu1 %3346 }
 0x7dd   : > { %17154 = vst [vmem:[#allocation86_spill] sm:$0xff] %v12887_v11  ;;  %v12889_v30 = vpop.xlane.xlu0 %3343 }
 0x7de   : > { %17155 = vst [vmem:[#allocation88_spill] sm:$0xff] %v12889_v30  ;;  %4309 = vrot.lane.b32.xlu0 %v17156_v22, %s16775_s29  ;;  %v17166_v22 = vld [vmem:[#allocation71_spill] sm:$0xff] }
 0x7e0   : > { %4311 = vrot.lane.b32.xlu1 %v17157_v26, %s16775_s29  ;;  %v12895_v34 = vpop.xlane.xlu1 %3388  ;;  %v17167_v26 = vld [vmem:[#allocation74_spill] sm:$0xff] }
 0x7e1   : > { %v12897_v19 = vpop.xlane.xlu0 %3385 }
 0x7e2   : > { %4748 = vrot.lane.b32.xlu0 %v17158_v61, %s16775_s29 }
 0x7e4   : > { %4750 = vrot.lane.b32.xlu1 %v17159_v42, %s16775_s29  ;;  %v12903_v48 = vpop.xlane.xlu1 %3809 }
 0x7e5   : > { %17160 = vst [vmem:[#allocation87_spill] sm:$0xff] %v12903_v48  ;;  %v12905_v54 = vpop.xlane.xlu0 %3806  ;;  %v17181_v48 = vld [vmem:[#allocation35_spill] sm:$0xff] }
 0x7e6   : > { %17161 = vst [vmem:[#allocation51_spill] sm:$0xff] %v12905_v54  ;;  %4776 = vrot.lane.b32.xlu0 %v17162_v4, %s16775_s29  ;;  %v17170_v4 = vld [vmem:[#allocation31_spill] sm:$0xff] }
 0x7e8   : > { %4778 = vrot.lane.b32.xlu1 %v17163_v53, %s16775_s29  ;;  %v12911_v43 = vpop.xlane.xlu1 %3851  ;;  %v17171_v53 = vld [vmem:[#allocation36_spill] sm:$0xff] }
 0x7e9   : > { %v12913_v17 = vpop.xlane.xlu0 %3848 }
 0x7ea   : > { %4285 = vrot.lane.b32.xlu0 %v17164_v37, %s16775_s29 }
 0x7ec   : > { %4287 = vrot.lane.b32.xlu1 %v17165_v31, %s16775_s29  ;;  %v12919_v38 = vpop.xlane.xlu1 %3394 }
 0x7ed   : > { %v12921_v21 = vpop.xlane.xlu0 %3391 }
 0x7ee   : > { %4313 = vrot.lane.b32.xlu0 %v17166_v22, %s16775_s29  ;;  %v17174_v22 = vld [vmem:[#allocation39_spill] sm:$0xff] }
 0x7f0   : > { %4315 = vrot.lane.b32.xlu1 %v17167_v26, %s16775_s29  ;;  %v12927_v61 = vpop.xlane.xlu1 %3815 }
 0x7f1   : > { %17168 = vst [vmem:[#allocation64_spill] sm:$0xff] %v12927_v61  ;;  %v12929_v42 = vpop.xlane.xlu0 %3812 }
 0x7f2   : > { %17169 = vst [vmem:[#allocation66_spill] sm:$0xff] %v12929_v42  ;;  %4752 = vrot.lane.b32.xlu0 %v17170_v4, %s16775_s29  ;;  %v17177_v42 = vld [vmem:[#allocation79_spill] sm:$0xff]  ;;  %v17178_v4 = vld [vmem:[#allocation82_spill] sm:$0xff] }
 0x7f4   : > { %4754 = vrot.lane.b32.xlu1 %v17171_v53, %s16775_s29  ;;  %v12935_v37 = vpop.xlane.xlu1 %3857 }
 0x7f5   : > { %v12937_v31 = vpop.xlane.xlu0 %3854 }
 0x7f6   : > { %17172 = vst [vmem:[#allocation52_spill] sm:$0xff] %v12937_v31  ;;  %4780 = vrot.lane.b32.xlu0 %v17173_v52, %s16775_s29  ;;  %v17182_v52 = vld [vmem:[#allocation41_spill] sm:$0xff] }
 0x7f8   : > { %4782 = vrot.lane.b32.xlu1 %v17174_v22, %s16775_s29  ;;  %v12943_v26 = vpop.xlane.xlu1 %3821 }
 0x7f9   : > { %17175 = vst [vmem:[#allocation15_spill] sm:$0xff] %v12943_v26  ;;  %v12945_v61 = vpop.xlane.xlu0 %3818 }
 0x7fa   : > { %17176 = vst [vmem:[#allocation53_spill] sm:$0xff] %v12945_v61  ;;  %4317 = vrot.lane.b32.xlu0 %v17177_v42, %s16775_s29  ;;  %v17185_v61 = vld [vmem:[#allocation37_spill] sm:$0xff]  ;;  %v17186_v42 = vld [vmem:[#allocation44_spill] sm:$0xff] }
 0x7fc   : > { %4319 = vrot.lane.b32.xlu1 %v17178_v4, %s16775_s29  ;;  %v12951_v53 = vpop.xlane.xlu1 %3863 }
 0x7fd   : > { %17179 = vst [vmem:[#allocation14_spill] sm:$0xff] %v12951_v53  ;;  %v12953_v54 = vpop.xlane.xlu0 %3860 }
 0x7fe   : > { %17180 = vst [vmem:[#allocation61_spill] sm:$0xff] %v12953_v54  ;;  %4756 = vrot.lane.b32.xlu0 %v17181_v48, %s16775_s29  ;;  %v17187_v54 = vld [vmem:[#allocation40_spill] sm:$0xff]  ;;  %v17188_v48 = vld [vmem:[#allocation46_spill] sm:$0xff] }
 0x800   : > { %4758 = vrot.lane.b32.xlu1 %v17182_v52, %s16775_s29  ;;  %v12959_v22 = vpop.xlane.xlu1 %3869 }
 0x801   : > { %17183 = vst [vmem:[#allocation54_spill] sm:$0xff] %v12959_v22  ;;  %v12961_v26 = vpop.xlane.xlu0 %3866 }
 0x802   : > { %17184 = vst [vmem:[#allocation62_spill] sm:$0xff] %v12961_v26  ;;  %4784 = vrot.lane.b32.xlu0 %v17185_v61, %s16775_s29  ;;  %v17189_v61 = vld [vmem:[#allocation42_spill] sm:$0xff] }
 0x804   : > { %4786 = vrot.lane.b32.xlu1 %v17186_v42, %s16775_s29  ;;  %v4454_v4 = vpop.permute.xlu1 %4453 }
 0x805   : > { %v4456_v53 = vpop.permute.xlu0 %4455 }
 0x806   : > { %4760 = vrot.lane.b32.xlu0 %v17187_v54, %s16775_s29  ;;  %10375 = vmatprep.subr.msk.mxu0 %vm1191_vm1, %v4456_v53  ;;  %v17190_v54 = vld [vmem:[#allocation48_spill] sm:$0xff] }
 0x807   : > { %10376 = vmatpush3.xpose.msk.msra.mxu0 %vm1191_vm1, %v4456_v53  ;;  %v10617_v53 = vld [vmem:[%s16598_s11 + $0x18] sm:$0xff] }
 0x808   : > { %10377 = vmatprep.subr.msk.mxu0 %vm1191_vm1, %v4454_v4  ;;  %4762 = vrot.lane.b32.xlu1 %v17188_v48, %s16775_s29  ;;  %v4450_v52 = vpop.permute.xlu1 %4449  ;;  %v17191_v48 = vld [vmem:[#allocation45_spill] sm:$0xff] }
 0x809   : > { %v4258_v26 = vpop.permute.xlu0 %4257  ;;  %10379 = vmatprep.mubr.msk.f32.mxu0 %vm1191_vm1, %v4450_v52  ;;  %v17192_v52 = vld [vmem:[#allocation10_spill] sm:$0xff] }
 0x80a   : > { %4788 = vrot.lane.b32.xlu0 %v17189_v61, %s16775_s29  ;;  %v17193_v61 = vld [vmem:[#allocation49_spill] sm:$0xff] }
 0x80b   : > { %10378 = vmatpush3.xpose.msk.msra.mxu0 %vm1191_vm1, %v4454_v4  ;;  %v10618_v4 = vld [vmem:[%s16598_s11 + $0x10] sm:$0xff] }
 0x80c   : > { %4790 = vrot.lane.b32.xlu1 %v17190_v54, %s16775_s29  ;;  %v4452_v42 = vpop.permute.xlu1 %4451  ;;  %10394 = vmatprep.subr.mxu0 %v10617_v53 }
 0x80d   : > { %v4262_v22 = vpop.permute.xlu0 %4261 }
 0x80e   : > { %4792 = vrot.lane.b32.xlu0 %v17191_v48, %s16775_s29  ;;  %10380 = vmatmul.mubr.msk.f32.vlgmr.msra.gmra.mxu0 %vm1191_vm1, %v4452_v42  ;;  %v10619_v42 = vld [vmem:[%s16598_s11 + $0x8] sm:$0xff] }
 0x80f   : > { %10395 = vmatpush3.msra.mxu0 %v10617_v53  ;;  %10402 = vmatprep.mubr.msk.f32.mxu0 %vm667_vm0, %v17192_v52  ;;  %v10620_v53 = vld [vmem:[%s16598_s11] sm:$0xff]  ;;  %v17196_v52 = vld [vmem:[#allocation11_spill] sm:$0xff] }
 0x810   : > { %10396 = vmatprep.subr.mxu0 %v10618_v4  ;;  %4794 = vrot.lane.b32.xlu1 %v17193_v61, %s16775_s29  ;;  %s17417_s29 = smov 112  }
 0x811   : > { %10397 = vmatpush3.msra.mxu0 %v10618_v4  ;;  %v12993_v54 = vpop.permute.xlu0 %4265 }
 0x812   : > { %17194 = vst [vmem:[#allocation63_spill] sm:$0xff] %v12993_v54  ;;  %4089 = vrot.lane.b32.xlu0 %v17073_v56, %s16773_s22  ;;  %10398 = vmatprep.subr.mxu0 %v10619_v42 }
 0x813   : > { %10399 = vmatpush3.msra.mxu0 %v10619_v42 }
 0x814   : > { %10400 = vmatprep.subr.mxu0 %v10620_v53 }
 0x815   : > { %10401 = vmatpush3.msra.mxu0 %v10620_v53  ;;  %v13003_v48 = vpop.permute.xlu0 %4289  ;;  %v4353_v53 = vsel %vm1191_vm1, %v4258_v26, 0.0 }
 0x816   : > { %17195 = vst [vmem:[#allocation47_spill] sm:$0xff] %v13003_v48  ;;  %10403 = vmatmul.mubr.msk.f32.vlgmr.msra.gmra.mxu0 %vm667_vm0, %v17196_v52  ;;  %v4260_v48 = vpop.permute.xlu1 %4259 }
 0x817   : > { %v4356_v52 = vsel %vm1191_vm1, %v4260_v48, 0.0 }
 0x819   : > { %v13007_v4 = vpop.permute.xlu0 %4293 }
 0x81d   : > { %v13009_v61 = vpop.permute.xlu0 %4269 }
 0x81e   : > { %17197 = vst [vmem:[#allocation67_spill] sm:$0xff] %v13009_v61 }
 0x821   : > { %v13011_v56 = vpop.permute.xlu0 %4297 }
 0x822   : > { %17198 = vst [vmem:[#allocation55_spill] sm:$0xff] %v13011_v56  ;;  %v4359_v56 = vsel %vm1191_vm1, %v4262_v22, 0.0 }
 0x825   : > { %v13013_v54 = vpop.permute.xlu0 %4732 }
 0x826   : > { %17199 = vst [vmem:[#allocation50_spill] sm:$0xff] %v13013_v54  ;;  %v4264_v54 = vpop.permute.xlu1 %4263 }
 0x829   : > { %v13015_v42 = vpop.permute.xlu0 %4736 }
 0x82a   : > { %17200 = vst [vmem:[#allocation73_spill] sm:$0xff] %v13015_v42  ;;  %v13043_v22 = vpop.permute.xlu1 %4267 }
 0x82b   : > { %17212 = vst [vmem:[#allocation20_spill] sm:$0xff] %v13043_v22 }
 0x82d   : > { %v13017_v30 = vpop.permute.xlu0 %4273 }
 0x82e   : > { %17201 = vst [vmem:[#allocation58_spill] sm:$0xff] %v13017_v30  ;;  %v4362_v30 = vsel %vm1191_vm1, %v4264_v54, 0.0 }
 0x831   : > { %v13019_v11 = vpop.permute.xlu0 %4301 }
 0x832   : > { %17202 = vst [vmem:[#allocation56_spill] sm:$0xff] %v13019_v11 }
 0x834   : > { %4354 = vadd.xlane.f32.xlu1 %v4353_v53 }
 0x835   : > { %v13022_v31 = vpop.permute.xlu0 %4740 }
 0x836   : > { %17203 = vst [vmem:[#allocation76_spill] sm:$0xff] %v13022_v31 }
 0x838   : > { %4357 = vadd.xlane.f32.xlu1 %v4356_v52 }
 0x839   : > { %v13025_v61 = vpop.permute.xlu0 %4764 }
 0x83a   : > { %17204 = vst [vmem:[#allocation16_spill] sm:$0xff] %v13025_v61  ;;  %v17222_v61 = vld [vmem:[#allocation89_spill] sm:$0xff] }
 0x83c   : > { %4360 = vadd.xlane.f32.xlu1 %v4359_v56 }
 0x83d   : > { %v13028_v42 = vpop.permute.xlu0 %4768 }
 0x83e   : > { %17205 = vst [vmem:[#allocation59_spill] sm:$0xff] %v13028_v42  ;;  %v13047_v42 = vpop.permute.xlu1 %4291 }
 0x840   : > { %4363 = vadd.xlane.f32.xlu1 %v4362_v30 }
 0x841   : > { %v13031_v11 = vpop.permute.xlu0 %4277 }
 0x842   : > { %17206 = vst [vmem:[#allocation19_spill] sm:$0xff] %v13031_v11  ;;  %v13053_v11 = vpop.permute.xlu1 %4295 }
 0x843   : > { %17216 = vst [vmem:[#allocation18_spill] sm:$0xff] %v13053_v11 }
 0x845   : > { %v13033_v26 = vpop.permute.xlu0 %4305 }
 0x846   : > { %17207 = vst [vmem:[#allocation17_spill] sm:$0xff] %v13033_v26 }
 0x849   : > { %v13035_v53 = vpop.permute.xlu0 %4744 }
 0x84a   : > { %17208 = vst [vmem:[#allocation21_spill] sm:$0xff] %v13035_v53  ;;  %v13057_v53 = vpop.permute.xlu1 %4271 }
 0x84b   : > { %17218 = vst [vmem:[#allocation75_spill] sm:$0xff] %v13057_v53 }
 0x84d   : > { %v13037_v31 = vpop.permute.xlu0 %4772 }
 0x84e   : > { %17209 = vst [vmem:[#allocation65_spill] sm:$0xff] %v13037_v31 }
 0x851   : > { %v13039_v48 = vpop.permute.xlu0 %4281 }
 0x852   : > { %17210 = vst [vmem:[#allocation69_spill] sm:$0xff] %v13039_v48 }
 0x855   : > { %v13041_v52 = vpop.permute.xlu0 %4309 }
 0x856   : > { %17211 = vst [vmem:[#allocation68_spill] sm:$0xff] %v13041_v52  ;;  %v13063_v52 = vpop.permute.xlu1 %4299 }
 0x857   : > { %17221 = vst [vmem:[#allocation84_spill] sm:$0xff] %v13063_v52 }
 0x859   : > { %v13045_v56 = vpop.permute.xlu0 %4748 }
 0x85a   : > { %17213 = vst [vmem:[#allocation24_spill] sm:$0xff] %v13045_v56  ;;  %v3443_v56 = vrot.slane %v12709_v28, %v17222_v61  ;;  %v13095_v52 = vpop.permute.xlu1 %4734 }
 0x85d   : > { %v13049_v54 = vpop.permute.xlu0 %4776 }
 0x85e   : > { %17214 = vst [vmem:[#allocation22_spill] sm:$0xff] %v13049_v54  ;;  %v3452_v54 = vrot.slane %v12711_v12, %v17222_v61 }
 0x861   : > { %v13051_v30 = vpop.permute.xlu0 %4285 }
 0x862   : > { %17215 = vst [vmem:[#allocation26_spill] sm:$0xff] %v13051_v30  ;;  %v3461_v30 = vrot.slane %v12715_v51, %v17222_v61 }
 0x865   : > { %v13055_v26 = vpop.permute.xlu0 %4313 }
 0x866   : > { %17217 = vst [vmem:[#allocation85_spill] sm:$0xff] %v13055_v26  ;;  %v17224_v26 = vld [vmem:[#allocation90_spill] sm:$0xff] }
 0x867   : > { %v3457_v53 = vrot.slane %v12717_v46, %v17224_v26  ;;  %v3439_v28 = vrot.slane %v12703_v10, %v17224_v26  ;;  %v3448_v12 = vrot.slane %v12705_v20, %v17224_v26  ;;  %v3466_v51 = vrot.slane %v12741_v32, %v17224_v26 }
 0x868   : > { %v3533_v46 = vrot.slane %v12747_v2, %v17222_v61  ;;  %v3511_v10 = vrot.slane %v12725_v62, %v17224_v26  ;;  %v3919_v62 = vrot.slane %v12763_v1, %v17222_v61 }
 0x869   : > { %v13059_v31 = vpop.permute.xlu0 %4752  ;;  %v3453_v32 = vsel %vm1331_vm2, %v3452_v54, %v3448_v12  ;;  %v3462_v11 = vsel %vm1331_vm2, %v3461_v30, %v3457_v53  ;;  %v3479_v12 = vrot.slane %v12771_v24, %v17222_v61  ;;  %v3987_v24 = vrot.slane %v12805_v60, %v17224_v26 }
 0x86a   : > { %17219 = vst [vmem:[#allocation78_spill] sm:$0xff] %v13059_v31  ;;  %v3524_v31 = vrot.slane %v12731_v41, %v17222_v61  ;;  %v3529_v41 = vrot.slane %v12749_v33, %v17224_v26  ;;  %v3910_v33 = vrot.slane %v12755_v39, %v17222_v61  ;;  %v4000_v60 = vrot.slane %v12836_v16, %v17222_v61 }
 0x86c   : > { %v3534_v54 = vsel %vm1331_vm2, %v3533_v46, %v3529_v41  ;;  %v3538_v46 = vrot.slane %v12781_v57, %v17224_v26  ;;  %v3928_v41 = vrot.slane %v12787_v35, %v17222_v61  ;;  %v3551_v57 = vrot.slane %v12819_v8, %v17222_v61 }
 0x86d   : > { %v13061_v48 = vpop.permute.xlu0 %4780  ;;  %v3547_v35 = vrot.slane %v12821_v58, %v17224_v26  ;;  %v3978_v8 = vrot.slane %v12797_v45, %v17224_v26  ;;  %v3560_v58 = vrot.slane %v12863_v5, %v17222_v61  ;;  %v3497_v5 = vrot.slane %v12851_v23, %v17222_v61 }
 0x86e   : > { %17220 = vst [vmem:[#allocation57_spill] sm:$0xff] %v13061_v48  ;;  %v3520_v48 = vrot.slane %v12733_v27, %v17224_v26  ;;  %v3515_v27 = vrot.slane %v12723_v13, %v17222_v61  ;;  %v3906_v13 = vrot.slane %v12757_v29, %v17224_v26 }
 0x870   : > { %v3525_v2 = vsel %vm1331_vm2, %v3524_v31, %v3520_v48  ;;  %v3516_v31 = vsel %vm1331_vm2, %v3515_v27, %v3511_v10  ;;  %v3924_v27 = vrot.slane %v12789_v50, %v17224_v26  ;;  %v3991_v10 = vrot.slane %v12803_v36, %v17222_v61 }
 0x871   : > { %v13069_v22 = vpop.permute.xlu0 %4317  ;;  %v3587_v29 = vsel %vm1468_vm3, %v3525_v2, %v3516_v31  ;;  %v3937_v50 = vrot.slane %v12827_v7, %v17222_v61  ;;  %v3933_v36 = vrot.slane %v12829_v44, %v17224_v26  ;;  %v3556_v7 = vrot.slane %v12865_v49, %v17224_v26 }
 0x872   : > { %17223 = vst [vmem:[#allocation60_spill] sm:$0xff] %v13069_v22  ;;  %v3470_v22 = vrot.slane %v12739_v47, %v17222_v61  ;;  %v3444_v47 = vsel %vm1331_vm2, %v3443_v56, %v3439_v28  ;;  %v3588_v1 = vsel %vm1470_vm4, %v3534_v54, %v3587_v29  ;;  %v13123_v28 = vpop.permute.xlu1 %4738  ;;  %v3929_v16 = vsel %vm1331_vm2, %v3928_v41, %v3924_v27 }
 0x873   : > { %v3580_v53 = vsel %vm1468_vm3, %v3453_v32, %v3444_v47  ;;  %v3552_v2 = vsel %vm1331_vm2, %v3551_v57, %v3547_v35  ;;  %v3493_v49 = vrot.slane %v12855_v63, %v17224_v26  ;;  %v3561_v31 = vsel %vm1331_vm2, %v3560_v58, %v3556_v7  ;;  %v17234_v7 = vld [vmem:[#allocation54_spill] sm:$0xff] }
 0x874   : > { %v3471_v56 = vsel %vm1331_vm2, %v3470_v22, %v3466_v51  ;;  %v3581_v39 = vsel %vm1470_vm4, %v3462_v11, %v3580_v53  ;;  %v3475_v51 = vrot.slane %v12773_v14, %v17224_v26  ;;  %v3542_v11 = vrot.slane %v12779_v0, %v17222_v61 }
 0x875   : > { %v13097_v20 = vpop.permute.xlu0 %4756  ;;  %v3582_v30 = vsel %vm1472_vm5, %v3471_v56, %v3581_v39  ;;  %v3488_v14 = vrot.slane %v12811_v59, %v17222_v61  ;;  %v3484_v0 = vrot.slane %v12813_v9, %v17224_v26  ;;  %v3996_v59 = vrot.slane %v12841_v40, %v17224_v26 }
 0x876   : > { %17225 = vst [vmem:[#allocation23_spill] sm:$0xff] %v13097_v20  ;;  %v3915_v20 = vrot.slane %v12765_v15, %v17224_v26  ;;  %v3911_v15 = vsel %vm1331_vm2, %v3910_v33, %v3906_v13  ;;  %v3982_v9 = vrot.slane %v12795_v25, %v17222_v61  ;;  %v3480_v44 = vsel %vm1331_vm2, %v3479_v12, %v3475_v51  ;;  %v13171_v32 = vpop.permute.xlu1 %4275 }
 0x877   : > { %v3543_v47 = vsel %vm1331_vm2, %v3542_v11, %v3538_v46  ;;  %v3992_v40 = vsel %vm1331_vm2, %v3991_v10, %v3987_v24  ;;  %v3489_v45 = vsel %vm1331_vm2, %v3488_v14, %v3484_v0  ;;  %v3938_v33 = vsel %vm1331_vm2, %v3937_v50, %v3933_v36 }
 0x878   : > { %v3920_v22 = vsel %vm1331_vm2, %v3919_v62, %v3915_v20  ;;  %v4001_v13 = vsel %vm1331_vm2, %v4000_v60, %v3996_v59  ;;  %v4009_v62 = vrot.slane %v12879_v3, %v17222_v61  ;;  %v4005_v56 = vrot.slane %v12881_v18, %v17224_v26 }
 0x879   : > { %v13115_v48 = vpop.permute.xlu0 %4784  ;;  %v4047_v54 = vsel %vm1468_vm3, %v3920_v22, %v3911_v15  ;;  %v3983_v53 = vsel %vm1331_vm2, %v3982_v9, %v3978_v8  ;;  %v3583_v23 = vsel %vm1474_vm6, %v3480_v44, %v3582_v30  ;;  %v3589_v63 = vsel %vm1472_vm5, %v3543_v47, %v3588_v1  ;;  %v17233_v8 = vld [vmem:[#allocation51_spill] sm:$0xff]  ;;  %v17235_v47 = vld [vmem:[#allocation62_spill] sm:$0xff] }
 0x87a   : > { %v4048_v39 = vsel %vm1470_vm4, %v3929_v16, %v4047_v54  ;;  %v4054_v29 = vsel %vm1468_vm3, %v3992_v40, %v3983_v53  ;;  %v3584_v3 = vsel %vm1476_vm7, %v3489_v45, %v3583_v23  ;;  %v3590_v22 = vsel %vm1474_vm6, %v3552_v2, %v3589_v63  ;;  %v13206_v46 = vpop.permute.xlu1 %4303  ;;  %v17236_v45 = vld [vmem:[#allocation64_spill] sm:$0xff]  ;;  %v17239_v54 = vld [vmem:[#allocation53_spill] sm:$0xff] }
 0x87b   : > { %v4049_v18 = vsel %vm1472_vm5, %v3938_v33, %v4048_v39  ;;  %v4055_v15 = vsel %vm1470_vm4, %v4001_v13, %v4054_v29  ;;  %v3498_v51 = vsel %vm1331_vm2, %v3497_v5, %v3493_v49  ;;  %v3946_v30 = vrot.slane %v12871_v6, %v17222_v61  ;;  %v17237_v5 = vld [vmem:[#allocation66_spill] sm:$0xff] }
 0x87c   : > { %v3942_v1 = vrot.slane %v12873_v55, %v17224_v26  ;;  %v4010_v11 = vsel %vm1331_vm2, %v4009_v62, %v4005_v56  ;;  %v3591_v41 = vsel %vm1476_vm7, %v3561_v31, %v3590_v22  ;;  %v3569_v27 = vrot.slane %v12895_v34, %v17222_v61  ;;  %v17226_v34 = vld [vmem:[#allocation52_spill] sm:$0xff]  ;;  %v17238_v62 = vld [vmem:[#allocation15_spill] sm:$0xff] }
 0x87d   : > { %v13141_v20 = vpop.permute.xlu0 %4760  ;;  %v3565_v10 = vrot.slane %v12897_v19, %v17224_v26  ;;  %v4018_v24 = vrot.slane %v12911_v43, %v17222_v61  ;;  %v4014_v6 = vrot.slane %v12913_v17, %v17224_v26  ;;  %v3578_v55 = vrot.slane %v12919_v38, %v17222_v61  ;;  %v17227_v19 = vld [vmem:[#allocation86_spill] sm:$0xff]  ;;  %v17228_v43 = vld [vmem:[#allocation88_spill] sm:$0xff]  ;;  %v17230_v38 = vld [vmem:[#allocation61_spill] sm:$0xff] }
 0x87e   : > { %v3574_v14 = vrot.slane %v12921_v21, %v17224_v26  ;;  %v4027_v0 = vrot.slane %v12935_v37, %v17222_v61  ;;  %v4023_v57 = vrot.slane %v17226_v34, %v17224_v26  ;;  %v3506_v50 = vrot.slane %v17227_v19, %v17222_v61  ;;  %v17229_v17 = vld [vmem:[#allocation14_spill] sm:$0xff]  ;;  %v17232_v37 = vld [vmem:[#allocation87_spill] sm:$0xff]  ;;  %v13254_v31 = vpop.permute.xlu1 %4742 }
 0x87f   : > { %v3502_v36 = vrot.slane %v17228_v43, %v17224_v26  ;;  %v4036_v60 = vrot.slane %v17229_v17, %v17222_v61  ;;  %v4032_v59 = vrot.slane %v17230_v38, %v17224_v26  ;;  %v3955_v9 = vrot.slane %v17232_v37, %v17222_v61 }
 0x880   : > { %v3951_v58 = vrot.slane %v17233_v8, %v17224_v26  ;;  %v4045_v44 = vrot.slane %v17234_v7, %v17222_v61  ;;  %v4041_v16 = vrot.slane %v17235_v47, %v17224_v26  ;;  %v4019_v40 = vsel %vm1331_vm2, %v4018_v24, %v4014_v6 }
 0x881   : > { %v13173_v25 = vpop.permute.xlu0 %4788  ;;  %v3964_v2 = vrot.slane %v17236_v45, %v17222_v61  ;;  %v3960_v49 = vrot.slane %v17237_v5, %v17224_v26  ;;  %v3570_v33 = vsel %vm1331_vm2, %v3569_v27, %v3565_v10  ;;  %v4028_v13 = vsel %vm1331_vm2, %v4027_v0, %v4023_v57  ;;  %v17243_v45 = vld [vmem:[#allocation18_spill] sm:$0xff] }
 0x882   : > { %v3973_v56 = vrot.slane %v17238_v62, %v17222_v61  ;;  %v3969_v53 = vrot.slane %v17239_v54, %v17224_v26  ;;  %v3579_v23 = vsel %vm1331_vm2, %v3578_v55, %v3574_v14  ;;  %v3947_v63 = vsel %vm1331_vm2, %v3946_v30, %v3942_v1  ;;  %v17247_v54 = vld [vmem:[#allocation55_spill] sm:$0xff] }
 0x883   : > { %v4056_v39 = vsel %vm1472_vm5, %v4010_v11, %v4055_v15  ;;  %v4037_v29 = vsel %vm1331_vm2, %v4036_v60, %v4032_v59  ;;  %v3507_v27 = vsel %vm1331_vm2, %v3506_v50, %v3502_v36  ;;  %v3956_v10 = vsel %vm1331_vm2, %v3955_v9, %v3951_v58  ;;  %v4767_v36 = vpop.permute.xlu1 %4766  ;;  %v17241_v9 = vld [vmem:[#allocation63_spill] sm:$0xff] }
 0x884   : > { %v4057_v24 = vsel %vm1474_vm6, %v4019_v40, %v4056_v39  ;;  %v3592_v6 = vsel %vm1478_vm8, %v3570_v33, %v3591_v41  ;;  %v4046_v0 = vsel %vm1331_vm2, %v4045_v44, %v4041_v16  ;;  %v3965_v55 = vsel %vm1331_vm2, %v3964_v2, %v3960_v49  ;;  %v17242_v58 = vld [vmem:[#allocation47_spill] sm:$0xff] }
 0x885   : > { %v13194_v12 = vpop.permute.xlu0 %4792  ;;  %v3593_v30 = vsel %vm1480_vm9, %v3579_v23, %v3592_v6  ;;  %v4058_v15 = vsel %vm1476_vm7, %v4028_v13, %v4057_v24  ;;  %v3585_v11 = vsel %vm1478_vm8, %v3498_v51, %v3584_v3  ;;  %v4050_v14 = vsel %vm1474_vm6, %v3947_v63, %v4049_v18  ;;  %v17244_v49 = vld [vmem:[#allocation67_spill] sm:$0xff]  ;;  %v17245_v13 = vld [vmem:[#allocation13_spill] sm:$0xff]  ;;  %v17248_v23 = vld [vmem:[#allocation84_spill] sm:$0xff] }
 0x886   : > { %v4059_v57 = vsel %vm1478_vm8, %v4037_v29, %v4058_v15  ;;  %v3586_v19 = vsel %vm1480_vm9, %v3507_v27, %v3585_v11  ;;  %v4051_v43 = vsel %vm1476_vm7, %v3956_v10, %v4050_v14  ;;  %v4365_v8 = vsel %vm1191_vm1, %v17241_v9, 0.0  ;;  %v17250_v15 = vld [vmem:[#allocation50_spill] sm:$0xff]  ;;  %v17251_v14 = vld [vmem:[#allocation73_spill] sm:$0xff] }
 0x887   : > { %v4060_v41 = vsel %vm1480_vm9, %v4046_v0, %v4059_v57  ;;  %v4052_v3 = vsel %vm1478_vm8, %v3965_v55, %v4051_v43  ;;  %v4771_v37 = vpop.permute.xlu1 %4770  ;;  %v4401_v7 = vsel %vm1191_vm1, %v17242_v58, 0.0  ;;  %v4404_v47 = vsel %vm1191_vm1, %v13047_v42, 0.0  ;;  %v17246_v42 = vld [vmem:[#allocation75_spill] sm:$0xff]  ;;  %v17249_v55 = vld [vmem:[#allocation20_spill] sm:$0xff]  ;;  %v13338_v43 = vld [vmem:[%s16599_s12] ss:$0 sm:$0xff] }
 0x888   : > { %v13233_v21 = vpop.f32.mrf.mxu0  ;;  %v4407_v40 = vsel %vm1191_vm1, %v13007_v4, 0.0  ;;  %v4410_v2 = vsel %vm1191_vm1, %v17243_v45, 0.0  ;;  %v4371_v33 = vsel %vm1191_vm1, %v17244_v49, 0.0  ;;  %v4413_v4 = vsel %vm1191_vm1, %v17247_v54, 0.0  ;;  %17254 = vst [vmem:[#allocation77_spill] sm:$0xff] %v13338_v43  ;;  %v17260_v49 = vld [vmem:[#allocation19_spill] sm:$0xff] }
 0x889   : > { %v4090_v35 = vpop.permute.xlu0 %4089  ;;  %17231 = vst [vmem:[#allocation28_spill] sm:$0xff] %v13233_v21  ;;  %v4416_v63 = vsel %vm1191_vm1, %v17248_v23, 0.0  ;;  %v4831_v29 = vsel %vm1191_vm1, %v13095_v52, 0.0  ;;  %v4837_v27 = vsel %vm1191_vm1, %v13123_v28, 0.0  ;;  %v4380_v24 = vsel %vm1191_vm1, %v13171_v32, 0.0 }
 0x88a   : > { %10363 = vmatprep.subr.mxu1 %v4090_v35  ;;  %v13260_v22 = vpop.f32.mrf.mxu0  ;;  %v4422_v0 = vsel %vm1191_vm1, %v13206_v46, 0.0  ;;  %v4843_v52 = vsel %vm1191_vm1, %v13254_v31, 0.0  ;;  %v4828_v32 = vsel %vm1191_vm1, %v17250_v15, 0.0  ;;  %v4879_v11 = vsel %vm1191_vm1, %v4767_v36, 0.0 }
 0x88b   : > { %10364 = vmatpush3.msra.mxu1 %v4090_v35  ;;  %17240 = vst [vmem:[#allocation25_spill] sm:$0xff] %v13260_v22  ;;  %v3974_v35 = vsel %vm1331_vm2, %v3973_v56, %v3969_v53  ;;  %v4280_v44 = vpop.permute.xlu1 %4279  ;;  %v4374_v56 = vsel %vm1191_vm1, %v17246_v42, 0.0  ;;  %v4885_v31 = vsel %vm1191_vm1, %v4771_v37, 0.0  ;;  %v17257_v37 = vld [vmem:[#allocation76_spill] sm:$0xff] }
 0x88c   : > { %v4053_v18 = vsel %vm1480_vm9, %v3974_v35, %v4052_v3  ;;  %v4840_v9 = vsel %vm1191_vm1, %v17257_v37, 0.0 }
 0x88f   : > { %v4308_v16 = vpop.permute.xlu1 %4307 }
 0x890   : > { %v10362_v1 = vpop.f32.mrf.mxu0 }
 0x891   : > { %v3676_v34 = vadd.f32 %v10362_v1, %v3593_v30  ;;  %v4368_v30 = vsel %vm1191_vm1, %v17249_v55, 0.0 }
 0x892   : > { %v3670_v50 = vpop.f32.mrf.mxu0 }
 0x893   : > { %v13277_v17 = vadd.f32 %v4060_v41, %v3676_v34  ;;  %v3671_v60 = vadd.f32 %v3670_v50, %v3586_v19  ;;  %v4747_v5 = vpop.permute.xlu1 %4746  ;;  %v4834_v34 = vsel %vm1191_vm1, %v17251_v14, 0.0  ;;  %v17253_v19 = vld [vmem:[#allocation58_spill] sm:$0xff] }
 0x894   : > { %v4377_v50 = vsel %vm1191_vm1, %v17253_v19, 0.0  ;;  %v4849_v58 = vsel %vm1191_vm1, %v4747_v5, 0.0  ;;  %v4383_v5 = vsel %vm1191_vm1, %v17260_v49, 0.0  ;;  %v17269_v49 = vld [vmem:[#allocation85_spill] sm:$0xff] }
 0x895   : > { %v13281_v51 = vadd.f32 %v4053_v18, %v3671_v60  ;;  %v4068_v38 = vsel %vm1898_vm10, %v13277_v17, -inf  ;;  %v4386_v60 = vsel %vm1191_vm1, %v4280_v44, 0.0  ;;  %v17256_v18 = vld [vmem:[#allocation56_spill] sm:$0xff] }
 0x896   : > { %4069 = vmax.xlane.f32.xlu1 %v4068_v38  ;;  %v4419_v38 = vsel %vm1191_vm1, %v17256_v18, 0.0 }
 0x897   : > { %v4065_v59 = vsel %vm1898_vm10, %v13281_v51, -inf  ;;  %v4775_v62 = vpop.permute.xlu1 %4774 }
 0x898   : > { %4066 = vmax.xlane.f32.xlu0 %v4065_v59  ;;  %v4428_v59 = vsel %vm1191_vm1, %v4308_v16, 0.0  ;;  %v17259_v16 = vld [vmem:[#allocation59_spill] sm:$0xff] }
 0x899   : > { %v4882_v45 = vsel %vm1191_vm1, %v17259_v16, 0.0 }
 0x89a   : > { %4366 = vadd.xlane.f32.xlu1 %v4365_v8 }
 0x89b   : > { %v4284_v53 = vpop.permute.xlu1 %4283 }
 0x89e   : > { %4402 = vadd.xlane.f32.xlu1 %v4401_v7  ;;  %v17258_v7 = vld [vmem:[#allocation16_spill] sm:$0xff] }
 0x89f   : > { %v4312_v39 = vpop.permute.xlu1 %4311  ;;  %v4876_v44 = vsel %vm1191_vm1, %v17258_v7, 0.0 }
 0x8a0   : > { %v4434_v42 = vsel %vm1191_vm1, %v4312_v39, 0.0 }
 0x8a2   : > { %4405 = vadd.xlane.f32.xlu1 %v4404_v47  ;;  %v4891_v47 = vsel %vm1191_vm1, %v4775_v62, 0.0  ;;  %v17261_v62 = vld [vmem:[#allocation17_spill] sm:$0xff] }
 0x8a3   : > { %v4751_v10 = vpop.permute.xlu1 %4750 }
 0x8a4   : > { %v4855_v54 = vsel %vm1191_vm1, %v4751_v10, 0.0  ;;  %v17264_v10 = vld [vmem:[#allocation69_spill] sm:$0xff] }
 0x8a6   : > { %4408 = vadd.xlane.f32.xlu1 %v4407_v40 }
 0x8a7   : > { %v4779_v6 = vpop.permute.xlu1 %4778 }
 0x8aa   : > { %4411 = vadd.xlane.f32.xlu1 %v4410_v2  ;;  %v4392_v2 = vsel %vm1191_vm1, %v4284_v53, 0.0  ;;  %v17262_v53 = vld [vmem:[#allocation21_spill] sm:$0xff] }
 0x8ab   : > { %v4288_v28 = vpop.permute.xlu1 %4287  ;;  %v4846_v23 = vsel %vm1191_vm1, %v17262_v53, 0.0 }
 0x8ae   : > { %4087 = vrot.lane.b32.xlu0 %v17245_v13, %s16773_s22  ;;  %4372 = vadd.xlane.f32.xlu1 %v4371_v33  ;;  %s645_s22 = scalar_lea.vmem %s16605_s18, %s10861_s28 }
 0x8af   : > { %v13328_v57 = vpop.permute.xlu1 %4315 }
 0x8b2   : > { %4375 = vadd.xlane.f32.xlu1 %v4374_v56  ;;  %v4425_v56 = vsel %vm1191_vm1, %v17261_v62, 0.0 }
 0x8b3   : > { %v13344_v3 = vpop.permute.xlu1 %4754 }
 0x8b4   : > { %v4861_v62 = vsel %vm1191_vm1, %v13344_v3, 0.0  ;;  %v17272_v3 = vld [vmem:[#allocation60_spill] sm:$0xff] }
 0x8b6   : > { %4414 = vadd.xlane.f32.xlu1 %v4413_v4 }
 0x8b7   : > { %v13353_v8 = vpop.permute.xlu1 %4782 }
 0x8b8   : > { %v4903_v53 = vsel %vm1191_vm1, %v13353_v8, 0.0 }
 0x8ba   : > { %4417 = vadd.xlane.f32.xlu1 %v4416_v63  ;;  %v4897_v63 = vsel %vm1191_vm1, %v4779_v6, 0.0  ;;  %v17266_v6 = vld [vmem:[#allocation24_spill] sm:$0xff] }
 0x8bb   : > { %v13359_v40 = vpop.permute.xlu1 %4319  ;;  %v4852_v15 = vsel %vm1191_vm1, %v17266_v6, 0.0 }
 0x8be   : > { %4832 = vadd.xlane.f32.xlu1 %v4831_v29  ;;  %v17263_v29 = vld [vmem:[#allocation65_spill] sm:$0xff] }
 0x8bf   : > { %v13366_v33 = vpop.permute.xlu1 %4758  ;;  %v4888_v39 = vsel %vm1191_vm1, %v17263_v29, 0.0  ;;  %v4446_v29 = vsel %vm1191_vm1, %v13359_v40, 0.0 }
 0x8c0   : > { %v4867_v8 = vsel %vm1191_vm1, %v13366_v33, 0.0  ;;  %v4870_v33 = vsel %vm1191_vm1, %v13141_v20, 0.0  ;;  %v4918_v20 = vsel %vm1191_vm1, %v13194_v12, 0.0 }
 0x8c2   : > { %4838 = vadd.xlane.f32.xlu1 %v4837_v27 }
 0x8c3   : > { %v13372_v4 = vpop.permute.xlu1 %4786 }
 0x8c6   : > { %4381 = vadd.xlane.f32.xlu1 %v4380_v24  ;;  %v4398_v24 = vsel %vm1191_vm1, %v4288_v28, 0.0 }
 0x8c7   : > { %v13379_v27 = vpop.permute.xlu1 %4762 }
 0x8c8   : > { %v4873_v6 = vsel %vm1191_vm1, %v13379_v27, 0.0 }
 0x8ca   : > { %4423 = vadd.xlane.f32.xlu1 %v4422_v0  ;;  %v4389_v0 = vsel %vm1191_vm1, %v17264_v10, 0.0  ;;  %v17273_v10 = vld [vmem:[#allocation23_spill] sm:$0xff] }
 0x8cb   : > { %v13384_v55 = vpop.permute.xlu1 %4790 }
 0x8cd   : > { %4369 = vadd.xlane.f32.xlu0 %v4368_v30  ;;  %v17265_v30 = vld [vmem:[#allocation68_spill] sm:$0xff] }
 0x8ce   : > { %4844 = vadd.xlane.f32.xlu1 %v4843_v52  ;;  %v13319_v1 = vpop.f32.mrf.mxu0  ;;  %v4431_v52 = vsel %vm1191_vm1, %v17265_v30, 0.0  ;;  %v4909_v30 = vsel %vm1191_vm1, %v13372_v4, 0.0  ;;  %v4915_v4 = vsel %vm1191_vm1, %v13384_v55, 0.0 }
 0x8d0   : > { %v13324_v46 = vpop.f32.mrf.mxu0 }
 0x8d1   : > { %4829 = vadd.xlane.f32.xlu0 %v4828_v32  ;;  %v13390_v32 = vpop.permute.xlu1 %4794 }
 0x8d2   : > { %4880 = vadd.xlane.f32.xlu1 %v4879_v11  ;;  %v17267_v11 = vld [vmem:[#allocation22_spill] sm:$0xff] }
 0x8d3   : > { %v4894_v28 = vsel %vm1191_vm1, %v17267_v11, 0.0  ;;  %v4912_v11 = vsel %vm1191_vm1, %v13173_v25, 0.0 }
 0x8d5   : > { %4835 = vadd.xlane.f32.xlu0 %v4834_v34  ;;  %v13394_v14 = vpop.xlane.xlu1 %4354  ;;  %v17268_v34 = vld [vmem:[#allocation26_spill] sm:$0xff] }
 0x8d6   : > { %v13331_v35 = vpop.f32.mrf.mxu0  ;;  %4886 = vadd.xlane.f32.xlu1 %v4885_v31  ;;  %v4395_v31 = vsel %vm1191_vm1, %v17268_v34, 0.0  ;;  %v4492_v22 = vrot.slane %v13394_v14, %v17224_v26 }
 0x8d7   : > { %17252 = vst [vmem:[#allocation30_spill] sm:$0xff] %v13331_v35 }
 0x8d8   : > { %v5430_v41 = vpop.f32.mrf.mxu0 }
 0x8d9   : > { %v13341_v36 = vadd.f32 %v13338_v43, %v5430_v41  ;;  %4378 = vadd.xlane.f32.xlu0 %v4377_v50  ;;  %v13398_v41 = vpop.xlane.xlu1 %4357 }
 0x8da   : > { %4387 = vadd.xlane.f32.xlu1 %v4386_v60  ;;  %v4496_v43 = vrot.slane %v13398_v41, %v17222_v61 }
 0x8db   : > { %17255 = vst [vmem:[#allocation80_spill] sm:$0xff] %v13341_v36  ;;  %10420 = vmatprep.mubr.msk.f32.mxu0 %vm1191_vm1, %v13341_v36 }
 0x8dc   : > { %v4497_v13 = vsel %vm1331_vm2, %v4496_v43, %v4492_v22 }
 0x8dd   : > { %4420 = vadd.xlane.f32.xlu0 %v4419_v38  ;;  %v13400_v19 = vpop.xlane.xlu1 %4360 }
 0x8de   : > { %4429 = vadd.xlane.f32.xlu1 %v4428_v59 }
 0x8e1   : > { %4841 = vadd.xlane.f32.xlu0 %v4840_v9  ;;  %v13402_v50 = vpop.xlane.xlu1 %4363 }
 0x8e2   : > { %4850 = vadd.xlane.f32.xlu1 %v4849_v58 }
 0x8e5   : > { %4877 = vadd.xlane.f32.xlu0 %v4876_v44 }
 0x8e6   : > { %4892 = vadd.xlane.f32.xlu1 %v4891_v47 }
 0x8e9   : > { %4883 = vadd.xlane.f32.xlu0 %v4882_v45 }
 0x8ea   : > { %4393 = vadd.xlane.f32.xlu1 %v4392_v2  ;;  %v4440_v2 = vsel %vm1191_vm1, %v13328_v57, 0.0 }
 0x8ed   : > { %4384 = vadd.xlane.f32.xlu0 %v4383_v5  ;;  %v4437_v5 = vsel %vm1191_vm1, %v17269_v49, 0.0 }
 0x8ee   : > { %4435 = vadd.xlane.f32.xlu1 %v4434_v42 }
 0x8f1   : > { %4426 = vadd.xlane.f32.xlu0 %v4425_v56  ;;  %v17270_v56 = vld [vmem:[#allocation78_spill] sm:$0xff] }
 0x8f2   : > { %4856 = vadd.xlane.f32.xlu1 %v4855_v54  ;;  %v4858_v54 = vsel %vm1191_vm1, %v17270_v56, 0.0 }
 0x8f5   : > { %4847 = vadd.xlane.f32.xlu0 %v4846_v23  ;;  %v17271_v23 = vld [vmem:[#allocation57_spill] sm:$0xff] }
 0x8f6   : > { %4898 = vadd.xlane.f32.xlu1 %v4897_v63  ;;  %v4900_v63 = vsel %vm1191_vm1, %v17271_v23, 0.0 }
 0x8f9   : > { %4889 = vadd.xlane.f32.xlu0 %v4888_v39  ;;  %v4443_v39 = vsel %vm1191_vm1, %v17272_v3, 0.0 }
 0x8fa   : > { %4399 = vadd.xlane.f32.xlu1 %v4398_v24 }
 0x8fd   : > { %4390 = vadd.xlane.f32.xlu0 %v4389_v0  ;;  %v4864_v0 = vsel %vm1191_vm1, %v17273_v10, 0.0 }
 0x901   : > { %4432 = vadd.xlane.f32.xlu0 %v4431_v52  ;;  %v4906_v52 = vsel %vm1191_vm1, %v13115_v48, 0.0  ;;  %v4921_v48 = vsel %vm1191_vm1, %v13390_v32, 0.0 }
 0x905   : > { %4853 = vadd.xlane.f32.xlu0 %v4852_v15 }
 0x909   : > { %4895 = vadd.xlane.f32.xlu0 %v4894_v28 }
 0x90d   : > { %4396 = vadd.xlane.f32.xlu0 %v4395_v31 }
 0x91f   : > { %v4070_v60 = vpop.xlane.xlu1 %4069 }
 0x920   : > { %v4072_v18 = vsub.f32 %v13277_v17, %v4070_v60 }
 0x921   : > { %v4067_v38 = vpop.xlane.xlu0 %4066 }
 0x922   : > { %v4075_v59 = vmul.f32 1.442695, %v4072_v18  ;;  %v4071_v37 = vsub.f32 %v13281_v51, %v4067_v38 }
 0x923   : > { %v13406_v7 = vpop.xlane.xlu1 %4366 }
 0x924   : > { %10565 = vpow2.f32 %v4075_v59  ;;  %v4073_v9 = vmul.f32 1.442695, %v4071_v37  ;;  %v4510_v41 = vrot.slane %v13406_v7, %v17224_v26 }
 0x925   : > { %v4088_v58 = vpop.permute.xlu0 %4087 }
 0x926   : > { %10567 = vpow2.f32 %v4073_v9  ;;  %10365 = vmatprep.subr.mxu1 %v4088_v58 }
 0x927   : > { %10366 = vmatpush3.msra.mxu1 %v4088_v58  ;;  %v13408_v44 = vpop.xlane.xlu1 %4402 }
 0x92b   : > { %v13416_v45 = vpop.xlane.xlu1 %4405 }
 0x92f   : > { %v13424_v42 = vpop.xlane.xlu1 %4408 }
 0x930   : > { %v4573_v36 = vrot.slane %v13424_v42, %v17224_v26 }
 0x931   : > { %v13410_v47 = vpop.eup %10565 }
 0x932   : > { %v4080_v16 = vsel %vm1898_vm10, %v13410_v47, 0.0 }
 0x933   : > { %v13414_v17 = vpop.eup %10567  ;;  %4081 = vadd.xlane.f32.xlu1 %v4080_v16  ;;  %v13432_v57 = vpop.xlane.xlu1 %4411 }
 0x934   : > { %v4077_v51 = vsel %vm1898_vm10, %v13414_v17, 0.0 }
 0x935   : > { %4078 = vadd.xlane.f32.xlu0 %v4077_v51 }
 0x937   : > { %4441 = vadd.xlane.f32.xlu1 %v4440_v2  ;;  %v13440_v24 = vpop.xlane.xlu1 %4372 }
 0x939   : > { %4438 = vadd.xlane.f32.xlu0 %v4437_v5 }
 0x93b   : > { %4862 = vadd.xlane.f32.xlu1 %v4861_v62  ;;  %v13448_v40 = vpop.xlane.xlu1 %4375 }
 0x93d   : > { %4859 = vadd.xlane.f32.xlu0 %v4858_v54 }
 0x93f   : > { %4904 = vadd.xlane.f32.xlu1 %v4903_v53  ;;  %v13456_v15 = vpop.xlane.xlu1 %4414 }
 0x940   : > { %v4582_v42 = vrot.slane %v13456_v15, %v17224_v26  ;;  %v4519_v15 = vrot.slane %v13440_v24, %v17224_v26 }
 0x941   : > { %4901 = vadd.xlane.f32.xlu0 %v4900_v63 }
 0x943   : > { %4447 = vadd.xlane.f32.xlu1 %v4446_v29  ;;  %v13464_v27 = vpop.xlane.xlu1 %4417 }
 0x945   : > { %4444 = vadd.xlane.f32.xlu0 %v4443_v39 }
 0x947   : > { %4868 = vadd.xlane.f32.xlu1 %v4867_v8  ;;  %v13468_v34 = vpop.xlane.xlu1 %4832 }
 0x949   : > { %4865 = vadd.xlane.f32.xlu0 %v4864_v0 }
 0x94b   : > { %4910 = vadd.xlane.f32.xlu1 %v4909_v30  ;;  %v13472_v55 = vpop.xlane.xlu1 %4838 }
 0x94d   : > { %4907 = vadd.xlane.f32.xlu0 %v4906_v52 }
 0x94f   : > { %4874 = vadd.xlane.f32.xlu1 %v4873_v6  ;;  %v13476_v25 = vpop.xlane.xlu1 %4381 }
 0x951   : > { %4871 = vadd.xlane.f32.xlu0 %v4870_v33 }
 0x953   : > { %4916 = vadd.xlane.f32.xlu1 %v4915_v4  ;;  %v13480_v32 = vpop.xlane.xlu1 %4423 }
 0x955   : > { %4913 = vadd.xlane.f32.xlu0 %v4912_v11  ;;  %v4505_v11 = vrot.slane %v13402_v50, %v17222_v61  ;;  %v4586_v50 = vrot.slane %v13464_v27, %v17222_v61  ;;  %v4523_v27 = vrot.slane %v13448_v40, %v17222_v61 }
 0x956   : > { %v4370_v28 = vpop.xlane.xlu0 %4369 }
 0x957   : > { %4922 = vadd.xlane.f32.xlu1 %v4921_v48  ;;  %v13484_v59 = vpop.xlane.xlu1 %4844  ;;  %v4577_v48 = vrot.slane %v13432_v57, %v17222_v61  ;;  %v4514_v35 = vrot.slane %v4370_v28, %v17222_v61 }
 0x959   : > { %4919 = vadd.xlane.f32.xlu0 %v4918_v20  ;;  %v4515_v14 = vsel %vm1331_vm2, %v4514_v35, %v4510_v41 }
 0x95a   : > { %v13470_v31 = vpop.xlane.xlu0 %4829 }
 0x95b   : > { %v13488_v37 = vpop.xlane.xlu1 %4880  ;;  %v4959_v22 = vrot.slane %v13470_v31, %v17224_v26 }
 0x95e   : > { %v13474_v60 = vpop.xlane.xlu0 %4835 }
 0x95f   : > { %v13492_v58 = vpop.xlane.xlu1 %4886  ;;  %v4968_v40 = vrot.slane %v13474_v60, %v17224_v26  ;;  %v4972_v60 = vrot.slane %v13472_v55, %v17222_v61  ;;  %v5035_v55 = vrot.slane %v13488_v37, %v17222_v61 }
 0x962   : > { %v13478_v18 = vpop.xlane.xlu0 %4378 }
 0x963   : > { %v13496_v51 = vpop.xlane.xlu1 %4387  ;;  %v4528_v43 = vrot.slane %v13478_v18, %v17224_v26  ;;  %v4963_v18 = vrot.slane %v13468_v34, %v17222_v61 }
 0x966   : > { %v13482_v38 = vpop.xlane.xlu0 %4420 }
 0x967   : > { %v13500_v49 = vpop.xlane.xlu1 %4429 }
 0x96a   : > { %v13486_v12 = vpop.xlane.xlu0 %4841 }
 0x96b   : > { %v13504_v62 = vpop.xlane.xlu1 %4850  ;;  %v4977_v41 = vrot.slane %v13486_v12, %v17224_v26  ;;  %v4973_v12 = vsel %vm1331_vm2, %v4972_v60, %v4968_v40  ;;  %v4604_v40 = vrot.slane %v13500_v49, %v17222_v61 }
 0x96e   : > { %v13490_v9 = vpop.xlane.xlu0 %4877 }
 0x96f   : > { %v13508_v54 = vpop.xlane.xlu1 %4892 }
 0x970   : > { %v5053_v49 = vrot.slane %v13508_v54, %v17222_v61 }
 0x972   : > { %v13494_v16 = vpop.xlane.xlu0 %4883 }
 0x973   : > { %v13512_v23 = vpop.xlane.xlu1 %4393 }
 0x976   : > { %v13498_v2 = vpop.xlane.xlu0 %4384 }
 0x977   : > { %v13516_v29 = vpop.xlane.xlu1 %4435 }
 0x97a   : > { %v13502_v5 = vpop.xlane.xlu0 %4426 }
 0x97b   : > { %v13520_v39 = vpop.xlane.xlu1 %4856 }
 0x97c   : > { %v4999_v60 = vrot.slane %v13520_v39, %v17222_v61 }
 0x97e   : > { %v13506_v56 = vpop.xlane.xlu0 %4847 }
 0x97f   : > { %v13524_v10 = vpop.xlane.xlu1 %4898 }
 0x982   : > { %v13510_v53 = vpop.xlane.xlu0 %4889 }
 0x983   : > { %v13528_v30 = vpop.xlane.xlu1 %4399  ;;  %v5049_v54 = vrot.slane %v13510_v53, %v17224_v26  ;;  %v4613_v53 = vrot.slane %v13516_v29, %v17222_v61 }
 0x986   : > { %v13514_v63 = vpop.xlane.xlu0 %4390 }
 0x98a   : > { %v13518_v3 = vpop.xlane.xlu0 %4432 }
 0x98e   : > { %v13522_v8 = vpop.xlane.xlu0 %4853 }
 0x992   : > { %v13526_v0 = vpop.xlane.xlu0 %4895 }
 0x996   : > { %v13530_v52 = vpop.xlane.xlu0 %4396 }
 0x9bc   : > { %v4082_v6 = vpop.xlane.xlu1 %4081 }
 0x9bd   : > { %10569 = vrcp.f32 %v4082_v6  ;;  %v4501_v6 = vrot.slane %v13400_v19, %v17224_v26  ;;  %v4564_v19 = vrot.slane %v13408_v44, %v17224_v26 }
 0x9be   : > { %v4079_v33 = vpop.xlane.xlu0 %4078 }
 0x9bf   : > { %10571 = vrcp.f32 %v4079_v33  ;;  %v4568_v33 = vrot.slane %v13416_v45, %v17222_v61  ;;  %v4506_v28 = vsel %vm1331_vm2, %v4505_v11, %v4501_v6  ;;  %v4578_v45 = vsel %vm1331_vm2, %v4577_v48, %v4573_v36 }
 0x9c0   : > { %v13532_v4 = vpop.xlane.xlu1 %4441  ;;  %v4587_v11 = vsel %vm1331_vm2, %v4586_v50, %v4582_v42  ;;  %v4633_v36 = vsel %vm1468_vm3, %v4506_v28, %v4497_v13  ;;  %v4591_v48 = vrot.slane %v13482_v38, %v17224_v26  ;;  %v4524_v50 = vsel %vm1331_vm2, %v4523_v27, %v4519_v15 }
 0x9c1   : > { %v4569_v7 = vsel %vm1331_vm2, %v4568_v33, %v4564_v19  ;;  %v4634_v35 = vsel %vm1470_vm4, %v4515_v14, %v4633_v36  ;;  %v4532_v38 = vrot.slane %v13476_v25, %v17222_v61  ;;  %v4595_v28 = vrot.slane %v13480_v32, %v17222_v61 }
 0x9c2   : > { %v13538_v20 = vpop.xlane.xlu0 %4438  ;;  %v4640_v44 = vsel %vm1468_vm3, %v4578_v45, %v4569_v7  ;;  %v4981_v19 = vrot.slane %v13484_v59, %v17222_v61  ;;  %v4635_v42 = vsel %vm1472_vm5, %v4524_v50, %v4634_v35  ;;  %v4964_v27 = vsel %vm1331_vm2, %v4963_v18, %v4959_v22 }
 0x9c3   : > { %v4641_v24 = vsel %vm1470_vm4, %v4587_v11, %v4640_v44  ;;  %v4533_v25 = vsel %vm1331_vm2, %v4532_v38, %v4528_v43  ;;  %v4596_v32 = vsel %vm1331_vm2, %v4595_v28, %v4591_v48  ;;  %v5044_v7 = vrot.slane %v13492_v58, %v17222_v61 }
 0x9c4   : > { %v13551_v57 = vpop.xlane.xlu1 %4862  ;;  %v4982_v37 = vsel %vm1331_vm2, %v4981_v19, %v4977_v41  ;;  %v5031_v11 = vrot.slane %v13490_v9, %v17224_v26  ;;  %v5100_v36 = vsel %vm1468_vm3, %v4973_v12, %v4964_v27  ;;  %v4541_v44 = vrot.slane %v13496_v51, %v17222_v61 }
 0x9c5   : > { %v4600_v58 = vrot.slane %v13502_v5, %v17224_v26  ;;  %v4636_v9 = vsel %vm1474_vm6, %v4533_v25, %v4635_v42  ;;  %v4546_v35 = vrot.slane %v13514_v63, %v17224_v26  ;;  %v5101_v51 = vsel %vm1470_vm4, %v4982_v37, %v5100_v36 }
 0x9c6   : > { %v13563_v21 = vpop.xlane.xlu0 %4859  ;;  %v4986_v5 = vrot.slane %v13506_v56, %v17224_v26  ;;  %v4555_v22 = vrot.slane %v13530_v52, %v17224_v26  ;;  %v5036_v48 = vsel %vm1331_vm2, %v5035_v55, %v5031_v11  ;;  %v4550_v63 = vrot.slane %v13512_v23, %v17222_v61 }
 0x9c7   : > { %v4559_v56 = vrot.slane %v13528_v30, %v17222_v61  ;;  %v4995_v52 = vrot.slane %v13522_v8, %v17224_v26  ;;  %v5004_v23 = vrot.slane %v13563_v21, %v17224_v26  ;;  %v4609_v30 = vrot.slane %v13518_v3, %v17224_v26 }
 0x9c8   : > { %v13571_v6 = vpop.xlane.xlu1 %4904  ;;  %v4551_v41 = vsel %vm1331_vm2, %v4550_v63, %v4546_v35  ;;  %v5008_v21 = vrot.slane %v13551_v57, %v17222_v61  ;;  %v5062_v19 = vrot.slane %v13524_v10, %v17222_v61  ;;  %v5054_v27 = vsel %vm1331_vm2, %v5053_v49, %v5049_v54 }
 0x9c9   : > { %v4560_v18 = vsel %vm1331_vm2, %v4559_v56, %v4555_v22  ;;  %v5000_v55 = vsel %vm1331_vm2, %v4999_v60, %v4995_v52  ;;  %v4614_v57 = vsel %vm1331_vm2, %v4613_v53, %v4609_v30  ;;  %v5058_v10 = vrot.slane %v13526_v0, %v17224_v26 }
 0x9ca   : > { %v13586_v13 = vpop.xlane.xlu0 %4901  ;;  %v10570_v33 = vpop.eup %10569  ;;  %v5009_v29 = vsel %vm1331_vm2, %v5008_v21, %v5004_v23  ;;  %v5071_v35 = vrot.slane %v13571_v6, %v17222_v61 }
 0x9cb   : > { %v4086_v59 = vmul.f32 %v10570_v33, %v13410_v47  ;;  %v4537_v47 = vrot.slane %v13498_v2, %v17224_v26  ;;  %v4990_v2 = vrot.slane %v13504_v62, %v17222_v61  ;;  %v4605_v62 = vsel %vm1331_vm2, %v4604_v40, %v4600_v58 }
 0x9cc   : > { %v10572_v31 = vpop.eup %10571  ;;  %v13602_v45 = vpop.xlane.xlu1 %4447  ;;  %v5063_v40 = vsel %vm1331_vm2, %v5062_v19, %v5058_v10 }
 0x9cd   : > { %v4085_v34 = vmul.f32 %v10572_v31, %v13414_v17  ;;  %v5040_v17 = vrot.slane %v13494_v16, %v17224_v26  ;;  %v4642_v16 = vsel %vm1472_vm5, %v4596_v32, %v4641_v24  ;;  %v4542_v50 = vsel %vm1331_vm2, %v4541_v44, %v4537_v47 }
 0x9ce   : > { %v13612_v14 = vpop.xlane.xlu0 %4444  ;;  %v4991_v31 = vsel %vm1331_vm2, %v4990_v2, %v4986_v5  ;;  %v4637_v39 = vsel %vm1476_vm7, %v4542_v50, %v4636_v9  ;;  %v4643_v28 = vsel %vm1474_vm6, %v4605_v62, %v4642_v16  ;;  %v4618_v32 = vrot.slane %v13538_v20, %v17224_v26 }
 0x9cf   : > { %10367 = vmatprep.mubr.msk.f32.mxu1 %vm1898_vm10, %v4085_v34  ;;  %v5045_v33 = vsel %vm1331_vm2, %v5044_v7, %v5040_v17  ;;  %v4638_v3 = vsel %vm1478_vm8, %v4551_v41, %v4637_v39  ;;  %v5102_v34 = vsel %vm1472_vm5, %v4991_v31, %v5101_v51  ;;  %v4627_v11 = vrot.slane %v13612_v14, %v17224_v26 }
 0x9d0   : > { %v4869_v15 = vpop.xlane.xlu1 %4868  ;;  %10368 = vmatmul.mubr.msk.f32.vlgmr.msra.gmra.mxu1 %vm1898_vm10, %v4086_v59  ;;  %v4639_v25 = vsel %vm1480_vm9, %v4560_v18, %v4638_v3  ;;  %v5103_v37 = vsel %vm1474_vm6, %v5000_v55, %v5102_v34  ;;  %v4622_v44 = vrot.slane %v13532_v4, %v17222_v61  ;;  %v5067_v20 = vrot.slane %v13586_v13, %v17224_v26 }
 0x9d1   : > { %v5017_v12 = vrot.slane %v4869_v15, %v17222_v61  ;;  %v5104_v0 = vsel %vm1476_vm7, %v5009_v29, %v5103_v37  ;;  %v4724_v58 = vadd.f32 %v13324_v46, %v4639_v25  ;;  %v4631_v15 = vrot.slane %v13602_v45, %v17222_v61  ;;  %v10355_v25 = vpop.f32.mrf.mxu1 }
 0x9d2   : > { %v4866_v43 = vpop.xlane.xlu0 %4865  ;;  %v4623_v4 = vsel %vm1331_vm2, %v4622_v44, %v4618_v32  ;;  %v5107_v22 = vsel %vm1468_vm3, %v5045_v33, %v5036_v48  ;;  %v5072_v49 = vsel %vm1331_vm2, %v5071_v35, %v5067_v20  ;;  %v663_v44 = vld [vmem:[%s16602_s15 + $0x18] sm:$0xff] }
 0x9d3   : > { %v5013_v8 = vrot.slane %v4866_v43, %v17224_v26  ;;  %v4632_v46 = vsel %vm1331_vm2, %v4631_v15, %v4627_v11  ;;  %v4644_v43 = vsel %vm1476_vm7, %v4614_v57, %v4643_v28  ;;  %v5108_v6 = vsel %vm1470_vm4, %v5054_v27, %v5107_v22  ;;  %v662_v28 = vld [vmem:[%s16602_s15 + $0x10] sm:$0xff]  ;;  %v3195_v57 = vpop.f32.mrf.mxu1  ;;  %v10622_v15 = vld [vmem:[%s16600_s13 + $0x18] sm:$0xff]  ;;  %v10135_v22 = vld [vmem:[%s16603_s16] ss:$0 sm:$0xff] }
 0x9d4   : > { %v4911_v24 = vpop.xlane.xlu1 %4910  ;;  %v4645_v62 = vsel %vm1478_vm8, %v4623_v4, %v4644_v43  ;;  %10370 = vmatprep.subr.mxu1 %v662_v28 }
 0x9d5   : > { %v5018_v59 = vsel %vm1331_vm2, %v5017_v12, %v5013_v8  ;;  %v5080_v45 = vrot.slane %v4911_v24, %v17222_v61  ;;  %v5109_v24 = vsel %vm1472_vm5, %v5063_v40, %v5108_v6  ;;  %v4646_v33 = vsel %vm1480_vm9, %v4632_v46, %v4645_v62  ;;  %10371 = vmatpush3.msra.mxu1 %v662_v28  ;;  %v10624_v46 = vld [vmem:[%s16600_s13 + $0x8] sm:$0xff] }
 0x9d6   : > { %v4908_v38 = vpop.xlane.xlu0 %4907  ;;  %v5105_v16 = vsel %vm1478_vm8, %v5018_v59, %v5104_v0  ;;  %v5110_v54 = vsel %vm1474_vm6, %v5072_v49, %v5109_v24  ;;  %v4729_v18 = vadd.f32 %v13319_v1, %v4646_v33  ;;  %v17274_v59 = vld [vmem:[#allocation12_spill] sm:$0xff] }
 0x9d7   : > { %v5076_v14 = vrot.slane %v4908_v38, %v17224_v26 }
 0x9d8   : > { %v4875_v42 = vpop.xlane.xlu1 %4874 }
 0x9d9   : > { %v5026_v17 = vrot.slane %v4875_v42, %v17222_v61  ;;  %v5081_v56 = vsel %vm1331_vm2, %v5080_v45, %v5076_v14  ;;  %v17276_v14 = vld [vmem:[#allocation28_spill] sm:$0xff]  ;;  %v10625_v45 = vld [vmem:[%s16600_s13] sm:$0xff] }
 0x9da   : > { %v4872_v7 = vpop.xlane.xlu0 %4871  ;;  %v5111_v31 = vsel %vm1476_vm7, %v5081_v56, %v5110_v54  ;;  %v10626_v56 = vld [vmem:[%s10874_s26 + $0x8] sm:$0xff] }
 0x9db   : > { %v5022_v36 = vrot.slane %v4872_v7, %v17224_v26  ;;  %v17275_v7 = vld [vmem:[#allocation13_spill] sm:$0xff] }
 0x9dc   : > { %v4917_v47 = vpop.xlane.xlu1 %4916 }
 0x9dd   : > { %v5027_v9 = vsel %vm1331_vm2, %v5026_v17, %v5022_v36  ;;  %v5089_v63 = vrot.slane %v4917_v47, %v17222_v61 }
 0x9de   : > { %v4914_v13 = vpop.xlane.xlu0 %4913  ;;  %v5106_v51 = vsel %vm1480_vm9, %v5027_v9, %v5105_v16  ;;  %v3201_v9 = vadd.f32 %v10355_v25, %v17276_v14 }
 0x9df   : > { %v5085_v2 = vrot.slane %v4914_v13, %v17224_v26  ;;  %v5116_v5 = vadd.f32 %v5106_v51, %v4724_v58  ;;  %v10623_v51 = vld [vmem:[%s16600_s13 + $0x10] sm:$0xff] }
 0x9e0   : > { %v4923_v50 = vpop.xlane.xlu1 %4922 }
 0x9e1   : > { %v5118_v52 = vsel %vm1898_vm10, %v5116_v5, -inf  ;;  %v5090_v60 = vsel %vm1331_vm2, %v5089_v63, %v5085_v2  ;;  %v5098_v41 = vrot.slane %v4923_v50, %v17222_v61  ;;  %v17277_v2 = vld [vmem:[#allocation25_spill] sm:$0xff] }
 0x9e2   : > { %5119 = vmax.xlane.f32.xlu0 %v5118_v52  ;;  %v4920_v48 = vpop.xlane.xlu0 %4919  ;;  %v5112_v8 = vsel %vm1478_vm8, %v5090_v60, %v5111_v31  ;;  %v10627_v60 = vld [vmem:[%s10874_s26] sm:$0xff]  ;;  %s17488_s26 = smov 104  }
 0x9e3   : > { %v5094_v23 = vrot.slane %v4920_v48, %v17224_v26 }
 0x9e5   : > { %v5099_v30 = vsel %vm1331_vm2, %v5098_v41, %v5094_v23  ;;  %v17278_v41 = vld [vmem:[#allocation38_spill] sm:$0xff]  ;;  %v17279_v23 = vld [vmem:[#allocation80_spill] sm:$0xff] }
 0x9e6   : > { %v5113_v38 = vsel %vm1480_vm9, %v5099_v30, %v5112_v8  ;;  %v5595_v31 = vrot.slane %v17279_v23, %v17278_v41 }
 0x9e7   : > { %v5117_v39 = vadd.f32 %v5113_v38, %v4729_v18 }
 0x9e8   : > { %v5611_v30 = vrot.slane %v5595_v31, %v17278_v41  ;;  %v5603_v18 = vcombine.high %v5595_v31, %v5595_v31 }
 0x9e9   : > { %v5121_v53 = vsel %vm1898_vm10, %v5117_v39, -inf }
 0x9ea   : > { %5122 = vmax.xlane.f32.xlu1 %v5121_v53  ;;  %v17281_v53 = vld [vmem:[#allocation77_spill] sm:$0xff]  ;;  %v5633_v25 = vcombine.high %v5611_v30, %v5611_v30 }
 0xa6b   : > { %v5120_v21 = vpop.xlane.xlu0 %5119 }
 0xa6c   : > { %v5124_v19 = vsub.f32 %v5116_v5, %v5120_v21  ;;  %v3196_v5 = vadd.f32 %v3195_v57, %v17277_v2  ;;  %v5568_v2 = vld [vmem:[%s17284_s2 + $0x80] sm:$0xff] }
 0xa6e   : > { %v5126_v3 = vmul.f32 1.442695, %v5124_v19 }
 0xa70   : > { %10573 = vpow2.f32 %v5126_v3 }
 0xa73   : > { %v5123_v55 = vpop.xlane.xlu1 %5122 }
 0xa74   : > { %v5125_v1 = vsub.f32 %v5117_v39, %v5123_v55  ;;  %v17280_v39 = vld [vmem:[#allocation30_spill] sm:$0xff]  ;;  %v17283_v55 = vld [vmem:[#allocation43_spill] sm:$0xff] }
 0xa75   : > { %v13783_v28 = vadd.f32 %v17281_v53, %v17280_v39  ;;  %v5573_v53 = vld [vmem:[%s17284_s2 + $0xa8] sm:$0xff] }
 0xa76   : > { %v5128_v12 = vmul.f32 1.442695, %v5125_v1  ;;  %v5689_v1 = vrot.slane %v5611_v30, %v17283_v55 }
 0xa77   : > { %17282 = vst [vmem:[#allocation70_spill] sm:$0xff] %v13783_v28  ;;  %v5644_v57 = vrot.slane %v13783_v28, %v17278_v41 }
 0xa78   : > { %10575 = vpow2.f32 %v5128_v12  ;;  %v5625_v12 = vrot.slane %v5603_v18, %v17278_v41  ;;  %v5558_v18 = vld [vmem:[%s17284_s2 + $0x30] sm:$0xff] }
 0xa7d   : > { %v10574_v42 = vpop.eup %10573 }
 0xa7e   : > { %v5130_v34 = vsel %vm1898_vm10, %v10574_v42, 0.0 }
 0xa7f   : > { %5131 = vadd.xlane.f32.xlu0 %v5130_v34 }
 0xa85   : > { %v10576_v27 = vpop.eup %10575 }
 0xa86   : > { %v5133_v29 = vsel %vm1898_vm10, %v10576_v27, 0.0 }
 0xa87   : > { %5134 = vadd.xlane.f32.xlu1 %v5133_v29  ;;  %v5552_v29 = vld [vmem:[%s17284_s2] sm:$0xff] }
 0xa90   : > { %v10369_v10 = vpop.f32.mrf.mxu1 }
 0xa92   : > { %v4165_v32 = vpop.f32.mrf.mxu1 }
 0xa93   : > { %10372 = vmatprep.mubr.msk.f32.mxu1 %vm1191_vm1, %v4165_v32 }
 0xa94   : > { %10373 = vmatmul.mubr.msk.f32.vlgmr.msra.gmra.mxu1 %vm1191_vm1, %v10369_v10 }
 0xa95   : > { %5142 = vrot.lane.b32.xlu0 %v17274_v59, %s16771_s23 }
 0xa98   : > { %5140 = vrot.lane.b32.xlu1 %v17275_v7, %s16771_s23  ;;  %v5693_v7 = vrot.slane %v5625_v12, %v17283_v55  ;;  %s17319_s23 = sld [smem:[#allocation93_spill]] }
 0xb08   : > { %v5132_v37 = vpop.xlane.xlu0 %5131 }
 0xb09   : > { %10577 = vrcp.f32 %v5132_v37  ;;  %v5555_v37 = vld [vmem:[%s17284_s2 + $0x18] sm:$0xff] }
 0xb0c   : > { %v5143_v11 = vpop.permute.xlu0 %5142 }
 0xb0d   : > { %10382 = vmatprep.subr.mxu1 %v5143_v11 }
 0xb0e   : > { %10383 = vmatpush3.msra.mxu1 %v5143_v11 }
 0xb10   : > { %v5135_v17 = vpop.xlane.xlu1 %5134 }
 0xb11   : > { %10579 = vrcp.f32 %v5135_v17  ;;  %v13811_v17 = vmul.f32 %v5689_v1, %v5552_v29 }
 0xb13   : > { %17286 = vst [vmem:[#allocation27_spill] sm:$0xff] %v13811_v17  ;;  %v5798_v14 = vsel %vm1191_vm1, %v13811_v17, 0.0 }
 0xb14   : > { %v5141_v36 = vpop.permute.xlu1 %5140 }
 0xb15   : > { %10384 = vmatprep.subr.mxu1 %v5141_v36 }
 0xb16   : > { %v10578_v0 = vpop.eup %10577  ;;  %10385 = vmatpush3.msra.mxu1 %v5141_v36  ;;  %v5554_v36 = vld [vmem:[%s17284_s2 + $0x10] sm:$0xff] }
 0xb17   : > { %v5138_v20 = vmul.f32 %v10578_v0, %v10574_v42  ;;  %10389 = vmatprep.subr.mxu1 %v663_v44  ;;  %v5553_v42 = vld [vmem:[%s17284_s2 + $0x8] sm:$0xff] }
 0xb18   : > { %v13804_v59 = vmul.f32 %v5689_v1, %v5553_v42  ;;  %v5572_v42 = vld [vmem:[%s17284_s2 + $0xa0] sm:$0xff] }
 0xb19   : > { %10386 = vmatprep.mubr.msk.f32.mxu1 %vm1898_vm10, %v5138_v20  ;;  %v13819_v20 = vmul.f32 %v5693_v7, %v5555_v37 }
 0xb1a   : > { %17285 = vst [vmem:[#allocation72_spill] sm:$0xff] %v13804_v59  ;;  %v5801_v0 = vsel %vm1191_vm1, %v13804_v59, 0.0 }
 0xb1b   : > { %17287 = vst [vmem:[#allocation32_spill] sm:$0xff] %v13819_v20 }
 0xb1e   : > { %v10580_v47 = vpop.eup %10579 }
 0xb1f   : > { %v5139_v58 = vmul.f32 %v10580_v47, %v10576_v27  ;;  %v5697_v47 = vrot.slane %v5633_v25, %v17283_v55 }
 0xb21   : > { %10387 = vmatmul.mubr.msk.f32.vlgmr.msra.gmra.mxu1 %vm1898_vm10, %v5139_v58  ;;  %v5652_v58 = vcombine.high %v5644_v57, %v5644_v57 }
 0xb22   : > { %10390 = vmatpush3.msra.mxu1 %v663_v44  ;;  %v5660_v44 = vrot.slane %v5644_v57, %v17278_v41 }
 0xb23   : > { %10405 = vmatprep.subr.mxu1 %v10622_v15 }
 0xb54   : > { %v10374_v16 = vpop.f32.mrf.mxu1 }
 0xb55   : > { %v4256_v40 = vadd.f32 %v10374_v16, %v3201_v9  ;;  %v13827_v9 = vmul.f32 %v5693_v7, %v5554_v36  ;;  %v5556_v16 = vld [vmem:[%s17284_s2 + $0x20] sm:$0xff] }
 0xb56   : > { %v4246_v4 = vpop.f32.mrf.mxu1 }
 0xb57   : > { %v4255_v49 = vadd.f32 %v4246_v4, %v3196_v5  ;;  %17288 = vst [vmem:[#allocation29_spill] sm:$0xff] %v13827_v9  ;;  %v5588_v5 = vcombine.high %v17279_v23, %v17279_v23 }
 0xbe1   : > { %v10388_v35 = vpop.f32.mrf.mxu1 }
 0xbe3   : > { %v5218_v13 = vpop.f32.mrf.mxu1 }
 0xbe4   : > { %10391 = vmatprep.mubr.msk.f32.mxu1 %vm1191_vm1, %v5218_v13  ;;  %v5674_v13 = vrot.slane %v5652_v58, %v17278_v41 }
 0xbe5   : > { %10392 = vmatmul.mubr.msk.f32.vlgmr.msra.gmra.mxu1 %vm1191_vm1, %v10388_v35  ;;  %v5721_v35 = vrot.slane %v5660_v44, %v17283_v55 }
 0xbe6   : > { %10406 = vmatpush3.msra.mxu1 %v10622_v15  ;;  %v5557_v15 = vld [vmem:[%s17284_s2 + $0x28] sm:$0xff]  ;;  %v5684_v57 = vcombine.high %v5674_v13, %v5674_v13 }
 0xbe7   : > { %10407 = vmatprep.subr.mxu1 %v10623_v51  ;;  %v13834_v4 = vmul.f32 %v5697_v47, %v5557_v15  ;;  %v5575_v15 = vld [vmem:[%s17284_s2 + $0xb8] sm:$0xff] }
 0xbe8   : > { %10408 = vmatpush3.msra.mxu1 %v10623_v51  ;;  %v5569_v51 = vld [vmem:[%s17284_s2 + $0x88] sm:$0xff] }
 0xbe9   : > { %10409 = vmatprep.subr.mxu1 %v10624_v46  ;;  %17289 = vst [vmem:[#allocation34_spill] sm:$0xff] %v13834_v4 }
 0xbea   : > { %10410 = vmatpush3.msra.mxu1 %v10624_v46  ;;  %v5804_v46 = vsel %vm1191_vm1, %v13827_v9, 0.0 }
 0xbeb   : > { %10411 = vmatprep.subr.mxu1 %v10625_v45 }
 0xbec   : > { %10412 = vmatpush3.msra.mxu1 %v10625_v45  ;;  %v13843_v45 = vmul.f32 %v5697_v47, %v5556_v16  ;;  %v5733_v47 = vrot.slane %v5684_v57, %v17283_v55  ;;  %v5579_v57 = vld [vmem:[%s17284_s2 + $0xd8] sm:$0xff] }
 0xbee   : > { %17290 = vst [vmem:[#allocation81_spill] sm:$0xff] %v13843_v45 }
 0xca5   : > { %v10393_v43 = vpop.f32.mrf.mxu1 }
 0xca6   : > { %v5309_v63 = vadd.f32 %v10393_v43, %v4256_v40  ;;  %v5807_v40 = vsel %vm1191_vm1, %v13819_v20, 0.0  ;;  %v13852_v43 = vmul.f32 %v5721_v35, %v5569_v51 }
 0xca7   : > { %v5299_v50 = vpop.f32.mrf.mxu1 }
 0xca8   : > { %v5317_v6 = vadd.f32 %v10135_v22, %v5309_v63  ;;  %v5308_v62 = vadd.f32 %v5299_v50, %v4255_v49  ;;  %17291 = vst [vmem:[#allocation83_spill] sm:$0xff] %v13852_v43  ;;  %v5725_v49 = vrot.slane %v5674_v13, %v17283_v55  ;;  %v5635_v63 = vcombine.high %v5625_v12, %v5625_v12  ;;  %v5571_v50 = vld [vmem:[%s17284_s2 + $0x98] sm:$0xff] }
 0xca9   : > { %v13933_v13 = vmul.f32 %v5733_v47, %v5575_v15 }
 0xcaa   : > { %v5319_v52 = vadd.f32 %v10626_v56, %v5317_v6  ;;  %v5316_v24 = vadd.f32 %v10135_v22, %v5308_v62  ;;  %v5813_v22 = vsel %vm1191_vm1, %v13834_v4, 0.0  ;;  %v5810_v6 = vsel %vm1191_vm1, %v13843_v45, 0.0  ;;  %v5570_v56 = vld [vmem:[%s17284_s2 + $0x90] sm:$0xff] }
 0xcab   : > { %v13860_v62 = vmul.f32 %v5721_v35, %v5568_v2  ;;  %v13876_v30 = vmul.f32 %v5725_v49, %v5570_v56  ;;  %v5563_v2 = vld [vmem:[%s17284_s2 + $0x58] sm:$0xff] }
 0xcac   : > { %9925 = vst.msk [vmem:[%s645_s22 + $0x8] sm:$0xff] %vm667_vm0, %v5319_v52  ;;  %v5318_v48 = vadd.f32 %v10627_v60, %v5316_v24  ;;  %v5325_v33 = vsel %vm667_vm0, %v5319_v52, 0.0  ;;  %v5849_v24 = vsel %vm1191_vm1, %v13852_v43, 0.0  ;;  %v13867_v60 = vmul.f32 %v5725_v49, %v5571_v50  ;;  %v5562_v49 = vld [vmem:[%s17284_s2 + $0x50] sm:$0xff] }
 0xcad   : > { %5326 = vadd.xlane.f32.xlu0 %v5325_v33  ;;  %17292 = vst [vmem:[#allocation71_spill] sm:$0xff] %v13860_v62  ;;  %v5602_v33 = vrot.slane %v5588_v5, %v17278_v41  ;;  %v5846_v31 = vsel %vm1191_vm1, %v13860_v62, 0.0  ;;  %17294 = vst [vmem:[#allocation31_spill] sm:$0xff] %v13876_v30  ;;  %v5867_v50 = vsel %vm1191_vm1, %v13933_v13, 0.0 }
 0xcae   : > { %9924 = vst.msk [vmem:[%s645_s22] sm:$0xff] %vm667_vm0, %v5318_v48  ;;  %v5322_v54 = vsel %vm667_vm0, %v5318_v48, 0.0  ;;  %17293 = vst [vmem:[#allocation74_spill] sm:$0xff] %v13867_v60 }
 0xcaf   : > { %5323 = vadd.xlane.f32.xlu1 %v5322_v54  ;;  %v5559_v54 = vld [vmem:[%s17284_s2 + $0x38] sm:$0xff] }
 0xd36   : > { %v5327_v8 = vpop.xlane.xlu0 %5326 }
 0xd37   : > { %v5329_v38 = vmul.f32 0.03125, %v5327_v8 }
 0xd38   : > { %v5324_v21 = vpop.xlane.xlu1 %5323 }
 0xd39   : > { %v13785_v19 = vsub.f32 %v5319_v52, %v5329_v38  ;;  %v5328_v3 = vmul.f32 0.03125, %v5324_v21  ;;  %v5682_v52 = vcombine.high %v5660_v44, %v5660_v44  ;;  %v5855_v38 = vsel %vm1191_vm1, %v13867_v60, 0.0 }
 0xd3a   : > { %v5618_v21 = vrot.slane %v5602_v33, %v17278_v41 }
 0xd3b   : > { %v13792_v34 = vsub.f32 %v5318_v48, %v5328_v3  ;;  %v5333_v27 = vmul.f32 %v13785_v19, %v13785_v19  ;;  %v5701_v48 = vrot.slane %v5635_v63, %v17283_v55  ;;  %v5729_v8 = vrot.slane %v5682_v52, %v17283_v55 }
 0xd3c   : > { %v5852_v3 = vsel %vm1191_vm1, %v13876_v30, 0.0  ;;  %v5705_v25 = vrot.slane %v5618_v21, %v17283_v55  ;;  %v5634_v52 = vcombine.high %v5618_v21, %v5618_v21 }
 0xd3d   : > { %v5337_v10 = vsel %vm667_vm0, %v5333_v27, 0.0  ;;  %v5332_v32 = vmul.f32 %v13792_v34, %v13792_v34  ;;  %v13884_v39 = vmul.f32 %v5701_v48, %v5559_v54  ;;  %v13892_v1 = vmul.f32 %v5701_v48, %v5558_v18  ;;  %v5576_v54 = vld [vmem:[%s17284_s2 + $0xc0] sm:$0xff] }
 0xd3e   : > { %5338 = vadd.xlane.f32.xlu1 %v5337_v10  ;;  %v13894_v12 = vmul.f32 %v5729_v8, %v5573_v53  ;;  %v5637_v27 = vcombine.high %v13783_v28, %v13783_v28  ;;  %v5604_v10 = vcombine.high %v5602_v33, %v5602_v33  ;;  %v13909_v37 = vmul.f32 %v5729_v8, %v5572_v42  ;;  %v5565_v53 = vld [vmem:[%s17284_s2 + $0x68] sm:$0xff]  ;;  %v5564_v42 = vld [vmem:[%s17284_s2 + $0x60] sm:$0xff] }
 0xd3f   : > { %v5334_v11 = vsel %vm667_vm0, %v5332_v32, 0.0  ;;  %17295 = vst [vmem:[#allocation36_spill] sm:$0xff] %v13884_v39  ;;  %17296 = vst [vmem:[#allocation33_spill] sm:$0xff] %v13892_v1  ;;  %v5819_v29 = vsel %vm1191_vm1, %v13884_v39, 0.0  ;;  %v5561_v32 = vld [vmem:[%s17284_s2 + $0x48] sm:$0xff]  ;;  %v5816_v7 = vsel %vm1191_vm1, %v13892_v1, 0.0  ;;  %v5713_v8 = vrot.slane %v5634_v52, %v17283_v55 }
 0xd40   : > { %5335 = vadd.xlane.f32.xlu0 %v5334_v11  ;;  %17297 = vst [vmem:[#allocation39_spill] sm:$0xff] %v13894_v12  ;;  %17298 = vst [vmem:[#allocation79_spill] sm:$0xff] %v13909_v37  ;;  %v5560_v11 = vld [vmem:[%s17284_s2 + $0x40] sm:$0xff]  ;;  %v5651_v36 = vrot.slane %v5637_v27, %v17278_v41  ;;  %v5861_v44 = vsel %vm1191_vm1, %v13894_v12, 0.0  ;;  %v5632_v58 = vrot.slane %v5604_v10, %v17278_v41 }
 0xd41   : > { %v13926_v16 = vmul.f32 %v5705_v25, %v5560_v11 }
 0xd42   : > { %5802 = vadd.xlane.f32.xlu1 %v5801_v0  ;;  %v13917_v0 = vmul.f32 %v5705_v25, %v5561_v32  ;;  %v5709_v51 = vrot.slane %v5632_v58, %v17283_v55  ;;  %v5653_v63 = vcombine.high %v5651_v36, %v5651_v36  ;;  %v5636_v25 = vcombine.high %v5632_v58, %v5632_v58  ;;  %v5567_v58 = vld [vmem:[%s17284_s2 + $0x78] sm:$0xff] }
 0xd43   : > { %17300 = vst [vmem:[#allocation35_spill] sm:$0xff] %v13926_v16  ;;  %v5822_v5 = vsel %vm1191_vm1, %v13926_v16, 0.0  ;;  %v13988_v32 = vmul.f32 %v5713_v8, %v5564_v42 }
 0xd44   : > { %5799 = vadd.xlane.f32.xlu0 %v5798_v14  ;;  %17299 = vst [vmem:[#allocation82_spill] sm:$0xff] %v13917_v0  ;;  %v5858_v14 = vsel %vm1191_vm1, %v13909_v37, 0.0  ;;  %v5825_v35 = vsel %vm1191_vm1, %v13917_v0, 0.0  ;;  %v13957_v33 = vmul.f32 %v5709_v51, %v5562_v49 }
 0xd45   : > { %17307 = vst [vmem:[#allocation48_spill] sm:$0xff] %v13988_v32  ;;  %v5834_v15 = vsel %vm1191_vm1, %v13988_v32, 0.0 }
 0xd46   : > { %5808 = vadd.xlane.f32.xlu1 %v5807_v40  ;;  %v5574_v40 = vld [vmem:[%s17284_s2 + $0xb0] sm:$0xff]  ;;  %17303 = vst [vmem:[#allocation44_spill] sm:$0xff] %v13957_v33  ;;  %v5828_v21 = vsel %vm1191_vm1, %v13957_v33, 0.0  ;;  %v5533_v33 = vld [vmem:[%s17319_s23 + $0x68] sm:$0xff] }
 0xd48   : > { %5805 = vadd.xlane.f32.xlu0 %v5804_v46  ;;  %v5667_v46 = vrot.slane %v5651_v36, %v17278_v41 }
 0xd4a   : > { %5814 = vadd.xlane.f32.xlu1 %v5813_v22  ;;  %v13942_v22 = vmul.f32 %v5733_v47, %v5574_v40  ;;  %v5737_v56 = vrot.slane %v5667_v46, %v17283_v55  ;;  %v5683_v47 = vcombine.high %v5667_v46, %v5667_v46  ;;  %v5566_v40 = vld [vmem:[%s17284_s2 + $0x70] sm:$0xff] }
 0xd4c   : > { %5811 = vadd.xlane.f32.xlu0 %v5810_v6  ;;  %17301 = vst [vmem:[#allocation41_spill] sm:$0xff] %v13942_v22  ;;  %v13949_v6 = vmul.f32 %v5709_v51, %v5563_v2  ;;  %v5864_v48 = vsel %vm1191_vm1, %v13942_v22, 0.0  ;;  %v5745_v46 = vrot.slane %v5683_v47, %v17283_v55  ;;  %v10136_v47 = vld [vmem:[%s16596_s9] ss:$0 sm:$0xff] }
 0xd4e   : > { %5850 = vadd.xlane.f32.xlu1 %v5849_v24  ;;  %17302 = vst [vmem:[#allocation37_spill] sm:$0xff] %v13949_v6  ;;  %v5577_v24 = vld [vmem:[%s17284_s2 + $0xc8] sm:$0xff] }
 0xd4f   : > { %v13964_v18 = vmul.f32 %v5737_v56, %v5577_v24 }
 0xd50   : > { %5847 = vadd.xlane.f32.xlu0 %v5846_v31  ;;  %v5831_v31 = vsel %vm1191_vm1, %v13949_v6, 0.0  ;;  %v5546_v6 = vld [vmem:[%s17319_s23 + $0xd0] sm:$0xff] }
 0xd51   : > { %17304 = vst [vmem:[#allocation40_spill] sm:$0xff] %v13964_v18  ;;  %v5873_v27 = vsel %vm1191_vm1, %v13964_v18, 0.0 }
 0xd52   : > { %5856 = vadd.xlane.f32.xlu1 %v5855_v38  ;;  %v5681_v38 = vrot.slane %v5653_v63, %v17278_v41 }
 0xd54   : > { %5853 = vadd.xlane.f32.xlu0 %v5852_v3  ;;  %v13973_v3 = vmul.f32 %v5737_v56, %v5576_v54  ;;  %v5741_v41 = vrot.slane %v5681_v38, %v17283_v55  ;;  %v5685_v2 = vcombine.high %v5681_v38, %v5681_v38 }
 0xd56   : > { %5820 = vadd.xlane.f32.xlu1 %v5819_v29  ;;  %17305 = vst [vmem:[#allocation46_spill] sm:$0xff] %v13973_v3  ;;  %v13980_v29 = vmul.f32 %v5713_v8, %v5565_v53  ;;  %v5870_v10 = vsel %vm1191_vm1, %v13973_v3, 0.0  ;;  %v13995_v36 = vmul.f32 %v5741_v41, %v5579_v57  ;;  %v5749_v24 = vrot.slane %v5685_v2, %v17283_v55  ;;  %v5582_v8 = vld [vmem:[%s17284_s2 + $0xf0] sm:$0xff]  ;;  %v5545_v3 = vld [vmem:[%s17319_s23 + $0xc8] sm:$0xff] }
 0xd58   : > { %5817 = vadd.xlane.f32.xlu0 %v5816_v7  ;;  %17306 = vst [vmem:[#allocation42_spill] sm:$0xff] %v13980_v29  ;;  %v5578_v7 = vld [vmem:[%s17284_s2 + $0xd0] sm:$0xff]  ;;  %v5837_v11 = vsel %vm1191_vm1, %v13980_v29, 0.0  ;;  %17308 = vst [vmem:[#allocation45_spill] sm:$0xff] %v13995_v36  ;;  %v5529_v29 = vld [vmem:[%s17319_s23 + $0x48] sm:$0xff] }
 0xd5a   : > { %5862 = vadd.xlane.f32.xlu1 %v5861_v44  ;;  %v5717_v44 = vrot.slane %v5636_v25, %v17283_v55 }
 0xd5c   : > { %5859 = vadd.xlane.f32.xlu0 %v5858_v14  ;;  %v14003_v14 = vmul.f32 %v5741_v41, %v5578_v7  ;;  %v14010_v51 = vmul.f32 %v5717_v44, %v5567_v58  ;;  %v14018_v63 = vmul.f32 %v5717_v44, %v5566_v40 }
 0xd5e   : > { %5826 = vadd.xlane.f32.xlu1 %v5825_v35  ;;  %17309 = vst [vmem:[#allocation10_spill] sm:$0xff] %v14003_v14  ;;  %v5879_v35 = vsel %vm1191_vm1, %v13995_v36, 0.0  ;;  %17310 = vst [vmem:[#allocation49_spill] sm:$0xff] %v14010_v51  ;;  %v5876_v49 = vsel %vm1191_vm1, %v14003_v14, 0.0  ;;  %v5843_v56 = vsel %vm1191_vm1, %v14010_v51, 0.0  ;;  %v5840_v54 = vsel %vm1191_vm1, %v14018_v63, 0.0 }
 0xd5f   : > { %17311 = vst [vmem:[#allocation11_spill] sm:$0xff] %v14018_v63 }
 0xd60   : > { %5823 = vadd.xlane.f32.xlu0 %v5822_v5  ;;  %v5581_v5 = vld [vmem:[%s17284_s2 + $0xe8] sm:$0xff] }
 0xd61   : > { %v14025_v52 = vmul.f32 %v5745_v46, %v5581_v5 }
 0xd62   : > { %5868 = vadd.xlane.f32.xlu1 %v5867_v50  ;;  %v5580_v50 = vld [vmem:[%s17284_s2 + $0xe0] sm:$0xff] }
 0xd63   : > { %17312 = vst [vmem:[#allocation52_spill] sm:$0xff] %v14025_v52  ;;  %v5885_v38 = vsel %vm1191_vm1, %v14025_v52, 0.0  ;;  %v5527_v52 = vld [vmem:[%s17319_s23 + $0x38] sm:$0xff] }
 0xd64   : > { %5865 = vadd.xlane.f32.xlu0 %v5864_v48  ;;  %v5583_v48 = vld [vmem:[%s17284_s2 + $0xf8] sm:$0xff] }
 0xd65   : > { %v14040_v53 = vmul.f32 %v5749_v24, %v5583_v48 }
 0xd66   : > { %5832 = vadd.xlane.f32.xlu1 %v5831_v31  ;;  %v14033_v31 = vmul.f32 %v5745_v46, %v5580_v50  ;;  %v10137_v46 = vld [vmem:[%s16597_s10] ss:$0 sm:$0xff] }
 0xd67   : > { %17314 = vst [vmem:[#allocation88_spill] sm:$0xff] %v14040_v53  ;;  %v5891_v42 = vsel %vm1191_vm1, %v14040_v53, 0.0 }
 0xd68   : > { %5829 = vadd.xlane.f32.xlu0 %v5828_v21  ;;  %17313 = vst [vmem:[#allocation86_spill] sm:$0xff] %v14033_v31  ;;  %v5882_v55 = vsel %vm1191_vm1, %v14033_v31, 0.0  ;;  %v14044_v21 = vmul.f32 %v5749_v24, %v5582_v8 }
 0xd6a   : > { %5874 = vadd.xlane.f32.xlu1 %v5873_v27  ;;  %17315 = vst [vmem:[#allocation14_spill] sm:$0xff] %v14044_v21  ;;  %v5888_v27 = vsel %vm1191_vm1, %v14044_v21, 0.0  ;;  %v5540_v21 = vld [vmem:[%s17319_s23 + $0xa0] sm:$0xff] }
 0xd6c   : > { %5871 = vadd.xlane.f32.xlu0 %v5870_v10 }
 0xd6e   : > { %5838 = vadd.xlane.f32.xlu1 %v5837_v11 }
 0xd70   : > { %5835 = vadd.xlane.f32.xlu0 %v5834_v15 }
 0xd72   : > { %5880 = vadd.xlane.f32.xlu1 %v5879_v35 }
 0xd74   : > { %5877 = vadd.xlane.f32.xlu0 %v5876_v49 }
 0xd76   : > { %5844 = vadd.xlane.f32.xlu1 %v5843_v56 }
 0xd78   : > { %5841 = vadd.xlane.f32.xlu0 %v5840_v54 }
 0xd7a   : > { %5886 = vadd.xlane.f32.xlu1 %v5885_v38 }
 0xd7c   : > { %5883 = vadd.xlane.f32.xlu0 %v5882_v55 }
 0xd7e   : > { %5892 = vadd.xlane.f32.xlu1 %v5891_v42 }
 0xd80   : > { %5889 = vadd.xlane.f32.xlu0 %v5888_v27 }
 0xd8f   : > { %6828 = vrot.lane.b32.xlu1 %v17279_v23, %s10700_s20 }
 0xd93   : > { %6636 = vrot.lane.b32.xlu1 %v13811_v17, %s10700_s20 }
 0xd96   : > { %6830 = vrot.lane.b32.xlu0 %v13783_v28, %s10700_s20 }
 0xd97   : > { %6640 = vrot.lane.b32.xlu1 %v13827_v9, %s10700_s20 }
 0xd9a   : > { %6638 = vrot.lane.b32.xlu0 %v13804_v59, %s10700_s20 }
 0xd9b   : > { %6644 = vrot.lane.b32.xlu1 %v13843_v45, %s10700_s20 }
 0xd9e   : > { %6642 = vrot.lane.b32.xlu0 %v13819_v20, %s10700_s20 }
 0xda2   : > { %6646 = vrot.lane.b32.xlu0 %v13834_v4, %s10700_s20  ;;  %v5525_v4 = vld [vmem:[%s17319_s23 + $0x28] sm:$0xff] }
 0xdc7   : > { %v5339_v41 = vpop.xlane.xlu1 %5338 }
 0xdc8   : > { %v5341_v25 = vmul.f32 0.03125, %v5339_v41 }
 0xdc9   : > { %v5336_v57 = vpop.xlane.xlu0 %5335 }
 0xdca   : > { %v5343_v10 = vadd.f32 1e-05, %v5341_v25  ;;  %v5340_v7 = vmul.f32 0.03125, %v5336_v57 }
 0xdcb   : > { %v14076_v50 = vpop.xlane.xlu1 %5802 }
 0xdcc   : > { %10581 = vrsqrt.f32 %v5343_v10  ;;  %v5342_v11 = vadd.f32 1e-05, %v5340_v7 }
 0xdcd   : > { %v14078_v56 = vpop.xlane.xlu0 %5799 }
 0xdce   : > { %10583 = vrsqrt.f32 %v5342_v11  ;;  %v5520_v11 = vld [vmem:[%s17319_s23] sm:$0xff] }
 0xdcf   : > { %v14093_v8 = vpop.xlane.xlu1 %5808 }
 0xdd1   : > { %v14095_v38 = vpop.xlane.xlu0 %5805 }
 0xdd3   : > { %v14107_v55 = vpop.xlane.xlu1 %5814 }
 0xdd5   : > { %v14109_v42 = vpop.xlane.xlu0 %5811 }
 0xdd7   : > { %v14113_v27 = vpop.xlane.xlu1 %5850 }
 0xdd9   : > { %v10582_v44 = vpop.eup %10581  ;;  %v14115_v41 = vpop.xlane.xlu0 %5847 }
 0xdda   : > { %v5347_v58 = vmul.f32 %v10582_v44, %v13785_v19 }
 0xddb   : > { %v10584_v15 = vpop.eup %10583  ;;  %v14117_v25 = vpop.xlane.xlu1 %5856 }
 0xddc   : > { %v5346_v40 = vmul.f32 %v10584_v15, %v13792_v34  ;;  %v5355_v35 = vmul.f32 %v10136_v47, %v5347_v58  ;;  %v10628_v34 = vld [vmem:[%s16601_s14] ss:$0 sm:$0xff] }
 0xddd   : > { %v14119_v57 = vpop.xlane.xlu0 %5853 }
 0xdde   : > { %v5354_v2 = vmul.f32 %v10136_v47, %v5346_v40  ;;  %v5363_v49 = vadd.f32 %v10137_v46, %v5355_v35  ;;  %v5522_v47 = vld [vmem:[%s17319_s23 + $0x10] sm:$0xff]  ;;  %v5521_v40 = vld [vmem:[%s17319_s23 + $0x8] sm:$0xff] }
 0xddf   : > { %v14121_v10 = vpop.xlane.xlu1 %5820 }
 0xde0   : > { %v5362_v5 = vadd.f32 %v10137_v46, %v5354_v2 }
 0xde1   : > { %v14123_v7 = vpop.xlane.xlu0 %5817 }
 0xde2   : > { %10413 = vmatprep.mubr.msk.f32.mxu1 %vm667_vm0, %v5362_v5  ;;  %v5524_v5 = vld [vmem:[%s17319_s23 + $0x20] sm:$0xff] }
 0xde3   : > { %10414 = vmatmul.mubr.msk.f32.vlgmr.msra.gmra.mxu1 %vm667_vm0, %v5363_v49  ;;  %v14134_v58 = vpop.xlane.xlu1 %5862  ;;  %v5523_v49 = vld [vmem:[%s17319_s23 + $0x18] sm:$0xff] }
 0xde5   : > { %v14136_v15 = vpop.xlane.xlu0 %5859 }
 0xea3   : > { %v10415_v19 = vpop.f32.mrf.mxu1 }
 0xea4   : > { %v14083_v24 = vadd.f32 %v10628_v34, %v10415_v19  ;;  %v14155_v19 = vpop.xlane.xlu1 %5826 }
 0xea5   : > { %v5511_v48 = vpop.f32.mrf.mxu1 }
 0xea6   : > { %17316 = vst [vmem:[#allocation61_spill] sm:$0xff] %v14083_v24  ;;  %v14085_v54 = vadd.f32 %v10628_v34, %v5511_v48  ;;  %6834 = vrot.lane.b32.xlu1 %v14083_v24, %s10700_s20  ;;  %6519 = vrot.lane.b32.xlu0 %v14083_v24, %s17318_s25  ;;  %v14147_v2 = vmul.f32 %v5521_v40, %v14083_v24  ;;  %v14157_v34 = vpop.xlane.xlu0 %5823 }
 0xea7   : > { %10416 = vmatprep.subr.msk.mxu0 %vm1191_vm1, %v14083_v24  ;;  %v14167_v40 = vmul.f32 %v5523_v49, %v14083_v24  ;;  %v14183_v45 = vmul.f32 %v5525_v4, %v14083_v24  ;;  %v14239_v31 = vmul.f32 %v5527_v52, %v14083_v24 }
 0xea8   : > { %17317 = vst [vmem:[#allocation87_spill] sm:$0xff] %v14085_v54  ;;  %10417 = vmatpush3.xpose.msk.msra.mxu0 %vm1191_vm1, %v14083_v24  ;;  %v14129_v44 = vmul.f32 %v5520_v11, %v14085_v54  ;;  %v14144_v46 = vmul.f32 %v5522_v47, %v14085_v54  ;;  %17322 = vst [vmem:[#allocation62_spill] sm:$0xff] %v14147_v2  ;;  %v14162_v11 = vmul.f32 %v5524_v5, %v14085_v54  ;;  %v14188_v20 = vpop.xlane.xlu1 %5868 }
 0xea9   : > { %10418 = vmatprep.subr.msk.mxu0 %vm1191_vm1, %v14085_v54  ;;  %v6206_v47 = vsel %vm1191_vm1, %v14147_v2, 0.0  ;;  %17324 = vst [vmem:[#allocation66_spill] sm:$0xff] %v14167_v40  ;;  %v6212_v49 = vsel %vm1191_vm1, %v14167_v40, 0.0  ;;  %17326 = vst [vmem:[#allocation53_spill] sm:$0xff] %v14183_v45  ;;  %v6218_v4 = vsel %vm1191_vm1, %v14183_v45, 0.0  ;;  %v6224_v52 = vsel %vm1191_vm1, %v14239_v31, 0.0 }
 0xeaa   : > { %6832 = vrot.lane.b32.xlu0 %v14085_v54, %s10700_s20  ;;  %6517 = vrot.lane.b32.xlu1 %v14085_v54, %s17318_s25  ;;  %17320 = vst [vmem:[#allocation51_spill] sm:$0xff] %v14129_v44  ;;  %v6203_v35 = vsel %vm1191_vm1, %v14129_v44, 0.0  ;;  %17321 = vst [vmem:[#allocation54_spill] sm:$0xff] %v14144_v46  ;;  %v6209_v48 = vsel %vm1191_vm1, %v14144_v46, 0.0  ;;  %v6215_v5 = vsel %vm1191_vm1, %v14162_v11, 0.0  ;;  %v14190_v9 = vpop.xlane.xlu0 %5865  ;;  %v5551_v45 = vld [vmem:[%s17319_s23 + $0xf8] sm:$0xff] }
 0xeab   : > { %17323 = vst [vmem:[#allocation64_spill] sm:$0xff] %v14162_v11  ;;  %17332 = vst [vmem:[#allocation55_spill] sm:$0xff] %v14239_v31  ;;  %v5530_v31 = vld [vmem:[%s17319_s23 + $0x50] sm:$0xff] }
 0xeac   : > { %10419 = vmatpush3.xpose.msk.msra.mxu0 %vm1191_vm1, %v14085_v54  ;;  %v14211_v23 = vpop.xlane.xlu1 %5832 }
 0xeaf   : > { %10421 = vmatmul.mubr.msk.f32.vlgmr.msra.gmra.mxu0 %vm1191_vm1, %v13783_v28  ;;  %v5539_v28 = vld [vmem:[%s17319_s23 + $0x98] sm:$0xff] }
 0xeb0   : > { %v14244_v51 = vpop.xlane.xlu1 %5874 }
 0xeb4   : > { %v14267_v32 = vpop.xlane.xlu1 %5838 }
 0xec9   : > { %6204 = vadd.xlane.f32.xlu0 %v6203_v35  ;;  %v5536_v35 = vld [vmem:[%s17319_s23 + $0x80] sm:$0xff] }
 0xecd   : > { %6210 = vadd.xlane.f32.xlu0 %v6209_v48  ;;  %v14178_v48 = vmul.f32 %v5536_v35, %v14085_v54  ;;  %v5537_v35 = vld [vmem:[%s17319_s23 + $0x88] sm:$0xff] }
 0xece   : > { %6207 = vadd.xlane.f32.xlu1 %v6206_v47  ;;  %v5538_v47 = vld [vmem:[%s17319_s23 + $0x90] sm:$0xff]  ;;  %v14203_v17 = vmul.f32 %v5537_v35, %v14083_v24 }
 0xecf   : > { %17325 = vst [vmem:[#allocation15_spill] sm:$0xff] %v14178_v48  ;;  %v14198_v59 = vmul.f32 %v5538_v47, %v14085_v54  ;;  %v14213_v47 = vpop.xlane.xlu0 %5829 }
 0xed0   : > { %17328 = vst [vmem:[#allocation47_spill] sm:$0xff] %v14203_v17  ;;  %v6254_v35 = vsel %vm1191_vm1, %v14203_v17, 0.0  ;;  %v5550_v17 = vld [vmem:[%s17319_s23 + $0xf0] sm:$0xff] }
 0xed1   : > { %6216 = vadd.xlane.f32.xlu0 %v6215_v5  ;;  %v6251_v5 = vsel %vm1191_vm1, %v14178_v48, 0.0  ;;  %17327 = vst [vmem:[#allocation63_spill] sm:$0xff] %v14198_v59  ;;  %v5549_v48 = vld [vmem:[%s17319_s23 + $0xe8] sm:$0xff] }
 0xed2   : > { %6213 = vadd.xlane.f32.xlu1 %v6212_v49  ;;  %v5526_v49 = vld [vmem:[%s17319_s23 + $0x30] sm:$0xff] }
 0xed3   : > { %v14218_v53 = vmul.f32 %v5526_v49, %v14085_v54  ;;  %v14246_v63 = vpop.xlane.xlu0 %5871 }
 0xed5   : > { %6252 = vadd.xlane.f32.xlu0 %v6251_v5  ;;  %v6257_v5 = vsel %vm1191_vm1, %v14198_v59, 0.0  ;;  %17329 = vst [vmem:[#allocation18_spill] sm:$0xff] %v14218_v53  ;;  %v6221_v49 = vsel %vm1191_vm1, %v14218_v53, 0.0  ;;  %v5543_v53 = vld [vmem:[%s17319_s23 + $0xb8] sm:$0xff] }
 0xed6   : > { %6219 = vadd.xlane.f32.xlu1 %v6218_v4  ;;  %v14223_v4 = vmul.f32 %v5539_v28, %v14083_v24  ;;  %v5535_v59 = vld [vmem:[%s17319_s23 + $0x78] sm:$0xff] }
 0xed8   : > { %17330 = vst [vmem:[#allocation67_spill] sm:$0xff] %v14223_v4  ;;  %v6260_v28 = vsel %vm1191_vm1, %v14223_v4, 0.0 }
 0xed9   : > { %6258 = vadd.xlane.f32.xlu0 %v6257_v5  ;;  %v14234_v5 = vmul.f32 %v5540_v21, %v14085_v54  ;;  %v5541_v21 = vld [vmem:[%s17319_s23 + $0xa8] sm:$0xff] }
 0xeda   : > { %6255 = vadd.xlane.f32.xlu1 %v6254_v35  ;;  %v5528_v35 = vld [vmem:[%s17319_s23 + $0x40] sm:$0xff]  ;;  %v14259_v14 = vmul.f32 %v5541_v21, %v14083_v24 }
 0xedb   : > { %17331 = vst [vmem:[#allocation75_spill] sm:$0xff] %v14234_v5  ;;  %v14254_v36 = vmul.f32 %v5528_v35, %v14085_v54  ;;  %v14269_v35 = vpop.xlane.xlu0 %5835 }
 0xedc   : > { %17334 = vst [vmem:[#allocation20_spill] sm:$0xff] %v14259_v14  ;;  %v6266_v21 = vsel %vm1191_vm1, %v14259_v14, 0.0  ;;  %v14300_v14 = vpop.xlane.xlu1 %5880 }
 0xedd   : > { %6222 = vadd.xlane.f32.xlu0 %v6221_v49  ;;  %v6263_v49 = vsel %vm1191_vm1, %v14234_v5, 0.0  ;;  %17333 = vst [vmem:[#allocation84_spill] sm:$0xff] %v14254_v36 }
 0xede   : > { %6261 = vadd.xlane.f32.xlu1 %v6260_v28  ;;  %v5542_v28 = vld [vmem:[%s17319_s23 + $0xb0] sm:$0xff] }
 0xedf   : > { %v14274_v5 = vmul.f32 %v5542_v28, %v14085_v54  ;;  %v14302_v18 = vpop.xlane.xlu0 %5877 }
 0xee1   : > { %6264 = vadd.xlane.f32.xlu0 %v6263_v49  ;;  %v6227_v49 = vsel %vm1191_vm1, %v14254_v36, 0.0  ;;  %17335 = vst [vmem:[#allocation50_spill] sm:$0xff] %v14274_v5  ;;  %v6269_v28 = vsel %vm1191_vm1, %v14274_v5, 0.0  ;;  %v14295_v36 = vmul.f32 %v5543_v53, %v14083_v24 }
 0xee2   : > { %6225 = vadd.xlane.f32.xlu1 %v6224_v52  ;;  %v14279_v52 = vmul.f32 %v5529_v29, %v14083_v24 }
 0xee3   : > { %17338 = vst [vmem:[#allocation56_spill] sm:$0xff] %v14295_v36  ;;  %v6272_v53 = vsel %vm1191_vm1, %v14295_v36, 0.0 }
 0xee4   : > { %17336 = vst [vmem:[#allocation73_spill] sm:$0xff] %v14279_v52  ;;  %v6230_v29 = vsel %vm1191_vm1, %v14279_v52, 0.0 }
 0xee5   : > { %6228 = vadd.xlane.f32.xlu0 %v6227_v49  ;;  %v14290_v49 = vmul.f32 %v5530_v31, %v14085_v54  ;;  %v5531_v31 = vld [vmem:[%s17319_s23 + $0x58] sm:$0xff] }
 0xee6   : > { %6267 = vadd.xlane.f32.xlu1 %v6266_v21  ;;  %v5544_v21 = vld [vmem:[%s17319_s23 + $0xc0] sm:$0xff]  ;;  %v14315_v52 = vmul.f32 %v5531_v31, %v14083_v24 }
 0xee7   : > { %17337 = vst [vmem:[#allocation58_spill] sm:$0xff] %v14290_v49  ;;  %v14310_v5 = vmul.f32 %v5544_v21, %v14085_v54  ;;  %v14325_v21 = vpop.xlane.xlu0 %5841 }
 0xee8   : > { %17340 = vst [vmem:[#allocation16_spill] sm:$0xff] %v14315_v52  ;;  %v6236_v31 = vsel %vm1191_vm1, %v14315_v52, 0.0 }
 0xee9   : > { %6270 = vadd.xlane.f32.xlu0 %v6269_v28  ;;  %v6233_v28 = vsel %vm1191_vm1, %v14290_v49, 0.0  ;;  %17339 = vst [vmem:[#allocation76_spill] sm:$0xff] %v14310_v5  ;;  %v14323_v49 = vpop.xlane.xlu1 %5844 }
 0xeea   : > { %6231 = vadd.xlane.f32.xlu1 %v6230_v29  ;;  %v5532_v29 = vld [vmem:[%s17319_s23 + $0x60] sm:$0xff] }
 0xeeb   : > { %v14330_v36 = vmul.f32 %v5532_v29, %v14085_v54  ;;  %v14358_v4 = vpop.xlane.xlu0 %5883 }
 0xeed   : > { %6234 = vadd.xlane.f32.xlu0 %v6233_v28  ;;  %v6275_v28 = vsel %vm1191_vm1, %v14310_v5, 0.0  ;;  %17341 = vst [vmem:[#allocation59_spill] sm:$0xff] %v14330_v36  ;;  %v6239_v29 = vsel %vm1191_vm1, %v14330_v36, 0.0  ;;  %v14351_v5 = vmul.f32 %v5533_v33, %v14083_v24  ;;  %v14356_v52 = vpop.xlane.xlu1 %5886 }
 0xeee   : > { %6273 = vadd.xlane.f32.xlu1 %v6272_v53  ;;  %v14335_v53 = vmul.f32 %v5545_v3, %v14083_v24 }
 0xeef   : > { %17344 = vst [vmem:[#allocation21_spill] sm:$0xff] %v14351_v5  ;;  %v6242_v33 = vsel %vm1191_vm1, %v14351_v5, 0.0 }
 0xef0   : > { %17342 = vst [vmem:[#allocation19_spill] sm:$0xff] %v14335_v53  ;;  %v6278_v3 = vsel %vm1191_vm1, %v14335_v53, 0.0 }
 0xef1   : > { %6276 = vadd.xlane.f32.xlu0 %v6275_v28  ;;  %v14346_v28 = vmul.f32 %v5546_v6, %v14085_v54  ;;  %v5547_v6 = vld [vmem:[%s17319_s23 + $0xd8] sm:$0xff] }
 0xef2   : > { %6237 = vadd.xlane.f32.xlu1 %v6236_v31  ;;  %v5534_v31 = vld [vmem:[%s17319_s23 + $0x70] sm:$0xff]  ;;  %v14371_v53 = vmul.f32 %v5547_v6, %v14083_v24 }
 0xef3   : > { %17343 = vst [vmem:[#allocation17_spill] sm:$0xff] %v14346_v28  ;;  %v14366_v36 = vmul.f32 %v5534_v31, %v14085_v54  ;;  %v14381_v31 = vpop.xlane.xlu0 %5889 }
 0xef4   : > { %17346 = vst [vmem:[#allocation69_spill] sm:$0xff] %v14371_v53  ;;  %v6284_v6 = vsel %vm1191_vm1, %v14371_v53, 0.0 }
 0xef5   : > { %6240 = vadd.xlane.f32.xlu0 %v6239_v29  ;;  %v6281_v29 = vsel %vm1191_vm1, %v14346_v28, 0.0  ;;  %17345 = vst [vmem:[#allocation65_spill] sm:$0xff] %v14366_v36  ;;  %v14379_v28 = vpop.xlane.xlu1 %5892 }
 0xef6   : > { %6279 = vadd.xlane.f32.xlu1 %v6278_v3  ;;  %v5548_v3 = vld [vmem:[%s17319_s23 + $0xe0] sm:$0xff] }
 0xef7   : > { %v14386_v5 = vmul.f32 %v5548_v3, %v14085_v54 }
 0xef9   : > { %6282 = vadd.xlane.f32.xlu0 %v6281_v29  ;;  %v6245_v29 = vsel %vm1191_vm1, %v14366_v36, 0.0  ;;  %17347 = vst [vmem:[#allocation68_spill] sm:$0xff] %v14386_v5  ;;  %v6287_v3 = vsel %vm1191_vm1, %v14386_v5, 0.0  ;;  %v14407_v36 = vmul.f32 %v5549_v48, %v14083_v24  ;;  %v14409_v53 = vpop.permute.xlu1 %6828 }
 0xefa   : > { %6243 = vadd.xlane.f32.xlu1 %v6242_v33  ;;  %v14391_v33 = vmul.f32 %v5535_v59, %v14083_v24  ;;  %17351 = vst [vmem:[#allocation85_spill] sm:$0xff] %v14409_v53 }
 0xefb   : > { %17350 = vst [vmem:[#allocation26_spill] sm:$0xff] %v14407_v36 }
 0xefc   : > { %17348 = vst [vmem:[#allocation24_spill] sm:$0xff] %v14391_v33  ;;  %v6248_v59 = vsel %vm1191_vm1, %v14391_v33, 0.0 }
 0xefd   : > { %6246 = vadd.xlane.f32.xlu0 %v6245_v29  ;;  %v14402_v29 = vmul.f32 %v5550_v17, %v14085_v54  ;;  %v14421_v54 = vmul.f32 %v5551_v45, %v14083_v24  ;;  %v14423_v48 = vpop.permute.xlu1 %6636  ;;  %v5947_v24 = vrot.slane %v14109_v42, %v17224_v26 }
 0xefe   : > { %6285 = vadd.xlane.f32.xlu1 %v6284_v6  ;;  %v14411_v6 = vpop.permute.xlu0 %6830  ;;  %17354 = vst [vmem:[#allocation60_spill] sm:$0xff] %v14423_v48  ;;  %v6010_v48 = vrot.slane %v14119_v57, %v17224_v26 }
 0xeff   : > { %17349 = vst [vmem:[#allocation22_spill] sm:$0xff] %v14402_v29  ;;  %17352 = vst [vmem:[#allocation78_spill] sm:$0xff] %v14411_v6  ;;  %v6293_v17 = vsel %vm1191_vm1, %v14402_v29, 0.0 }
 0xf00   : > { %17353 = vst [vmem:[#allocation57_spill] sm:$0xff] %v14421_v54 }
 0xf01   : > { %6288 = vadd.xlane.f32.xlu0 %v6287_v3  ;;  %v6290_v3 = vsel %vm1191_vm1, %v14407_v36, 0.0  ;;  %v14429_v6 = vpop.permute.xlu1 %6640 }
 0xf02   : > { %6249 = vadd.xlane.f32.xlu1 %v6248_v59  ;;  %v14425_v53 = vpop.permute.xlu0 %6638  ;;  %v6296_v59 = vsel %vm1191_vm1, %v14421_v54, 0.0  ;;  %17356 = vst [vmem:[#allocation12_spill] sm:$0xff] %v14429_v6 }
 0xf03   : > { %17355 = vst [vmem:[#allocation23_spill] sm:$0xff] %v14425_v53 }
 0xf05   : > { %6294 = vadd.xlane.f32.xlu0 %v6293_v17  ;;  %v14433_v17 = vpop.permute.xlu1 %6644 }
 0xf06   : > { %6291 = vadd.xlane.f32.xlu1 %v6290_v3  ;;  %v14431_v5 = vpop.permute.xlu0 %6642  ;;  %17358 = vst [vmem:[#allocation28_spill] sm:$0xff] %v14433_v17  ;;  %v5933_v17 = vrot.slane %v14076_v50, %v17222_v61  ;;  %v6019_v50 = vrot.slane %v14136_v15, %v17224_v26  ;;  %v6028_v15 = vrot.slane %v14190_v9, %v17224_v26 }
 0xf07   : > { %17357 = vst [vmem:[#allocation13_spill] sm:$0xff] %v14431_v5  ;;  %v5951_v5 = vrot.slane %v14107_v55, %v17222_v61  ;;  %v6001_v55 = vrot.slane %v14115_v41, %v17224_v26  ;;  %v6032_v9 = vrot.slane %v14188_v20, %v17222_v61 }
 0xf09   : > { %v5952_v6 = vsel %vm1331_vm2, %v5951_v5, %v5947_v24  ;;  %v6005_v24 = vrot.slane %v14113_v27, %v17222_v61  ;;  %v5965_v5 = vrot.slane %v14157_v34, %v17224_v26  ;;  %v5974_v34 = vrot.slane %v14213_v47, %v17224_v26 }
 0xf0a   : > { %6297 = vadd.xlane.f32.xlu1 %v6296_v59  ;;  %v14435_v29 = vpop.permute.xlu0 %6646  ;;  %v5978_v47 = vrot.slane %v14211_v23, %v17222_v61  ;;  %v6033_v20 = vsel %vm1331_vm2, %v6032_v9, %v6028_v15 }
 0xf0b   : > { %17359 = vst [vmem:[#allocation25_spill] sm:$0xff] %v14435_v29  ;;  %v5942_v29 = vrot.slane %v14093_v8, %v17222_v61 }
 0xf18   : > { %v6520_v36 = vpop.permute.xlu0 %6519  ;;  %v14437_v45 = vpop.permute.xlu1 %6834 }
 0xf19   : > { %17360 = vst [vmem:[#allocation38_spill] sm:$0xff] %v14437_v45  ;;  %10423 = vmatprep.subr.mxu1 %v6520_v36 }
 0xf1a   : > { %10424 = vmatpush3.msra.mxu1 %v6520_v36 }
 0xf1b   : > { %6668 = vrot.lane.b32.xlu1 %v13860_v62, %s10700_s20  ;;  %6670 = vrot.lane.b32.xlu0 %v13852_v43, %s10700_s20  ;;  %v5938_v43 = vrot.slane %v14095_v38, %v17224_v26 }
 0xf1c   : > { %v6518_v3 = vpop.permute.xlu1 %6517  ;;  %v14471_v36 = vpop.permute.xlu0 %6832 }
 0xf1d   : > { %10425 = vmatprep.subr.mxu1 %v6518_v3  ;;  %17361 = vst [vmem:[#allocation30_spill] sm:$0xff] %v14471_v36  ;;  %v5943_v38 = vsel %vm1331_vm2, %v5942_v29, %v5938_v43  ;;  %v6014_v43 = vrot.slane %v14117_v25, %v17222_v61  ;;  %v6023_v25 = vrot.slane %v14134_v58, %v17222_v61 }
 0xf1e   : > { %10426 = vmatpush3.msra.mxu1 %v6518_v3  ;;  %v6006_v58 = vsel %vm1331_vm2, %v6005_v24, %v6001_v55 }
 0xf1f   : > { %6672 = vrot.lane.b32.xlu1 %v13876_v30, %s10700_s20  ;;  %6674 = vrot.lane.b32.xlu0 %v13867_v60, %s10700_s20  ;;  %v6015_v41 = vsel %vm1331_vm2, %v6014_v43, %v6010_v48 }
 0xf20   : > { %10430 = vmatprep.subr.msk.mxu1 %vm1191_vm1, %v14437_v45  ;;  %v5929_v45 = vrot.slane %v14078_v56, %v17224_v26  ;;  %v5956_v56 = vrot.slane %v14123_v7, %v17224_v26  ;;  %v5960_v7 = vrot.slane %v14121_v10, %v17222_v61  ;;  %v5969_v10 = vrot.slane %v14155_v19, %v17222_v61 }
 0xf22   : > { %v5934_v8 = vsel %vm1331_vm2, %v5933_v17, %v5929_v45  ;;  %v5961_v27 = vsel %vm1331_vm2, %v5960_v7, %v5956_v56  ;;  %v6024_v45 = vsel %vm1331_vm2, %v6023_v25, %v6019_v50  ;;  %v5970_v19 = vsel %vm1331_vm2, %v5969_v10, %v5965_v5 }
 0xf23   : > { %6648 = vrot.lane.b32.xlu1 %v13892_v1, %s10700_s20  ;;  %6650 = vrot.lane.b32.xlu0 %v13884_v39, %s10700_s20  ;;  %v6070_v57 = vsel %vm1468_vm3, %v5943_v38, %v5934_v8  ;;  %v5983_v38 = vrot.slane %v14269_v35, %v17224_v26  ;;  %v5992_v56 = vrot.slane %v14325_v21, %v17224_v26 }
 0xf24   : > { %v6071_v29 = vsel %vm1470_vm4, %v5952_v6, %v6070_v57  ;;  %v6037_v6 = vrot.slane %v14246_v63, %v17224_v26  ;;  %v6041_v63 = vrot.slane %v14244_v51, %v17222_v61  ;;  %v6077_v8 = vsel %vm1468_vm3, %v6015_v41, %v6006_v58 }
 0xf25   : > { %v6072_v55 = vsel %vm1472_vm5, %v5961_v27, %v6071_v29  ;;  %v5987_v35 = vrot.slane %v14267_v32, %v17222_v61  ;;  %v5979_v50 = vsel %vm1331_vm2, %v5978_v47, %v5974_v34  ;;  %v6046_v51 = vrot.slane %v14302_v18, %v17224_v26 }
 0xf26   : > { %v6042_v23 = vsel %vm1331_vm2, %v6041_v63, %v6037_v6  ;;  %v5996_v21 = vrot.slane %v14323_v49, %v17222_v61  ;;  %v6078_v24 = vsel %vm1470_vm4, %v6024_v45, %v6077_v8  ;;  %v6073_v5 = vsel %vm1474_vm6, %v5970_v19, %v6072_v55 }
 0xf27   : > { %6676 = vrot.lane.b32.xlu1 %v13909_v37, %s10700_s20  ;;  %6678 = vrot.lane.b32.xlu0 %v13894_v12, %s10700_s20  ;;  %v5988_v7 = vsel %vm1331_vm2, %v5987_v35, %v5983_v38  ;;  %v6079_v32 = vsel %vm1472_vm5, %v6033_v20, %v6078_v24  ;;  %v6050_v29 = vrot.slane %v14300_v14, %v17222_v61 }
 0xf28   : > { %v6055_v41 = vrot.slane %v14358_v4, %v17224_v26  ;;  %v5997_v18 = vsel %vm1331_vm2, %v5996_v21, %v5992_v56  ;;  %v14598_v25 = vsel %vm1474_vm6, %v6042_v23, %v6079_v32  ;;  %v6074_v15 = vsel %vm1476_vm7, %v5979_v50, %v6073_v5 }
 0xf29   : > { %v14604_v10 = vsel %vm1331_vm2, %v6050_v29, %v6046_v51  ;;  %v6059_v14 = vrot.slane %v14356_v52, %v17222_v61  ;;  %v6075_v34 = vsel %vm1478_vm8, %v5988_v7, %v6074_v15  ;;  %v6068_v52 = vrot.slane %v14379_v28, %v17222_v61 }
 0xf2a   : > { %v6076_v9 = vsel %vm1480_vm9, %v5997_v18, %v6075_v34 }
 0xf2b   : > { %7143 = vrot.lane.b32.xlu1 %v14129_v44, %s10700_s20  ;;  %7145 = vrot.lane.b32.xlu0 %v14147_v2, %s10700_s20  ;;  %v14623_v38 = vsel %vm1331_vm2, %v6059_v14, %v6055_v41 }
 0xf2f   : > { %7147 = vrot.lane.b32.xlu1 %v14144_v46, %s10700_s20  ;;  %7149 = vrot.lane.b32.xlu0 %v14167_v40, %s10700_s20 }
 0xf33   : > { %6652 = vrot.lane.b32.xlu1 %v13926_v16, %s10700_s20  ;;  %6654 = vrot.lane.b32.xlu0 %v13917_v0, %s10700_s20 }
 0xf37   : > { %6680 = vrot.lane.b32.xlu1 %v13942_v22, %s10700_s20 }
 0xf52   : > { %v14473_v59 = vpop.xlane.xlu0 %6204 }
 0xf56   : > { %v14475_v3 = vpop.xlane.xlu0 %6210 }
 0xf57   : > { %v14477_v2 = vpop.xlane.xlu1 %6207 }
 0xf58   : > { %v6338_v58 = vrot.slane %v14477_v2, %v17222_v61  ;;  %v6334_v2 = vrot.slane %v14473_v59, %v17224_v26 }
 0xf5a   : > { %v14479_v46 = vpop.xlane.xlu0 %6216  ;;  %v6339_v55 = vsel %vm1331_vm2, %v6338_v58, %v6334_v2 }
 0xf5b   : > { %v14481_v40 = vpop.xlane.xlu1 %6213 }
 0xf5c   : > { %v6347_v49 = vrot.slane %v14481_v40, %v17222_v61  ;;  %v6343_v40 = vrot.slane %v14475_v3, %v17224_v26 }
 0xf5e   : > { %v14483_v44 = vpop.xlane.xlu0 %6252  ;;  %v6348_v19 = vsel %vm1331_vm2, %v6347_v49, %v6343_v40 }
 0xf5f   : > { %v14485_v16 = vpop.xlane.xlu1 %6219  ;;  %v6475_v35 = vsel %vm1468_vm3, %v6348_v19, %v6339_v55  ;;  %v6406_v23 = vrot.slane %v14483_v44, %v17224_v26 }
 0xf60   : > { %v6356_v4 = vrot.slane %v14485_v16, %v17222_v61  ;;  %v6352_v16 = vrot.slane %v14479_v46, %v17224_v26 }
 0xf62   : > { %v14487_v0 = vpop.xlane.xlu0 %6258  ;;  %v6357_v63 = vsel %vm1331_vm2, %v6356_v4, %v6352_v16 }
 0xf63   : > { %v14489_v12 = vpop.xlane.xlu1 %6255 }
 0xf64   : > { %v6410_v51 = vrot.slane %v14489_v12, %v17222_v61 }
 0xf66   : > { %v14491_v22 = vpop.xlane.xlu0 %6222 }
 0xf67   : > { %v14493_v37 = vpop.xlane.xlu1 %6261 }
 0xf68   : > { %v6419_v56 = vrot.slane %v14493_v37, %v17222_v61  ;;  %v6415_v37 = vrot.slane %v14487_v0, %v17224_v26 }
 0xf6a   : > { %v14495_v39 = vpop.xlane.xlu0 %6264  ;;  %v6420_v24 = vsel %vm1331_vm2, %v6419_v56, %v6415_v37 }
 0xf6b   : > { %v14497_v1 = vpop.xlane.xlu1 %6225  ;;  %v6424_v18 = vrot.slane %v14495_v39, %v17224_v26 }
 0xf6c   : > { %v6365_v45 = vrot.slane %v14497_v1, %v17222_v61  ;;  %v6361_v1 = vrot.slane %v14491_v22, %v17224_v26  ;;  %v6064_v22 = vrot.slane %v14381_v31, %v17224_v26  ;;  %v6476_v31 = vsel %vm1470_vm4, %v6357_v63, %v6475_v35 }
 0xf6e   : > { %v14499_v60 = vpop.xlane.xlu0 %6228  ;;  %v6366_v20 = vsel %vm1331_vm2, %v6365_v45, %v6361_v1 }
 0xf6f   : > { %v14501_v30 = vpop.xlane.xlu1 %6267  ;;  %v14632_v47 = vpop.f32.mrf.mxu0  ;;  %v6477_v7 = vsel %vm1472_vm5, %v6366_v20, %v6476_v31 }
 0xf70   : > { %v6428_v0 = vrot.slane %v14501_v30, %v17222_v61 }
 0xf71   : > { %v6162_v21 = vpop.f32.mrf.mxu0 }
 0xf72   : > { %v14505_v62 = vpop.xlane.xlu0 %6270  ;;  %v6163_v49 = vadd.f32 %v6162_v21, %v6076_v9  ;;  %v6429_v40 = vsel %vm1331_vm2, %v6428_v0, %v6424_v18  ;;  %v17366_v21 = vld [vmem:[#allocation15_spill] sm:$0xff]  ;;  %v17370_v0 = vld [vmem:[#allocation44_spill] sm:$0xff] }
 0xf73   : > { %v14509_v36 = vpop.xlane.xlu1 %6231  ;;  %v6433_v14 = vrot.slane %v14505_v62, %v17224_v26  ;;  %v14687_v62 = vld [vmem:[%s17362_s6] sm:$0xff]  ;;  %v17378_v18 = vld [vmem:[#allocation48_spill] sm:$0xff] }
 0xf74   : > { %v6374_v3 = vrot.slane %v14509_v36, %v17222_v61  ;;  %v6370_v36 = vrot.slane %v14499_v60, %v17224_v26 }
 0xf76   : > { %v14522_v42 = vpop.xlane.xlu0 %6234  ;;  %v6375_v60 = vsel %vm1331_vm2, %v6374_v3, %v6370_v36 }
 0xf77   : > { %v14527_v53 = vpop.xlane.xlu1 %6273  ;;  %v6478_v44 = vsel %vm1474_vm6, %v6375_v60, %v6477_v7  ;;  %v17369_v7 = vld [vmem:[#allocation67_spill] sm:$0xff] }
 0xf78   : > { %v6437_v29 = vrot.slane %v14527_v53, %v17222_v61 }
 0xf7a   : > { %v14549_v17 = vpop.xlane.xlu0 %6276 }
 0xf7b   : > { %v14558_v48 = vpop.xlane.xlu1 %6237  ;;  %v6442_v39 = vrot.slane %v14549_v17, %v17224_v26  ;;  %v6081_v17 = vsel %vm1476_vm7, %v14604_v10, %v14598_v25 }
 0xf7c   : > { %v6383_v28 = vrot.slane %v14558_v48, %v17222_v61  ;;  %v6379_v48 = vrot.slane %v14522_v42, %v17224_v26  ;;  %v6082_v36 = vsel %vm1478_vm8, %v14623_v38, %v6081_v17 }
 0xf7e   : > { %v6241_v43 = vpop.xlane.xlu0 %6240  ;;  %v6384_v42 = vsel %vm1331_vm2, %v6383_v28, %v6379_v48 }
 0xf7f   : > { %v14584_v57 = vpop.xlane.xlu1 %6279  ;;  %v6388_v50 = vrot.slane %v6241_v43, %v17224_v26  ;;  %v6479_v15 = vsel %vm1476_vm7, %v6384_v42, %v6478_v44  ;;  %v17367_v42 = vld [vmem:[#allocation47_spill] sm:$0xff]  ;;  %v17374_v44 = vld [vmem:[#allocation18_spill] sm:$0xff] }
 0xf80   : > { %v6446_v30 = vrot.slane %v14584_v57, %v17222_v61  ;;  %v6438_v57 = vsel %vm1331_vm2, %v6437_v29, %v6433_v14  ;;  %v17375_v29 = vld [vmem:[#allocation55_spill] sm:$0xff]  ;;  %v17382_v14 = vld [vmem:[#allocation84_spill] sm:$0xff] }
 0xf82   : > { %v14601_v27 = vpop.xlane.xlu0 %6282  ;;  %v6447_v19 = vsel %vm1331_vm2, %v6446_v30, %v6442_v39  ;;  %v17381_v30 = vld [vmem:[#allocation45_spill] sm:$0xff] }
 0xf83   : > { %v6244_v6 = vpop.xlane.xlu1 %6243  ;;  %v6451_v9 = vrot.slane %v14601_v27, %v17224_v26 }
 0xf84   : > { %v6392_v59 = vrot.slane %v6244_v6, %v17222_v61  ;;  %v6411_v6 = vsel %vm1331_vm2, %v6410_v51, %v6406_v23 }
 0xf85   : > { %v6482_v2 = vsel %vm1468_vm3, %v6420_v24, %v6411_v6  ;;  %v17368_v24 = vld [vmem:[#allocation63_spill] sm:$0xff] }
 0xf86   : > { %v6247_v46 = vpop.xlane.xlu0 %6246  ;;  %v6393_v43 = vsel %vm1331_vm2, %v6392_v59, %v6388_v50  ;;  %v6483_v63 = vsel %vm1470_vm4, %v6429_v40, %v6482_v2  ;;  %v14723_v50 = vld [vmem:[%s17362_s6 + $0x8] sm:$0xff] }
 0xf87   : > { %v6286_v8 = vpop.xlane.xlu1 %6285  ;;  %v6397_v12 = vrot.slane %v6247_v46, %v17224_v26  ;;  %v6480_v4 = vsel %vm1478_vm8, %v6393_v43, %v6479_v15  ;;  %v6069_v46 = vsel %vm1331_vm2, %v6068_v52, %v6064_v22  ;;  %v6484_v59 = vsel %vm1472_vm5, %v6438_v57, %v6483_v63  ;;  %v17371_v43 = vld [vmem:[#allocation37_spill] sm:$0xff]  ;;  %v17380_v15 = vld [vmem:[#allocation10_spill] sm:$0xff] }
 0xf88   : > { %v6455_v53 = vrot.slane %v6286_v8, %v17222_v61  ;;  %v6485_v8 = vsel %vm1474_vm6, %v6447_v19, %v6484_v59  ;;  %v6083_v20 = vsel %vm1480_vm9, %v6069_v46, %v6082_v36 }
 0xf89   : > { %v6168_v38 = vadd.f32 %v14632_v47, %v6083_v20  ;;  %v17365_v47 = vld [vmem:[#allocation53_spill] sm:$0xff]  ;;  %v17386_v20 = vld [vmem:[#allocation11_spill] sm:$0xff] }
 0xf8a   : > { %v6289_v5 = vpop.xlane.xlu0 %6288  ;;  %v6456_v27 = vsel %vm1331_vm2, %v6455_v53, %v6451_v9 }
 0xf8b   : > { %v6250_v32 = vpop.xlane.xlu1 %6249  ;;  %v6460_v1 = vrot.slane %v6289_v5, %v17224_v26  ;;  %v6486_v48 = vsel %vm1476_vm7, %v6456_v27, %v6485_v8  ;;  %v17372_v5 = vld [vmem:[#allocation46_spill] sm:$0xff] }
 0xf8c   : > { %v6401_v41 = vrot.slane %v6250_v32, %v17222_v61  ;;  %v17373_v32 = vld [vmem:[#allocation40_spill] sm:$0xff] }
 0xf8e   : > { %v6402_v34 = vsel %vm1331_vm2, %v6401_v41, %v6397_v12  ;;  %v6295_v28 = vpop.xlane.xlu0 %6294  ;;  %v17376_v12 = vld [vmem:[#allocation75_spill] sm:$0xff]  ;;  %v17377_v41 = vld [vmem:[#allocation20_spill] sm:$0xff] }
 0xf8f   : > { %v6481_v58 = vsel %vm1480_vm9, %v6402_v34, %v6480_v4  ;;  %v6292_v45 = vpop.xlane.xlu1 %6291  ;;  %v6469_v55 = vrot.slane %v6295_v28, %v17224_v26 }
 0xf90   : > { %v6464_v16 = vrot.slane %v6292_v45, %v17222_v61  ;;  %v6491_v3 = vadd.f32 %v6481_v58, %v6163_v49  ;;  %v17379_v49 = vld [vmem:[#allocation42_spill] sm:$0xff] }
 0xf92   : > { %v14703_v56 = vadd.f32 %v6491_v3, %v14687_v62  ;;  %v6465_v25 = vsel %vm1331_vm2, %v6464_v16, %v6460_v1  ;;  %v14770_v4 = vpop.permute.xlu0 %6670 }
 0xf93   : > { %v6298_v10 = vpop.xlane.xlu1 %6297  ;;  %v6487_v35 = vsel %vm1478_vm8, %v6465_v25, %v6486_v48  ;;  %v17387_v48 = vld [vmem:[#allocation49_spill] sm:$0xff] }
 0xf94   : > { %17363 = vst [vmem:[#allocation77_spill] sm:$0xff] %v14703_v56  ;;  %v6473_v52 = vrot.slane %v6298_v10, %v17222_v61  ;;  %v6495_v22 = vsel %vm1898_vm10, %v14703_v56, -inf }
 0xf95   : > { %6496 = vmax.xlane.f32.xlu0 %v6495_v22  ;;  %v17385_v22 = vld [vmem:[#allocation56_spill] sm:$0xff] }
 0xf96   : > { %v6474_v37 = vsel %vm1331_vm2, %v6473_v52, %v6469_v55  ;;  %v14774_v34 = vpop.permute.xlu0 %6674  ;;  %v17383_v55 = vld [vmem:[#allocation73_spill] sm:$0xff]  ;;  %v17384_v52 = vld [vmem:[#allocation50_spill] sm:$0xff] }
 0xf97   : > { %v6488_v60 = vsel %vm1480_vm9, %v6474_v37, %v6487_v35  ;;  %v14772_v53 = vpop.permute.xlu1 %6668  ;;  %v17389_v35 = vld [vmem:[#allocation52_spill] sm:$0xff]  ;;  %v17390_v37 = vld [vmem:[#allocation58_spill] sm:$0xff] }
 0xf98   : > { %v6492_v23 = vadd.f32 %v6488_v60, %v6168_v38  ;;  %v17388_v38 = vld [vmem:[#allocation86_spill] sm:$0xff]  ;;  %v17391_v60 = vld [vmem:[#allocation16_spill] sm:$0xff] }
 0xf9a   : > { %v14726_v31 = vadd.f32 %v6492_v23, %v14723_v50  ;;  %v14778_v40 = vpop.permute.xlu0 %6650  ;;  %v17392_v23 = vld [vmem:[#allocation76_spill] sm:$0xff] }
 0xf9b   : > { %v14776_v6 = vpop.permute.xlu1 %6672 }
 0xf9c   : > { %17364 = vst [vmem:[#allocation43_spill] sm:$0xff] %v14726_v31  ;;  %v6498_v51 = vsel %vm1898_vm10, %v14726_v31, -inf }
 0xf9d   : > { %6499 = vmax.xlane.f32.xlu1 %v6498_v51  ;;  %v17393_v51 = vld [vmem:[#allocation19_spill] sm:$0xff] }
 0xf9e   : > { %v14782_v58 = vpop.permute.xlu0 %6678 }
 0xf9f   : > { %v14780_v39 = vpop.permute.xlu1 %6648 }
 0xfa2   : > { %v14786_v57 = vpop.permute.xlu0 %7145 }
 0xfa3   : > { %v14784_v45 = vpop.permute.xlu1 %6676 }
 0xfa6   : > { %v14790_v16 = vpop.permute.xlu0 %7149 }
 0xfa7   : > { %v14788_v9 = vpop.permute.xlu1 %7143 }
 0xfaa   : > { %v14794_v2 = vpop.permute.xlu0 %6654 }
 0xfab   : > { %6682 = vrot.lane.b32.xlu0 %v13933_v13, %s10700_s20  ;;  %v14792_v3 = vpop.permute.xlu1 %7147 }
 0xfae   : > { %7151 = vrot.lane.b32.xlu1 %v14162_v11, %s10700_s20 }
 0xfaf   : > { %7153 = vrot.lane.b32.xlu0 %v17365_v47, %s10700_s20  ;;  %v14796_v17 = vpop.permute.xlu1 %6652 }
 0xfb2   : > { %7175 = vrot.lane.b32.xlu1 %v17366_v21, %s10700_s20 }
 0xfb3   : > { %7177 = vrot.lane.b32.xlu0 %v17367_v42, %s10700_s20  ;;  %v14799_v46 = vpop.permute.xlu1 %6680 }
 0xfb6   : > { %7179 = vrot.lane.b32.xlu1 %v17368_v24, %s10700_s20 }
 0xfb7   : > { %7181 = vrot.lane.b32.xlu0 %v17369_v7, %s10700_s20 }
 0xfba   : > { %6656 = vrot.lane.b32.xlu1 %v17370_v0, %s10700_s20 }
 0xfbb   : > { %6658 = vrot.lane.b32.xlu0 %v17371_v43, %s10700_s20 }
 0xfbe   : > { %6684 = vrot.lane.b32.xlu1 %v17372_v5, %s10700_s20 }
 0xfbf   : > { %6686 = vrot.lane.b32.xlu0 %v17373_v32, %s10700_s20 }
 0xfc2   : > { %7155 = vrot.lane.b32.xlu1 %v17374_v44, %s10700_s20 }
 0xfc3   : > { %7157 = vrot.lane.b32.xlu0 %v17375_v29, %s10700_s20 }
 0xfc6   : > { %7183 = vrot.lane.b32.xlu1 %v17376_v12, %s10700_s20 }
 0xfc7   : > { %7185 = vrot.lane.b32.xlu0 %v17377_v41, %s10700_s20 }
 0xfca   : > { %6660 = vrot.lane.b32.xlu1 %v17378_v18, %s10700_s20 }
 0xfcb   : > { %6662 = vrot.lane.b32.xlu0 %v17379_v49, %s10700_s20 }
 0xfce   : > { %6688 = vrot.lane.b32.xlu1 %v17380_v15, %s10700_s20 }
 0xfcf   : > { %6690 = vrot.lane.b32.xlu0 %v17381_v30, %s10700_s20 }
 0xfd2   : > { %7159 = vrot.lane.b32.xlu1 %v17382_v14, %s10700_s20 }
0x101e   : > { %v6497_v19 = vpop.xlane.xlu0 %6496 }
0x101f   : > { %v6501_v1 = vsub.f32 %v14703_v56, %v6497_v19  ;;  %v17394_v19 = vld [vmem:[#allocation14_spill] sm:$0xff] }
0x1020   : > { %v17403_v56 = vld [vmem:[#allocation22_spill] sm:$0xff] }
0x1021   : > { %v6503_v28 = vmul.f32 1.442695, %v6501_v1  ;;  %v17395_v1 = vld [vmem:[#allocation88_spill] sm:$0xff] }
0x1023   : > { %10585 = vpow2.f32 %v6503_v28  ;;  %v17396_v28 = vld [vmem:[#allocation59_spill] sm:$0xff] }
0x1026   : > { %v6500_v63 = vpop.xlane.xlu1 %6499 }
0x1027   : > { %v6502_v27 = vsub.f32 %v14726_v31, %v6500_v63  ;;  %v17397_v63 = vld [vmem:[#allocation21_spill] sm:$0xff]  ;;  %v17402_v31 = vld [vmem:[#allocation26_spill] sm:$0xff] }
0x1029   : > { %v6505_v36 = vmul.f32 1.442695, %v6502_v27  ;;  %v17398_v27 = vld [vmem:[#allocation17_spill] sm:$0xff] }
0x102b   : > { %10587 = vpow2.f32 %v6505_v36  ;;  %v17399_v36 = vld [vmem:[#allocation69_spill] sm:$0xff] }
0x1030   : > { %v14802_v59 = vpop.eup %10585 }
0x1031   : > { %v6507_v25 = vsel %vm1898_vm10, %v14802_v59, 0.0 }
0x1032   : > { %6508 = vadd.xlane.f32.xlu0 %v6507_v25  ;;  %v17400_v25 = vld [vmem:[#allocation65_spill] sm:$0xff] }
0x1038   : > { %v14806_v10 = vpop.eup %10587 }
0x1039   : > { %v6510_v8 = vsel %vm1898_vm10, %v14806_v10, 0.0 }
0x103a   : > { %6511 = vadd.xlane.f32.xlu1 %v6510_v8  ;;  %v17401_v8 = vld [vmem:[#allocation68_spill] sm:$0xff] }
0x1048   : > { %7161 = vrot.lane.b32.xlu0 %v17383_v55, %s10700_s20 }
0x104b   : > { %7187 = vrot.lane.b32.xlu1 %v17384_v52, %s10700_s20 }
0x104c   : > { %7189 = vrot.lane.b32.xlu0 %v17385_v22, %s10700_s20 }
0x104f   : > { %6664 = vrot.lane.b32.xlu1 %v17386_v20, %s10700_s20 }
0x1050   : > { %6666 = vrot.lane.b32.xlu0 %v17387_v48, %s10700_s20 }
0x1053   : > { %6692 = vrot.lane.b32.xlu1 %v17388_v38, %s10700_s20 }
0x1054   : > { %6694 = vrot.lane.b32.xlu0 %v17389_v35, %s10700_s20  ;;  %v17408_v35 = vld [vmem:[#allocation13_spill] sm:$0xff] }
0x1057   : > { %7163 = vrot.lane.b32.xlu1 %v17390_v37, %s10700_s20 }
0x1058   : > { %7165 = vrot.lane.b32.xlu0 %v17391_v60, %s10700_s20  ;;  %v17407_v60 = vld [vmem:[#allocation28_spill] sm:$0xff] }
0x1059   : > { %v6744_v37 = vsel %vm1191_vm1, %v17407_v60, 0.0  ;;  %v6786_v60 = vsel %vm1191_vm1, %v14776_v6, 0.0  ;;  %v6753_v6 = vsel %vm1191_vm1, %v14778_v40, 0.0  ;;  %v7242_v40 = vsel %vm1191_vm1, %v14786_v57, 0.0 }
0x105a   : > { %v6759_v57 = vsel %vm1191_vm1, %v14794_v2, 0.0 }
0x105b   : > { %7191 = vrot.lane.b32.xlu1 %v17392_v23, %s10700_s20 }
0x105c   : > { %7193 = vrot.lane.b32.xlu0 %v17393_v51, %s10700_s20 }
0x105f   : > { %6696 = vrot.lane.b32.xlu1 %v17394_v19, %s10700_s20  ;;  %v17406_v19 = vld [vmem:[#allocation60_spill] sm:$0xff] }
0x1060   : > { %6698 = vrot.lane.b32.xlu0 %v17395_v1, %s10700_s20  ;;  %v6732_v51 = vsel %vm1191_vm1, %v17406_v19, 0.0 }
0x1063   : > { %7167 = vrot.lane.b32.xlu1 %v17396_v28, %s10700_s20  ;;  %v17404_v28 = vld [vmem:[#allocation23_spill] sm:$0xff] }
0x1064   : > { %7169 = vrot.lane.b32.xlu0 %v17397_v63, %s10700_s20 }
0x1067   : > { %7195 = vrot.lane.b32.xlu1 %v17398_v27, %s10700_s20  ;;  %v14856_v27 = vpop.permute.xlu0 %6682 }
0x1068   : > { %7197 = vrot.lane.b32.xlu0 %v17399_v36, %s10700_s20 }
0x106b   : > { %7171 = vrot.lane.b32.xlu1 %v17400_v25, %s10700_s20  ;;  %v14858_v36 = vpop.permute.xlu0 %7153  ;;  %v7152_v25 = vpop.permute.xlu1 %7151 }
0x106c   : > { %7173 = vrot.lane.b32.xlu0 %v14391_v33, %s10700_s20 }
0x106f   : > { %7199 = vrot.lane.b32.xlu1 %v17401_v8, %s10700_s20  ;;  %v14860_v63 = vpop.permute.xlu0 %7177  ;;  %v14862_v33 = vpop.permute.xlu1 %7175  ;;  %v6735_v8 = vsel %vm1191_vm1, %v17404_v28, 0.0  ;;  %v6741_v28 = vsel %vm1191_vm1, %v17408_v35, 0.0  ;;  %v6783_v35 = vsel %vm1191_vm1, %v14770_v4, 0.0 }
0x1070   : > { %7201 = vrot.lane.b32.xlu0 %v17402_v31, %s10700_s20 }
0x1073   : > { %7203 = vrot.lane.b32.xlu1 %v17403_v56, %s10700_s20  ;;  %v14866_v1 = vpop.permute.xlu0 %7181  ;;  %v14868_v31 = vpop.permute.xlu1 %7179  ;;  %v17405_v56 = vld [vmem:[#allocation12_spill] sm:$0xff] }
0x1074   : > { %7205 = vrot.lane.b32.xlu0 %v14421_v54, %s10700_s20  ;;  %v6738_v54 = vsel %vm1191_vm1, %v17405_v56, 0.0  ;;  %v6780_v56 = vsel %vm1191_vm1, %v14772_v53, 0.0  ;;  %v6750_v53 = vsel %vm1191_vm1, %v14780_v39, 0.0  ;;  %v7239_v39 = vsel %vm1191_vm1, %v14788_v9, 0.0  ;;  %s17559_s20 = smov 80  }
0x1075   : > { %v7248_v9 = vsel %vm1191_vm1, %v14790_v16, 0.0  ;;  %v7251_v16 = vsel %vm1191_vm1, %v7152_v25, 0.0 }
0x1077   : > { %v14874_v23 = vpop.permute.xlu0 %6658  ;;  %v14880_v38 = vpop.permute.xlu1 %6656 }
0x1093   : > { %6736 = vadd.xlane.f32.xlu0 %v6735_v8  ;;  %v17409_v8 = vld [vmem:[#allocation25_spill] sm:$0xff] }
0x1094   : > { %v6747_v19 = vsel %vm1191_vm1, %v17409_v8, 0.0  ;;  %v6792_v8 = vsel %vm1191_vm1, %v14784_v45, 0.0  ;;  %v7245_v45 = vsel %vm1191_vm1, %v14792_v3, 0.0  ;;  %v6798_v3 = vsel %vm1191_vm1, %v14799_v46, 0.0 }
0x1095   : > { %v7287_v46 = vsel %vm1191_vm1, %v14862_v33, 0.0 }
0x1097   : > { %6739 = vadd.xlane.f32.xlu0 %v6738_v54  ;;  %6733 = vadd.xlane.f32.xlu1 %v6732_v51  ;;  %v14886_v54 = vpop.permute.xlu0 %6686  ;;  %v14888_v51 = vpop.permute.xlu1 %6684 }
0x109b   : > { %6745 = vadd.xlane.f32.xlu0 %v6744_v37  ;;  %6742 = vadd.xlane.f32.xlu1 %v6741_v28  ;;  %v14894_v37 = vpop.permute.xlu0 %7157  ;;  %v6789_v28 = vsel %vm1191_vm1, %v14774_v34, 0.0  ;;  %v6795_v34 = vsel %vm1191_vm1, %v14782_v58, 0.0 }
0x109f   : > { %6781 = vadd.xlane.f32.xlu0 %v6780_v56  ;;  %6748 = vadd.xlane.f32.xlu1 %v6747_v19  ;;  %v7156_v56 = vpop.permute.xlu1 %7155  ;;  %v14904_v4 = vpop.permute.xlu0 %7185 }
0x10a3   : > { %6787 = vadd.xlane.f32.xlu0 %v6786_v60  ;;  %6784 = vadd.xlane.f32.xlu1 %v6783_v35  ;;  %v14906_v19 = vpop.permute.xlu1 %7183  ;;  %v14912_v60 = vpop.permute.xlu0 %6662 }
0x10a7   : > { %6751 = vadd.xlane.f32.xlu0 %v6750_v53  ;;  %6790 = vadd.xlane.f32.xlu1 %v6789_v28  ;;  %v6661_v35 = vpop.permute.xlu1 %6660  ;;  %v6756_v53 = vsel %vm1191_vm1, %v14796_v17, 0.0  ;;  %v14922_v58 = vpop.permute.xlu0 %6690  ;;  %v6801_v17 = vsel %vm1191_vm1, %v14856_v27, 0.0  ;;  %v7293_v27 = vsel %vm1191_vm1, %v14868_v31, 0.0  ;;  %v6804_v31 = vsel %vm1191_vm1, %v14888_v51, 0.0  ;;  %v17411_v51 = vld [vmem:[#allocation85_spill] sm:$0xff] }
0x10ab   : > { %6793 = vadd.xlane.f32.xlu0 %v6792_v8  ;;  %6754 = vadd.xlane.f32.xlu1 %v6753_v6  ;;  %v14924_v28 = vpop.permute.xlu1 %6688 }
0x10af   : > { %7240 = vadd.xlane.f32.xlu0 %v7239_v39  ;;  %6796 = vadd.xlane.f32.xlu1 %v6795_v34  ;;  %v7160_v6 = vpop.permute.xlu1 %7159  ;;  %v7254_v39 = vsel %vm1191_vm1, %v14858_v36, 0.0  ;;  %v7290_v34 = vsel %vm1191_vm1, %v14860_v63, 0.0  ;;  %v6762_v36 = vsel %vm1191_vm1, %v14880_v38, 0.0  ;;  %v6765_v63 = vsel %vm1191_vm1, %v14874_v23, 0.0 }
0x10b0   : > { %v6807_v38 = vsel %vm1191_vm1, %v14886_v54, 0.0  ;;  %v7260_v54 = vsel %vm1191_vm1, %v14894_v37, 0.0 }
0x10b3   : > { %7246 = vadd.xlane.f32.xlu0 %v7245_v45  ;;  %7243 = vadd.xlane.f32.xlu1 %v7242_v40  ;;  %v7296_v45 = vsel %vm1191_vm1, %v14866_v1, 0.0 }
0x10b7   : > { %6757 = vadd.xlane.f32.xlu0 %v6756_v53  ;;  %7249 = vadd.xlane.f32.xlu1 %v7248_v9 }
0x10bb   : > { %v6509_v8 = vpop.xlane.xlu0 %6508  ;;  %6799 = vadd.xlane.f32.xlu0 %v6798_v3  ;;  %6760 = vadd.xlane.f32.xlu1 %v6759_v57  ;;  %v17410_v57 = vld [vmem:[#allocation38_spill] sm:$0xff] }
0x10bc   : > { %10589 = vrcp.f32 %v6509_v8  ;;  %v17412_v8 = vld [vmem:[#allocation30_spill] sm:$0xff] }
0x10bf   : > { %6802 = vadd.xlane.f32.xlu1 %v6801_v17  ;;  %7252 = vadd.xlane.f32.xlu0 %v7251_v16  ;;  %v7162_v40 = vpop.permute.xlu0 %7161  ;;  %v7302_v17 = vsel %vm1191_vm1, %v14904_v4, 0.0  ;;  %v6768_v16 = vsel %vm1191_vm1, %v6661_v35, 0.0  ;;  %v6810_v4 = vsel %vm1191_vm1, %v14924_v28, 0.0 }
0x10c3   : > { %7255 = vadd.xlane.f32.xlu1 %v7254_v39  ;;  %7288 = vadd.xlane.f32.xlu0 %v7287_v46  ;;  %v6512_v2 = vpop.xlane.xlu1 %6511  ;;  %v7190_v3 = vpop.permute.xlu0 %7189  ;;  %v10629_v39 = vld [vmem:[%s16602_s15] sm:$0xff]  ;;  %v6771_v46 = vsel %vm1191_vm1, %v14912_v60, 0.0 }
0x10c4   : > { %10591 = vrcp.f32 %v6512_v2  ;;  %v7308_v28 = vsel %vm1191_vm1, %v7190_v3, 0.0 }
0x10c7   : > { %7291 = vadd.xlane.f32.xlu1 %v7290_v34  ;;  %7294 = vadd.xlane.f32.xlu0 %v7293_v27  ;;  %v7188_v53 = vpop.permute.xlu1 %7187  ;;  %v6813_v34 = vsel %vm1191_vm1, %v14922_v58, 0.0  ;;  %v7263_v27 = vsel %vm1191_vm1, %v7160_v6, 0.0 }
0x10c9   : > { %v10590_v25 = vpop.eup %10589 }
0x10ca   : > { %v6515_v33 = vmul.f32 %v10590_v25, %v14802_v59  ;;  %v7257_v59 = vsel %vm1191_vm1, %v7156_v56, 0.0  ;;  %v6667_v56 = vpop.permute.xlu0 %6666 }
0x10cb   : > { %7297 = vadd.xlane.f32.xlu1 %v7296_v45  ;;  %6763 = vadd.xlane.f32.xlu0 %v6762_v36  ;;  %v6665_v23 = vpop.permute.xlu1 %6664  ;;  %v7266_v45 = vsel %vm1191_vm1, %v7162_v40, 0.0  ;;  %v7305_v36 = vsel %vm1191_vm1, %v7188_v53, 0.0  ;;  %v6777_v6 = vsel %vm1191_vm1, %v6667_v56, 0.0 }
0x10cc   : > { %10427 = vmatprep.mubr.msk.f32.mxu1 %vm1898_vm10, %v6515_v33  ;;  %v6774_v33 = vsel %vm1191_vm1, %v6665_v23, 0.0 }
0x10ce   : > { %v6695_v2 = vpop.permute.xlu0 %6694 }
0x10cf   : > { %6766 = vadd.xlane.f32.xlu1 %v6765_v63  ;;  %6805 = vadd.xlane.f32.xlu0 %v6804_v31  ;;  %v6693_v37 = vpop.permute.xlu1 %6692  ;;  %v6819_v53 = vsel %vm1191_vm1, %v6695_v2, 0.0 }
0x10d0   : > { %v6816_v31 = vsel %vm1191_vm1, %v6693_v37, 0.0 }
0x10d1   : > { %v10592_v1 = vpop.eup %10591 }
0x10d2   : > { %v6516_v9 = vmul.f32 %v10592_v1, %v14806_v10  ;;  %v7299_v10 = vsel %vm1191_vm1, %v14906_v19, 0.0  ;;  %v17413_v19 = vld [vmem:[#allocation78_spill] sm:$0xff]  ;;  %v7166_v25 = vpop.permute.xlu0 %7165 }
0x10d3   : > { %6808 = vadd.xlane.f32.xlu1 %v6807_v38  ;;  %7258 = vadd.xlane.f32.xlu0 %v7257_v59  ;;  %v7164_v35 = vpop.permute.xlu1 %7163  ;;  %v7272_v59 = vsel %vm1191_vm1, %v7166_v25, 0.0 }
0x10d4   : > { %10428 = vmatmul.mubr.msk.f32.vlgmr.msra.gmra.mxu1 %vm1898_vm10, %v6516_v9  ;;  %v7269_v1 = vsel %vm1191_vm1, %v7164_v35, 0.0 }
0x10d5   : > { %10431 = vmatpush3.xpose.msk.msra.mxu1 %vm1191_vm1, %v17410_v57  ;;  %10434 = vmatprep.mubr.msk.f32.mxu1 %vm1191_vm1, %v17411_v51 }
0x10d6   : > { %10432 = vmatprep.subr.msk.mxu1 %vm1191_vm1, %v17412_v8  ;;  %v7194_v63 = vpop.permute.xlu0 %7193 }
0x10d7   : > { %7261 = vadd.xlane.f32.xlu1 %v7260_v54  ;;  %7300 = vadd.xlane.f32.xlu0 %v7299_v10  ;;  %v7192_v60 = vpop.permute.xlu1 %7191  ;;  %v7314_v57 = vsel %vm1191_vm1, %v7194_v63, 0.0 }
0x10d8   : > { %v7311_v9 = vsel %vm1191_vm1, %v7192_v60, 0.0 }
0x10d9   : > { %10433 = vmatpush3.xpose.msk.msra.mxu1 %vm1191_vm1, %v17412_v8 }
0x10da   : > { %10449 = vmatprep.subr.mxu1 %v10629_v39  ;;  %v6699_v40 = vpop.permute.xlu0 %6698 }
0x10db   : > { %7303 = vadd.xlane.f32.xlu1 %v7302_v17  ;;  %6769 = vadd.xlane.f32.xlu0 %v6768_v16  ;;  %v6697_v58 = vpop.permute.xlu1 %6696  ;;  %v6825_v54 = vsel %vm1191_vm1, %v6699_v40, 0.0 }
0x10dc   : > { %10435 = vmatmul.mubr.msk.f32.vlgmr.msra.gmra.mxu1 %vm1191_vm1, %v17413_v19  ;;  %v6822_v51 = vsel %vm1191_vm1, %v6697_v58, 0.0  ;;  %v17415_v58 = vld [vmem:[#allocation87_spill] sm:$0xff] }
0x10dd   : > { %10450 = vmatpush3.msra.mxu1 %v10629_v39 }
0x10de   : > { %v7170_v3 = vpop.permute.xlu0 %7169 }
0x10df   : > { %6772 = vadd.xlane.f32.xlu1 %v6771_v46  ;;  %6811 = vadd.xlane.f32.xlu0 %v6810_v4  ;;  %v7168_v38 = vpop.permute.xlu1 %7167  ;;  %v7278_v17 = vsel %vm1191_vm1, %v7170_v3, 0.0 }
0x10e0   : > { %v7275_v10 = vsel %vm1191_vm1, %v7168_v38, 0.0  ;;  %v17418_v38 = vld [vmem:[#allocation80_spill] sm:$0xff] }
0x10e2   : > { %v7198_v8 = vpop.permute.xlu0 %7197 }
0x10e3   : > { %6814 = vadd.xlane.f32.xlu1 %v6813_v34  ;;  %7264 = vadd.xlane.f32.xlu0 %v7263_v27  ;;  %v7196_v23 = vpop.permute.xlu1 %7195  ;;  %v7320_v19 = vsel %vm1191_vm1, %v7198_v8, 0.0 }
0x10e4   : > { %v7317_v16 = vsel %vm1191_vm1, %v7196_v23, 0.0  ;;  %v17420_v23 = vld [vmem:[#allocation27_spill] sm:$0xff] }
0x10e6   : > { %v7174_v39 = vpop.permute.xlu0 %7173 }
0x10e7   : > { %7267 = vadd.xlane.f32.xlu1 %v7266_v45  ;;  %7306 = vadd.xlane.f32.xlu0 %v7305_v36  ;;  %v7172_v56 = vpop.permute.xlu1 %7171  ;;  %v7284_v2 = vsel %vm1191_vm1, %v7174_v39, 0.0 }
0x10e8   : > { %v7281_v46 = vsel %vm1191_vm1, %v7172_v56, 0.0  ;;  %v17423_v56 = vld [vmem:[#allocation32_spill] sm:$0xff] }
0x10ea   : > { %v7202_v4 = vpop.permute.xlu0 %7201 }
0x10eb   : > { %7309 = vadd.xlane.f32.xlu1 %v7308_v28  ;;  %6775 = vadd.xlane.f32.xlu0 %v6774_v33  ;;  %v7200_v37 = vpop.permute.xlu1 %7199  ;;  %v7326_v27 = vsel %vm1191_vm1, %v7202_v4, 0.0 }
0x10ec   : > { %v7323_v35 = vsel %vm1191_vm1, %v7200_v37, 0.0  ;;  %v17425_v37 = vld [vmem:[#allocation34_spill] sm:$0xff] }
0x10ee   : > { %v7206_v45 = vpop.permute.xlu0 %7205 }
0x10ef   : > { %6778 = vadd.xlane.f32.xlu1 %v6777_v6  ;;  %6817 = vadd.xlane.f32.xlu0 %v6816_v31  ;;  %v7204_v34 = vpop.permute.xlu1 %7203  ;;  %v7332_v36 = vsel %vm1191_vm1, %v7206_v45, 0.0  ;;  %v17416_v31 = vld [vmem:[#allocation61_spill] sm:$0xff] }
0x10f0   : > { %v7329_v25 = vsel %vm1191_vm1, %v7204_v34, 0.0 }
0x10f3   : > { %6820 = vadd.xlane.f32.xlu1 %v6819_v53  ;;  %7270 = vadd.xlane.f32.xlu0 %v7269_v1 }
0x10f7   : > { %7273 = vadd.xlane.f32.xlu1 %v7272_v59  ;;  %7312 = vadd.xlane.f32.xlu0 %v7311_v9  ;;  %v17419_v9 = vld [vmem:[#allocation70_spill] sm:$0xff] }
0x10fb   : > { %7315 = vadd.xlane.f32.xlu1 %v7314_v57  ;;  %6823 = vadd.xlane.f32.xlu0 %v6822_v51  ;;  %v17421_v51 = vld [vmem:[#allocation72_spill] sm:$0xff] }
0x10ff   : > { %6826 = vadd.xlane.f32.xlu1 %v6825_v54  ;;  %7276 = vadd.xlane.f32.xlu0 %v7275_v10  ;;  %v17422_v54 = vld [vmem:[#allocation29_spill] sm:$0xff] }
0x1103   : > { %7279 = vadd.xlane.f32.xlu1 %v7278_v17  ;;  %7318 = vadd.xlane.f32.xlu0 %v7317_v16  ;;  %v17424_v16 = vld [vmem:[#allocation81_spill] sm:$0xff] }
0x1107   : > { %7321 = vadd.xlane.f32.xlu1 %v7320_v19  ;;  %7282 = vadd.xlane.f32.xlu0 %v7281_v46 }
0x110b   : > { %7285 = vadd.xlane.f32.xlu1 %v7284_v2  ;;  %7324 = vadd.xlane.f32.xlu0 %v7323_v35 }
0x110f   : > { %7327 = vadd.xlane.f32.xlu1 %v7326_v27  ;;  %7330 = vadd.xlane.f32.xlu0 %v7329_v25 }
0x1113   : > { %7333 = vadd.xlane.f32.xlu1 %v7332_v36 }
0x111c   : > { %v15006_v60 = vpop.xlane.xlu0 %6736 }
0x111d   : > { %v6875_v0 = vrot.slane %v15006_v60, %v17222_v61 }
0x1120   : > { %v15008_v28 = vpop.xlane.xlu0 %6739  ;;  %v15010_v33 = vpop.xlane.xlu1 %6733 }
0x1121   : > { %v6880_v5 = vrot.slane %v15008_v28, %v17224_v26  ;;  %v6871_v43 = vrot.slane %v15010_v33, %v17224_v26 }
0x1124   : > { %v15012_v63 = vpop.xlane.xlu0 %6745  ;;  %7555 = vrot.lane.b32.xlu1 %v17415_v58, %s17414_s27  ;;  %v6743_v6 = vpop.xlane.xlu1 %6742 }
0x1125   : > { %7557 = vrot.lane.b32.xlu0 %v17416_v31, %s17414_s27  ;;  %v6884_v29 = vrot.slane %v6743_v6, %v17222_v61  ;;  %v6876_v6 = vsel %vm1331_vm2, %v6875_v0, %v6871_v43  ;;  %v6889_v21 = vrot.slane %v15012_v63, %v17224_v26 }
0x1127   : > { %v6885_v7 = vsel %vm1331_vm2, %v6884_v29, %v6880_v5 }
0x1128   : > { %v15018_v40 = vpop.xlane.xlu0 %6781  ;;  %8002 = vrot.lane.b32.xlu1 %v17416_v31, %s17417_s29  ;;  %v15022_v53 = vpop.xlane.xlu1 %6748  ;;  %v7012_v47 = vsel %vm1468_vm3, %v6885_v7, %v6876_v6 }
0x1129   : > { %8000 = vrot.lane.b32.xlu0 %v17415_v58, %s17417_s29  ;;  %v6893_v28 = vrot.slane %v15022_v53, %v17222_v61  ;;  %v6943_v5 = vrot.slane %v15018_v40, %v17224_v26 }
0x112c   : > { %v15026_v1 = vpop.xlane.xlu0 %6787  ;;  %7996 = vrot.lane.b32.xlu1 %v17418_v38, %s17417_s29  ;;  %v15030_v59 = vpop.xlane.xlu1 %6784 }
0x112d   : > { %7998 = vrot.lane.b32.xlu0 %v17419_v9, %s17417_s29  ;;  %v6952_v63 = vrot.slane %v15026_v1, %v17224_v26  ;;  %v6947_v53 = vrot.slane %v15030_v59, %v17222_v61  ;;  %v6894_v59 = vsel %vm1331_vm2, %v6893_v28, %v6889_v21 }
0x112f   : > { %v6948_v28 = vsel %vm1331_vm2, %v6947_v53, %v6943_v5 }
0x1130   : > { %v15034_v3 = vpop.xlane.xlu0 %6751  ;;  %7804 = vrot.lane.b32.xlu1 %v17420_v23, %s17417_s29  ;;  %v15038_v57 = vpop.xlane.xlu1 %6790 }
0x1131   : > { %7806 = vrot.lane.b32.xlu0 %v17421_v51, %s17417_s29  ;;  %v6956_v33 = vrot.slane %v15038_v57, %v17222_v61 }
0x1133   : > { %v6957_v6 = vsel %vm1331_vm2, %v6956_v33, %v6952_v63 }
0x1134   : > { %v15042_v8 = vpop.xlane.xlu0 %6793  ;;  %7808 = vrot.lane.b32.xlu1 %v17422_v54, %s17417_s29  ;;  %v15046_v10 = vpop.xlane.xlu1 %6754 }
0x1135   : > { %7810 = vrot.lane.b32.xlu0 %v17423_v56, %s17417_s29  ;;  %v6902_v29 = vrot.slane %v15046_v10, %v17222_v61  ;;  %v6898_v10 = vrot.slane %v15034_v3, %v17224_v26 }
0x1137   : > { %v6903_v3 = vsel %vm1331_vm2, %v6902_v29, %v6898_v10  ;;  %v7013_v29 = vsel %vm1470_vm4, %v6894_v59, %v7012_v47 }
0x1138   : > { %v15050_v17 = vpop.xlane.xlu0 %7240  ;;  %7812 = vrot.lane.b32.xlu1 %v17424_v16, %s17417_s29  ;;  %v15054_v39 = vpop.xlane.xlu1 %6796 }
0x1139   : > { %7814 = vrot.lane.b32.xlu0 %v17425_v37, %s17417_s29  ;;  %v6965_v0 = vrot.slane %v15054_v39, %v17222_v61  ;;  %v6961_v39 = vrot.slane %v15042_v8, %v17224_v26  ;;  %v7370_v8 = vrot.slane %v15050_v17, %v17224_v26  ;;  %v7019_v17 = vsel %vm1468_vm3, %v6957_v6, %v6948_v28 }
0x113c   : > { %v15058_v19 = vpop.xlane.xlu0 %7246  ;;  %v15060_v46 = vpop.xlane.xlu1 %7243 }
0x113d   : > { %v7374_v1 = vrot.slane %v15060_v46, %v17222_v61 }
0x1140   : > { %v15062_v4 = vpop.xlane.xlu0 %6757  ;;  %v15064_v2 = vpop.xlane.xlu1 %7249 }
0x1141   : > { %v7383_v43 = vrot.slane %v15064_v2, %v17222_v61  ;;  %v7379_v2 = vrot.slane %v15058_v19, %v17224_v26  ;;  %v6966_v19 = vsel %vm1331_vm2, %v6965_v0, %v6961_v39  ;;  %v7375_v0 = vsel %vm1331_vm2, %v7374_v1, %v7370_v8 }
0x1142   : > { %v7020_v63 = vsel %vm1470_vm4, %v6966_v19, %v7019_v17 }
0x1143   : > { %v7384_v11 = vsel %vm1331_vm2, %v7383_v43, %v7379_v2  ;;  %v7014_v43 = vsel %vm1472_vm5, %v6903_v3, %v7013_v29 }
0x1144   : > { %v15066_v35 = vpop.xlane.xlu0 %6799  ;;  %v15068_v34 = vpop.xlane.xlu1 %6760  ;;  %v7511_v10 = vsel %vm1468_vm3, %v7384_v11, %v7375_v0 }
0x1145   : > { %v6911_v40 = vrot.slane %v15068_v34, %v17222_v61  ;;  %v6907_v34 = vrot.slane %v15062_v4, %v17224_v26 }
0x1147   : > { %v6912_v4 = vsel %vm1331_vm2, %v6911_v40, %v6907_v34 }
0x1148   : > { %v15070_v27 = vpop.xlane.xlu0 %7252  ;;  %v15072_v25 = vpop.xlane.xlu1 %6802  ;;  %v7015_v39 = vsel %vm1474_vm6, %v6912_v4, %v7014_v43 }
0x1149   : > { %v6974_v57 = vrot.slane %v15072_v25, %v17222_v61  ;;  %v6970_v25 = vrot.slane %v15066_v35, %v17224_v26  ;;  %v7388_v5 = vrot.slane %v15070_v27, %v17224_v26 }
0x114b   : > { %v6975_v33 = vsel %vm1331_vm2, %v6974_v57, %v6970_v25 }
0x114c   : > { %v15074_v45 = vpop.xlane.xlu0 %7288  ;;  %v15076_v36 = vpop.xlane.xlu1 %7255  ;;  %v7021_v53 = vsel %vm1472_vm5, %v6975_v33, %v7020_v63 }
0x114d   : > { %v7392_v35 = vrot.slane %v15076_v36, %v17222_v61  ;;  %v7442_v11 = vrot.slane %v15074_v45, %v17224_v26 }
0x114f   : > { %v7393_v2 = vsel %vm1331_vm2, %v7392_v35, %v7388_v5 }
0x1150   : > { %v15078_v37 = vpop.xlane.xlu0 %7294  ;;  %v15080_v56 = vpop.xlane.xlu1 %7291  ;;  %v7512_v8 = vsel %vm1470_vm4, %v7393_v2, %v7511_v10 }
0x1151   : > { %v7451_v27 = vrot.slane %v15078_v37, %v17224_v26 }
0x1154   : > { %v15082_v16 = vpop.xlane.xlu0 %6763  ;;  %v15084_v23 = vpop.xlane.xlu1 %7297 }
0x1155   : > { %v7455_v36 = vrot.slane %v15084_v23, %v17222_v61  ;;  %v6916_v1 = vrot.slane %v15082_v16, %v17224_v26 }
0x1157   : > { %v7456_v16 = vsel %vm1331_vm2, %v7455_v36, %v7451_v27 }
0x1158   : > { %v15086_v54 = vpop.xlane.xlu0 %6805  ;;  %v15088_v9 = vpop.xlane.xlu1 %6766 }
0x1159   : > { %v6920_v47 = vrot.slane %v15088_v9, %v17222_v61  ;;  %v7446_v9 = vrot.slane %v15080_v56, %v17222_v61  ;;  %v6979_v6 = vrot.slane %v15086_v54, %v17224_v26 }
0x115b   : > { %v6921_v34 = vsel %vm1331_vm2, %v6920_v47, %v6916_v1 }
0x115c   : > { %v15090_v51 = vpop.xlane.xlu0 %7258  ;;  %v15092_v31 = vpop.xlane.xlu1 %6808  ;;  %v7016_v0 = vsel %vm1476_vm7, %v6921_v34, %v7015_v39 }
0x115d   : > { %v6983_v23 = vrot.slane %v15092_v31, %v17222_v61 }
0x1160   : > { %v15094_v38 = vpop.xlane.xlu0 %7300  ;;  %v15096_v58 = vpop.xlane.xlu1 %7261 }
0x1161   : > { %v7401_v59 = vrot.slane %v15096_v58, %v17222_v61  ;;  %v7397_v58 = vrot.slane %v15090_v51, %v17224_v26  ;;  %v7447_v51 = vsel %vm1331_vm2, %v7446_v9, %v7442_v11 }
0x1162   : > { %v7518_v33 = vsel %vm1468_vm3, %v7456_v16, %v7447_v51 }
0x1164   : > { %v15098_v48 = vpop.xlane.xlu0 %6769  ;;  %v15100_v20 = vpop.xlane.xlu1 %7303 }
0x1165   : > { %v7464_v45 = vrot.slane %v15100_v20, %v17222_v61  ;;  %v7460_v20 = vrot.slane %v15094_v38, %v17224_v26  ;;  %v7402_v38 = vsel %vm1331_vm2, %v7401_v59, %v7397_v58 }
0x1166   : > { %v7513_v43 = vsel %vm1472_vm5, %v7402_v38, %v7512_v8 }
0x1167   : > { %v7465_v19 = vsel %vm1331_vm2, %v7464_v45, %v7460_v20 }
0x1168   : > { %v15102_v22 = vpop.xlane.xlu0 %6811  ;;  %v15104_v52 = vpop.xlane.xlu1 %6772  ;;  %v7519_v63 = vsel %vm1470_vm4, %v7465_v19, %v7518_v33 }
0x1169   : > { %v6929_v37 = vrot.slane %v15104_v52, %v17222_v61  ;;  %v6984_v52 = vsel %vm1331_vm2, %v6983_v23, %v6979_v6 }
0x116a   : > { %v7022_v17 = vsel %vm1474_vm6, %v6984_v52, %v7021_v53 }
0x116c   : > { %v15106_v55 = vpop.xlane.xlu0 %7264  ;;  %v15108_v14 = vpop.xlane.xlu1 %6814 }
0x116d   : > { %v6992_v31 = vrot.slane %v15108_v14, %v17222_v61  ;;  %v6925_v14 = vrot.slane %v15098_v48, %v17224_v26  ;;  %v7406_v3 = vrot.slane %v15106_v55, %v17224_v26 }
0x1170   : > { %v15110_v30 = vpop.xlane.xlu0 %7306  ;;  %v15112_v15 = vpop.xlane.xlu1 %7267 }
0x1171   : > { %v7410_v56 = vrot.slane %v15112_v15, %v17222_v61  ;;  %v6988_v15 = vrot.slane %v15102_v22, %v17224_v26  ;;  %v6930_v22 = vsel %vm1331_vm2, %v6929_v37, %v6925_v14 }
0x1172   : > { %v7017_v39 = vsel %vm1478_vm8, %v6930_v22, %v7016_v0 }
0x1173   : > { %v6993_v28 = vsel %vm1331_vm2, %v6992_v31, %v6988_v15  ;;  %v7411_v4 = vsel %vm1331_vm2, %v7410_v56, %v7406_v3 }
0x1174   : > { %v15114_v49 = vpop.xlane.xlu0 %6775  ;;  %v15116_v18 = vpop.xlane.xlu1 %7309  ;;  %v7514_v36 = vsel %vm1474_vm6, %v7411_v4, %v7513_v43  ;;  %v7023_v53 = vsel %vm1476_vm7, %v6993_v28, %v7022_v17 }
0x1175   : > { %v7473_v48 = vrot.slane %v15116_v18, %v17222_v61  ;;  %v7469_v18 = vrot.slane %v15110_v30, %v17224_v26 }
0x1177   : > { %v7474_v11 = vsel %vm1331_vm2, %v7473_v48, %v7469_v18 }
0x1178   : > { %v15118_v41 = vpop.xlane.xlu0 %6817  ;;  %v15120_v12 = vpop.xlane.xlu1 %6778  ;;  %v7520_v16 = vsel %vm1472_vm5, %v7474_v11, %v7519_v63  ;;  %v17434_v11 = vld [vmem:[#allocation79_spill] sm:$0xff] }
0x1179   : > { %v6938_v55 = vrot.slane %v15120_v12, %v17222_v61  ;;  %v6934_v12 = vrot.slane %v15114_v49, %v17224_v26  ;;  %v6997_v2 = vrot.slane %v15118_v41, %v17224_v26 }
0x117b   : > { %v6939_v41 = vsel %vm1331_vm2, %v6938_v55, %v6934_v12  ;;  %v17430_v12 = vld [vmem:[#allocation31_spill] sm:$0xff] }
0x117c   : > { %v15123_v44 = vpop.xlane.xlu0 %7270  ;;  %v15125_v32 = vpop.xlane.xlu1 %6820  ;;  %v7018_v14 = vsel %vm1480_vm9, %v6939_v41, %v7017_v39  ;;  %v17433_v39 = vld [vmem:[#allocation36_spill] sm:$0xff]  ;;  %v17442_v41 = vld [vmem:[#allocation41_spill] sm:$0xff] }
0x117d   : > { %v7001_v10 = vrot.slane %v15125_v32, %v17222_v61 }
0x1180   : > { %v15134_v24 = vpop.xlane.xlu0 %7312  ;;  %v15136_v42 = vpop.xlane.xlu1 %7273 }
0x1181   : > { %v7419_v30 = vrot.slane %v15136_v42, %v17222_v61  ;;  %v7415_v42 = vrot.slane %v15123_v44, %v17224_v26 }
0x1183   : > { %v7420_v44 = vsel %vm1331_vm2, %v7419_v30, %v7415_v42  ;;  %v17436_v30 = vld [vmem:[#allocation51_spill] sm:$0xff]  ;;  %v17443_v42 = vld [vmem:[#allocation64_spill] sm:$0xff] }
0x1184   : > { %v15154_v60 = vpop.xlane.xlu0 %6823  ;;  %v15156_v7 = vpop.xlane.xlu1 %7315  ;;  %v7515_v38 = vsel %vm1476_vm7, %v7420_v44, %v7514_v36 }
0x1185   : > { %v7482_v32 = vrot.slane %v15156_v7, %v17222_v61  ;;  %v7478_v7 = vrot.slane %v15134_v24, %v17224_v26 }
0x1187   : > { %v7483_v24 = vsel %vm1331_vm2, %v7482_v32, %v7478_v7  ;;  %v17437_v32 = vld [vmem:[#allocation62_spill] sm:$0xff]  ;;  %v17444_v7 = vld [vmem:[#allocation53_spill] sm:$0xff] }
0x1188   : > { %v15185_v46 = vpop.xlane.xlu0 %7276  ;;  %v15187_v21 = vpop.xlane.xlu1 %6826  ;;  %v7521_v15 = vsel %vm1474_vm6, %v7483_v24, %v7520_v16 }
0x1189   : > { %v7010_v49 = vrot.slane %v15187_v21, %v17222_v61  ;;  %v7002_v21 = vsel %vm1331_vm2, %v7001_v10, %v6997_v2  ;;  %v7424_v45 = vrot.slane %v15185_v46, %v17224_v26  ;;  %v15336_v10 = vld [vmem:[%s16602_s15 + $0x8] sm:$0xff] }
0x118a   : > { %v17435_v2 = vld [vmem:[#allocation39_spill] sm:$0xff] }
0x118c   : > { %v15207_v40 = vpop.xlane.xlu0 %7318  ;;  %v15209_v57 = vpop.xlane.xlu1 %7279 }
0x118d   : > { %v7428_v27 = vrot.slane %v15209_v57, %v17222_v61  ;;  %v7006_v57 = vrot.slane %v15154_v60, %v17224_v26  ;;  %v7487_v6 = vrot.slane %v15207_v40, %v17224_v26 }
0x118f   : > { %v7429_v60 = vsel %vm1331_vm2, %v7428_v27, %v7424_v45  ;;  %v7011_v34 = vsel %vm1331_vm2, %v7010_v49, %v7006_v57  ;;  %v17438_v49 = vld [vmem:[#allocation54_spill] sm:$0xff] }
0x1190   : > { %v15241_v54 = vpop.xlane.xlu0 %7282  ;;  %v7322_v25 = vpop.xlane.xlu1 %7321  ;;  %v7516_v48 = vsel %vm1478_vm8, %v7429_v60, %v7515_v38  ;;  %v17439_v27 = vld [vmem:[#allocation66_spill] sm:$0xff] }
0x1191   : > { %v7491_v23 = vrot.slane %v7322_v25, %v17222_v61  ;;  %v7433_v31 = vrot.slane %v15241_v54, %v17224_v26  ;;  %v7024_v25 = vsel %vm1478_vm8, %v7002_v21, %v7023_v53  ;;  %v17432_v53 = vld [vmem:[#allocation33_spill] sm:$0xff]  ;;  %v17454_v38 = vld [vmem:[#allocation46_spill] sm:$0xff] }
0x1192   : > { %v7025_v28 = vsel %vm1480_vm9, %v7011_v34, %v7024_v25 }
0x1193   : > { %v7492_v46 = vsel %vm1331_vm2, %v7491_v23, %v7487_v6  ;;  %v17440_v23 = vld [vmem:[#allocation35_spill] sm:$0xff] }
0x1194   : > { %v10429_v35 = vpop.f32.mrf.mxu1  ;;  %v7325_v29 = vpop.xlane.xlu0 %7324  ;;  %v7522_v19 = vsel %vm1476_vm7, %v7492_v46, %v7521_v15  ;;  %v17450_v15 = vld [vmem:[#allocation63_spill] sm:$0xff] }
0x1195   : > { %v7286_v5 = vpop.xlane.xlu1 %7285  ;;  %v7496_v56 = vrot.slane %v7325_v29, %v17224_v26 }
0x1196   : > { %v6595_v47 = vpop.f32.mrf.mxu1  ;;  %v7437_v1 = vrot.slane %v7286_v5, %v17222_v61 }
0x1197   : > { %10451 = vmatprep.mubr.msk.f32.mxu1 %vm1191_vm1, %v6595_v47  ;;  %v17431_v47 = vld [vmem:[#allocation74_spill] sm:$0xff] }
0x1198   : > { %10452 = vmatmul.mubr.msk.f32.vlgmr.msra.gmra.mxu1 %vm1191_vm1, %v10429_v35  ;;  %v7331_v9 = vpop.xlane.xlu0 %7330  ;;  %v7438_v54 = vsel %vm1331_vm2, %v7437_v1, %v7433_v31  ;;  %v17445_v1 = vld [vmem:[#allocation15_spill] sm:$0xff] }
0x1199   : > { %v7328_v59 = vpop.xlane.xlu1 %7327  ;;  %v7505_v3 = vrot.slane %v7331_v9, %v17224_v26  ;;  %v7517_v35 = vsel %vm1480_vm9, %v7438_v54, %v7516_v48  ;;  %v17441_v9 = vld [vmem:[#allocation82_spill] sm:$0xff]  ;;  %v17458_v48 = vld [vmem:[#allocation75_spill] sm:$0xff]  ;;  %v17480_v26 = vld [vmem:[#allocation17_spill] sm:$0xff] }
0x119a   : > { %v7500_v37 = vrot.slane %v7328_v59, %v17222_v61  ;;  %v17446_v59 = vld [vmem:[#allocation47_spill] sm:$0xff] }
0x119c   : > { %v10436_v40 = vpop.f32.mrf.mxu1  ;;  %v7558_v58 = vpop.permute.xlu0 %7557  ;;  %v7501_v20 = vsel %vm1331_vm2, %v7500_v37, %v7496_v56 }
0x119d   : > { %v7334_v52 = vpop.xlane.xlu1 %7333  ;;  %10437 = vmatprep.subr.mxu0 %v7558_v58  ;;  %v7523_v22 = vsel %vm1478_vm8, %v7501_v20, %v7522_v19  ;;  %v7108_v33 = vadd.f32 %v10436_v40, %v7025_v28  ;;  %v17455_v19 = vld [vmem:[#allocation40_spill] sm:$0xff]  ;;  %v17456_v28 = vld [vmem:[#allocation18_spill] sm:$0xff] }
0x119e   : > { %v7509_v8 = vrot.slane %v7334_v52, %v17222_v61  ;;  %v7102_v51 = vpop.f32.mrf.mxu1  ;;  %10438 = vmatpush3.msra.mxu0 %v7558_v58  ;;  %v17479_v61 = vld [vmem:[#allocation21_spill] sm:$0xff] }
0x119f   : > { %v7103_v4 = vadd.f32 %v7102_v51, %v7018_v14  ;;  %v17453_v51 = vld [vmem:[#allocation37_spill] sm:$0xff] }
0x11a0   : > { %v7510_v55 = vsel %vm1331_vm2, %v7509_v8, %v7505_v3  ;;  %v15383_v21 = vpop.permute.xlu0 %8000  ;;  %v17451_v3 = vld [vmem:[#allocation67_spill] sm:$0xff]  ;;  %v17452_v8 = vld [vmem:[#allocation44_spill] sm:$0xff] }
0x11a1   : > { %v7524_v29 = vsel %vm1480_vm9, %v7510_v55, %v7523_v22  ;;  %v7527_v17 = vadd.f32 %v7517_v35, %v7103_v4  ;;  %v7556_v0 = vpop.permute.xlu1 %7555  ;;  %17447 = vst [vmem:[#allocation60_spill] sm:$0xff] %v15383_v21  ;;  %v17457_v4 = vld [vmem:[#allocation55_spill] sm:$0xff]  ;;  %v17459_v22 = vld [vmem:[#allocation20_spill] sm:$0xff]  ;;  %v17461_v55 = vld [vmem:[#allocation42_spill] sm:$0xff] }
0x11a2   : > { %10439 = vmatprep.subr.mxu0 %v7556_v0  ;;  %v7528_v43 = vadd.f32 %v7524_v29, %v7108_v33  ;;  %v17460_v33 = vld [vmem:[#allocation48_spill] sm:$0xff]  ;;  %v17462_v35 = vld [vmem:[#allocation10_spill] sm:$0xff]  ;;  %v17463_v29 = vld [vmem:[#allocation45_spill] sm:$0xff] }
0x11a3   : > { %v15328_v63 = vadd.f32 %v7527_v17, %v14687_v62  ;;  %10440 = vmatpush3.msra.mxu0 %v7556_v0  ;;  %v17428_v62 = vld [vmem:[#allocation71_spill] sm:$0xff]  ;;  %v17464_v17 = vld [vmem:[#allocation84_spill] sm:$0xff]  ;;  %v17465_v0 = vld [vmem:[#allocation73_spill] sm:$0xff] }
0x11a4   : > { %v15331_v18 = vadd.f32 %v7528_v43, %v14723_v50  ;;  %10444 = vmatprep.subr.mxu0 %v15336_v10  ;;  %v17429_v50 = vld [vmem:[#allocation83_spill] sm:$0xff]  ;;  %v15387_v45 = vpop.permute.xlu0 %7998  ;;  %v17466_v43 = vld [vmem:[#allocation50_spill] sm:$0xff] }
0x11a5   : > { %17426 = vst [vmem:[#allocation23_spill] sm:$0xff] %v15328_v63  ;;  %v7533_v5 = vsel %vm1898_vm10, %v15328_v63, -inf  ;;  %v15385_v57 = vpop.permute.xlu1 %8002  ;;  %17448 = vst [vmem:[#allocation28_spill] sm:$0xff] %v15387_v45 }
0x11a6   : > { %17427 = vst [vmem:[#allocation12_spill] sm:$0xff] %v15331_v18  ;;  %7534 = vmax.xlane.f32.xlu0 %v7533_v5  ;;  %v7536_v36 = vsel %vm1898_vm10, %v15331_v18, -inf  ;;  %v17467_v5 = vld [vmem:[#allocation56_spill] sm:$0xff] }
0x11a7   : > { %7537 = vmax.xlane.f32.xlu1 %v7536_v36  ;;  %v17468_v36 = vld [vmem:[#allocation11_spill] sm:$0xff] }
0x11a8   : > { %v15391_v37 = vpop.permute.xlu0 %7806 }
0x11a9   : > { %v15389_v6 = vpop.permute.xlu1 %7996 }
0x11aa   : > { %17449 = vst [vmem:[#allocation13_spill] sm:$0xff] %v15389_v6 }
0x11ac   : > { %v15395_v24 = vpop.permute.xlu0 %7810 }
0x11ad   : > { %v15393_v44 = vpop.permute.xlu1 %7804 }
0x11b0   : > { %v15399_v56 = vpop.permute.xlu0 %7814 }
0x11b1   : > { %v15397_v31 = vpop.permute.xlu1 %7808 }
0x11b2   : > { %v7906_v21 = vsel %vm1191_vm1, %v15397_v31, 0.0 }
0x11b5   : > { %v15401_v16 = vpop.permute.xlu1 %7812 }
0x11b8   : > { %7836 = vrot.lane.b32.xlu1 %v17428_v62, %s17417_s29 }
0x11bc   : > { %7838 = vrot.lane.b32.xlu0 %v17429_v50, %s17417_s29  ;;  %7840 = vrot.lane.b32.xlu1 %v17430_v12, %s17417_s29 }
0x11c0   : > { %7842 = vrot.lane.b32.xlu0 %v17431_v47, %s17417_s29  ;;  %7816 = vrot.lane.b32.xlu1 %v17432_v53, %s17417_s29 }
0x11c4   : > { %7818 = vrot.lane.b32.xlu0 %v17433_v39, %s17417_s29  ;;  %7844 = vrot.lane.b32.xlu1 %v17434_v11, %s17417_s29 }
0x11c8   : > { %7846 = vrot.lane.b32.xlu0 %v17435_v2, %s17417_s29  ;;  %8279 = vrot.lane.b32.xlu1 %v17436_v30, %s17417_s29 }
0x11cc   : > { %8281 = vrot.lane.b32.xlu0 %v17437_v32, %s17417_s29  ;;  %8283 = vrot.lane.b32.xlu1 %v17438_v49, %s17417_s29 }
0x11d0   : > { %8285 = vrot.lane.b32.xlu0 %v17439_v27, %s17417_s29  ;;  %7820 = vrot.lane.b32.xlu1 %v17440_v23, %s17417_s29 }
0x11d4   : > { %7822 = vrot.lane.b32.xlu0 %v17441_v9, %s17417_s29  ;;  %7848 = vrot.lane.b32.xlu1 %v17442_v41, %s17417_s29 }
0x11d8   : > { %7850 = vrot.lane.b32.xlu0 %v13933_v13, %s17417_s29  ;;  %8287 = vrot.lane.b32.xlu1 %v17443_v42, %s17417_s29 }
0x11dc   : > { %8289 = vrot.lane.b32.xlu0 %v17444_v7, %s17417_s29  ;;  %8311 = vrot.lane.b32.xlu1 %v17445_v1, %s17417_s29 }
0x11e0   : > { %8313 = vrot.lane.b32.xlu0 %v17446_v59, %s17417_s29 }
0x122f   : > { %v7535_v60 = vpop.xlane.xlu0 %7534 }
0x1230   : > { %v7539_v46 = vsub.f32 %v15328_v63, %v7535_v60  ;;  %v7538_v34 = vpop.xlane.xlu1 %7537  ;;  %v17469_v60 = vld [vmem:[#allocation49_spill] sm:$0xff]  ;;  %v17478_v63 = vld [vmem:[#allocation59_spill] sm:$0xff] }
0x1231   : > { %v7540_v40 = vsub.f32 %v15331_v18, %v7538_v34  ;;  %v17471_v34 = vld [vmem:[#allocation52_spill] sm:$0xff] }
0x1232   : > { %v7541_v58 = vmul.f32 1.442695, %v7539_v46  ;;  %v17470_v46 = vld [vmem:[#allocation86_spill] sm:$0xff]  ;;  %v17477_v18 = vld [vmem:[#allocation88_spill] sm:$0xff] }
0x1233   : > { %v7543_v20 = vmul.f32 1.442695, %v7540_v40  ;;  %v17472_v40 = vld [vmem:[#allocation58_spill] sm:$0xff] }
0x1234   : > { %10593 = vpow2.f32 %v7541_v58  ;;  %v17473_v58 = vld [vmem:[#allocation16_spill] sm:$0xff] }
0x1235   : > { %10595 = vpow2.f32 %v7543_v20  ;;  %v17474_v20 = vld [vmem:[#allocation76_spill] sm:$0xff] }
0x1241   : > { %v15405_v25 = vpop.eup %10593 }
0x1242   : > { %v15407_v52 = vpop.eup %10595  ;;  %v7545_v14 = vsel %vm1898_vm10, %v15405_v25, 0.0 }
0x1243   : > { %7546 = vadd.xlane.f32.xlu0 %v7545_v14  ;;  %v7548_v54 = vsel %vm1898_vm10, %v15407_v52, 0.0  ;;  %v17475_v14 = vld [vmem:[#allocation19_spill] sm:$0xff] }
0x1244   : > { %7549 = vadd.xlane.f32.xlu1 %v7548_v54  ;;  %v17476_v54 = vld [vmem:[#allocation14_spill] sm:$0xff] }
0x1255   : > { %8315 = vrot.lane.b32.xlu1 %v17450_v15, %s17417_s29 }
0x1259   : > { %8317 = vrot.lane.b32.xlu0 %v17451_v3, %s17417_s29  ;;  %7824 = vrot.lane.b32.xlu1 %v17452_v8, %s17417_s29 }
0x125d   : > { %7826 = vrot.lane.b32.xlu0 %v17453_v51, %s17417_s29  ;;  %7852 = vrot.lane.b32.xlu1 %v17454_v38, %s17417_s29 }
0x1261   : > { %7854 = vrot.lane.b32.xlu0 %v17455_v19, %s17417_s29  ;;  %8291 = vrot.lane.b32.xlu1 %v17456_v28, %s17417_s29 }
0x1265   : > { %8293 = vrot.lane.b32.xlu0 %v17457_v4, %s17417_s29  ;;  %8319 = vrot.lane.b32.xlu1 %v17458_v48, %s17417_s29 }
0x1269   : > { %8321 = vrot.lane.b32.xlu0 %v17459_v22, %s17417_s29  ;;  %7828 = vrot.lane.b32.xlu1 %v17460_v33, %s17417_s29 }
0x126d   : > { %7830 = vrot.lane.b32.xlu0 %v17461_v55, %s17417_s29  ;;  %7856 = vrot.lane.b32.xlu1 %v17462_v35, %s17417_s29  ;;  %v7909_v35 = vsel %vm1191_vm1, %v15395_v24, 0.0 }
0x1271   : > { %7858 = vrot.lane.b32.xlu0 %v17463_v29, %s17417_s29  ;;  %8295 = vrot.lane.b32.xlu1 %v17464_v17, %s17417_s29 }
0x1275   : > { %8297 = vrot.lane.b32.xlu0 %v17465_v0, %s17417_s29  ;;  %8323 = vrot.lane.b32.xlu1 %v17466_v43, %s17417_s29 }
0x1279   : > { %8325 = vrot.lane.b32.xlu0 %v17467_v5, %s17417_s29  ;;  %7832 = vrot.lane.b32.xlu1 %v17468_v36, %s17417_s29 }
0x127d   : > { %7834 = vrot.lane.b32.xlu0 %v17469_v60, %s17417_s29  ;;  %7860 = vrot.lane.b32.xlu1 %v17470_v46, %s17417_s29 }
0x1281   : > { %7862 = vrot.lane.b32.xlu0 %v17471_v34, %s17417_s29  ;;  %8299 = vrot.lane.b32.xlu1 %v17472_v40, %s17417_s29  ;;  %v17481_v40 = vld [vmem:[#allocation69_spill] sm:$0xff] }
0x1285   : > { %8301 = vrot.lane.b32.xlu0 %v17473_v58, %s17417_s29  ;;  %8327 = vrot.lane.b32.xlu1 %v17474_v20, %s17417_s29  ;;  %v7839_v58 = vpop.permute.xlu0 %7838  ;;  %v7837_v20 = vpop.permute.xlu1 %7836 }
0x1286   : > { %v7948_v55 = vsel %vm1191_vm1, %v7837_v20, 0.0 }
0x1289   : > { %8329 = vrot.lane.b32.xlu0 %v17475_v14, %s17417_s29  ;;  %7864 = vrot.lane.b32.xlu1 %v17476_v54, %s17417_s29  ;;  %v17482_v14 = vld [vmem:[#allocation65_spill] sm:$0xff]  ;;  %v7843_v54 = vpop.permute.xlu0 %7842  ;;  %v7841_v34 = vpop.permute.xlu1 %7840 }
0x128a   : > { %v7954_v31 = vsel %vm1191_vm1, %v7841_v34, 0.0 }
0x128d   : > { %7866 = vrot.lane.b32.xlu0 %v17477_v18, %s17417_s29  ;;  %8303 = vrot.lane.b32.xlu1 %v17478_v63, %s17417_s29  ;;  %v17483_v18 = vld [vmem:[#allocation24_spill] sm:$0xff]  ;;  %v7819_v46 = vpop.permute.xlu0 %7818  ;;  %v7817_v60 = vpop.permute.xlu1 %7816 }
0x128e   : > { %v17484_v63 = vld [vmem:[#allocation68_spill] sm:$0xff] }
0x1291   : > { %8305 = vrot.lane.b32.xlu0 %v17479_v61, %s17417_s29  ;;  %8331 = vrot.lane.b32.xlu1 %v17480_v26, %s17417_s29  ;;  %v17485_v61 = vld [vmem:[#allocation26_spill] sm:$0xff]  ;;  %v7845_v36 = vpop.permute.xlu1 %7844 }
0x1292   : > { %v17486_v26 = vld [vmem:[#allocation22_spill] sm:$0xff] }
0x1295   : > { %8333 = vrot.lane.b32.xlu0 %v17481_v40, %s17417_s29  ;;  %8307 = vrot.lane.b32.xlu1 %v17482_v14, %s17417_s29  ;;  %v17487_v40 = vld [vmem:[#allocation57_spill] sm:$0xff]  ;;  %v7847_v14 = vpop.permute.xlu0 %7846  ;;  %v8280_v43 = vpop.permute.xlu1 %8279 }
0x1296   : > { %v7963_v20 = vsel %vm1191_vm1, %v7847_v14, 0.0 }
0x1299   : > { %8309 = vrot.lane.b32.xlu0 %v17483_v18, %s17417_s29  ;;  %8335 = vrot.lane.b32.xlu1 %v17484_v63, %s17417_s29  ;;  %v8282_v5 = vpop.permute.xlu0 %8281  ;;  %v8284_v18 = vpop.permute.xlu1 %8283 }
0x129d   : > { %8337 = vrot.lane.b32.xlu0 %v17485_v61, %s17417_s29  ;;  %8339 = vrot.lane.b32.xlu1 %v17486_v26, %s17417_s29  ;;  %v15489_v0 = vpop.permute.xlu0 %8285  ;;  %v15493_v63 = vpop.permute.xlu1 %7820  ;;  %v7903_v26 = vsel %vm1191_vm1, %v15391_v37, 0.0  ;;  %v7912_v37 = vsel %vm1191_vm1, %v15401_v16, 0.0 }
0x12a1   : > { %8341 = vrot.lane.b32.xlu0 %v17487_v40, %s17417_s29  ;;  %v15491_v45 = vpop.permute.xlu0 %7822  ;;  %v15497_v17 = vpop.permute.xlu1 %7848  ;;  %v7900_v40 = vsel %vm1191_vm1, %v15393_v44, 0.0  ;;  %v7915_v44 = vsel %vm1191_vm1, %v15399_v56, 0.0  ;;  %s17622_s29 = smov 72  }
0x12a5   : > { %v15495_v61 = vpop.permute.xlu0 %7850  ;;  %v15505_v6 = vpop.permute.xlu1 %8287 }
0x12a9   : > { %v15503_v29 = vpop.permute.xlu0 %8289 }
0x12c0   : > { %7904 = vadd.xlane.f32.xlu0 %v7903_v26  ;;  %v15513_v26 = vpop.permute.xlu0 %8313 }
0x12c1   : > { %7901 = vadd.xlane.f32.xlu1 %v7900_v40  ;;  %v8312_v40 = vpop.permute.xlu1 %8311 }
0x12c4   : > { %7907 = vadd.xlane.f32.xlu0 %v7906_v21  ;;  %v7951_v21 = vsel %vm1191_vm1, %v7839_v58, 0.0 }
0x12c5   : > { %7910 = vadd.xlane.f32.xlu1 %v7909_v35  ;;  %v7957_v35 = vsel %vm1191_vm1, %v7843_v54, 0.0 }
0x12c8   : > { %7913 = vadd.xlane.f32.xlu0 %v7912_v37  ;;  %v7918_v37 = vsel %vm1191_vm1, %v7817_v60, 0.0 }
0x12c9   : > { %7916 = vadd.xlane.f32.xlu1 %v7915_v44 }
0x12cc   : > { %v7547_v33 = vpop.xlane.xlu0 %7546  ;;  %7949 = vadd.xlane.f32.xlu0 %v7948_v55  ;;  %v7921_v55 = vsel %vm1191_vm1, %v7819_v46, 0.0 }
0x12cd   : > { %10597 = vrcp.f32 %v7547_v33  ;;  %7952 = vadd.xlane.f32.xlu1 %v7951_v21  ;;  %v7550_v24 = vpop.xlane.xlu1 %7549  ;;  %v7960_v33 = vsel %vm1191_vm1, %v7845_v36, 0.0 }
0x12ce   : > { %10599 = vrcp.f32 %v7550_v24 }
0x12d0   : > { %v8318_v16 = vpop.permute.xlu0 %8317  ;;  %7955 = vadd.xlane.f32.xlu0 %v7954_v31  ;;  %v8375_v31 = vsel %vm1191_vm1, %v8280_v43, 0.0 }
0x12d1   : > { %7958 = vadd.xlane.f32.xlu1 %v7957_v35  ;;  %v8316_v56 = vpop.permute.xlu1 %8315  ;;  %v8378_v35 = vsel %vm1191_vm1, %v8282_v5, 0.0  ;;  %v7927_v5 = vsel %vm1191_vm1, %v15491_v45, 0.0  ;;  %v8423_v45 = vsel %vm1191_vm1, %v8312_v40, 0.0 }
0x12d4   : > { %v7827_v44 = vpop.permute.xlu0 %7826  ;;  %7919 = vadd.xlane.f32.xlu0 %v7918_v37  ;;  %v8381_v37 = vsel %vm1191_vm1, %v8284_v18, 0.0  ;;  %v7966_v18 = vsel %vm1191_vm1, %v15497_v17, 0.0  ;;  %v8426_v17 = vsel %vm1191_vm1, %v15513_v26, 0.0 }
0x12d5   : > { %7922 = vadd.xlane.f32.xlu1 %v7921_v55  ;;  %v7825_v58 = vpop.permute.xlu1 %7824  ;;  %v7933_v40 = vsel %vm1191_vm1, %v7827_v44, 0.0 }
0x12d8   : > { %7961 = vadd.xlane.f32.xlu0 %v7960_v33  ;;  %v7855_v34 = vpop.permute.xlu0 %7854 }
0x12d9   : > { %7964 = vadd.xlane.f32.xlu1 %v7963_v20  ;;  %v7853_v21 = vpop.permute.xlu1 %7852  ;;  %v8390_v20 = vsel %vm1191_vm1, %v15503_v29, 0.0  ;;  %v7930_v29 = vsel %vm1191_vm1, %v7825_v58, 0.0  ;;  %v7975_v26 = vsel %vm1191_vm1, %v7855_v34, 0.0 }
0x12da   : > { %v10598_v24 = vpop.eup %10597 }
0x12db   : > { %v10600_v54 = vpop.eup %10599  ;;  %v7553_v60 = vmul.f32 %v10598_v24, %v15405_v25  ;;  %v8384_v25 = vsel %vm1191_vm1, %v15489_v0, 0.0 }
0x12dc   : > { %8376 = vadd.xlane.f32.xlu0 %v8375_v31  ;;  %v7554_v46 = vmul.f32 %v10600_v54, %v15407_v52  ;;  %v8294_v14 = vpop.permute.xlu0 %8293  ;;  %v7924_v52 = vsel %vm1191_vm1, %v15493_v63, 0.0  ;;  %v8387_v63 = vsel %vm1191_vm1, %v15505_v6, 0.0  ;;  %v8432_v31 = vsel %vm1191_vm1, %v8318_v16, 0.0 }
0x12dd   : > { %10441 = vmatprep.mubr.msk.f32.mxu0 %vm1898_vm10, %v7553_v60  ;;  %8379 = vadd.xlane.f32.xlu1 %v8378_v35  ;;  %v8292_v36 = vpop.permute.xlu1 %8291  ;;  %v7972_v35 = vsel %vm1191_vm1, %v7853_v21, 0.0  ;;  %v8396_v16 = vsel %vm1191_vm1, %v8294_v14, 0.0 }
0x12de   : > { %10442 = vmatmul.mubr.msk.f32.vlgmr.msra.gmra.mxu0 %vm1898_vm10, %v7554_v46 }
0x12df   : > { %10445 = vmatpush3.msra.mxu0 %v15336_v10  ;;  %v7969_v10 = vsel %vm1191_vm1, %v15495_v61, 0.0  ;;  %v8429_v61 = vsel %vm1191_vm1, %v8316_v56, 0.0  ;;  %v8393_v56 = vsel %vm1191_vm1, %v8292_v36, 0.0 }
0x12e0   : > { %10454 = vmatprep.subr.msk.mxu0 %vm1191_vm1, %v15385_v57  ;;  %8382 = vadd.xlane.f32.xlu0 %v8381_v37  ;;  %v8322_v55 = vpop.permute.xlu0 %8321 }
0x12e1   : > { %8385 = vadd.xlane.f32.xlu1 %v8384_v25  ;;  %v8320_v43 = vpop.permute.xlu1 %8319  ;;  %v8438_v44 = vsel %vm1191_vm1, %v8322_v55, 0.0 }
0x12e4   : > { %7925 = vadd.xlane.f32.xlu0 %v7924_v52  ;;  %v7831_v33 = vpop.permute.xlu0 %7830  ;;  %v8435_v52 = vsel %vm1191_vm1, %v8320_v43, 0.0 }
0x12e5   : > { %7928 = vadd.xlane.f32.xlu1 %v7927_v5  ;;  %v7829_v0 = vpop.permute.xlu1 %7828  ;;  %v7939_v34 = vsel %vm1191_vm1, %v7831_v33, 0.0 }
0x12e6   : > { %v7936_v21 = vsel %vm1191_vm1, %v7829_v0, 0.0 }
0x12e8   : > { %7967 = vadd.xlane.f32.xlu0 %v7966_v18  ;;  %v7859_v54 = vpop.permute.xlu0 %7858 }
0x12e9   : > { %7970 = vadd.xlane.f32.xlu1 %v7969_v10  ;;  %v7857_v24 = vpop.permute.xlu1 %7856  ;;  %v7981_v14 = vsel %vm1191_vm1, %v7859_v54, 0.0 }
0x12ea   : > { %v7978_v36 = vsel %vm1191_vm1, %v7857_v24, 0.0 }
0x12ec   : > { %8388 = vadd.xlane.f32.xlu0 %v8387_v63  ;;  %v8298_v60 = vpop.permute.xlu0 %8297 }
0x12ed   : > { %8391 = vadd.xlane.f32.xlu1 %v8390_v20  ;;  %v8296_v6 = vpop.permute.xlu1 %8295  ;;  %v8402_v55 = vsel %vm1191_vm1, %v8298_v60, 0.0 }
0x12ee   : > { %v8399_v63 = vsel %vm1191_vm1, %v8296_v6, 0.0 }
0x12f0   : > { %8424 = vadd.xlane.f32.xlu0 %v8423_v45  ;;  %v8326_v37 = vpop.permute.xlu0 %8325 }
0x12f1   : > { %8427 = vadd.xlane.f32.xlu1 %v8426_v17  ;;  %v8324_v46 = vpop.permute.xlu1 %8323  ;;  %v8444_v33 = vsel %vm1191_vm1, %v8326_v37, 0.0 }
0x12f2   : > { %v8441_v0 = vsel %vm1191_vm1, %v8324_v46, 0.0 }
0x12f4   : > { %8430 = vadd.xlane.f32.xlu0 %v8429_v61  ;;  %v7835_v58 = vpop.permute.xlu0 %7834 }
0x12f5   : > { %8433 = vadd.xlane.f32.xlu1 %v8432_v31  ;;  %v7833_v25 = vpop.permute.xlu1 %7832  ;;  %v7945_v17 = vsel %vm1191_vm1, %v7835_v58, 0.0 }
0x12f6   : > { %v7942_v24 = vsel %vm1191_vm1, %v7833_v25, 0.0 }
0x12f8   : > { %7931 = vadd.xlane.f32.xlu0 %v7930_v29  ;;  %v7863_v18 = vpop.permute.xlu0 %7862 }
0x12f9   : > { %7934 = vadd.xlane.f32.xlu1 %v7933_v40  ;;  %v7861_v5 = vpop.permute.xlu1 %7860  ;;  %v7987_v6 = vsel %vm1191_vm1, %v7863_v18, 0.0 }
0x12fa   : > { %v7984_v31 = vsel %vm1191_vm1, %v7861_v5, 0.0 }
0x12fc   : > { %7973 = vadd.xlane.f32.xlu0 %v7972_v35  ;;  %v8302_v43 = vpop.permute.xlu0 %8301 }
0x12fd   : > { %7976 = vadd.xlane.f32.xlu1 %v7975_v26  ;;  %v8300_v10 = vpop.permute.xlu1 %8299  ;;  %v8408_v40 = vsel %vm1191_vm1, %v8302_v43, 0.0 }
0x12fe   : > { %v8405_v60 = vsel %vm1191_vm1, %v8300_v10, 0.0 }
0x1300   : > { %8394 = vadd.xlane.f32.xlu0 %v8393_v56  ;;  %v8330_v45 = vpop.permute.xlu0 %8329 }
0x1301   : > { %8397 = vadd.xlane.f32.xlu1 %v8396_v16  ;;  %v8328_v20 = vpop.permute.xlu1 %8327  ;;  %v8450_v26 = vsel %vm1191_vm1, %v8330_v45, 0.0 }
0x1302   : > { %v8447_v46 = vsel %vm1191_vm1, %v8328_v20, 0.0 }
0x1304   : > { %8436 = vadd.xlane.f32.xlu0 %v8435_v52  ;;  %v7867_v61 = vpop.permute.xlu0 %7866 }
0x1305   : > { %8439 = vadd.xlane.f32.xlu1 %v8438_v44  ;;  %v7865_v54 = vpop.permute.xlu1 %7864  ;;  %v7993_v25 = vsel %vm1191_vm1, %v7867_v61, 0.0 }
0x1306   : > { %v7990_v16 = vsel %vm1191_vm1, %v7865_v54, 0.0  ;;  %v17489_v54 = vld [vmem:[#allocation87_spill] sm:$0xff] }
0x1308   : > { %7937 = vadd.xlane.f32.xlu0 %v7936_v21  ;;  %v8306_v35 = vpop.permute.xlu0 %8305 }
0x1309   : > { %7940 = vadd.xlane.f32.xlu1 %v7939_v34  ;;  %v8304_v29 = vpop.permute.xlu1 %8303  ;;  %v8414_v44 = vsel %vm1191_vm1, %v8306_v35, 0.0  ;;  %v17492_v35 = vld [vmem:[#allocation72_spill] sm:$0xff] }
0x130a   : > { %v8411_v58 = vsel %vm1191_vm1, %v8304_v29, 0.0 }
0x130c   : > { %7979 = vadd.xlane.f32.xlu0 %v7978_v36  ;;  %v8334_v56 = vpop.permute.xlu0 %8333 }
0x130d   : > { %7982 = vadd.xlane.f32.xlu1 %v7981_v14  ;;  %v8332_v37 = vpop.permute.xlu1 %8331  ;;  %v8456_v34 = vsel %vm1191_vm1, %v8334_v56, 0.0  ;;  %v17494_v56 = vld [vmem:[#allocation29_spill] sm:$0xff] }
0x130e   : > { %v8453_v5 = vsel %vm1191_vm1, %v8332_v37, 0.0 }
0x1310   : > { %8400 = vadd.xlane.f32.xlu0 %v8399_v63  ;;  %v8310_v21 = vpop.permute.xlu0 %8309 }
0x1311   : > { %8403 = vadd.xlane.f32.xlu1 %v8402_v55  ;;  %v8308_v52 = vpop.permute.xlu1 %8307  ;;  %v8420_v10 = vsel %vm1191_vm1, %v8310_v21, 0.0 }
0x1312   : > { %v8417_v14 = vsel %vm1191_vm1, %v8308_v52, 0.0  ;;  %v17496_v52 = vld [vmem:[#allocation81_spill] sm:$0xff] }
0x1314   : > { %8442 = vadd.xlane.f32.xlu0 %v8441_v0  ;;  %v8338_v36 = vpop.permute.xlu0 %8337 }
0x1315   : > { %8445 = vadd.xlane.f32.xlu1 %v8444_v33  ;;  %v8336_v18 = vpop.permute.xlu1 %8335  ;;  %v8462_v55 = vsel %vm1191_vm1, %v8338_v36, 0.0 }
0x1316   : > { %v8459_v43 = vsel %vm1191_vm1, %v8336_v18, 0.0 }
0x1318   : > { %7943 = vadd.xlane.f32.xlu0 %v7942_v24  ;;  %v8342_v0 = vpop.permute.xlu0 %8341 }
0x1319   : > { %7946 = vadd.xlane.f32.xlu1 %v7945_v17  ;;  %v8340_v63 = vpop.permute.xlu1 %8339  ;;  %v8468_v33 = vsel %vm1191_vm1, %v8342_v0, 0.0 }
0x131a   : > { %v8465_v20 = vsel %vm1191_vm1, %v8340_v63, 0.0 }
0x131c   : > { %7985 = vadd.xlane.f32.xlu0 %v7984_v31 }
0x131d   : > { %7988 = vadd.xlane.f32.xlu1 %v7987_v6  ;;  %v17490_v6 = vld [vmem:[#allocation80_spill] sm:$0xff] }
0x1320   : > { %8406 = vadd.xlane.f32.xlu0 %v8405_v60  ;;  %v17491_v60 = vld [vmem:[#allocation61_spill] sm:$0xff] }
0x1321   : > { %8409 = vadd.xlane.f32.xlu1 %v8408_v40 }
0x1324   : > { %8448 = vadd.xlane.f32.xlu0 %v8447_v46  ;;  %v17493_v46 = vld [vmem:[#allocation70_spill] sm:$0xff] }
0x1325   : > { %8451 = vadd.xlane.f32.xlu1 %v8450_v26 }
0x1328   : > { %7991 = vadd.xlane.f32.xlu0 %v7990_v16  ;;  %v17495_v16 = vld [vmem:[#allocation27_spill] sm:$0xff] }
0x1329   : > { %7994 = vadd.xlane.f32.xlu1 %v7993_v25 }
0x132c   : > { %8412 = vadd.xlane.f32.xlu0 %v8411_v58 }
0x132d   : > { %8415 = vadd.xlane.f32.xlu1 %v8414_v44  ;;  %v17497_v44 = vld [vmem:[#allocation32_spill] sm:$0xff] }
0x1330   : > { %8454 = vadd.xlane.f32.xlu0 %v8453_v5 }
0x1331   : > { %8457 = vadd.xlane.f32.xlu1 %v8456_v34  ;;  %v17498_v34 = vld [vmem:[#allocation34_spill] sm:$0xff] }
0x1334   : > { %8418 = vadd.xlane.f32.xlu0 %v8417_v14 }
0x1335   : > { %8421 = vadd.xlane.f32.xlu1 %v8420_v10 }
0x1338   : > { %8460 = vadd.xlane.f32.xlu0 %v8459_v43 }
0x1339   : > { %8463 = vadd.xlane.f32.xlu1 %v8462_v55 }
0x133c   : > { %8466 = vadd.xlane.f32.xlu0 %v8465_v20  ;;  %v17510_v20 = vld [vmem:[#allocation60_spill] sm:$0xff] }
0x133d   : > { %8469 = vadd.xlane.f32.xlu1 %v8468_v33  ;;  %v17511_v33 = vld [vmem:[#allocation13_spill] sm:$0xff] }
0x1349   : > { %v15590_v45 = vpop.xlane.xlu0 %7904 }
0x134a   : > { %v15592_v24 = vpop.xlane.xlu1 %7901 }
0x134d   : > { %v15594_v17 = vpop.xlane.xlu0 %7907 }
0x134e   : > { %9057 = vrot.lane.b32.xlu1 %v17489_v54, %s17488_s26  ;;  %v15598_v61 = vpop.xlane.xlu1 %7910  ;;  %v17536_v54 = vld [vmem:[#allocation76_spill] sm:$0xff] }
0x1351   : > { %v15600_v31 = vpop.xlane.xlu0 %7913 }
0x1352   : > { %9053 = vrot.lane.b32.xlu1 %v17490_v6, %s17488_s26  ;;  %9059 = vrot.lane.b32.xlu0 %v17491_v60, %s17488_s26  ;;  %v15606_v29 = vpop.xlane.xlu1 %7916 }
0x1355   : > { %v15608_v40 = vpop.xlane.xlu0 %7949 }
0x1356   : > { %8863 = vrot.lane.b32.xlu1 %v17492_v35, %s17488_s26  ;;  %9055 = vrot.lane.b32.xlu0 %v17493_v46, %s17488_s26  ;;  %v15614_v26 = vpop.xlane.xlu1 %7952  ;;  %v17513_v35 = vld [vmem:[#allocation45_spill] sm:$0xff] }
0x1359   : > { %v15616_v37 = vpop.xlane.xlu0 %7955 }
0x135a   : > { %8865 = vrot.lane.b32.xlu1 %v17494_v56, %s17488_s26  ;;  %8861 = vrot.lane.b32.xlu0 %v17495_v16, %s17488_s26  ;;  %v15622_v25 = vpop.xlane.xlu1 %7958  ;;  %v17517_v16 = vld [vmem:[#allocation28_spill] sm:$0xff] }
0x135d   : > { %v15624_v58 = vpop.xlane.xlu0 %7919 }
0x135e   : > { %8869 = vrot.lane.b32.xlu1 %v17496_v52, %s17488_s26  ;;  %8867 = vrot.lane.b32.xlu0 %v17497_v44, %s17488_s26  ;;  %v15630_v21 = vpop.xlane.xlu1 %7922  ;;  %v17518_v52 = vld [vmem:[#allocation73_spill] sm:$0xff] }
0x1361   : > { %v15632_v5 = vpop.xlane.xlu0 %7961 }
0x1362   : > { %8893 = vrot.lane.b32.xlu1 %v17428_v62, %s17488_s26  ;;  %8871 = vrot.lane.b32.xlu0 %v17498_v34, %s17488_s26  ;;  %v15638_v18 = vpop.xlane.xlu1 %7964  ;;  %v17520_v34 = vld [vmem:[#allocation50_spill] sm:$0xff] }
0x1365   : > { %v15640_v36 = vpop.xlane.xlu0 %8376 }
0x1366   : > { %8897 = vrot.lane.b32.xlu1 %v17430_v12, %s17488_s26  ;;  %8895 = vrot.lane.b32.xlu0 %v17429_v50, %s17488_s26  ;;  %v15646_v14 = vpop.xlane.xlu1 %8379 }
0x1369   : > { %v15648_v10 = vpop.xlane.xlu0 %8382 }
0x136a   : > { %8873 = vrot.lane.b32.xlu1 %v17432_v53, %s17488_s26  ;;  %8899 = vrot.lane.b32.xlu0 %v17431_v47, %s17488_s26  ;;  %v15654_v62 = vpop.xlane.xlu1 %8385 }
0x136d   : > { %v15656_v43 = vpop.xlane.xlu0 %7925 }
0x136e   : > { %8901 = vrot.lane.b32.xlu1 %v17434_v11, %s17488_s26  ;;  %8875 = vrot.lane.b32.xlu0 %v17433_v39, %s17488_s26  ;;  %v15662_v50 = vpop.xlane.xlu1 %7928 }
0x1371   : > { %v15664_v12 = vpop.xlane.xlu0 %7967 }
0x1372   : > { %9336 = vrot.lane.b32.xlu1 %v17436_v30, %s17488_s26  ;;  %8903 = vrot.lane.b32.xlu0 %v17435_v2, %s17488_s26  ;;  %v15670_v47 = vpop.xlane.xlu1 %7970 }
0x1375   : > { %v15672_v53 = vpop.xlane.xlu0 %8388 }
0x1376   : > { %9340 = vrot.lane.b32.xlu1 %v17438_v49, %s17488_s26  ;;  %9338 = vrot.lane.b32.xlu0 %v17437_v32, %s17488_s26  ;;  %v15678_v39 = vpop.xlane.xlu1 %8391 }
0x1379   : > { %v15680_v11 = vpop.xlane.xlu0 %8424 }
0x137a   : > { %8877 = vrot.lane.b32.xlu1 %v17440_v23, %s17488_s26  ;;  %9342 = vrot.lane.b32.xlu0 %v17439_v27, %s17488_s26  ;;  %v15686_v2 = vpop.xlane.xlu1 %8427 }
0x137d   : > { %v15688_v30 = vpop.xlane.xlu0 %8430 }
0x137e   : > { %8905 = vrot.lane.b32.xlu1 %v17442_v41, %s17488_s26  ;;  %8879 = vrot.lane.b32.xlu0 %v17441_v9, %s17488_s26  ;;  %v15694_v32 = vpop.xlane.xlu1 %8433 }
0x1381   : > { %v15696_v49 = vpop.xlane.xlu0 %7931 }
0x1382   : > { %9344 = vrot.lane.b32.xlu1 %v17443_v42, %s17488_s26  ;;  %8907 = vrot.lane.b32.xlu0 %v13933_v13, %s17488_s26  ;;  %v15702_v27 = vpop.xlane.xlu1 %7934 }
0x1385   : > { %v15704_v23 = vpop.xlane.xlu0 %7973 }
0x1386   : > { %9368 = vrot.lane.b32.xlu1 %v17445_v1, %s17488_s26  ;;  %9346 = vrot.lane.b32.xlu0 %v17444_v7, %s17488_s26  ;;  %v15710_v9 = vpop.xlane.xlu1 %7976 }
0x1389   : > { %v15712_v41 = vpop.xlane.xlu0 %8394 }
0x138a   : > { %9372 = vrot.lane.b32.xlu1 %v17450_v15, %s17488_s26  ;;  %9370 = vrot.lane.b32.xlu0 %v17446_v59, %s17488_s26  ;;  %v15718_v13 = vpop.xlane.xlu1 %8397 }
0x138d   : > { %v15720_v42 = vpop.xlane.xlu0 %8436 }
0x138e   : > { %9374 = vrot.lane.b32.xlu0 %v17451_v3, %s17488_s26  ;;  %8881 = vrot.lane.b32.xlu1 %v17452_v8, %s17488_s26  ;;  %v15726_v7 = vpop.xlane.xlu1 %8439 }
0x1391   : > { %v15728_v1 = vpop.xlane.xlu0 %7937 }
0x1392   : > { %17499 = vst [vmem:[#allocation25_spill] sm:$0xff] %v15728_v1  ;;  %8883 = vrot.lane.b32.xlu0 %v17453_v51, %s17488_s26  ;;  %8909 = vrot.lane.b32.xlu1 %v17454_v38, %s17488_s26  ;;  %v15734_v59 = vpop.xlane.xlu1 %7940 }
0x1393   : > { %17500 = vst [vmem:[#allocation38_spill] sm:$0xff] %v15734_v59 }
0x1395   : > { %v15736_v15 = vpop.xlane.xlu0 %7979 }
0x1396   : > { %8911 = vrot.lane.b32.xlu0 %v17455_v19, %s17488_s26  ;;  %9348 = vrot.lane.b32.xlu1 %v17456_v28, %s17488_s26  ;;  %v15742_v3 = vpop.xlane.xlu1 %7982  ;;  %v17504_v19 = vld [vmem:[#allocation48_spill] sm:$0xff] }
0x1399   : > { %v15744_v8 = vpop.xlane.xlu0 %8400 }
0x139a   : > { %17501 = vst [vmem:[#allocation85_spill] sm:$0xff] %v15744_v8  ;;  %9350 = vrot.lane.b32.xlu0 %v17457_v4, %s17488_s26  ;;  %9376 = vrot.lane.b32.xlu1 %v17458_v48, %s17488_s26  ;;  %v15750_v51 = vpop.xlane.xlu1 %8403  ;;  %v17507_v48 = vld [vmem:[#allocation42_spill] sm:$0xff] }
0x139b   : > { %17502 = vst [vmem:[#allocation30_spill] sm:$0xff] %v15750_v51 }
0x139d   : > { %v15752_v38 = vpop.xlane.xlu0 %8442 }
0x139e   : > { %17503 = vst [vmem:[#allocation78_spill] sm:$0xff] %v15752_v38  ;;  %v10443_v63 = vpop.f32.mrf.mxu0  ;;  %9378 = vrot.lane.b32.xlu0 %v17459_v22, %s17488_s26  ;;  %8885 = vrot.lane.b32.xlu1 %v17504_v19, %s17488_s26  ;;  %v15758_v28 = vpop.xlane.xlu1 %8445  ;;  %v17509_v22 = vld [vmem:[#allocation10_spill] sm:$0xff]  ;;  %v17522_v19 = vld [vmem:[#allocation56_spill] sm:$0xff] }
0x139f   : > { %17505 = vst [vmem:[#allocation71_spill] sm:$0xff] %v15758_v28 }
0x13a0   : > { %v7633_v55 = vpop.f32.mrf.mxu0 }
0x13a1   : > { %10446 = vmatprep.mubr.msk.f32.mxu0 %vm1191_vm1, %v7633_v55  ;;  %v15761_v4 = vpop.xlane.xlu0 %7943 }
0x13a2   : > { %17506 = vst [vmem:[#allocation83_spill] sm:$0xff] %v15761_v4  ;;  %10447 = vmatmul.mubr.msk.f32.vlgmr.msra.gmra.mxu0 %vm1191_vm1, %v10443_v63  ;;  %8887 = vrot.lane.b32.xlu0 %v17507_v48, %s17488_s26  ;;  %v15766_v0 = vpop.xlane.xlu1 %7946  ;;  %v17524_v48 = vld [vmem:[#allocation11_spill] sm:$0xff] }
0x13a3   : > { %17508 = vst [vmem:[#allocation31_spill] sm:$0xff] %v15766_v0  ;;  %10455 = vmatpush3.xpose.msk.msra.mxu0 %vm1191_vm1, %v15385_v57  ;;  %8913 = vrot.lane.b32.xlu1 %v17509_v22, %s17488_s26  ;;  %v17515_v57 = vld [vmem:[#allocation84_spill] sm:$0xff] }
0x13a4   : > { %10456 = vmatprep.subr.msk.mxu0 %vm1191_vm1, %v17510_v20  ;;  %10458 = vmatprep.mubr.msk.f32.mxu0 %vm1191_vm1, %v17511_v33 }
0x13a5   : > { %v15776_v6 = vpop.xlane.xlu0 %7985 }
0x13a6   : > { %17512 = vst [vmem:[#allocation74_spill] sm:$0xff] %v15776_v6  ;;  %8915 = vrot.lane.b32.xlu0 %v17513_v35, %s17488_s26  ;;  %v15780_v46 = vpop.xlane.xlu1 %7988  ;;  %v17528_v35 = vld [vmem:[#allocation86_spill] sm:$0xff] }
0x13a7   : > { %17514 = vst [vmem:[#allocation33_spill] sm:$0xff] %v15780_v46  ;;  %10457 = vmatpush3.xpose.msk.msra.mxu0 %vm1191_vm1, %v17510_v20  ;;  %9352 = vrot.lane.b32.xlu1 %v17515_v57, %s17488_s26  ;;  %v17526_v20 = vld [vmem:[#allocation49_spill] sm:$0xff] }
0x13a9   : > { %v15786_v56 = vpop.xlane.xlu0 %8406 }
0x13aa   : > { %17516 = vst [vmem:[#allocation36_spill] sm:$0xff] %v15786_v56  ;;  %10459 = vmatmul.mubr.msk.f32.vlgmr.msra.gmra.mxu0 %vm1191_vm1, %v17517_v16  ;;  %9354 = vrot.lane.b32.xlu0 %v17518_v52, %s17488_s26  ;;  %v15792_v44 = vpop.xlane.xlu1 %8409  ;;  %v17530_v16 = vld [vmem:[#allocation52_spill] sm:$0xff]  ;;  %v17544_v56 = vld [vmem:[#allocation59_spill] sm:$0xff] }
0x13ab   : > { %17519 = vst [vmem:[#allocation79_spill] sm:$0xff] %v15792_v44  ;;  %9380 = vrot.lane.b32.xlu1 %v17520_v34, %s17488_s26  ;;  %v17532_v34 = vld [vmem:[#allocation58_spill] sm:$0xff]  ;;  %v17542_v44 = vld [vmem:[#allocation88_spill] sm:$0xff] }
0x13ad   : > { %v15796_v63 = vpop.xlane.xlu0 %8448 }
0x13ae   : > { %17521 = vst [vmem:[#allocation39_spill] sm:$0xff] %v15796_v63  ;;  %9382 = vrot.lane.b32.xlu0 %v17522_v19, %s17488_s26  ;;  %v15800_v55 = vpop.xlane.xlu1 %8451 }
0x13af   : > { %17523 = vst [vmem:[#allocation51_spill] sm:$0xff] %v15800_v55  ;;  %8889 = vrot.lane.b32.xlu1 %v17524_v48, %s17488_s26  ;;  %v17534_v48 = vld [vmem:[#allocation16_spill] sm:$0xff] }
0x13b1   : > { %v15804_v22 = vpop.xlane.xlu0 %7991 }
0x13b2   : > { %17525 = vst [vmem:[#allocation62_spill] sm:$0xff] %v15804_v22  ;;  %8891 = vrot.lane.b32.xlu0 %v17526_v20, %s17488_s26  ;;  %v15808_v33 = vpop.xlane.xlu1 %7994 }
0x13b3   : > { %17527 = vst [vmem:[#allocation54_spill] sm:$0xff] %v15808_v33  ;;  %8917 = vrot.lane.b32.xlu1 %v17528_v35, %s17488_s26 }
0x13b5   : > { %v15812_v57 = vpop.xlane.xlu0 %8412 }
0x13b6   : > { %17529 = vst [vmem:[#allocation66_spill] sm:$0xff] %v15812_v57  ;;  %8919 = vrot.lane.b32.xlu0 %v17530_v16, %s17488_s26  ;;  %v15816_v52 = vpop.xlane.xlu1 %8415  ;;  %v17538_v57 = vld [vmem:[#allocation19_spill] sm:$0xff] }
0x13b7   : > { %17531 = vst [vmem:[#allocation35_spill] sm:$0xff] %v15816_v52  ;;  %9356 = vrot.lane.b32.xlu1 %v17532_v34, %s17488_s26  ;;  %v17540_v52 = vld [vmem:[#allocation14_spill] sm:$0xff] }
0x13b9   : > { %v15820_v19 = vpop.xlane.xlu0 %8454 }
0x13ba   : > { %17533 = vst [vmem:[#allocation82_spill] sm:$0xff] %v15820_v19  ;;  %9358 = vrot.lane.b32.xlu0 %v17534_v48, %s17488_s26  ;;  %v15824_v20 = vpop.xlane.xlu1 %8457 }
0x13bb   : > { %17535 = vst [vmem:[#allocation41_spill] sm:$0xff] %v15824_v20  ;;  %9384 = vrot.lane.b32.xlu1 %v17536_v54, %s17488_s26 }
0x13bd   : > { %v15828_v35 = vpop.xlane.xlu0 %8418 }
0x13be   : > { %17537 = vst [vmem:[#allocation64_spill] sm:$0xff] %v15828_v35  ;;  %9386 = vrot.lane.b32.xlu0 %v17538_v57, %s17488_s26  ;;  %v15832_v16 = vpop.xlane.xlu1 %8421  ;;  %v17546_v35 = vld [vmem:[#allocation21_spill] sm:$0xff] }
0x13bf   : > { %17539 = vst [vmem:[#allocation53_spill] sm:$0xff] %v15832_v16  ;;  %8921 = vrot.lane.b32.xlu1 %v17540_v52, %s17488_s26  ;;  %v17548_v16 = vld [vmem:[#allocation17_spill] sm:$0xff] }
0x13c1   : > { %v15836_v34 = vpop.xlane.xlu0 %8460 }
0x13c2   : > { %17541 = vst [vmem:[#allocation15_spill] sm:$0xff] %v15836_v34  ;;  %8923 = vrot.lane.b32.xlu0 %v17542_v44, %s17488_s26  ;;  %v15840_v48 = vpop.xlane.xlu1 %8463  ;;  %v17549_v34 = vld [vmem:[#allocation69_spill] sm:$0xff] }
0x13c3   : > { %17543 = vst [vmem:[#allocation47_spill] sm:$0xff] %v15840_v48  ;;  %9360 = vrot.lane.b32.xlu1 %v17544_v56, %s17488_s26  ;;  %v17550_v48 = vld [vmem:[#allocation65_spill] sm:$0xff] }
0x13c5   : > { %v15844_v54 = vpop.xlane.xlu0 %8466 }
0x13c6   : > { %17545 = vst [vmem:[#allocation63_spill] sm:$0xff] %v15844_v54  ;;  %9362 = vrot.lane.b32.xlu0 %v17546_v35, %s17488_s26  ;;  %v15848_v57 = vpop.xlane.xlu1 %8469  ;;  %v17551_v35 = vld [vmem:[#allocation24_spill] sm:$0xff]  ;;  %v17553_v54 = vld [vmem:[#allocation26_spill] sm:$0xff] }
0x13c7   : > { %17547 = vst [vmem:[#allocation67_spill] sm:$0xff] %v15848_v57  ;;  %9388 = vrot.lane.b32.xlu1 %v17548_v16, %s17488_s26  ;;  %v17552_v16 = vld [vmem:[#allocation68_spill] sm:$0xff] }
0x13c9   : > { %v9060_v52 = vpop.permute.xlu0 %9059 }
0x13ca   : > { %9390 = vrot.lane.b32.xlu0 %v17549_v34, %s17488_s26  ;;  %10473 = vmatprep.subr.msk.mxu0 %vm1191_vm1, %v9060_v52  ;;  %v9058_v44 = vpop.permute.xlu1 %9057 }
0x13cb   : > { %9364 = vrot.lane.b32.xlu1 %v17550_v48, %s17488_s26  ;;  %10474 = vmatpush3.xpose.msk.msra.mxu0 %vm1191_vm1, %v9060_v52  ;;  %v17554_v52 = vld [vmem:[#allocation22_spill] sm:$0xff] }
0x13cc   : > { %10475 = vmatprep.subr.msk.mxu0 %vm1191_vm1, %v9058_v44 }
0x13cd   : > { %v9056_v56 = vpop.permute.xlu0 %9055 }
0x13ce   : > { %9366 = vrot.lane.b32.xlu0 %v17551_v35, %s17488_s26  ;;  %v9054_v57 = vpop.permute.xlu1 %9053  ;;  %v17555_v35 = vld [vmem:[#allocation57_spill] sm:$0xff] }
0x13cf   : > { %9392 = vrot.lane.b32.xlu1 %v17552_v16, %s17488_s26  ;;  %10476 = vmatpush3.xpose.msk.msra.mxu0 %vm1191_vm1, %v9058_v44 }
0x13d0   : > { %10477 = vmatprep.mubr.msk.f32.mxu0 %vm1191_vm1, %v9054_v57 }
0x13d1   : > { %v8862_v34 = vpop.permute.xlu0 %8861 }
0x13d2   : > { %9394 = vrot.lane.b32.xlu0 %v17553_v54, %s17488_s26  ;;  %10478 = vmatmul.mubr.msk.f32.vlgmr.msra.gmra.mxu0 %vm1191_vm1, %v9056_v56  ;;  %v8864_v48 = vpop.permute.xlu1 %8863  ;;  %v8957_v51 = vsel %vm1191_vm1, %v8862_v34, 0.0 }
0x13d3   : > { %9396 = vrot.lane.b32.xlu1 %v17554_v52, %s17488_s26  ;;  %v8960_v8 = vsel %vm1191_vm1, %v8864_v48, 0.0 }
0x13d5   : > { %v8868_v0 = vpop.permute.xlu0 %8867 }
0x13d6   : > { %9398 = vrot.lane.b32.xlu0 %v17555_v35, %s17488_s26  ;;  %v8866_v4 = vpop.permute.xlu1 %8865  ;;  %v8966_v59 = vsel %vm1191_vm1, %v8868_v0, 0.0  ;;  %s10183_s26 = sshll.u32 %s10832_s1, 8  ;;  %s10708_s1 = smov [#allocation2]  }
0x13d7   : > { %v8963_v38 = vsel %vm1191_vm1, %v8866_v4, 0.0  ;;  %s16527_s25 = scalar_lea.hbm %s16606_s19, %s10183_s26  ;;  %s10642_s5 = sshll.u32 %s10708_s1, 4  ;;  %s10643_s5 = int_to_ptr.vmem [resolvable:$false] %s10642_s5 }
0x13d9   : > { %v8872_v16 = vpop.permute.xlu0 %8871 }
0x13da   : > { %v8870_v20 = vpop.permute.xlu1 %8869  ;;  %v8972_v48 = vsel %vm1191_vm1, %v8872_v16, 0.0 }
0x13db   : > { %v8969_v34 = vsel %vm1191_vm1, %v8870_v20, 0.0 }
0x13dd   : > { %v8896_v44 = vpop.permute.xlu0 %8895 }
0x13de   : > { %v8894_v19 = vpop.permute.xlu1 %8893  ;;  %v9008_v0 = vsel %vm1191_vm1, %v8896_v44, 0.0 }
0x13df   : > { %v9005_v4 = vsel %vm1191_vm1, %v8894_v19, 0.0 }
0x13e1   : > { %v8900_v57 = vpop.permute.xlu0 %8899 }
0x13e2   : > { %v8898_v33 = vpop.permute.xlu1 %8897 }
0x13e3   : > { %v9011_v20 = vsel %vm1191_vm1, %v8898_v33, 0.0 }
0x13e5   : > { %v8876_v22 = vpop.permute.xlu0 %8875 }
0x13e6   : > { %v8874_v55 = vpop.permute.xlu1 %8873  ;;  %v8978_v44 = vsel %vm1191_vm1, %v8876_v22, 0.0 }
0x13e7   : > { %v8975_v19 = vsel %vm1191_vm1, %v8874_v55, 0.0 }
0x13e9   : > { %v8904_v54 = vpop.permute.xlu0 %8903 }
0x13ea   : > { %v8902_v63 = vpop.permute.xlu1 %8901 }
0x13eb   : > { %v9017_v33 = vsel %vm1191_vm1, %v8902_v63, 0.0 }
0x13ed   : > { %v9339_v56 = vpop.permute.xlu0 %9338 }
0x13ee   : > { %v9337_v46 = vpop.permute.xlu1 %9336  ;;  %v9435_v22 = vsel %vm1191_vm1, %v9339_v56, 0.0 }
0x13f1   : > { %v15872_v6 = vpop.permute.xlu0 %9342 }
0x13f2   : > { %17556 = vst [vmem:[#allocation44_spill] sm:$0xff] %v15872_v6  ;;  %v9341_v52 = vpop.permute.xlu1 %9340 }
0x13f3   : > { %v9438_v63 = vsel %vm1191_vm1, %v9341_v52, 0.0 }
0x13f5   : > { %8958 = vadd.xlane.f32.xlu0 %v8957_v51  ;;  %v15875_v35 = vpop.permute.xlu0 %8879 }
0x13f6   : > { %v15878_v28 = vpop.permute.xlu1 %8877 }
0x13f7   : > { %8961 = vadd.xlane.f32.xlu1 %v8960_v8 }
0x13f9   : > { %8964 = vadd.xlane.f32.xlu0 %v8963_v38  ;;  %v15882_v1 = vpop.permute.xlu0 %8907 }
0x13fa   : > { %17557 = vst [vmem:[#allocation37_spill] sm:$0xff] %v15882_v1  ;;  %v15884_v6 = vpop.permute.xlu1 %8905 }
0x13fb   : > { %8967 = vadd.xlane.f32.xlu1 %v8966_v59 }
0x13fd   : > { %v15887_v51 = vpop.permute.xlu0 %9346 }
0x13fe   : > { %17558 = vst [vmem:[#allocation46_spill] sm:$0xff] %v15887_v51  ;;  %v15890_v8 = vpop.permute.xlu1 %9344 }
0x13ff   : > { %8970 = vadd.xlane.f32.xlu1 %v8969_v34 }
0x1401   : > { %v15893_v38 = vpop.permute.xlu0 %9370 }
0x1402   : > { %v15895_v59 = vpop.permute.xlu1 %9368 }
0x1403   : > { %8973 = vadd.xlane.f32.xlu1 %v8972_v48 }
0x1405   : > { %v15898_v1 = vpop.permute.xlu0 %9374 }
0x1406   : > { %v15903_v16 = vpop.permute.xlu1 %9372 }
0x1407   : > { %9006 = vadd.xlane.f32.xlu1 %v9005_v4 }
0x1409   : > { %v15906_v34 = vpop.permute.xlu0 %8883 }
0x140a   : > { %v15908_v48 = vpop.permute.xlu1 %8881 }
0x140b   : > { %9009 = vadd.xlane.f32.xlu1 %v9008_v0 }
0x140d   : > { %v15911_v4 = vpop.permute.xlu0 %8911 }
0x140e   : > { %v15914_v0 = vpop.permute.xlu1 %8909 }
0x140f   : > { %9012 = vadd.xlane.f32.xlu1 %v9011_v20  ;;  %8693 = vrot.lane.b32.xlu0 %v17491_v60, %s17559_s20  ;;  %v9020_v20 = vsel %vm1191_vm1, %v8904_v54, 0.0  ;;  %v9014_v54 = vsel %vm1191_vm1, %v8900_v57, 0.0 }
0x1411   : > { %v15917_v60 = vpop.permute.xlu0 %9350 }
0x1412   : > { %17560 = vst [vmem:[#allocation40_spill] sm:$0xff] %v15917_v60  ;;  %v15919_v55 = vpop.permute.xlu1 %9348 }
0x1413   : > { %8976 = vadd.xlane.f32.xlu1 %v8975_v19  ;;  %v9432_v19 = vsel %vm1191_vm1, %v9337_v46, 0.0 }
0x1415   : > { %v15922_v51 = vpop.permute.xlu0 %9378 }
0x1416   : > { %17561 = vst [vmem:[#allocation18_spill] sm:$0xff] %v15922_v51 }
0x1417   : > { %8979 = vadd.xlane.f32.xlu1 %v8978_v44  ;;  %v15925_v44 = vpop.permute.xlu1 %9376 }
0x141b   : > { %9018 = vadd.xlane.f32.xlu1 %v9017_v33  ;;  %v15928_v33 = vpop.permute.xlu0 %8887 }
0x141c   : > { %17562 = vst [vmem:[#allocation55_spill] sm:$0xff] %v15928_v33  ;;  %v17572_v33 = vld [vmem:[#allocation90_spill] sm:$0xff] }
0x141f   : > { %9021 = vadd.xlane.f32.xlu1 %v9020_v20  ;;  %v15931_v20 = vpop.permute.xlu1 %8885  ;;  %v15933_v60 = vpop.permute.xlu0 %8915 }
0x1420   : > { %17563 = vst [vmem:[#allocation75_spill] sm:$0xff] %v15933_v60  ;;  %v17573_v60 = vld [vmem:[#allocation89_spill] sm:$0xff] }
0x1423   : > { %9433 = vadd.xlane.f32.xlu1 %v9432_v19  ;;  %v15935_v46 = vpop.permute.xlu1 %8913  ;;  %v15937_v19 = vpop.permute.xlu0 %9354 }
0x1424   : > { %17564 = vst [vmem:[#allocation20_spill] sm:$0xff] %v15935_v46  ;;  %17565 = vst [vmem:[#allocation80_spill] sm:$0xff] %v15937_v19  ;;  %v8052_v46 = vrot.slane %v15598_v61, %v17573_v60  ;;  %v8057_v19 = vrot.slane %v15600_v31, %v17572_v33  ;;  %v8039_v61 = vrot.slane %v15592_v24, %v17572_v33 }
0x1425   : > { %v8066_v31 = vrot.slane %v15624_v58, %v17572_v33 }
0x1427   : > { %9436 = vadd.xlane.f32.xlu1 %v9435_v22  ;;  %v15939_v56 = vpop.permute.xlu1 %9352  ;;  %v15941_v22 = vpop.permute.xlu0 %9382 }
0x1428   : > { %17566 = vst [vmem:[#allocation72_spill] sm:$0xff] %v15939_v56  ;;  %17567 = vst [vmem:[#allocation70_spill] sm:$0xff] %v15941_v22  ;;  %v8061_v22 = vrot.slane %v15606_v29, %v17573_v60  ;;  %v8070_v29 = vrot.slane %v15630_v21, %v17573_v60  ;;  %v8506_v21 = vrot.slane %v15640_v36, %v17572_v33 }
0x142b   : > { %9439 = vadd.xlane.f32.xlu1 %v9438_v63  ;;  %v15943_v51 = vpop.permute.xlu1 %9380  ;;  %v15945_v52 = vpop.permute.xlu0 %8891 }
0x142c   : > { %17568 = vst [vmem:[#allocation29_spill] sm:$0xff] %v15943_v51  ;;  %17569 = vst [vmem:[#allocation27_spill] sm:$0xff] %v15945_v52  ;;  %v8120_v51 = vrot.slane %v15616_v37, %v17572_v33  ;;  %v8124_v52 = vrot.slane %v15622_v25, %v17573_v60  ;;  %v8129_v37 = vrot.slane %v15632_v5, %v17572_v33 }
0x142d   : > { %v8133_v25 = vrot.slane %v15638_v18, %v17573_v60  ;;  %v8510_v5 = vrot.slane %v15646_v14, %v17573_v60 }
0x142e   : > { %9015 = vadd.xlane.f32.xlu0 %v9014_v54  ;;  %v8048_v54 = vrot.slane %v15594_v17, %v17572_v33  ;;  %v8043_v17 = vrot.slane %v15590_v45, %v17573_v60  ;;  %v8115_v45 = vrot.slane %v15614_v26, %v17573_v60  ;;  %v8125_v58 = vsel %vm1331_vm2, %v8124_v52, %v8120_v51 }
0x142f   : > { %v15947_v63 = vpop.permute.xlu1 %8889  ;;  %v15949_v57 = vpop.permute.xlu0 %8919  ;;  %v8519_v26 = vrot.slane %v15654_v62, %v17573_v60  ;;  %v8134_v51 = vsel %vm1331_vm2, %v8133_v25, %v8129_v37  ;;  %v8524_v37 = vrot.slane %v15672_v53, %v17572_v33  ;;  %v8528_v25 = vrot.slane %v15678_v39, %v17573_v60 }
0x1430   : > { %17570 = vst [vmem:[#allocation81_spill] sm:$0xff] %v15947_v63  ;;  %17571 = vst [vmem:[#allocation32_spill] sm:$0xff] %v15949_v57  ;;  %v8111_v57 = vrot.slane %v15608_v40, %v17572_v33  ;;  %v8053_v24 = vsel %vm1331_vm2, %v8052_v46, %v8048_v54  ;;  %v8515_v40 = vrot.slane %v15648_v10, %v17572_v33 }
0x1431   : > { %v8044_v18 = vsel %vm1331_vm2, %v8043_v17, %v8039_v61  ;;  %v8071_v46 = vsel %vm1331_vm2, %v8070_v29, %v8066_v31  ;;  %v8511_v54 = vsel %vm1331_vm2, %v8510_v5, %v8506_v21  ;;  %v8075_v61 = vrot.slane %v15656_v43, %v17572_v33 }
0x1432   : > { %v8116_v36 = vsel %vm1331_vm2, %v8115_v45, %v8111_v57  ;;  %v8520_v17 = vsel %vm1331_vm2, %v8519_v26, %v8515_v40  ;;  %v8079_v31 = vrot.slane %v15662_v50, %v17573_v60  ;;  %v8138_v57 = vrot.slane %v15664_v12, %v17572_v33 }
0x1433   : > { %v15963_v63 = vpop.permute.xlu1 %8917  ;;  %v15984_v56 = vpop.permute.xlu0 %9358  ;;  %v8187_v52 = vsel %vm1468_vm3, %v8125_v58, %v8116_v36  ;;  %v8587_v43 = vrot.slane %v15688_v30, %v17572_v33  ;;  %v8591_v50 = vrot.slane %v15694_v32, %v17573_v60  ;;  %v8084_v12 = vrot.slane %v15696_v49, %v17572_v33 }
0x1434   : > { %17574 = vst [vmem:[#allocation34_spill] sm:$0xff] %v15963_v63  ;;  %v8062_v63 = vsel %vm1331_vm2, %v8061_v22, %v8057_v19  ;;  %v8180_v22 = vsel %vm1468_vm3, %v8053_v24, %v8044_v18  ;;  %v8188_v62 = vsel %vm1470_vm4, %v8134_v51, %v8187_v52  ;;  %v8147_v45 = vrot.slane %v15704_v23, %v17572_v33 }
0x1435   : > { %v8181_v14 = vsel %vm1470_vm4, %v8062_v63, %v8180_v22  ;;  %v8142_v63 = vrot.slane %v15670_v47, %v17573_v60  ;;  %v8088_v47 = vrot.slane %v15702_v27, %v17573_v60  ;;  %v8151_v53 = vrot.slane %v15710_v9, %v17573_v60  ;;  %v17578_v22 = vld [vmem:[#allocation71_spill] sm:$0xff] }
0x1436   : > { %v8182_v10 = vsel %vm1472_vm5, %v8071_v46, %v8181_v14  ;;  %v8533_v39 = vrot.slane %v15712_v41, %v17572_v33  ;;  %v8537_v30 = vrot.slane %v15718_v13, %v17573_v60  ;;  %v8596_v32 = vrot.slane %v15720_v42, %v17572_v33  ;;  %v17577_v46 = vld [vmem:[#allocation78_spill] sm:$0xff] }
0x1437   : > { %v15997_v19 = vpop.permute.xlu1 %9356  ;;  %v16015_v29 = vpop.permute.xlu0 %9386  ;;  %v8600_v49 = vrot.slane %v15726_v7, %v17573_v60  ;;  %v8578_v27 = vrot.slane %v15680_v11, %v17572_v33  ;;  %v8582_v23 = vrot.slane %v15686_v2, %v17573_v60  ;;  %v8156_v9 = vrot.slane %v15736_v15, %v17572_v33  ;;  %v17575_v2 = vld [vmem:[#allocation25_spill] sm:$0xff]  ;;  %v17576_v15 = vld [vmem:[#allocation38_spill] sm:$0xff] }
0x1438   : > { %v8160_v41 = vrot.slane %v15742_v3, %v17573_v60  ;;  %v8080_v13 = vsel %vm1331_vm2, %v8079_v31, %v8075_v61  ;;  %v8143_v58 = vsel %vm1331_vm2, %v8142_v63, %v8138_v57  ;;  %v8529_v42 = vsel %vm1331_vm2, %v8528_v25, %v8524_v37 }
0x1439   : > { %v8592_v7 = vsel %vm1331_vm2, %v8591_v50, %v8587_v43  ;;  %v8089_v21 = vsel %vm1331_vm2, %v8088_v47, %v8084_v12  ;;  %v8152_v11 = vsel %vm1331_vm2, %v8151_v53, %v8147_v45  ;;  %v8093_v5 = vrot.slane %v17575_v2, %v17572_v33  ;;  %v17579_v47 = vld [vmem:[#allocation85_spill] sm:$0xff]  ;;  %v17587_v2 = vld [vmem:[#allocation82_spill] sm:$0xff] }
0x143a   : > { %v8097_v40 = vrot.slane %v17576_v15, %v17573_v60  ;;  %v8538_v3 = vsel %vm1331_vm2, %v8537_v30, %v8533_v39  ;;  %v8601_v18 = vsel %vm1331_vm2, %v8600_v49, %v8596_v32  ;;  %v8605_v51 = vrot.slane %v17577_v46, %v17572_v33  ;;  %v17581_v30 = vld [vmem:[#allocation74_spill] sm:$0xff]  ;;  %v17582_v49 = vld [vmem:[#allocation33_spill] sm:$0xff]  ;;  %v17590_v46 = vld [vmem:[#allocation31_spill] sm:$0xff] }
0x143b   : > { %v16033_v24 = vpop.permute.xlu1 %9384  ;;  %v16061_v26 = vpop.permute.xlu0 %8923  ;;  %v8609_v36 = vrot.slane %v17578_v22, %v17573_v60  ;;  %v8647_v14 = vsel %vm1468_vm3, %v8520_v17, %v8511_v54  ;;  %v8583_v52 = vsel %vm1331_vm2, %v8582_v23, %v8578_v27  ;;  %v8161_v61 = vsel %vm1331_vm2, %v8160_v41, %v8156_v9  ;;  %v17583_v23 = vld [vmem:[#allocation39_spill] sm:$0xff]  ;;  %v17588_v15 = vld [vmem:[#allocation41_spill] sm:$0xff] }
0x143c   : > { %v8183_v57 = vsel %vm1474_vm6, %v8080_v13, %v8182_v10  ;;  %v8189_v63 = vsel %vm1472_vm5, %v8143_v58, %v8188_v62  ;;  %v8648_v37 = vsel %vm1470_vm4, %v8529_v42, %v8647_v14  ;;  %v8654_v25 = vsel %vm1468_vm3, %v8592_v7, %v8583_v52  ;;  %v17580_v10 = vld [vmem:[#allocation30_spill] sm:$0xff]  ;;  %v17584_v41 = vld [vmem:[#allocation51_spill] sm:$0xff] }
0x143d   : > { %v8184_v43 = vsel %vm1476_vm7, %v8089_v21, %v8183_v57  ;;  %v8649_v50 = vsel %vm1472_vm5, %v8538_v3, %v8648_v37  ;;  %v8655_v54 = vsel %vm1470_vm4, %v8601_v18, %v8654_v25  ;;  %v8190_v17 = vsel %vm1474_vm6, %v8152_v11, %v8189_v63  ;;  %v17585_v42 = vld [vmem:[#allocation62_spill] sm:$0xff]  ;;  %v17589_v3 = vld [vmem:[#allocation83_spill] sm:$0xff]  ;;  %v17593_v63 = vld [vmem:[#allocation36_spill] sm:$0xff] }
0x143e   : > { %v8098_v12 = vsel %vm1331_vm2, %v8097_v40, %v8093_v5  ;;  %v8542_v45 = vrot.slane %v17579_v47, %v17572_v33  ;;  %v8546_v62 = vrot.slane %v17580_v10, %v17573_v60  ;;  %v8610_v53 = vsel %vm1331_vm2, %v8609_v36, %v8605_v51  ;;  %v17586_v21 = vld [vmem:[#allocation54_spill] sm:$0xff]  ;;  %v17591_v22 = vld [vmem:[#allocation15_spill] sm:$0xff] }
0x143f   : > { %v16072_v31 = vpop.permute.xlu1 %8921  ;;  %v8191_v39 = vsel %vm1476_vm7, %v8161_v61, %v8190_v17  ;;  %v8165_v32 = vrot.slane %v17581_v30, %v17572_v33  ;;  %v8169_v27 = vrot.slane %v17582_v49, %v17573_v60  ;;  %v8614_v9 = vrot.slane %v17583_v23, %v17572_v33  ;;  %v16097_v58 = vpop.permute.xlu0 %9362  ;;  %v17592_v14 = vld [vmem:[#allocation47_spill] sm:$0xff] }
0x1440   : > { %v8618_v13 = vrot.slane %v17584_v41, %v17573_v60  ;;  %v8174_v7 = vrot.slane %v17585_v42, %v17572_v33  ;;  %v8178_v11 = vrot.slane %v17586_v21, %v17573_v60  ;;  %v8623_v5 = vrot.slane %v17587_v2, %v17572_v33  ;;  %v17594_v25 = vld [vmem:[#allocation79_spill] sm:$0xff]  ;;  %v17597_v41 = vld [vmem:[#allocation66_spill] sm:$0xff] }
0x1441   : > { %v8627_v40 = vrot.slane %v17588_v15, %v17573_v60  ;;  %v8102_v18 = vrot.slane %v17589_v3, %v17572_v33  ;;  %v8106_v51 = vrot.slane %v17590_v46, %v17573_v60  ;;  %v8632_v36 = vrot.slane %v17591_v22, %v17572_v33  ;;  %v17595_v47 = vld [vmem:[#allocation63_spill] sm:$0xff]  ;;  %v17599_v46 = vld [vmem:[#allocation64_spill] sm:$0xff] }
0x1442   : > { %v8636_v52 = vrot.slane %v17592_v14, %v17573_v60  ;;  %v8551_v37 = vrot.slane %v17593_v63, %v17572_v33  ;;  %v8555_v17 = vrot.slane %v17594_v25, %v17573_v60  ;;  %v8641_v10 = vrot.slane %v17595_v47, %v17572_v33  ;;  %v17596_v30 = vld [vmem:[#allocation67_spill] sm:$0xff]  ;;  %v17600_v14 = vld [vmem:[#allocation53_spill] sm:$0xff] }
0x1443   : > { %v16115_v61 = vpop.permute.xlu1 %9360  ;;  %v8645_v49 = vrot.slane %v17596_v30, %v17573_v60  ;;  %v8619_v23 = vsel %vm1331_vm2, %v8618_v13, %v8614_v9  ;;  %v8560_v42 = vrot.slane %v17597_v41, %v17572_v33  ;;  %v17598_v21 = vld [vmem:[#allocation35_spill] sm:$0xff]  ;;  %v8170_v15 = vsel %vm1331_vm2, %v8169_v27, %v8165_v32  ;;  %v16142_v30 = vpop.permute.xlu0 %9390 }
0x1444   : > { %v8564_v2 = vrot.slane %v17598_v21, %v17573_v60  ;;  %v8628_v3 = vsel %vm1331_vm2, %v8627_v40, %v8623_v5  ;;  %v8569_v22 = vrot.slane %v17599_v46, %v17572_v33  ;;  %v8573_v63 = vrot.slane %v17600_v14, %v17573_v60  ;;  %v16180_v46 = vld [vmem:[%s17362_s6] sm:$0xff] }
0x1445   : > { %v8179_v25 = vsel %vm1331_vm2, %v8178_v11, %v8174_v7  ;;  %v8547_v9 = vsel %vm1331_vm2, %v8546_v62, %v8542_v45  ;;  %v8656_v13 = vsel %vm1472_vm5, %v8610_v53, %v8655_v54  ;;  %v8637_v47 = vsel %vm1331_vm2, %v8636_v52, %v8632_v36 }
0x1446   : > { %v8107_v32 = vsel %vm1331_vm2, %v8106_v51, %v8102_v18  ;;  %v8556_v27 = vsel %vm1331_vm2, %v8555_v17, %v8551_v37  ;;  %v8657_v5 = vsel %vm1474_vm6, %v8619_v23, %v8656_v13  ;;  %v8192_v40 = vsel %vm1478_vm8, %v8170_v15, %v8191_v39  ;;  %v17601_v13 = vld [vmem:[#allocation44_spill] sm:$0xff] }
0x1447   : > { %v8646_v7 = vsel %vm1331_vm2, %v8645_v49, %v8641_v10  ;;  %v8565_v45 = vsel %vm1331_vm2, %v8564_v2, %v8560_v42  ;;  %v16152_v62 = vpop.permute.xlu1 %9388  ;;  %v8193_v54 = vsel %vm1480_vm9, %v8179_v25, %v8192_v40  ;;  %v8658_v11 = vsel %vm1476_vm7, %v8628_v3, %v8657_v5  ;;  %v16164_v2 = vpop.permute.xlu0 %9366 }
0x1448   : > { %v8185_v36 = vsel %vm1478_vm8, %v8098_v12, %v8184_v43  ;;  %v8650_v18 = vsel %vm1474_vm6, %v8547_v9, %v8649_v50  ;;  %v8659_v52 = vsel %vm1478_vm8, %v8637_v47, %v8658_v11  ;;  %v8574_v39 = vsel %vm1331_vm2, %v8573_v63, %v8569_v22  ;;  %v16170_v50 = vld [vmem:[%s17362_s6 + $0x8] sm:$0xff] }
0x1449   : > { %v8660_v37 = vsel %vm1480_vm9, %v8646_v7, %v8659_v52  ;;  %v8186_v17 = vsel %vm1480_vm9, %v8107_v32, %v8185_v36  ;;  %v8651_v49 = vsel %vm1476_vm7, %v8556_v27, %v8650_v18  ;;  %v9441_v47 = vsel %vm1191_vm1, %v17601_v13, 0.0 }
0x144a   : > { %v8652_v21 = vsel %vm1478_vm8, %v8565_v45, %v8651_v49  ;;  %v8981_v27 = vsel %vm1191_vm1, %v15878_v28, 0.0  ;;  %v8984_v45 = vsel %vm1191_vm1, %v15875_v35, 0.0  ;;  %v9023_v28 = vsel %vm1191_vm1, %v15884_v6, 0.0  ;;  %v17603_v49 = vld [vmem:[#allocation87_spill] sm:$0xff] }
0x144b   : > { %v8653_v43 = vsel %vm1480_vm9, %v8574_v39, %v8652_v21  ;;  %v16175_v3 = vpop.permute.xlu1 %9364  ;;  %v16189_v25 = vpop.permute.xlu0 %9394  ;;  %v9444_v6 = vsel %vm1191_vm1, %v15890_v8, 0.0 }
0x144f   : > { %v16191_v9 = vpop.permute.xlu1 %9392  ;;  %v16195_v32 = vpop.permute.xlu0 %9398 }
0x1453   : > { %v16199_v5 = vpop.permute.xlu1 %9396 }
0x1462   : > { %v16117_v57 = vpop.f32.mrf.mxu0 }
0x1464   : > { %v16144_v41 = vpop.f32.mrf.mxu0 }
0x146a   : > { %v10460_v53 = vpop.f32.mrf.mxu0 }
0x146b   : > { %v8276_v51 = vadd.f32 %v10460_v53, %v8193_v54 }
0x146c   : > { %v8270_v10 = vpop.f32.mrf.mxu0 }
0x146d   : > { %v8664_v23 = vadd.f32 %v8660_v37, %v8276_v51  ;;  %v8271_v42 = vadd.f32 %v8270_v10, %v8186_v17  ;;  %v17602_v37 = vld [vmem:[#allocation37_spill] sm:$0xff] }
0x146e   : > { %v9026_v35 = vsel %vm1191_vm1, %v17602_v37, 0.0 }
0x146f   : > { %v16173_v12 = vadd.f32 %v16170_v50, %v8664_v23  ;;  %v8663_v15 = vadd.f32 %v8653_v43, %v8271_v42 }
0x1471   : > { %v16183_v22 = vadd.f32 %v16180_v46, %v8663_v15  ;;  %v8672_v14 = vsel %vm1898_vm10, %v16173_v12, -inf }
0x1472   : > { %8673 = vmax.xlane.f32.xlu0 %v8672_v14  ;;  %v9480_v14 = vsel %vm1191_vm1, %v15895_v59, 0.0 }
0x1473   : > { %v8669_v63 = vsel %vm1898_vm10, %v16183_v22, -inf }
0x1474   : > { %8670 = vmax.xlane.f32.xlu1 %v8669_v63 }
0x1478   : > { %9442 = vadd.xlane.f32.xlu1 %v9441_v47  ;;  %v9483_v47 = vsel %vm1191_vm1, %v15893_v38, 0.0  ;;  %v8987_v38 = vsel %vm1191_vm1, %v15908_v48, 0.0  ;;  %v9029_v48 = vsel %vm1191_vm1, %v15914_v0, 0.0  ;;  %v9492_v0 = vsel %vm1191_vm1, %v15925_v44, 0.0  ;;  %v17607_v44 = vld [vmem:[#allocation20_spill] sm:$0xff] }
0x147c   : > { %8982 = vadd.xlane.f32.xlu1 %v8981_v27 }
0x147e   : > { %v8959_v40 = vpop.xlane.xlu0 %8958 }
0x147f   : > { %v9096_v7 = vrot.slane %v8959_v40, %v17572_v33 }
0x1480   : > { %8985 = vadd.xlane.f32.xlu1 %v8984_v45  ;;  %v8962_v54 = vpop.xlane.xlu1 %8961  ;;  %v9486_v45 = vsel %vm1191_vm1, %v15903_v16, 0.0 }
0x1481   : > { %v9100_v53 = vrot.slane %v8962_v54, %v17573_v60  ;;  %v9489_v54 = vsel %vm1191_vm1, %v15898_v1, 0.0 }
0x1482   : > { %v8965_v11 = vpop.xlane.xlu0 %8964 }
0x1483   : > { %v9101_v36 = vsel %vm1331_vm2, %v9100_v53, %v9096_v7  ;;  %v9105_v18 = vrot.slane %v8965_v11, %v17572_v33 }
0x1484   : > { %9024 = vadd.xlane.f32.xlu1 %v9023_v28  ;;  %v8968_v51 = vpop.xlane.xlu1 %8967  ;;  %v8990_v28 = vsel %vm1191_vm1, %v15906_v34, 0.0 }
0x1485   : > { %v9109_v52 = vrot.slane %v8968_v51, %v17573_v60 }
0x1486   : > { %v8694_v39 = vpop.permute.xlu0 %8693 }
0x1487   : > { %v9110_v17 = vsel %vm1331_vm2, %v9109_v52, %v9105_v18  ;;  %10461 = vmatprep.subr.mxu1 %v8694_v39  ;;  %v17604_v52 = vld [vmem:[#allocation46_spill] sm:$0xff] }
0x1488   : > { %v9237_v10 = vsel %vm1468_vm3, %v9110_v17, %v9101_v36  ;;  %8691 = vrot.lane.b32.xlu0 %v17603_v49, %s17559_s20  ;;  %9027 = vadd.xlane.f32.xlu1 %v9026_v35  ;;  %v8971_v23 = vpop.xlane.xlu1 %8970  ;;  %v9450_v17 = vsel %vm1191_vm1, %v15919_v55, 0.0  ;;  %s623_s20 = sand.u32 1, %s10690_s30  }
0x1489   : > { %10462 = vmatpush3.msra.mxu1 %v8694_v39  ;;  %v9114_v21 = vrot.slane %v8971_v23, %v17572_v33  ;;  %v9447_v39 = vsel %vm1191_vm1, %v17604_v52, 0.0  ;;  %s10086_s0 = sshll.u32 %s623_s20, 4  ;;  %s16534_s2 = scalar_lea.sflag [#allocation3], %s623_s20 }
0x148a   : > { %s16493_s27 = scalar_lea.vmem [#allocation2], %s10086_s0  ;;  %s10644_s0 = scalar_lea.vmem %s10643_s5, 512 }
0x148b   : > { %s9958_s22 = sshll.u32 %s16493_s27, 4  ;;  %s16530_s22 = int_to_ptr.vmem [resolvable:$true] %s9958_s22 }
0x148c   : > { %9445 = vadd.xlane.f32.xlu1 %v9444_v6  ;;  %v8974_v42 = vpop.xlane.xlu1 %8973  ;;  %s10638_s4 = scalar_lea.vmem %s16530_s22, 256  ;;  %p10645_p0 = scmp.lt.s32.totalorder %s16530_s22, %s10643_s5 }
0x148d   : > { %v9118_v43 = vrot.slane %v8974_v42, %v17573_v60  ;;  %v17605_v42 = vld [vmem:[#allocation40_spill] sm:$0xff]  ;;  %p10639_p11 = scmp.ne.s32.totalorder %s16530_s22, %s10638_s4  ;;  %p10646_p1 = scmp.lt.s32.totalorder %s10644_s0, %s10638_s4 }
0x148f   : > { %v9119_v15 = vsel %vm1331_vm2, %v9118_v43, %v9114_v21  ;;  %v9453_v21 = vsel %vm1191_vm1, %v17605_v42, 0.0  ;;  %p10640_p12 = pnand %p10639_p11, %p10849_p5  ;;  %p10647_p2 = por %p10646_p1, %p10645_p0 }
0x1490   : > { %v9238_v63 = vsel %vm1470_vm4, %v9119_v15, %v9237_v10  ;;  %9481 = vadd.xlane.f32.xlu1 %v9480_v14  ;;  %v9007_v13 = vpop.xlane.xlu1 %9006  ;;  %v9032_v10 = vsel %vm1191_vm1, %v15911_v4, 0.0  ;;  %v8993_v4 = vsel %vm1191_vm1, %v15931_v20, 0.0  ;;  %v17606_v14 = vld [vmem:[#allocation18_spill] sm:$0xff] }
0x1491   : > { %v9168_v27 = vrot.slane %v9007_v13, %v17572_v33  ;;  %p10641_p13 = pneg %p10640_p12 }
0x1493   : > { %p10648_p3 = pnand %p10647_p2, %p10641_p13 }
0x1494   : > { %9484 = vadd.xlane.f32.xlu1 %v9483_v47  ;;  %v9010_v8 = vpop.xlane.xlu1 %9009  ;;  %v9035_v47 = vsel %vm1191_vm1, %v17607_v44, 0.0  ;;  %v16297_v44 = vld [vmem:[%s16602_s15 + $0x10] sm:$0xff] }
0x1495   : > { %v9172_v40 = vrot.slane %v9010_v8, %v17573_v60  ;;  %v17608_v8 = vld [vmem:[#allocation55_spill] sm:$0xff] }
0x1497   : > { %v9173_v7 = vsel %vm1331_vm2, %v9172_v40, %v9168_v27  ;;  %v8996_v27 = vsel %vm1191_vm1, %v17608_v8, 0.0 }
0x1498   : > { %9487 = vadd.xlane.f32.xlu1 %v9486_v45  ;;  %v9013_v59 = vpop.xlane.xlu1 %9012 }
0x1499   : > { %v9177_v45 = vrot.slane %v9013_v59, %v17572_v33 }
0x149c   : > { %9490 = vadd.xlane.f32.xlu1 %v9489_v54  ;;  %v8977_v53 = vpop.xlane.xlu1 %8976 }
0x149d   : > { %v9123_v36 = vrot.slane %v8977_v53, %v17572_v33  ;;  %v17609_v53 = vld [vmem:[#allocation72_spill] sm:$0xff] }
0x14a0   : > { %8988 = vadd.xlane.f32.xlu1 %v8987_v38  ;;  %v8980_v11 = vpop.xlane.xlu1 %8979  ;;  %v9456_v38 = vsel %vm1191_vm1, %v17609_v53, 0.0 }
0x14a1   : > { %v9127_v18 = vrot.slane %v8980_v11, %v17573_v60  ;;  %v17610_v11 = vld [vmem:[#allocation75_spill] sm:$0xff] }
0x14a3   : > { %v9128_v16 = vsel %vm1331_vm2, %v9127_v18, %v9123_v36  ;;  %v9038_v36 = vsel %vm1191_vm1, %v17610_v11, 0.0 }
0x14a4   : > { %v16241_v51 = vsel %vm1472_vm5, %v9128_v16, %v9238_v63  ;;  %8991 = vadd.xlane.f32.xlu1 %v8990_v28  ;;  %v9019_v1 = vpop.xlane.xlu1 %9018  ;;  %v9495_v63 = vsel %vm1191_vm1, %v17606_v14, 0.0  ;;  %v17611_v16 = vld [vmem:[#allocation29_spill] sm:$0xff] }
0x14a5   : > { %v9186_v35 = vrot.slane %v9019_v1, %v17572_v33  ;;  %v9498_v59 = vsel %vm1191_vm1, %v17611_v16, 0.0  ;;  %v17612_v1 = vld [vmem:[#allocation80_spill] sm:$0xff] }
0x14a6   : > { %v9459_v52 = vsel %vm1191_vm1, %v17612_v1, 0.0 }
0x14a7   : > { %9448 = vadd.xlane.f32.xlu0 %v9447_v39  ;;  %v17613_v39 = vld [vmem:[#allocation81_spill] sm:$0xff] }
0x14a8   : > { %9030 = vadd.xlane.f32.xlu1 %v9029_v48  ;;  %v9022_v37 = vpop.xlane.xlu1 %9021  ;;  %v8999_v48 = vsel %vm1191_vm1, %v17613_v39, 0.0 }
0x14a9   : > { %v9190_v34 = vrot.slane %v9022_v37, %v17573_v60  ;;  %v17614_v37 = vld [vmem:[#allocation70_spill] sm:$0xff] }
0x14ab   : > { %v9191_v23 = vsel %vm1331_vm2, %v9190_v34, %v9186_v35  ;;  %9451 = vadd.xlane.f32.xlu0 %v9450_v17  ;;  %v9501_v35 = vsel %vm1191_vm1, %v17614_v37, 0.0  ;;  %v17616_v17 = vld [vmem:[#allocation27_spill] sm:$0xff] }
0x14ac   : > { %9033 = vadd.xlane.f32.xlu1 %v9032_v10  ;;  %v9434_v6 = vpop.xlane.xlu1 %9433  ;;  %v9002_v10 = vsel %vm1191_vm1, %v17616_v17, 0.0 }
0x14ad   : > { %v9563_v15 = vrot.slane %v9434_v6, %v17572_v33 }
0x14af   : > { %9493 = vadd.xlane.f32.xlu0 %v9492_v0 }
0x14b0   : > { %9454 = vadd.xlane.f32.xlu1 %v9453_v21  ;;  %v9437_v43 = vpop.xlane.xlu1 %9436 }
0x14b1   : > { %v9567_v55 = vrot.slane %v9437_v43, %v17573_v60 }
0x14b3   : > { %v9568_v13 = vsel %vm1331_vm2, %v9567_v55, %v9563_v15  ;;  %8994 = vadd.xlane.f32.xlu0 %v8993_v4 }
0x14b4   : > { %9496 = vadd.xlane.f32.xlu1 %v9495_v63 }
0x14b7   : > { %9036 = vadd.xlane.f32.xlu0 %v9035_v47  ;;  %v9016_v40 = vpop.xlane.xlu0 %9015 }
0x14b8   : > { %v9181_v54 = vrot.slane %v9016_v40, %v17573_v60  ;;  %8997 = vadd.xlane.f32.xlu1 %v8996_v27 }
0x14ba   : > { %v9182_v20 = vsel %vm1331_vm2, %v9181_v54, %v9177_v45 }
0x14bb   : > { %v9244_v18 = vsel %vm1468_vm3, %v9182_v20, %v9173_v7  ;;  %9457 = vadd.xlane.f32.xlu0 %v9456_v38  ;;  %v17615_v7 = vld [vmem:[#allocation34_spill] sm:$0xff] }
0x14bc   : > { %9039 = vadd.xlane.f32.xlu1 %v9038_v36  ;;  %v9245_v28 = vsel %vm1470_vm4, %v9191_v23, %v9244_v18  ;;  %v9041_v34 = vsel %vm1191_vm1, %v17615_v7, 0.0  ;;  %v9440_v23 = vpop.xlane.xlu1 %9439  ;;  %v9504_v7 = vsel %vm1191_vm1, %v16033_v24, 0.0  ;;  %v9468_v24 = vsel %vm1191_vm1, %v16115_v61, 0.0 }
0x14bd   : > { %v9572_v14 = vrot.slane %v9440_v23, %v17572_v33 }
0x14bf   : > { %9499 = vadd.xlane.f32.xlu0 %v9498_v59 }
0x14c0   : > { %9460 = vadd.xlane.f32.xlu1 %v9459_v52  ;;  %v17617_v52 = vld [vmem:[#allocation32_spill] sm:$0xff] }
0x14c1   : > { %v9044_v39 = vsel %vm1191_vm1, %v17617_v52, 0.0 }
0x14c3   : > { %9000 = vadd.xlane.f32.xlu0 %v8999_v48 }
0x14c4   : > { %9502 = vadd.xlane.f32.xlu1 %v9501_v35 }
0x14c7   : > { %9042 = vadd.xlane.f32.xlu0 %v9041_v34  ;;  %v9465_v34 = vsel %vm1191_vm1, %v15984_v56, 0.0  ;;  %v9050_v56 = vsel %vm1191_vm1, %v16061_v26, 0.0  ;;  %v9474_v26 = vsel %vm1191_vm1, %v16175_v3, 0.0 }
0x14c8   : > { %9003 = vadd.xlane.f32.xlu1 %v9002_v10  ;;  %v9507_v10 = vsel %vm1191_vm1, %v16015_v29, 0.0  ;;  %v9510_v29 = vsel %vm1191_vm1, %v16152_v62, 0.0 }
0x14fb   : > { %v8674_v6 = vpop.xlane.xlu0 %8673 }
0x14fc   : > { %v8676_v0 = vsub.f32 %v16173_v12, %v8674_v6 }
0x14fd   : > { %v8671_v42 = vpop.xlane.xlu1 %8670 }
0x14fe   : > { %v8679_v21 = vmul.f32 1.442695, %v8676_v0  ;;  %v8675_v43 = vsub.f32 %v16183_v22, %v8671_v42  ;;  %v9471_v42 = vsel %vm1191_vm1, %v16097_v58, 0.0 }
0x14ff   : > { %v8692_v15 = vpop.permute.xlu0 %8691 }
0x1500   : > { %10601 = vpow2.f32 %v8679_v21  ;;  %v8677_v55 = vmul.f32 1.442695, %v8675_v43  ;;  %10463 = vmatprep.subr.mxu1 %v8692_v15 }
0x1501   : > { %10464 = vmatpush3.msra.mxu1 %v8692_v15  ;;  %v9443_v4 = vpop.xlane.xlu1 %9442  ;;  %v9513_v15 = vsel %vm1191_vm1, %v16142_v30, 0.0 }
0x1502   : > { %10603 = vpow2.f32 %v8677_v55  ;;  %v9576_v63 = vrot.slane %v9443_v4, %v17573_v60  ;;  %10468 = vmatprep.subr.mxu1 %v16297_v44  ;;  %v9516_v4 = vsel %vm1191_vm1, %v16191_v9, 0.0 }
0x1504   : > { %v9577_v47 = vsel %vm1331_vm2, %v9576_v63, %v9572_v14  ;;  %v9477_v14 = vsel %vm1191_vm1, %v16164_v2, 0.0 }
0x1505   : > { %v16302_v8 = vsel %vm1468_vm3, %v9577_v47, %v9568_v13  ;;  %v8983_v27 = vpop.xlane.xlu1 %8982  ;;  %v9522_v47 = vsel %vm1191_vm1, %v16199_v5, 0.0  ;;  %v9525_v5 = vsel %vm1191_vm1, %v16195_v32, 0.0 }
0x1506   : > { %v9132_v45 = vrot.slane %v8983_v27, %v17572_v33  ;;  %v9519_v27 = vsel %vm1191_vm1, %v16189_v25, 0.0 }
0x1509   : > { %v8986_v40 = vpop.xlane.xlu1 %8985 }
0x150a   : > { %v9136_v54 = vrot.slane %v8986_v40, %v17573_v60 }
0x150c   : > { %v9137_v20 = vsel %vm1331_vm2, %v9136_v54, %v9132_v45 }
0x150d   : > { %v16307_v53 = vpop.eup %10601  ;;  %v16311_v38 = vsel %vm1474_vm6, %v9137_v20, %v16241_v51  ;;  %v9025_v11 = vpop.xlane.xlu1 %9024  ;;  %v9462_v51 = vsel %vm1191_vm1, %v15997_v19, 0.0  ;;  %v9047_v19 = vsel %vm1191_vm1, %v16072_v31, 0.0 }
0x150e   : > { %v8684_v36 = vsel %vm1898_vm10, %v16307_v53, 0.0  ;;  %v9195_v59 = vrot.slane %v9025_v11, %v17572_v33 }
0x150f   : > { %v16315_v13 = vpop.eup %10603  ;;  %8685 = vadd.xlane.f32.xlu0 %v8684_v36 }
0x1510   : > { %v8681_v18 = vsel %vm1898_vm10, %v16315_v13, 0.0 }
0x1511   : > { %8682 = vadd.xlane.f32.xlu1 %v8681_v18  ;;  %v9028_v16 = vpop.xlane.xlu1 %9027 }
0x1512   : > { %v9199_v1 = vrot.slane %v9028_v16, %v17573_v60 }
0x1513   : > { %9463 = vadd.xlane.f32.xlu0 %v9462_v51 }
0x1514   : > { %v9200_v48 = vsel %vm1331_vm2, %v9199_v1, %v9195_v59 }
0x1515   : > { %v9246_v37 = vsel %vm1472_vm5, %v9200_v48, %v9245_v28  ;;  %9045 = vadd.xlane.f32.xlu1 %v9044_v39  ;;  %v9446_v35 = vpop.xlane.xlu1 %9445 }
0x1516   : > { %v9581_v45 = vrot.slane %v9446_v35, %v17572_v33 }
0x1517   : > { %9505 = vadd.xlane.f32.xlu0 %v9504_v7 }
0x1519   : > { %9466 = vadd.xlane.f32.xlu1 %v9465_v34  ;;  %v9482_v17 = vpop.xlane.xlu1 %9481 }
0x151a   : > { %v9635_v23 = vrot.slane %v9482_v17, %v17572_v33 }
0x151b   : > { %9048 = vadd.xlane.f32.xlu0 %v9047_v19 }
0x151d   : > { %9508 = vadd.xlane.f32.xlu1 %v9507_v10  ;;  %v9485_v28 = vpop.xlane.xlu1 %9484 }
0x151e   : > { %v9639_v6 = vrot.slane %v9485_v28, %v17573_v60 }
0x151f   : > { %9469 = vadd.xlane.f32.xlu0 %v9468_v24 }
0x1520   : > { %v9640_v0 = vsel %vm1331_vm2, %v9639_v6, %v9635_v23 }
0x1521   : > { %9051 = vadd.xlane.f32.xlu1 %v9050_v56  ;;  %v9488_v31 = vpop.xlane.xlu1 %9487 }
0x1522   : > { %v9644_v43 = vrot.slane %v9488_v31, %v17572_v33 }
0x1523   : > { %9511 = vadd.xlane.f32.xlu0 %v9510_v29 }
0x1525   : > { %9472 = vadd.xlane.f32.xlu1 %v9471_v42  ;;  %v9491_v21 = vpop.xlane.xlu1 %9490 }
0x1526   : > { %v9648_v61 = vrot.slane %v9491_v21, %v17573_v60 }
0x1527   : > { %9475 = vadd.xlane.f32.xlu0 %v9474_v26 }
0x1528   : > { %v9649_v55 = vsel %vm1331_vm2, %v9648_v61, %v9644_v43 }
0x1529   : > { %v16354_v62 = vsel %vm1468_vm3, %v9649_v55, %v9640_v0  ;;  %9514 = vadd.xlane.f32.xlu1 %v9513_v15  ;;  %v8989_v58 = vpop.xlane.xlu1 %8988 }
0x152a   : > { %v9141_v63 = vrot.slane %v8989_v58, %v17572_v33 }
0x152b   : > { %9517 = vadd.xlane.f32.xlu0 %v9516_v4 }
0x152d   : > { %9478 = vadd.xlane.f32.xlu1 %v9477_v14  ;;  %v8992_v3 = vpop.xlane.xlu1 %8991 }
0x152e   : > { %v9145_v30 = vrot.slane %v8992_v3, %v17573_v60 }
0x152f   : > { %9523 = vadd.xlane.f32.xlu0 %v9522_v47 }
0x1530   : > { %v9146_v40 = vsel %vm1331_vm2, %v9145_v30, %v9141_v63  ;;  %v9449_v9 = vpop.xlane.xlu0 %9448 }
0x1531   : > { %v16370_v2 = vsel %vm1476_vm7, %v9146_v40, %v16311_v38  ;;  %v9585_v54 = vrot.slane %v9449_v9, %v17573_v60  ;;  %9520 = vadd.xlane.f32.xlu1 %v9519_v27  ;;  %v9031_v20 = vpop.xlane.xlu1 %9030 }
0x1532   : > { %v9204_v18 = vrot.slane %v9031_v20, %v17572_v33 }
0x1533   : > { %v9586_v11 = vsel %vm1331_vm2, %v9585_v54, %v9581_v45 }
0x1534   : > { %v16378_v25 = vsel %vm1470_vm4, %v9586_v11, %v16302_v8  ;;  %v9452_v1 = vpop.xlane.xlu0 %9451 }
0x1535   : > { %9526 = vadd.xlane.f32.xlu1 %v9525_v5  ;;  %v9034_v36 = vpop.xlane.xlu1 %9033  ;;  %v9590_v3 = vrot.slane %v9452_v1, %v17572_v33 }
0x1536   : > { %v9208_v38 = vrot.slane %v9034_v36, %v17573_v60 }
0x1538   : > { %v9209_v16 = vsel %vm1331_vm2, %v9208_v38, %v9204_v18  ;;  %v9494_v51 = vpop.xlane.xlu0 %9493  ;;  %v17618_v38 = vld [vmem:[#allocation77_spill] sm:$0xff] }
0x1539   : > { %v16384_v59 = vsel %vm1474_vm6, %v9209_v16, %v9246_v37  ;;  %v9455_v52 = vpop.xlane.xlu1 %9454  ;;  %v9653_v20 = vrot.slane %v9494_v51, %v17572_v33  ;;  %v17619_v16 = vld [vmem:[#allocation23_spill] sm:$0xff] }
0x153a   : > { %v9594_v58 = vrot.slane %v9455_v52, %v17573_v60  ;;  %v7531_v1 = vadd.f32 %v17619_v16, %v17618_v38  ;;  %v10479_v52 = vpop.f32.mrf.mxu0 }
0x153c   : > { %v8995_v39 = vpop.xlane.xlu0 %8994 }
0x153d   : > { %v9497_v32 = vpop.xlane.xlu1 %9496  ;;  %v9150_v30 = vrot.slane %v8995_v39, %v17572_v33 }
0x153e   : > { %v9657_v47 = vrot.slane %v9497_v32, %v17573_v60 }
0x1540   : > { %v9037_v48 = vpop.xlane.xlu0 %9036  ;;  %v9658_v51 = vsel %vm1331_vm2, %v9657_v47, %v9653_v20 }
0x1541   : > { %v8998_v35 = vpop.xlane.xlu1 %8997  ;;  %v9213_v32 = vrot.slane %v9037_v48, %v17572_v33 }
0x1542   : > { %v9154_v14 = vrot.slane %v8998_v35, %v17573_v60 }
0x1544   : > { %v9458_v8 = vpop.xlane.xlu0 %9457  ;;  %v9155_v45 = vsel %vm1331_vm2, %v9154_v14, %v9150_v30 }
0x1545   : > { %v9040_v7 = vpop.xlane.xlu1 %9039  ;;  %v9599_v11 = vrot.slane %v9458_v8, %v17572_v33  ;;  %v9242_v8 = vsel %vm1478_vm8, %v9155_v45, %v16370_v2  ;;  %v9712_v45 = vsel %vm1470_vm4, %v9658_v51, %v16354_v62 }
0x1548   : > { %v16386_v34 = vpop.xlane.xlu0 %9499 }
0x1549   : > { %v9461_v17 = vpop.xlane.xlu1 %9460 }
0x154a   : > { %v9603_v27 = vrot.slane %v9461_v17, %v17573_v60 }
0x154c   : > { %v9001_v19 = vpop.xlane.xlu0 %9000 }
0x154d   : > { %v16388_v10 = vpop.xlane.xlu1 %9502  ;;  %v9159_v40 = vrot.slane %v9001_v19, %v17572_v33 }
0x1550   : > { %v16390_v28 = vpop.xlane.xlu0 %9042 }
0x1551   : > { %v9004_v23 = vpop.xlane.xlu1 %9003 }
0x1598   : > { %v8686_v37 = vpop.xlane.xlu0 %8685 }
0x1599   : > { %10605 = vrcp.f32 %v8686_v37  ;;  %v9666_v37 = vrot.slane %v16388_v10, %v17573_v60 }
0x159a   : > { %v8683_v6 = vpop.xlane.xlu1 %8682 }
0x159b   : > { %10607 = vrcp.f32 %v8683_v6 }
0x159c   : > { %v9464_v24 = vpop.xlane.xlu0 %9463 }
0x159d   : > { %v9608_v35 = vrot.slane %v9464_v24, %v17572_v33 }
0x159e   : > { %v16392_v56 = vpop.xlane.xlu1 %9045 }
0x159f   : > { %v9226_v2 = vrot.slane %v16392_v56, %v17573_v60  ;;  %v9222_v56 = vrot.slane %v16390_v28, %v17572_v33 }
0x15a0   : > { %v16394_v0 = vpop.xlane.xlu0 %9505 }
0x15a1   : > { %v9227_v28 = vsel %vm1331_vm2, %v9226_v2, %v9222_v56  ;;  %v17623_v56 = vld [vmem:[#allocation61_spill] sm:$0xff] }
0x15a2   : > { %v9467_v31 = vpop.xlane.xlu1 %9466 }
0x15a3   : > { %v9612_v54 = vrot.slane %v9467_v31, %v17573_v60 }
0x15a4   : > { %v16396_v29 = vpop.xlane.xlu0 %9048 }
0x15a5   : > { %v9613_v48 = vsel %vm1331_vm2, %v9612_v54, %v9608_v35  ;;  %v9231_v14 = vrot.slane %v16396_v29, %v17572_v33 }
0x15a6   : > { %v16398_v42 = vpop.xlane.xlu1 %9508  ;;  %v10606_v21 = vpop.eup %10605 }
0x15a7   : > { %v8690_v55 = vmul.f32 %v10606_v21, %v16307_v53  ;;  %v9595_v53 = vsel %vm1331_vm2, %v9594_v58, %v9590_v3  ;;  %v9675_v6 = vrot.slane %v16398_v42, %v17573_v60  ;;  %v9671_v42 = vrot.slane %v16394_v0, %v17572_v33 }
0x15a8   : > { %v10608_v43 = vpop.eup %10607  ;;  %v9470_v61 = vpop.xlane.xlu0 %9469  ;;  %v9706_v39 = vsel %vm1472_vm5, %v9595_v53, %v16378_v25 }
0x15a9   : > { %v8689_v26 = vmul.f32 %v10608_v43, %v16315_v13  ;;  %v9163_v13 = vrot.slane %v9004_v23, %v17573_v60  ;;  %v9617_v17 = vrot.slane %v9470_v61, %v17572_v33  ;;  %v9662_v23 = vrot.slane %v16386_v34, %v17572_v33  ;;  %v9327_v43 = vpop.f32.mrf.mxu0 }
0x15aa   : > { %v16401_v15 = vpop.xlane.xlu1 %9051  ;;  %v9676_v30 = vsel %vm1331_vm2, %v9675_v6, %v9671_v42 }
0x15ab   : > { %10465 = vmatprep.mubr.msk.f32.mxu1 %vm1898_vm10, %v8689_v26  ;;  %v9164_v5 = vsel %vm1331_vm2, %v9163_v13, %v9159_v40  ;;  %v9235_v61 = vrot.slane %v16401_v15, %v17573_v60 }
0x15ac   : > { %v16406_v4 = vpop.xlane.xlu0 %9511  ;;  %10466 = vmatmul.mubr.msk.f32.vlgmr.msra.gmra.mxu1 %vm1898_vm10, %v8690_v55  ;;  %v9243_v25 = vsel %vm1480_vm9, %v9164_v5, %v9242_v8  ;;  %v17621_v8 = vld [vmem:[#allocation12_spill] sm:$0xff] }
0x15ad   : > { %10469 = vmatpush3.msra.mxu1 %v16297_v44  ;;  %v9217_v44 = vrot.slane %v9040_v7, %v17573_v60  ;;  %v9604_v7 = vsel %vm1331_vm2, %v9603_v27, %v9599_v11  ;;  %v9328_v55 = vadd.f32 %v9327_v43, %v9243_v25  ;;  %v9236_v47 = vsel %vm1331_vm2, %v9235_v61, %v9231_v14 }
0x15ae   : > { %v9473_v63 = vpop.xlane.xlu1 %9472  ;;  %v9707_v34 = vsel %vm1474_vm6, %v9604_v7, %v9706_v39  ;;  %v9680_v29 = vrot.slane %v16406_v4, %v17572_v33 }
0x15af   : > { %v9621_v36 = vrot.slane %v9473_v63, %v17573_v60  ;;  %v9218_v19 = vsel %vm1331_vm2, %v9217_v44, %v9213_v32  ;;  %v9708_v58 = vsel %vm1476_vm7, %v9613_v48, %v9707_v34  ;;  %v9667_v63 = vsel %vm1331_vm2, %v9666_v37, %v9662_v23  ;;  %v10453_v34 = vpop.f32.mrf.mxu1 }
0x15b0   : > { %v9476_v9 = vpop.xlane.xlu0 %9475  ;;  %v9248_v44 = vsel %vm1476_vm7, %v9218_v19, %v16384_v59  ;;  %v9713_v11 = vsel %vm1472_vm5, %v9667_v63, %v9712_v45 }
0x15b1   : > { %v9622_v24 = vsel %vm1331_vm2, %v9621_v36, %v9617_v17  ;;  %v9626_v26 = vrot.slane %v9476_v9, %v17572_v33  ;;  %v8667_v9 = vadd.f32 %v16183_v22, %v7531_v1  ;;  %v9249_v4 = vsel %vm1478_vm8, %v9227_v28, %v9248_v44  ;;  %v16507_v61 = vpop.f32.mrf.mxu1 }
0x15b2   : > { %v9515_v18 = vpop.xlane.xlu1 %9514  ;;  %v9709_v15 = vsel %vm1478_vm8, %v9622_v24, %v9708_v58  ;;  %v9250_v22 = vsel %vm1480_vm9, %v9236_v47, %v9249_v4  ;;  %v7801_v28 = vadd.f32 %v10453_v34, %v16117_v57 }
0x15b3   : > { %v9684_v3 = vrot.slane %v9515_v18, %v17573_v60  ;;  %v9714_v18 = vsel %vm1474_vm6, %v9676_v30, %v9713_v11  ;;  %v9333_v35 = vadd.f32 %v10479_v52, %v9250_v22 }
0x15b4   : > { %v9518_v31 = vpop.xlane.xlu0 %9517 }
0x15b5   : > { %v9689_v54 = vrot.slane %v9518_v31, %v17572_v33  ;;  %v9685_v5 = vsel %vm1331_vm2, %v9684_v3, %v9680_v29 }
0x15b6   : > { %v9479_v21 = vpop.xlane.xlu1 %9478  ;;  %v9715_v32 = vsel %vm1476_vm7, %v9685_v5, %v9714_v18 }
0x15b7   : > { %v9630_v10 = vrot.slane %v9479_v21, %v17573_v60 }
0x15b8   : > { %v9524_v20 = vpop.xlane.xlu0 %9523 }
0x15b9   : > { %v9631_v13 = vsel %vm1331_vm2, %v9630_v10, %v9626_v26  ;;  %v9698_v59 = vrot.slane %v9524_v20, %v17572_v33 }
0x15ba   : > { %v9710_v0 = vsel %vm1480_vm9, %v9631_v13, %v9709_v15  ;;  %v9521_v53 = vpop.xlane.xlu1 %9520  ;;  %v10634_v13 = vld [vmem:[%s16602_s15 + $0x18] sm:$0xff] }
0x15bb   : > { %v9693_v27 = vrot.slane %v9521_v53, %v17573_v60  ;;  %v9720_v40 = vadd.f32 %v9710_v0, %v9328_v55 }
0x15bd   : > { %v9722_v36 = vadd.f32 %v16180_v46, %v9720_v40  ;;  %v9694_v62 = vsel %vm1331_vm2, %v9693_v27, %v9689_v54 }
0x15be   : > { %v9527_v38 = vpop.xlane.xlu1 %9526  ;;  %v9716_v46 = vsel %vm1478_vm8, %v9694_v62, %v9715_v32 }
0x15bf   : > { %v9702_v16 = vrot.slane %v9527_v38, %v17573_v60  ;;  %v9726_v1 = vsel %vm1898_vm10, %v9722_v36, -inf  ;;  %v9724_v39 = vadd.f32 %v9722_v36, %v8667_v9  ;;  %v17620_v60 = vld [vmem:[#allocation43_spill] sm:$0xff] }
0x15c0   : > { %9727 = vmax.xlane.f32.xlu0 %v9726_v1  ;;  %v7532_v7 = vadd.f32 %v17621_v8, %v17620_v60 }
0x15c1   : > { %v9703_v51 = vsel %vm1331_vm2, %v9702_v16, %v9698_v59  ;;  %9926 = vst.msk [vmem:[%s16493_s27] sm:$0xff] %vm1898_vm10, %v9724_v39 }
0x15c2   : > { %v9717_v33 = vsel %vm1480_vm9, %v9703_v51, %v9716_v46  ;;  %v8668_v19 = vadd.f32 %v16173_v12, %v7532_v7 }
0x15c3   : > { %v9721_v17 = vadd.f32 %v9717_v33, %v9333_v35 }
0x15c5   : > { %v9723_v52 = vadd.f32 %v16170_v50, %v9721_v17 }
0x15c7   : > { %v9729_v23 = vsel %vm1898_vm10, %v9723_v52, -inf  ;;  %v9725_v25 = vadd.f32 %v9723_v52, %v8668_v19 }
0x15c8   : > { %9730 = vmax.xlane.f32.xlu1 %v9729_v23 }
0x15c9   : > { %9927 = vst.msk [vmem:[%s16493_s27 + $0x8] sm:$0xff] %vm1898_vm10, %v9725_v25 }
0x1649   : > { %v9728_v48 = vpop.xlane.xlu0 %9727 }
0x164a   : > { %v9732_v37 = vsub.f32 %v9722_v36, %v9728_v48 }
0x164c   : > { %v9734_v2 = vmul.f32 1.442695, %v9732_v37 }
0x164e   : > { %10609 = vpow2.f32 %v9734_v2 }
0x1651   : > { %v9731_v6 = vpop.xlane.xlu1 %9730 }
0x1652   : > { %v9733_v24 = vsub.f32 %v9723_v52, %v9731_v6 }
0x1654   : > { %v9736_v31 = vmul.f32 1.442695, %v9733_v24 }
0x1656   : > { %10611 = vpow2.f32 %v9736_v31 }
0x165b   : > { %v10610_v21 = vpop.eup %10609 }
0x165c   : > { %v9738_v43 = vsel %vm1898_vm10, %v10610_v21, 0.0 }
0x165d   : > { %9739 = vadd.xlane.f32.xlu0 %v9738_v43 }
0x1663   : > { %v10612_v12 = vpop.eup %10611 }
0x1664   : > { %v9741_v50 = vsel %vm1898_vm10, %v10612_v12, 0.0 }
0x1665   : > { %9742 = vadd.xlane.f32.xlu1 %v9741_v50 }
0x166c   : > { %v10467_v26 = vpop.f32.mrf.mxu1 }
0x166e   : > { %v8769_v10 = vpop.f32.mrf.mxu1 }
0x166f   : > { %10470 = vmatprep.mubr.msk.f32.mxu1 %vm1191_vm1, %v8769_v10 }
0x1670   : > { %10471 = vmatmul.mubr.msk.f32.vlgmr.msra.gmra.mxu1 %vm1191_vm1, %v10467_v26 }
0x1673   : > { %9750 = vrot.lane.b32.xlu0 %v17623_v56, %s17622_s29 }
0x1676   : > { %9748 = vrot.lane.b32.xlu1 %v17603_v49, %s17622_s29 }
0x16e6   : > { %v9740_v55 = vpop.xlane.xlu0 %9739 }
0x16e7   : > { %10613 = vrcp.f32 %v9740_v55 }
0x16ea   : > { %v9751_v42 = vpop.permute.xlu0 %9750 }
0x16eb   : > { %10480 = vmatprep.subr.mxu1 %v9751_v42 }
0x16ec   : > { %10481 = vmatpush3.msra.mxu1 %v9751_v42 }
0x16ee   : > { %v9743_v58 = vpop.xlane.xlu1 %9742 }
0x16ef   : > { %10615 = vrcp.f32 %v9743_v58 }
0x16f2   : > { %v9749_v14 = vpop.permute.xlu1 %9748 }
0x16f3   : > { %10482 = vmatprep.subr.mxu1 %v9749_v14 }
0x16f4   : > { %v10614_v15 = vpop.eup %10613  ;;  %10483 = vmatpush3.msra.mxu1 %v9749_v14 }
0x16f5   : > { %v9746_v3 = vmul.f32 %v10614_v15, %v10610_v21  ;;  %10487 = vmatprep.subr.mxu1 %v10634_v13 }
0x16f7   : > { %10484 = vmatprep.mubr.msk.f32.mxu1 %vm1898_vm10, %v9746_v3 }
0x16fc   : > { %v10616_v49 = vpop.eup %10615 }
0x16fd   : > { %v9747_v63 = vmul.f32 %v10616_v49, %v10612_v12 }
0x16ff   : > { %10485 = vmatmul.mubr.msk.f32.vlgmr.msra.gmra.mxu1 %vm1898_vm10, %v9747_v63 }
0x1700   : > { %10488 = vmatpush3.msra.mxu1 %v10634_v13 }
0x1730   : > { %v10472_v30 = vpop.f32.mrf.mxu1 }
0x1731   : > { %v8860_v0 = vadd.f32 %v10472_v30, %v7801_v28 }
0x1732   : > { %v8850_v53 = vpop.f32.mrf.mxu1 }
0x17bf   : > { %v10486_v47 = vpop.f32.mrf.mxu1 }
0x17c1   : > { %v9826_v29 = vpop.f32.mrf.mxu1 }
0x17c2   : > { %10489 = vmatprep.mubr.msk.f32.mxu1 %vm1191_vm1, %v9826_v29 }
0x17c3   : > { %10490 = vmatmul.mubr.msk.f32.vlgmr.msra.gmra.mxu1 %vm1191_vm1, %v10486_v47 }
0x17c4   : > { %10651 = shalt.err (!%p10648_p3)
}
0x17c5   : > { %s10652_s20 = scalar_lea.hbm %s16527_s25, 256  ;;  %s10656_s29 = scalar_lea.hbm %s16606_s19, 4096 }
0x17c6   : > { %p10653_p4 = scmp.ne.s32.totalorder %s16527_s25, %s10652_s20  ;;  %p10657_p9 = scmp.lt.s32.totalorder %s16527_s25, %s16606_s19 }
0x17c7   : > { %p10658_p10 = scmp.lt.s32.totalorder %s10656_s29, %s10652_s20 }
0x17c8   : > { %p10654_p7 = pnand %p10653_p4, %p10849_p5 }
0x17c9   : > { %p10659_p11 = por %p10658_p10, %p10657_p9 }
0x17ca   : > { %p10655_p8 = pneg %p10654_p7 }
0x17cc   : > { %p10660_p12 = pnand %p10659_p11, %p10655_p8 }
0x17ce   : > { %10663 = shalt.err (!%p10660_p12)
}
0x17cf   : > { %s10709_s4 = smov 128   ;;  %s10710_s5 = smov 8   ;;  %v7796_v57 = vadd.f32 %v16507_v61, %v16144_v41  ;;  %v10635_v44 = vld [vmem:[%s16603_s16] ss:$0 sm:$0xff]  ;;  %v10636_v11 = vld [vmem:[%s10867_s24 + $0x8] sm:$0xff] }
0x17d0   : > { %10492 = dma.vmem_to_hbm [thread:$0]  (%p10849_p5), %s16530_s22, 256, %s16527_s25, %s16534_s2, %s10709_s4, %s10709_s4, %s10710_s5  }
0x17d1   : > { %v8859_v40 = vadd.f32 %v8850_v53, %v7796_v57  ;;  %s640_s26 = scalar_lea.vmem %s16604_s17, %s10861_s28  ;;  %v10637_v41 = vld [vmem:[%s10867_s24] sm:$0xff] }
0x1883   : > { %v10491_v27 = vpop.f32.mrf.mxu1 }
0x1884   : > { %v9917_v9 = vadd.f32 %v10491_v27, %v8860_v0 }
0x1885   : > { %v9907_v45 = vpop.f32.mrf.mxu1 }
0x1886   : > { %v9919_v54 = vadd.f32 %v10635_v44, %v9917_v9  ;;  %v9916_v20 = vadd.f32 %v9907_v45, %v8859_v40 }
0x1888   : > { %v9921_v4 = vadd.f32 %v10636_v11, %v9919_v54  ;;  %v9918_v5 = vadd.f32 %v10635_v44, %v9916_v20 }
0x188a   : > { %9923 = vst.msk [vmem:[%s640_s26 + $0x8] sm:$0xff] %vm667_vm0, %v9921_v4  ;;  %v9920_v36 = vadd.f32 %v10637_v41, %v9918_v5 }
0x188c   : > { %9922 = vst.msk [vmem:[%s640_s26] sm:$0xff] %vm667_vm0, %v9920_v36 }
0x188d PF: > { %s17624_s3 = sld [smem:[#allocation5_spill]]  ;;  %p10498_p5 = scmp.ge.s32.totalorder %s10698_s21, 2 }
0x188f   : > { %p10495_p13 = pnand %p10498_p5, %p10853_p6 }
0x1891   : > { %p10496_p0 = pneg %p10495_p13 }
0x1893   : > { %s9989_s25 = sand.u32 1, %s17624_s3  }
0x1894   : > { %s9990_s22 = scalar_lea.sflag [#allocation3], %s9989_s25 }
0x1895   : > { %10681 = dma.done.wait (%p10496_p0), %s9990_s22, 256  }
0x1896   : > { %10683 = vsyncadd (%p10496_p0), %s9990_s22, 4294967040  ;;  %s17626_s21 = sld [smem:[#allocation7_spill]]  ;;  %s17629_s0 = smov %s10690_s30 }
0x1897   : > { %s17627_s28 = sld [smem:[#allocation6_spill]] }
0x1898   : > { %s17628_s20 = sld [smem:[#allocation8_spill]] }
0x189c   : > { %p30_p1 = scmp.ge.s32.totalorder %s17626_s21, 18  }
0x189d   : > { %s17630_s30 = smov %s17627_s28 }
0x189e   :  { %32 = sbr.rel (!%p30_p1) target bundleno = 11 (0xb), region = 150 }
0x18a3   :  { %9995 = vsyncpa [#allocation3], 1 }
0x18a4   :  { %9997 = vsyncpa [#allocation3 + $0x1], 1 }

</bundles_post_ra>
